<compile_context>
chip_gen: v7x
topology: tpu7x:2x2x1
jax: 0.10.0
libtpu: 0.0.40
codegen_flags: <defaults>
</compile_context>

<pallas_src>
import jax
import jax.numpy as jnp
import numpy as np
from jax.experimental import pallas as pl
from jax.experimental.pallas import tpu as pltpu


# Geometry from the torch module: 28x28 input, 5x5 convs with pad=2, 2x2 pools.
_W1P = 32            # conv1 padded row stride (28 + 2*2)
_M1 = 28 * _W1P      # conv1 output length on the padded-stride grid  = 896
_W2P = 18            # conv2 padded row stride (14 + 2*2)
_M2 = 14 * _W2P      # conv2 output length on the padded-stride grid  = 252


# ------------------------------ fused kernel --------------------------------

def _cnn_kernel(x_ref, w1_ref, b1_ref, g1_ref, w2_ref, b2_ref, g2_ref, wo_ref,
                bo_ref, o_ref, r1_s, a2_s, r2_s):
    f32 = jnp.float32

    # ---------------- conv1: 5x5, Cin=1 -> Cout=16, bias, ReLU ---------------
    # Cin == 1, so each tap is a rank-1 (16,1)*(1,896) update (cheap VPU FMAs).
    acc1 = jnp.zeros((16, _M1), f32)
    for kh in range(5):
        for kw in range(5):
            patch = x_ref[0, :, pl.ds(kh * _W1P + kw, _M1)]          # (1, 896)
            acc1 = acc1 + w1_ref[kh * 5 + kw] * patch                # (16,1)x(1,896)
    r1 = jnp.maximum(acc1 + b1_ref[...], 0.0)                        # (16, 896)

    # Stage in VMEM scratch; zero the tail so the pooling reads stay finite.
    r1_s[:, pl.ds(_M1, 64)] = jnp.zeros((16, 64), f32)
    r1_s[:, pl.ds(0, _M1)] = r1

    # ---------------- fused 2x2 max-pool #1 (offsets {0,1,32,33}) ------------
    m1 = jnp.maximum(
        jnp.maximum(r1_s[:, pl.ds(0, _M1)], r1_s[:, pl.ds(1, _M1)]),
        jnp.maximum(r1_s[:, pl.ds(_W1P, _M1)], r1_s[:, pl.ds(_W1P + 1, _M1)]))

    # Re-stride pooled values into conv2's zero-padded 18x18 grid (1 MXU matmul).
    a2 = jnp.dot(m1, g1_ref[...], preferred_element_type=f32)        # (16, 324)
    a2_s[:, pl.ds(324, 60)] = jnp.zeros((16, 60), f32)
    a2_s[:, pl.ds(0, 324)] = a2

    # ---------------- conv2: 5x5, 16 -> 32, bias, ReLU -----------------------
    # In-kernel im2col: 25 shifted (32,16)@(16,252) dots accumulated in f32.
    acc2 = jnp.zeros((32, _M2), f32)
    for kh in range(5):
        for kw in range(5):
            a_k = a2_s[:, pl.ds(kh * _W2P + kw, _M2)]                # (16, 252)
            acc2 = acc2 + jnp.dot(w2_ref[kh * 5 + kw], a_k,
                                  preferred_element_type=f32)
    r2 = jnp.maximum(acc2 + b2_ref[...], 0.0)                        # (32, 252)

    r2_s[:, pl.ds(_M2, 36)] = jnp.zeros((32, 36), f32)
    r2_s[:, pl.ds(0, _M2)] = r2

    # ---------------- fused 2x2 max-pool #2 (offsets {0,1,18,19}) ------------
    m2 = jnp.maximum(
        jnp.maximum(r2_s[:, pl.ds(0, _M2)], r2_s[:, pl.ds(1, _M2)]),
        jnp.maximum(r2_s[:, pl.ds(_W2P, _M2)], r2_s[:, pl.ds(_W2P + 1, _M2)]))

    # Gather the 7x7 pooled grid per channel -> (32, 49).
    z = jnp.dot(m2, g2_ref[...], preferred_element_type=f32)

    # ---------------- Linear(32*7*7 -> 10), torch (C,H,W) flatten order ------
    acc = bo_ref[...]                                                # (1, 10)
    for c in range(32):
        acc = acc + jnp.dot(z[c:c + 1, :], wo_ref[c],
                            preferred_element_type=f32)
    o_ref[0] = acc


# --------------------------- host-side constants -----------------------------

def make_cnn_constants(params):
    """Re-layout the torch parameters + build the exact 0/1 pool-gather matrices."""
    w1e = jnp.asarray(params["w1"]).reshape(16, 25).T.reshape(25, 16, 1)
    b1c = jnp.asarray(params["b1"]).reshape(16, 1)
    w2s = jnp.transpose(jnp.asarray(params["w2"]), (2, 3, 0, 1)).reshape(25, 32, 16)
    b2c = jnp.asarray(params["b2"]).reshape(32, 1)
    wor = jnp.asarray(params["wo"]).reshape(10, 32, 49).transpose(1, 2, 0)  # [c,p,n]
    boc = jnp.asarray(params["bo"]).reshape(1, 10)

    # Pool-1 gather: flat(28x32-grid) pooled position -> zero-padded 18x18 grid.
    g1 = np.zeros((_M1, 18 * 18), np.float32)
    for i2 in range(14):
        for j2 in range(14):
            g1[2 * i2 * _W1P + 2 * j2, (i2 + 2) * _W2P + (j2 + 2)] = 1.0
    # Pool-2 gather: flat(14x18-grid) pooled position -> 7x7 flat.
    g2 = np.zeros((_M2, 49), np.float32)
    for i3 in range(7):
        for j3 in range(7):
            g2[2 * i3 * _W2P + 2 * j3, 7 * i3 + j3] = 1.0

    return dict(w1e=w1e, b1=b1c, g1=jnp.asarray(g1), w2s=w2s, b2=b2c,
                g2=jnp.asarray(g2), wor=wor, bo=boc)


# ------------------------------ fused forward --------------------------------

def cnn_forward(x, consts):
    """x: (B, 1, 28, 28) NCHW.  Returns (B, 10) logits."""
    B = x.shape[0]
    xp = jnp.pad(x[:, 0], ((0, 0), (2, 2), (2, 2)))              # (B, 32, 32)
    xflat = xp.reshape(B, 1, 32 * 32)
    xflat = jnp.pad(xflat, ((0, 0), (0, 0), (0, 128)))           # (B, 1, 1152)

    out = pl.pallas_call(
        _cnn_kernel,
        out_shape=jax.ShapeDtypeStruct((B, 1, 10), jnp.float32),
        grid=(B,),
        in_specs=[
            pl.BlockSpec((1, 1, 1152), lambda b: (b, 0, 0)),     # padded image
            pl.BlockSpec((25, 16, 1), lambda b: (0, 0, 0)),      # conv1 taps
            pl.BlockSpec((16, 1), lambda b: (0, 0)),             # conv1 bias
            pl.BlockSpec((_M1, 324), lambda b: (0, 0)),          # pool1 gather
            pl.BlockSpec((25, 32, 16), lambda b: (0, 0, 0)),     # conv2 taps
            pl.BlockSpec((32, 1), lambda b: (0, 0)),             # conv2 bias
            pl.BlockSpec((_M2, 49), lambda b: (0, 0)),           # pool2 gather
            pl.BlockSpec((32, 49, 10), lambda b: (0, 0, 0)),     # linear weight
            pl.BlockSpec((1, 10), lambda b: (0, 0)),             # linear bias
        ],
        out_specs=pl.BlockSpec((1, 1, 10), lambda b: (b, 0, 0)),
        scratch_shapes=[
            pltpu.VMEM((16, 960), jnp.float32),                  # conv1 out (flat)
            pltpu.VMEM((16, 384), jnp.float32),                  # conv2 in  (padded)
            pltpu.VMEM((32, 288), jnp.float32),                  # conv2 out (flat)
        ],
        compiler_params=pltpu.CompilerParams(
            dimension_semantics=("parallel",),
            vmem_limit_bytes=32 * 1024 * 1024,
        ),
    )(xflat, consts["w1e"], consts["b1"], consts["g1"], consts["w2s"],
      consts["b2"], consts["g2"], consts["wor"], consts["bo"])
    return out.reshape(B, 10)


# ------------------------------ reference (JAX) ------------------------------

def cnn_forward_ref(x, params):
    dn = jax.lax.conv_dimension_numbers(x.shape, params["w1"].shape,
                                        ("NCHW", "OIHW", "NCHW"))

    def conv(x, w, b):
        y = jax.lax.conv_general_dilated(x, w, (1, 1), [(2, 2), (2, 2)],
                                         dimension_numbers=dn)
        return jnp.maximum(y + b.reshape(1, -1, 1, 1), 0.0)

    def pool(x):
        B, C, H, W = x.shape
        return x.reshape(B, C, H // 2, 2, W // 2, 2).max(axis=(3, 5))

    x = pool(conv(x, params["w1"], params["b1"]))
    x = pool(conv(x, params["w2"], params["b2"]))
    xf = x.reshape(x.shape[0], -1)
    return xf @ params["wo"].T + params["bo"]


# ---------------------------------- main -------------------------------------

if __name__ == "__main__":
    key = jax.random.PRNGKey(0)
    k_x, k_w1, k_b1, k_w2, k_b2, k_wo, k_bo = jax.random.split(key, 7)

    # Deterministic synthetic parameters (shapes from the torch module __init__).
    params = {
        "w1": jax.random.normal(k_w1, (16, 1, 5, 5), jnp.float32) * 0.1,
        "b1": jax.random.normal(k_b1, (16,), jnp.float32) * 0.1,
        "w2": jax.random.normal(k_w2, (32, 16, 5, 5), jnp.float32) * 0.05,
        "b2": jax.random.normal(k_b2, (32,), jnp.float32) * 0.1,
        "wo": jax.random.normal(k_wo, (10, 32 * 7 * 7), jnp.float32) * 0.02,
        "bo": jax.random.normal(k_bo, (10,), jnp.float32) * 0.1,
    }

    # MNIST-like input: batch=2, channels=1, 28x28 (required by the 32*7*7 Linear).
    x = jax.random.normal(k_x, (2, 1, 28, 28), jnp.float32)

    consts = make_cnn_constants(params)
    fwd = jax.jit(cnn_forward)
    out = jax.block_until_ready(fwd(x, consts))
    assert out.shape == (2, 10)

    ref = cnn_forward_ref(x, params)
    assert jnp.allclose(out, ref, rtol=1e-4, atol=1e-4), "mismatch vs JAX reference"

    print("KERNEL_OK")
</pallas_src>

<mosaic_0001>
module attributes {stable_mosaic.version = 11 : i64} {
  func.func @_cnn_kernel(%arg0: i32, %arg1: memref<1x1x1152xf32, #tpu.memory_space<vmem>>, %arg2: memref<25x16x1xf32, #tpu.memory_space<vmem>>, %arg3: memref<16x1xf32, #tpu.memory_space<vmem>>, %arg4: memref<896x324xf32, #tpu.memory_space<vmem>>, %arg5: memref<25x32x16xf32, #tpu.memory_space<vmem>>, %arg6: memref<32x1xf32, #tpu.memory_space<vmem>>, %arg7: memref<252x49xf32, #tpu.memory_space<vmem>>, %arg8: memref<32x49x10xf32, #tpu.memory_space<vmem>>, %arg9: memref<1x10xf32, #tpu.memory_space<vmem>>, %arg10: memref<1x1x10xf32, #tpu.memory_space<vmem>>, %arg11: memref<16x960xf32, #tpu.memory_space<vmem>>, %arg12: memref<16x384xf32, #tpu.memory_space<vmem>>, %arg13: memref<32x288xf32, #tpu.memory_space<vmem>>) attributes {dimension_semantics = [#tpu.dimension_semantics<parallel>], iteration_bounds = array<i64: 2>, scalar_prefetch = 0 : i64, scratch_operands = 3 : i64, tpu.core_type = #tpu.core_type<tc>, window_params = [{transform_indices = @transform_0, window_bounds = array<i64: 1, 1, 1152>}, {pipeline_mode = #tpu.pipeline_mode<synchronous>, transform_indices = @transform_1, window_bounds = array<i64: 25, 16, 1>}, {pipeline_mode = #tpu.pipeline_mode<synchronous>, transform_indices = @transform_2, window_bounds = array<i64: 16, 1>}, {pipeline_mode = #tpu.pipeline_mode<synchronous>, transform_indices = @transform_3, window_bounds = array<i64: 896, 324>}, {pipeline_mode = #tpu.pipeline_mode<synchronous>, transform_indices = @transform_4, window_bounds = array<i64: 25, 32, 16>}, {pipeline_mode = #tpu.pipeline_mode<synchronous>, transform_indices = @transform_5, window_bounds = array<i64: 32, 1>}, {pipeline_mode = #tpu.pipeline_mode<synchronous>, transform_indices = @transform_6, window_bounds = array<i64: 252, 49>}, {pipeline_mode = #tpu.pipeline_mode<synchronous>, transform_indices = @transform_7, window_bounds = array<i64: 32, 49, 10>}, {pipeline_mode = #tpu.pipeline_mode<synchronous>, transform_indices = @transform_8, window_bounds = array<i64: 1, 10>}, {transform_indices = @transform_9, window_bounds = array<i64: 1, 1, 10>}]} {
    %cst = arith.constant 0.000000e+00 : f32
    %0 = vector.broadcast %cst : f32 to vector<16x896xf32>
    %c0 = arith.constant 0 : index
    %c0_0 = arith.constant 0 : index
    %c0_1 = arith.constant 0 : index
    %1 = vector.load %arg1[%c0, %c0_0, %c0_1] : memref<1x1x1152xf32, #tpu.memory_space<vmem>>, vector<1x1x896xf32>
    %2 = vector.shape_cast %1 : vector<1x1x896xf32> to vector<1x896xf32>
    %c0_2 = arith.constant 0 : index
    %c0_3 = arith.constant 0 : index
    %c0_4 = arith.constant 0 : index
    %3 = vector.load %arg2[%c0_2, %c0_3, %c0_4] : memref<25x16x1xf32, #tpu.memory_space<vmem>>, vector<1x16x1xf32>
    %4 = vector.shape_cast %3 : vector<1x16x1xf32> to vector<16x1xf32>
    %5 = vector.broadcast %4 : vector<16x1xf32> to vector<16x896xf32>
    %6 = vector.broadcast %2 : vector<1x896xf32> to vector<16x896xf32>
    %7 = arith.mulf %5, %6 : vector<16x896xf32>
    %8 = arith.addf %0, %7 : vector<16x896xf32>
    %c0_5 = arith.constant 0 : index
    %c0_6 = arith.constant 0 : index
    %c1 = arith.constant 1 : index
    %9 = vector.load %arg1[%c0_5, %c0_6, %c1] : memref<1x1x1152xf32, #tpu.memory_space<vmem>>, vector<1x1x896xf32>
    %10 = vector.shape_cast %9 : vector<1x1x896xf32> to vector<1x896xf32>
    %c1_7 = arith.constant 1 : index
    %c0_8 = arith.constant 0 : index
    %c0_9 = arith.constant 0 : index
    %11 = vector.load %arg2[%c1_7, %c0_8, %c0_9] : memref<25x16x1xf32, #tpu.memory_space<vmem>>, vector<1x16x1xf32>
    %12 = vector.shape_cast %11 : vector<1x16x1xf32> to vector<16x1xf32>
    %13 = vector.broadcast %12 : vector<16x1xf32> to vector<16x896xf32>
    %14 = vector.broadcast %10 : vector<1x896xf32> to vector<16x896xf32>
    %15 = arith.mulf %13, %14 : vector<16x896xf32>
    %16 = arith.addf %8, %15 : vector<16x896xf32>
    %c0_10 = arith.constant 0 : index
    %c0_11 = arith.constant 0 : index
    %c2 = arith.constant 2 : index
    %17 = vector.load %arg1[%c0_10, %c0_11, %c2] : memref<1x1x1152xf32, #tpu.memory_space<vmem>>, vector<1x1x896xf32>
    %18 = vector.shape_cast %17 : vector<1x1x896xf32> to vector<1x896xf32>
    %c2_12 = arith.constant 2 : index
    %c0_13 = arith.constant 0 : index
    %c0_14 = arith.constant 0 : index
    %19 = vector.load %arg2[%c2_12, %c0_13, %c0_14] : memref<25x16x1xf32, #tpu.memory_space<vmem>>, vector<1x16x1xf32>
    %20 = vector.shape_cast %19 : vector<1x16x1xf32> to vector<16x1xf32>
    %21 = vector.broadcast %20 : vector<16x1xf32> to vector<16x896xf32>
    %22 = vector.broadcast %18 : vector<1x896xf32> to vector<16x896xf32>
    %23 = arith.mulf %21, %22 : vector<16x896xf32>
    %24 = arith.addf %16, %23 : vector<16x896xf32>
    %c0_15 = arith.constant 0 : index
    %c0_16 = arith.constant 0 : index
    %c3 = arith.constant 3 : index
    %25 = vector.load %arg1[%c0_15, %c0_16, %c3] : memref<1x1x1152xf32, #tpu.memory_space<vmem>>, vector<1x1x896xf32>
    %26 = vector.shape_cast %25 : vector<1x1x896xf32> to vector<1x896xf32>
    %c3_17 = arith.constant 3 : index
    %c0_18 = arith.constant 0 : index
    %c0_19 = arith.constant 0 : index
    %27 = vector.load %arg2[%c3_17, %c0_18, %c0_19] : memref<25x16x1xf32, #tpu.memory_space<vmem>>, vector<1x16x1xf32>
    %28 = vector.shape_cast %27 : vector<1x16x1xf32> to vector<16x1xf32>
    %29 = vector.broadcast %28 : vector<16x1xf32> to vector<16x896xf32>
    %30 = vector.broadcast %26 : vector<1x896xf32> to vector<16x896xf32>
    %31 = arith.mulf %29, %30 : vector<16x896xf32>
    %32 = arith.addf %24, %31 : vector<16x896xf32>
    %c0_20 = arith.constant 0 : index
    %c0_21 = arith.constant 0 : index
    %c4 = arith.constant 4 : index
    %33 = vector.load %arg1[%c0_20, %c0_21, %c4] : memref<1x1x1152xf32, #tpu.memory_space<vmem>>, vector<1x1x896xf32>
    %34 = vector.shape_cast %33 : vector<1x1x896xf32> to vector<1x896xf32>
    %c4_22 = arith.constant 4 : index
    %c0_23 = arith.constant 0 : index
    %c0_24 = arith.constant 0 : index
    %35 = vector.load %arg2[%c4_22, %c0_23, %c0_24] : memref<25x16x1xf32, #tpu.memory_space<vmem>>, vector<1x16x1xf32>
    %36 = vector.shape_cast %35 : vector<1x16x1xf32> to vector<16x1xf32>
    %37 = vector.broadcast %36 : vector<16x1xf32> to vector<16x896xf32>
    %38 = vector.broadcast %34 : vector<1x896xf32> to vector<16x896xf32>
    %39 = arith.mulf %37, %38 : vector<16x896xf32>
    %40 = arith.addf %32, %39 : vector<16x896xf32>
    %c0_25 = arith.constant 0 : index
    %c0_26 = arith.constant 0 : index
    %c32 = arith.constant 32 : index
    %41 = vector.load %arg1[%c0_25, %c0_26, %c32] : memref<1x1x1152xf32, #tpu.memory_space<vmem>>, vector<1x1x896xf32>
    %42 = vector.shape_cast %41 : vector<1x1x896xf32> to vector<1x896xf32>
    %c5 = arith.constant 5 : index
    %c0_27 = arith.constant 0 : index
    %c0_28 = arith.constant 0 : index
    %43 = vector.load %arg2[%c5, %c0_27, %c0_28] : memref<25x16x1xf32, #tpu.memory_space<vmem>>, vector<1x16x1xf32>
    %44 = vector.shape_cast %43 : vector<1x16x1xf32> to vector<16x1xf32>
    %45 = vector.broadcast %44 : vector<16x1xf32> to vector<16x896xf32>
    %46 = vector.broadcast %42 : vector<1x896xf32> to vector<16x896xf32>
    %47 = arith.mulf %45, %46 : vector<16x896xf32>
    %48 = arith.addf %40, %47 : vector<16x896xf32>
    %c0_29 = arith.constant 0 : index
    %c0_30 = arith.constant 0 : index
    %c33 = arith.constant 33 : index
    %49 = vector.load %arg1[%c0_29, %c0_30, %c33] : memref<1x1x1152xf32, #tpu.memory_space<vmem>>, vector<1x1x896xf32>
    %50 = vector.shape_cast %49 : vector<1x1x896xf32> to vector<1x896xf32>
    %c6 = arith.constant 6 : index
    %c0_31 = arith.constant 0 : index
    %c0_32 = arith.constant 0 : index
    %51 = vector.load %arg2[%c6, %c0_31, %c0_32] : memref<25x16x1xf32, #tpu.memory_space<vmem>>, vector<1x16x1xf32>
    %52 = vector.shape_cast %51 : vector<1x16x1xf32> to vector<16x1xf32>
    %53 = vector.broadcast %52 : vector<16x1xf32> to vector<16x896xf32>
    %54 = vector.broadcast %50 : vector<1x896xf32> to vector<16x896xf32>
    %55 = arith.mulf %53, %54 : vector<16x896xf32>
    %56 = arith.addf %48, %55 : vector<16x896xf32>
    %c0_33 = arith.constant 0 : index
    %c0_34 = arith.constant 0 : index
    %c34 = arith.constant 34 : index
    %57 = vector.load %arg1[%c0_33, %c0_34, %c34] : memref<1x1x1152xf32, #tpu.memory_space<vmem>>, vector<1x1x896xf32>
    %58 = vector.shape_cast %57 : vector<1x1x896xf32> to vector<1x896xf32>
    %c7 = arith.constant 7 : index
    %c0_35 = arith.constant 0 : index
    %c0_36 = arith.constant 0 : index
    %59 = vector.load %arg2[%c7, %c0_35, %c0_36] : memref<25x16x1xf32, #tpu.memory_space<vmem>>, vector<1x16x1xf32>
    %60 = vector.shape_cast %59 : vector<1x16x1xf32> to vector<16x1xf32>
    %61 = vector.broadcast %60 : vector<16x1xf32> to vector<16x896xf32>
    %62 = vector.broadcast %58 : vector<1x896xf32> to vector<16x896xf32>
    %63 = arith.mulf %61, %62 : vector<16x896xf32>
    %64 = arith.addf %56, %63 : vector<16x896xf32>
    %c0_37 = arith.constant 0 : index
    %c0_38 = arith.constant 0 : index
    %c35 = arith.constant 35 : index
    %65 = vector.load %arg1[%c0_37, %c0_38, %c35] : memref<1x1x1152xf32, #tpu.memory_space<vmem>>, vector<1x1x896xf32>
    %66 = vector.shape_cast %65 : vector<1x1x896xf32> to vector<1x896xf32>
    %c8 = arith.constant 8 : index
    %c0_39 = arith.constant 0 : index
    %c0_40 = arith.constant 0 : index
    %67 = vector.load %arg2[%c8, %c0_39, %c0_40] : memref<25x16x1xf32, #tpu.memory_space<vmem>>, vector<1x16x1xf32>
    %68 = vector.shape_cast %67 : vector<1x16x1xf32> to vector<16x1xf32>
    %69 = vector.broadcast %68 : vector<16x1xf32> to vector<16x896xf32>
    %70 = vector.broadcast %66 : vector<1x896xf32> to vector<16x896xf32>
    %71 = arith.mulf %69, %70 : vector<16x896xf32>
    %72 = arith.addf %64, %71 : vector<16x896xf32>
    %c0_41 = arith.constant 0 : index
    %c0_42 = arith.constant 0 : index
    %c36 = arith.constant 36 : index
    %73 = vector.load %arg1[%c0_41, %c0_42, %c36] : memref<1x1x1152xf32, #tpu.memory_space<vmem>>, vector<1x1x896xf32>
    %74 = vector.shape_cast %73 : vector<1x1x896xf32> to vector<1x896xf32>
    %c9 = arith.constant 9 : index
    %c0_43 = arith.constant 0 : index
    %c0_44 = arith.constant 0 : index
    %75 = vector.load %arg2[%c9, %c0_43, %c0_44] : memref<25x16x1xf32, #tpu.memory_space<vmem>>, vector<1x16x1xf32>
    %76 = vector.shape_cast %75 : vector<1x16x1xf32> to vector<16x1xf32>
    %77 = vector.broadcast %76 : vector<16x1xf32> to vector<16x896xf32>
    %78 = vector.broadcast %74 : vector<1x896xf32> to vector<16x896xf32>
    %79 = arith.mulf %77, %78 : vector<16x896xf32>
    %80 = arith.addf %72, %79 : vector<16x896xf32>
    %c0_45 = arith.constant 0 : index
    %c0_46 = arith.constant 0 : index
    %c64 = arith.constant 64 : index
    %81 = vector.load %arg1[%c0_45, %c0_46, %c64] : memref<1x1x1152xf32, #tpu.memory_space<vmem>>, vector<1x1x896xf32>
    %82 = vector.shape_cast %81 : vector<1x1x896xf32> to vector<1x896xf32>
    %c10 = arith.constant 10 : index
    %c0_47 = arith.constant 0 : index
    %c0_48 = arith.constant 0 : index
    %83 = vector.load %arg2[%c10, %c0_47, %c0_48] : memref<25x16x1xf32, #tpu.memory_space<vmem>>, vector<1x16x1xf32>
    %84 = vector.shape_cast %83 : vector<1x16x1xf32> to vector<16x1xf32>
    %85 = vector.broadcast %84 : vector<16x1xf32> to vector<16x896xf32>
    %86 = vector.broadcast %82 : vector<1x896xf32> to vector<16x896xf32>
    %87 = arith.mulf %85, %86 : vector<16x896xf32>
    %88 = arith.addf %80, %87 : vector<16x896xf32>
    %c0_49 = arith.constant 0 : index
    %c0_50 = arith.constant 0 : index
    %c65 = arith.constant 65 : index
    %89 = vector.load %arg1[%c0_49, %c0_50, %c65] : memref<1x1x1152xf32, #tpu.memory_space<vmem>>, vector<1x1x896xf32>
    %90 = vector.shape_cast %89 : vector<1x1x896xf32> to vector<1x896xf32>
    %c11 = arith.constant 11 : index
    %c0_51 = arith.constant 0 : index
    %c0_52 = arith.constant 0 : index
    %91 = vector.load %arg2[%c11, %c0_51, %c0_52] : memref<25x16x1xf32, #tpu.memory_space<vmem>>, vector<1x16x1xf32>
    %92 = vector.shape_cast %91 : vector<1x16x1xf32> to vector<16x1xf32>
    %93 = vector.broadcast %92 : vector<16x1xf32> to vector<16x896xf32>
    %94 = vector.broadcast %90 : vector<1x896xf32> to vector<16x896xf32>
    %95 = arith.mulf %93, %94 : vector<16x896xf32>
    %96 = arith.addf %88, %95 : vector<16x896xf32>
    %c0_53 = arith.constant 0 : index
    %c0_54 = arith.constant 0 : index
    %c66 = arith.constant 66 : index
    %97 = vector.load %arg1[%c0_53, %c0_54, %c66] : memref<1x1x1152xf32, #tpu.memory_space<vmem>>, vector<1x1x896xf32>
    %98 = vector.shape_cast %97 : vector<1x1x896xf32> to vector<1x896xf32>
    %c12 = arith.constant 12 : index
    %c0_55 = arith.constant 0 : index
    %c0_56 = arith.constant 0 : index
    %99 = vector.load %arg2[%c12, %c0_55, %c0_56] : memref<25x16x1xf32, #tpu.memory_space<vmem>>, vector<1x16x1xf32>
    %100 = vector.shape_cast %99 : vector<1x16x1xf32> to vector<16x1xf32>
    %101 = vector.broadcast %100 : vector<16x1xf32> to vector<16x896xf32>
    %102 = vector.broadcast %98 : vector<1x896xf32> to vector<16x896xf32>
    %103 = arith.mulf %101, %102 : vector<16x896xf32>
    %104 = arith.addf %96, %103 : vector<16x896xf32>
    %c0_57 = arith.constant 0 : index
    %c0_58 = arith.constant 0 : index
    %c67 = arith.constant 67 : index
    %105 = vector.load %arg1[%c0_57, %c0_58, %c67] : memref<1x1x1152xf32, #tpu.memory_space<vmem>>, vector<1x1x896xf32>
    %106 = vector.shape_cast %105 : vector<1x1x896xf32> to vector<1x896xf32>
    %c13 = arith.constant 13 : index
    %c0_59 = arith.constant 0 : index
    %c0_60 = arith.constant 0 : index
    %107 = vector.load %arg2[%c13, %c0_59, %c0_60] : memref<25x16x1xf32, #tpu.memory_space<vmem>>, vector<1x16x1xf32>
    %108 = vector.shape_cast %107 : vector<1x16x1xf32> to vector<16x1xf32>
    %109 = vector.broadcast %108 : vector<16x1xf32> to vector<16x896xf32>
    %110 = vector.broadcast %106 : vector<1x896xf32> to vector<16x896xf32>
    %111 = arith.mulf %109, %110 : vector<16x896xf32>
    %112 = arith.addf %104, %111 : vector<16x896xf32>
    %c0_61 = arith.constant 0 : index
    %c0_62 = arith.constant 0 : index
    %c68 = arith.constant 68 : index
    %113 = vector.load %arg1[%c0_61, %c0_62, %c68] : memref<1x1x1152xf32, #tpu.memory_space<vmem>>, vector<1x1x896xf32>
    %114 = vector.shape_cast %113 : vector<1x1x896xf32> to vector<1x896xf32>
    %c14 = arith.constant 14 : index
    %c0_63 = arith.constant 0 : index
    %c0_64 = arith.constant 0 : index
    %115 = vector.load %arg2[%c14, %c0_63, %c0_64] : memref<25x16x1xf32, #tpu.memory_space<vmem>>, vector<1x16x1xf32>
    %116 = vector.shape_cast %115 : vector<1x16x1xf32> to vector<16x1xf32>
    %117 = vector.broadcast %116 : vector<16x1xf32> to vector<16x896xf32>
    %118 = vector.broadcast %114 : vector<1x896xf32> to vector<16x896xf32>
    %119 = arith.mulf %117, %118 : vector<16x896xf32>
    %120 = arith.addf %112, %119 : vector<16x896xf32>
    %c0_65 = arith.constant 0 : index
    %c0_66 = arith.constant 0 : index
    %c96 = arith.constant 96 : index
    %121 = vector.load %arg1[%c0_65, %c0_66, %c96] : memref<1x1x1152xf32, #tpu.memory_space<vmem>>, vector<1x1x896xf32>
    %122 = vector.shape_cast %121 : vector<1x1x896xf32> to vector<1x896xf32>
    %c15 = arith.constant 15 : index
    %c0_67 = arith.constant 0 : index
    %c0_68 = arith.constant 0 : index
    %123 = vector.load %arg2[%c15, %c0_67, %c0_68] : memref<25x16x1xf32, #tpu.memory_space<vmem>>, vector<1x16x1xf32>
    %124 = vector.shape_cast %123 : vector<1x16x1xf32> to vector<16x1xf32>
    %125 = vector.broadcast %124 : vector<16x1xf32> to vector<16x896xf32>
    %126 = vector.broadcast %122 : vector<1x896xf32> to vector<16x896xf32>
    %127 = arith.mulf %125, %126 : vector<16x896xf32>
    %128 = arith.addf %120, %127 : vector<16x896xf32>
    %c0_69 = arith.constant 0 : index
    %c0_70 = arith.constant 0 : index
    %c97 = arith.constant 97 : index
    %129 = vector.load %arg1[%c0_69, %c0_70, %c97] : memref<1x1x1152xf32, #tpu.memory_space<vmem>>, vector<1x1x896xf32>
    %130 = vector.shape_cast %129 : vector<1x1x896xf32> to vector<1x896xf32>
    %c16 = arith.constant 16 : index
    %c0_71 = arith.constant 0 : index
    %c0_72 = arith.constant 0 : index
    %131 = vector.load %arg2[%c16, %c0_71, %c0_72] : memref<25x16x1xf32, #tpu.memory_space<vmem>>, vector<1x16x1xf32>
    %132 = vector.shape_cast %131 : vector<1x16x1xf32> to vector<16x1xf32>
    %133 = vector.broadcast %132 : vector<16x1xf32> to vector<16x896xf32>
    %134 = vector.broadcast %130 : vector<1x896xf32> to vector<16x896xf32>
    %135 = arith.mulf %133, %134 : vector<16x896xf32>
    %136 = arith.addf %128, %135 : vector<16x896xf32>
    %c0_73 = arith.constant 0 : index
    %c0_74 = arith.constant 0 : index
    %c98 = arith.constant 98 : index
    %137 = vector.load %arg1[%c0_73, %c0_74, %c98] : memref<1x1x1152xf32, #tpu.memory_space<vmem>>, vector<1x1x896xf32>
    %138 = vector.shape_cast %137 : vector<1x1x896xf32> to vector<1x896xf32>
    %c17 = arith.constant 17 : index
    %c0_75 = arith.constant 0 : index
    %c0_76 = arith.constant 0 : index
    %139 = vector.load %arg2[%c17, %c0_75, %c0_76] : memref<25x16x1xf32, #tpu.memory_space<vmem>>, vector<1x16x1xf32>
    %140 = vector.shape_cast %139 : vector<1x16x1xf32> to vector<16x1xf32>
    %141 = vector.broadcast %140 : vector<16x1xf32> to vector<16x896xf32>
    %142 = vector.broadcast %138 : vector<1x896xf32> to vector<16x896xf32>
    %143 = arith.mulf %141, %142 : vector<16x896xf32>
    %144 = arith.addf %136, %143 : vector<16x896xf32>
    %c0_77 = arith.constant 0 : index
    %c0_78 = arith.constant 0 : index
    %c99 = arith.constant 99 : index
    %145 = vector.load %arg1[%c0_77, %c0_78, %c99] : memref<1x1x1152xf32, #tpu.memory_space<vmem>>, vector<1x1x896xf32>
    %146 = vector.shape_cast %145 : vector<1x1x896xf32> to vector<1x896xf32>
    %c18 = arith.constant 18 : index
    %c0_79 = arith.constant 0 : index
    %c0_80 = arith.constant 0 : index
    %147 = vector.load %arg2[%c18, %c0_79, %c0_80] : memref<25x16x1xf32, #tpu.memory_space<vmem>>, vector<1x16x1xf32>
    %148 = vector.shape_cast %147 : vector<1x16x1xf32> to vector<16x1xf32>
    %149 = vector.broadcast %148 : vector<16x1xf32> to vector<16x896xf32>
    %150 = vector.broadcast %146 : vector<1x896xf32> to vector<16x896xf32>
    %151 = arith.mulf %149, %150 : vector<16x896xf32>
    %152 = arith.addf %144, %151 : vector<16x896xf32>
    %c0_81 = arith.constant 0 : index
    %c0_82 = arith.constant 0 : index
    %c100 = arith.constant 100 : index
    %153 = vector.load %arg1[%c0_81, %c0_82, %c100] : memref<1x1x1152xf32, #tpu.memory_space<vmem>>, vector<1x1x896xf32>
    %154 = vector.shape_cast %153 : vector<1x1x896xf32> to vector<1x896xf32>
    %c19 = arith.constant 19 : index
    %c0_83 = arith.constant 0 : index
    %c0_84 = arith.constant 0 : index
    %155 = vector.load %arg2[%c19, %c0_83, %c0_84] : memref<25x16x1xf32, #tpu.memory_space<vmem>>, vector<1x16x1xf32>
    %156 = vector.shape_cast %155 : vector<1x16x1xf32> to vector<16x1xf32>
    %157 = vector.broadcast %156 : vector<16x1xf32> to vector<16x896xf32>
    %158 = vector.broadcast %154 : vector<1x896xf32> to vector<16x896xf32>
    %159 = arith.mulf %157, %158 : vector<16x896xf32>
    %160 = arith.addf %152, %159 : vector<16x896xf32>
    %c0_85 = arith.constant 0 : index
    %c0_86 = arith.constant 0 : index
    %c128 = arith.constant 128 : index
    %161 = vector.load %arg1[%c0_85, %c0_86, %c128] : memref<1x1x1152xf32, #tpu.memory_space<vmem>>, vector<1x1x896xf32>
    %162 = vector.shape_cast %161 : vector<1x1x896xf32> to vector<1x896xf32>
    %c20 = arith.constant 20 : index
    %c0_87 = arith.constant 0 : index
    %c0_88 = arith.constant 0 : index
    %163 = vector.load %arg2[%c20, %c0_87, %c0_88] : memref<25x16x1xf32, #tpu.memory_space<vmem>>, vector<1x16x1xf32>
    %164 = vector.shape_cast %163 : vector<1x16x1xf32> to vector<16x1xf32>
    %165 = vector.broadcast %164 : vector<16x1xf32> to vector<16x896xf32>
    %166 = vector.broadcast %162 : vector<1x896xf32> to vector<16x896xf32>
    %167 = arith.mulf %165, %166 : vector<16x896xf32>
    %168 = arith.addf %160, %167 : vector<16x896xf32>
    %c0_89 = arith.constant 0 : index
    %c0_90 = arith.constant 0 : index
    %c129 = arith.constant 129 : index
    %169 = vector.load %arg1[%c0_89, %c0_90, %c129] : memref<1x1x1152xf32, #tpu.memory_space<vmem>>, vector<1x1x896xf32>
    %170 = vector.shape_cast %169 : vector<1x1x896xf32> to vector<1x896xf32>
    %c21 = arith.constant 21 : index
    %c0_91 = arith.constant 0 : index
    %c0_92 = arith.constant 0 : index
    %171 = vector.load %arg2[%c21, %c0_91, %c0_92] : memref<25x16x1xf32, #tpu.memory_space<vmem>>, vector<1x16x1xf32>
    %172 = vector.shape_cast %171 : vector<1x16x1xf32> to vector<16x1xf32>
    %173 = vector.broadcast %172 : vector<16x1xf32> to vector<16x896xf32>
    %174 = vector.broadcast %170 : vector<1x896xf32> to vector<16x896xf32>
    %175 = arith.mulf %173, %174 : vector<16x896xf32>
    %176 = arith.addf %168, %175 : vector<16x896xf32>
    %c0_93 = arith.constant 0 : index
    %c0_94 = arith.constant 0 : index
    %c130 = arith.constant 130 : index
    %177 = vector.load %arg1[%c0_93, %c0_94, %c130] : memref<1x1x1152xf32, #tpu.memory_space<vmem>>, vector<1x1x896xf32>
    %178 = vector.shape_cast %177 : vector<1x1x896xf32> to vector<1x896xf32>
    %c22 = arith.constant 22 : index
    %c0_95 = arith.constant 0 : index
    %c0_96 = arith.constant 0 : index
    %179 = vector.load %arg2[%c22, %c0_95, %c0_96] : memref<25x16x1xf32, #tpu.memory_space<vmem>>, vector<1x16x1xf32>
    %180 = vector.shape_cast %179 : vector<1x16x1xf32> to vector<16x1xf32>
    %181 = vector.broadcast %180 : vector<16x1xf32> to vector<16x896xf32>
    %182 = vector.broadcast %178 : vector<1x896xf32> to vector<16x896xf32>
    %183 = arith.mulf %181, %182 : vector<16x896xf32>
    %184 = arith.addf %176, %183 : vector<16x896xf32>
    %c0_97 = arith.constant 0 : index
    %c0_98 = arith.constant 0 : index
    %c131 = arith.constant 131 : index
    %185 = vector.load %arg1[%c0_97, %c0_98, %c131] : memref<1x1x1152xf32, #tpu.memory_space<vmem>>, vector<1x1x896xf32>
    %186 = vector.shape_cast %185 : vector<1x1x896xf32> to vector<1x896xf32>
    %c23 = arith.constant 23 : index
    %c0_99 = arith.constant 0 : index
    %c0_100 = arith.constant 0 : index
    %187 = vector.load %arg2[%c23, %c0_99, %c0_100] : memref<25x16x1xf32, #tpu.memory_space<vmem>>, vector<1x16x1xf32>
    %188 = vector.shape_cast %187 : vector<1x16x1xf32> to vector<16x1xf32>
    %189 = vector.broadcast %188 : vector<16x1xf32> to vector<16x896xf32>
    %190 = vector.broadcast %186 : vector<1x896xf32> to vector<16x896xf32>
    %191 = arith.mulf %189, %190 : vector<16x896xf32>
    %192 = arith.addf %184, %191 : vector<16x896xf32>
    %c0_101 = arith.constant 0 : index
    %c0_102 = arith.constant 0 : index
    %c132 = arith.constant 132 : index
    %193 = vector.load %arg1[%c0_101, %c0_102, %c132] : memref<1x1x1152xf32, #tpu.memory_space<vmem>>, vector<1x1x896xf32>
    %194 = vector.shape_cast %193 : vector<1x1x896xf32> to vector<1x896xf32>
    %c24 = arith.constant 24 : index
    %c0_103 = arith.constant 0 : index
    %c0_104 = arith.constant 0 : index
    %195 = vector.load %arg2[%c24, %c0_103, %c0_104] : memref<25x16x1xf32, #tpu.memory_space<vmem>>, vector<1x16x1xf32>
    %196 = vector.shape_cast %195 : vector<1x16x1xf32> to vector<16x1xf32>
    %197 = vector.broadcast %196 : vector<16x1xf32> to vector<16x896xf32>
    %198 = vector.broadcast %194 : vector<1x896xf32> to vector<16x896xf32>
    %199 = arith.mulf %197, %198 : vector<16x896xf32>
    %200 = arith.addf %192, %199 : vector<16x896xf32>
    %c0_105 = arith.constant 0 : index
    %c0_106 = arith.constant 0 : index
    %201 = vector.load %arg3[%c0_105, %c0_106] : memref<16x1xf32, #tpu.memory_space<vmem>>, vector<16x1xf32>
    %202 = vector.broadcast %201 : vector<16x1xf32> to vector<16x896xf32>
    %203 = arith.addf %200, %202 : vector<16x896xf32>
    %cst_107 = arith.constant 0.000000e+00 : f32
    %204 = vector.broadcast %cst_107 : f32 to vector<16x896xf32>
    %205 = arith.maximumf %203, %204 : vector<16x896xf32>
    %cst_108 = arith.constant 0.000000e+00 : f32
    %206 = vector.broadcast %cst_108 : f32 to vector<16x64xf32>
    %c0_109 = arith.constant 0 : index
    %c896 = arith.constant 896 : index
    %207 = vector.load %arg11[%c0_109, %c896] : memref<16x960xf32, #tpu.memory_space<vmem>>, vector<16x64xf32>
    tpu.vector_store %arg11[%c0_109, %c896], %206 {strides = array<i32>} : memref<16x960xf32, #tpu.memory_space<vmem>>, vector<16x64xf32>,
    %c0_110 = arith.constant 0 : index
    %c0_111 = arith.constant 0 : index
    %208 = vector.load %arg11[%c0_110, %c0_111] : memref<16x960xf32, #tpu.memory_space<vmem>>, vector<16x896xf32>
    tpu.vector_store %arg11[%c0_110, %c0_111], %205 {strides = array<i32>} : memref<16x960xf32, #tpu.memory_space<vmem>>, vector<16x896xf32>,
    %c0_112 = arith.constant 0 : index
    %c0_113 = arith.constant 0 : index
    %209 = vector.load %arg11[%c0_112, %c0_113] : memref<16x960xf32, #tpu.memory_space<vmem>>, vector<16x896xf32>
    %c0_114 = arith.constant 0 : index
    %c1_115 = arith.constant 1 : index
    %210 = vector.load %arg11[%c0_114, %c1_115] : memref<16x960xf32, #tpu.memory_space<vmem>>, vector<16x896xf32>
    %211 = arith.maximumf %209, %210 : vector<16x896xf32>
    %c0_116 = arith.constant 0 : index
    %c32_117 = arith.constant 32 : index
    %212 = vector.load %arg11[%c0_116, %c32_117] : memref<16x960xf32, #tpu.memory_space<vmem>>, vector<16x896xf32>
    %c0_118 = arith.constant 0 : index
    %c33_119 = arith.constant 33 : index
    %213 = vector.load %arg11[%c0_118, %c33_119] : memref<16x960xf32, #tpu.memory_space<vmem>>, vector<16x896xf32>
    %214 = arith.maximumf %212, %213 : vector<16x896xf32>
    %215 = arith.maximumf %211, %214 : vector<16x896xf32>
    %c0_120 = arith.constant 0 : index
    %c0_121 = arith.constant 0 : index
    %216 = vector.load %arg4[%c0_120, %c0_121] : memref<896x324xf32, #tpu.memory_space<vmem>>, vector<896x324xf32>
    %cst_122 = arith.constant dense<0.000000e+00> : vector<16x324xf32>
    %217 = tpu.matmul %215, %216, %cst_122 {dimension_numbers = #tpu.dot_dimension_numbers<[1], [0], [0], [1], [0, 0, 1, 1], [], []>} : vector<16x896xf32>, vector<896x324xf32>, vector<16x324xf32> -> vector<16x324xf32>
    %cst_123 = arith.constant 0.000000e+00 : f32
    %218 = vector.broadcast %cst_123 : f32 to vector<16x60xf32>
    %c0_124 = arith.constant 0 : index
    %c324 = arith.constant 324 : index
    %219 = vector.load %arg12[%c0_124, %c324] : memref<16x384xf32, #tpu.memory_space<vmem>>, vector<16x60xf32>
    tpu.vector_store %arg12[%c0_124, %c324], %218 {strides = array<i32>} : memref<16x384xf32, #tpu.memory_space<vmem>>, vector<16x60xf32>,
    %c0_125 = arith.constant 0 : index
    %c0_126 = arith.constant 0 : index
    %220 = vector.load %arg12[%c0_125, %c0_126] : memref<16x384xf32, #tpu.memory_space<vmem>>, vector<16x324xf32>
    tpu.vector_store %arg12[%c0_125, %c0_126], %217 {strides = array<i32>} : memref<16x384xf32, #tpu.memory_space<vmem>>, vector<16x324xf32>,
    %cst_127 = arith.constant 0.000000e+00 : f32
    %221 = vector.broadcast %cst_127 : f32 to vector<32x252xf32>
    %c0_128 = arith.constant 0 : index
    %c0_129 = arith.constant 0 : index
    %222 = vector.load %arg12[%c0_128, %c0_129] : memref<16x384xf32, #tpu.memory_space<vmem>>, vector<16x252xf32>
    %c0_130 = arith.constant 0 : index
    %c0_131 = arith.constant 0 : index
    %c0_132 = arith.constant 0 : index
    %223 = vector.load %arg5[%c0_130, %c0_131, %c0_132] : memref<25x32x16xf32, #tpu.memory_space<vmem>>, vector<1x32x16xf32>
    %224 = vector.shape_cast %223 : vector<1x32x16xf32> to vector<32x16xf32>
    %cst_133 = arith.constant dense<0.000000e+00> : vector<32x252xf32>
    %225 = tpu.matmul %224, %222, %cst_133 {dimension_numbers = #tpu.dot_dimension_numbers<[1], [0], [0], [1], [0, 0, 1, 1], [], []>} : vector<32x16xf32>, vector<16x252xf32>, vector<32x252xf32> -> vector<32x252xf32>
    %226 = arith.addf %221, %225 : vector<32x252xf32>
    %c0_134 = arith.constant 0 : index
    %c1_135 = arith.constant 1 : index
    %227 = vector.load %arg12[%c0_134, %c1_135] : memref<16x384xf32, #tpu.memory_space<vmem>>, vector<16x252xf32>
    %c1_136 = arith.constant 1 : index
    %c0_137 = arith.constant 0 : index
    %c0_138 = arith.constant 0 : index
    %228 = vector.load %arg5[%c1_136, %c0_137, %c0_138] : memref<25x32x16xf32, #tpu.memory_space<vmem>>, vector<1x32x16xf32>
    %229 = vector.shape_cast %228 : vector<1x32x16xf32> to vector<32x16xf32>
    %cst_139 = arith.constant dense<0.000000e+00> : vector<32x252xf32>
    %230 = tpu.matmul %229, %227, %cst_139 {dimension_numbers = #tpu.dot_dimension_numbers<[1], [0], [0], [1], [0, 0, 1, 1], [], []>} : vector<32x16xf32>, vector<16x252xf32>, vector<32x252xf32> -> vector<32x252xf32>
    %231 = arith.addf %226, %230 : vector<32x252xf32>
    %c0_140 = arith.constant 0 : index
    %c2_141 = arith.constant 2 : index
    %232 = vector.load %arg12[%c0_140, %c2_141] : memref<16x384xf32, #tpu.memory_space<vmem>>, vector<16x252xf32>
    %c2_142 = arith.constant 2 : index
    %c0_143 = arith.constant 0 : index
    %c0_144 = arith.constant 0 : index
    %233 = vector.load %arg5[%c2_142, %c0_143, %c0_144] : memref<25x32x16xf32, #tpu.memory_space<vmem>>, vector<1x32x16xf32>
    %234 = vector.shape_cast %233 : vector<1x32x16xf32> to vector<32x16xf32>
    %cst_145 = arith.constant dense<0.000000e+00> : vector<32x252xf32>
    %235 = tpu.matmul %234, %232, %cst_145 {dimension_numbers = #tpu.dot_dimension_numbers<[1], [0], [0], [1], [0, 0, 1, 1], [], []>} : vector<32x16xf32>, vector<16x252xf32>, vector<32x252xf32> -> vector<32x252xf32>
    %236 = arith.addf %231, %235 : vector<32x252xf32>
    %c0_146 = arith.constant 0 : index
    %c3_147 = arith.constant 3 : index
    %237 = vector.load %arg12[%c0_146, %c3_147] : memref<16x384xf32, #tpu.memory_space<vmem>>, vector<16x252xf32>
    %c3_148 = arith.constant 3 : index
    %c0_149 = arith.constant 0 : index
    %c0_150 = arith.constant 0 : index
    %238 = vector.load %arg5[%c3_148, %c0_149, %c0_150] : memref<25x32x16xf32, #tpu.memory_space<vmem>>, vector<1x32x16xf32>
    %239 = vector.shape_cast %238 : vector<1x32x16xf32> to vector<32x16xf32>
    %cst_151 = arith.constant dense<0.000000e+00> : vector<32x252xf32>
    %240 = tpu.matmul %239, %237, %cst_151 {dimension_numbers = #tpu.dot_dimension_numbers<[1], [0], [0], [1], [0, 0, 1, 1], [], []>} : vector<32x16xf32>, vector<16x252xf32>, vector<32x252xf32> -> vector<32x252xf32>
    %241 = arith.addf %236, %240 : vector<32x252xf32>
    %c0_152 = arith.constant 0 : index
    %c4_153 = arith.constant 4 : index
    %242 = vector.load %arg12[%c0_152, %c4_153] : memref<16x384xf32, #tpu.memory_space<vmem>>, vector<16x252xf32>
    %c4_154 = arith.constant 4 : index
    %c0_155 = arith.constant 0 : index
    %c0_156 = arith.constant 0 : index
    %243 = vector.load %arg5[%c4_154, %c0_155, %c0_156] : memref<25x32x16xf32, #tpu.memory_space<vmem>>, vector<1x32x16xf32>
    %244 = vector.shape_cast %243 : vector<1x32x16xf32> to vector<32x16xf32>
    %cst_157 = arith.constant dense<0.000000e+00> : vector<32x252xf32>
    %245 = tpu.matmul %244, %242, %cst_157 {dimension_numbers = #tpu.dot_dimension_numbers<[1], [0], [0], [1], [0, 0, 1, 1], [], []>} : vector<32x16xf32>, vector<16x252xf32>, vector<32x252xf32> -> vector<32x252xf32>
    %246 = arith.addf %241, %245 : vector<32x252xf32>
    %c0_158 = arith.constant 0 : index
    %c18_159 = arith.constant 18 : index
    %247 = vector.load %arg12[%c0_158, %c18_159] : memref<16x384xf32, #tpu.memory_space<vmem>>, vector<16x252xf32>
    %c5_160 = arith.constant 5 : index
    %c0_161 = arith.constant 0 : index
    %c0_162 = arith.constant 0 : index
    %248 = vector.load %arg5[%c5_160, %c0_161, %c0_162] : memref<25x32x16xf32, #tpu.memory_space<vmem>>, vector<1x32x16xf32>
    %249 = vector.shape_cast %248 : vector<1x32x16xf32> to vector<32x16xf32>
    %cst_163 = arith.constant dense<0.000000e+00> : vector<32x252xf32>
    %250 = tpu.matmul %249, %247, %cst_163 {dimension_numbers = #tpu.dot_dimension_numbers<[1], [0], [0], [1], [0, 0, 1, 1], [], []>} : vector<32x16xf32>, vector<16x252xf32>, vector<32x252xf32> -> vector<32x252xf32>
    %251 = arith.addf %246, %250 : vector<32x252xf32>
    %c0_164 = arith.constant 0 : index
    %c19_165 = arith.constant 19 : index
    %252 = vector.load %arg12[%c0_164, %c19_165] : memref<16x384xf32, #tpu.memory_space<vmem>>, vector<16x252xf32>
    %c6_166 = arith.constant 6 : index
    %c0_167 = arith.constant 0 : index
    %c0_168 = arith.constant 0 : index
    %253 = vector.load %arg5[%c6_166, %c0_167, %c0_168] : memref<25x32x16xf32, #tpu.memory_space<vmem>>, vector<1x32x16xf32>
    %254 = vector.shape_cast %253 : vector<1x32x16xf32> to vector<32x16xf32>
    %cst_169 = arith.constant dense<0.000000e+00> : vector<32x252xf32>
    %255 = tpu.matmul %254, %252, %cst_169 {dimension_numbers = #tpu.dot_dimension_numbers<[1], [0], [0], [1], [0, 0, 1, 1], [], []>} : vector<32x16xf32>, vector<16x252xf32>, vector<32x252xf32> -> vector<32x252xf32>
    %256 = arith.addf %251, %255 : vector<32x252xf32>
    %c0_170 = arith.constant 0 : index
    %c20_171 = arith.constant 20 : index
    %257 = vector.load %arg12[%c0_170, %c20_171] : memref<16x384xf32, #tpu.memory_space<vmem>>, vector<16x252xf32>
    %c7_172 = arith.constant 7 : index
    %c0_173 = arith.constant 0 : index
    %c0_174 = arith.constant 0 : index
    %258 = vector.load %arg5[%c7_172, %c0_173, %c0_174] : memref<25x32x16xf32, #tpu.memory_space<vmem>>, vector<1x32x16xf32>
    %259 = vector.shape_cast %258 : vector<1x32x16xf32> to vector<32x16xf32>
    %cst_175 = arith.constant dense<0.000000e+00> : vector<32x252xf32>
    %260 = tpu.matmul %259, %257, %cst_175 {dimension_numbers = #tpu.dot_dimension_numbers<[1], [0], [0], [1], [0, 0, 1, 1], [], []>} : vector<32x16xf32>, vector<16x252xf32>, vector<32x252xf32> -> vector<32x252xf32>
    %261 = arith.addf %256, %260 : vector<32x252xf32>
    %c0_176 = arith.constant 0 : index
    %c21_177 = arith.constant 21 : index
    %262 = vector.load %arg12[%c0_176, %c21_177] : memref<16x384xf32, #tpu.memory_space<vmem>>, vector<16x252xf32>
    %c8_178 = arith.constant 8 : index
    %c0_179 = arith.constant 0 : index
    %c0_180 = arith.constant 0 : index
    %263 = vector.load %arg5[%c8_178, %c0_179, %c0_180] : memref<25x32x16xf32, #tpu.memory_space<vmem>>, vector<1x32x16xf32>
    %264 = vector.shape_cast %263 : vector<1x32x16xf32> to vector<32x16xf32>
    %cst_181 = arith.constant dense<0.000000e+00> : vector<32x252xf32>
    %265 = tpu.matmul %264, %262, %cst_181 {dimension_numbers = #tpu.dot_dimension_numbers<[1], [0], [0], [1], [0, 0, 1, 1], [], []>} : vector<32x16xf32>, vector<16x252xf32>, vector<32x252xf32> -> vector<32x252xf32>
    %266 = arith.addf %261, %265 : vector<32x252xf32>
    %c0_182 = arith.constant 0 : index
    %c22_183 = arith.constant 22 : index
    %267 = vector.load %arg12[%c0_182, %c22_183] : memref<16x384xf32, #tpu.memory_space<vmem>>, vector<16x252xf32>
    %c9_184 = arith.constant 9 : index
    %c0_185 = arith.constant 0 : index
    %c0_186 = arith.constant 0 : index
    %268 = vector.load %arg5[%c9_184, %c0_185, %c0_186] : memref<25x32x16xf32, #tpu.memory_space<vmem>>, vector<1x32x16xf32>
    %269 = vector.shape_cast %268 : vector<1x32x16xf32> to vector<32x16xf32>
    %cst_187 = arith.constant dense<0.000000e+00> : vector<32x252xf32>
    %270 = tpu.matmul %269, %267, %cst_187 {dimension_numbers = #tpu.dot_dimension_numbers<[1], [0], [0], [1], [0, 0, 1, 1], [], []>} : vector<32x16xf32>, vector<16x252xf32>, vector<32x252xf32> -> vector<32x252xf32>
    %271 = arith.addf %266, %270 : vector<32x252xf32>
    %c0_188 = arith.constant 0 : index
    %c36_189 = arith.constant 36 : index
    %272 = vector.load %arg12[%c0_188, %c36_189] : memref<16x384xf32, #tpu.memory_space<vmem>>, vector<16x252xf32>
    %c10_190 = arith.constant 10 : index
    %c0_191 = arith.constant 0 : index
    %c0_192 = arith.constant 0 : index
    %273 = vector.load %arg5[%c10_190, %c0_191, %c0_192] : memref<25x32x16xf32, #tpu.memory_space<vmem>>, vector<1x32x16xf32>
    %274 = vector.shape_cast %273 : vector<1x32x16xf32> to vector<32x16xf32>
    %cst_193 = arith.constant dense<0.000000e+00> : vector<32x252xf32>
    %275 = tpu.matmul %274, %272, %cst_193 {dimension_numbers = #tpu.dot_dimension_numbers<[1], [0], [0], [1], [0, 0, 1, 1], [], []>} : vector<32x16xf32>, vector<16x252xf32>, vector<32x252xf32> -> vector<32x252xf32>
    %276 = arith.addf %271, %275 : vector<32x252xf32>
    %c0_194 = arith.constant 0 : index
    %c37 = arith.constant 37 : index
    %277 = vector.load %arg12[%c0_194, %c37] : memref<16x384xf32, #tpu.memory_space<vmem>>, vector<16x252xf32>
    %c11_195 = arith.constant 11 : index
    %c0_196 = arith.constant 0 : index
    %c0_197 = arith.constant 0 : index
    %278 = vector.load %arg5[%c11_195, %c0_196, %c0_197] : memref<25x32x16xf32, #tpu.memory_space<vmem>>, vector<1x32x16xf32>
    %279 = vector.shape_cast %278 : vector<1x32x16xf32> to vector<32x16xf32>
    %cst_198 = arith.constant dense<0.000000e+00> : vector<32x252xf32>
    %280 = tpu.matmul %279, %277, %cst_198 {dimension_numbers = #tpu.dot_dimension_numbers<[1], [0], [0], [1], [0, 0, 1, 1], [], []>} : vector<32x16xf32>, vector<16x252xf32>, vector<32x252xf32> -> vector<32x252xf32>
    %281 = arith.addf %276, %280 : vector<32x252xf32>
    %c0_199 = arith.constant 0 : index
    %c38 = arith.constant 38 : index
    %282 = vector.load %arg12[%c0_199, %c38] : memref<16x384xf32, #tpu.memory_space<vmem>>, vector<16x252xf32>
    %c12_200 = arith.constant 12 : index
    %c0_201 = arith.constant 0 : index
    %c0_202 = arith.constant 0 : index
    %283 = vector.load %arg5[%c12_200, %c0_201, %c0_202] : memref<25x32x16xf32, #tpu.memory_space<vmem>>, vector<1x32x16xf32>
    %284 = vector.shape_cast %283 : vector<1x32x16xf32> to vector<32x16xf32>
    %cst_203 = arith.constant dense<0.000000e+00> : vector<32x252xf32>
    %285 = tpu.matmul %284, %282, %cst_203 {dimension_numbers = #tpu.dot_dimension_numbers<[1], [0], [0], [1], [0, 0, 1, 1], [], []>} : vector<32x16xf32>, vector<16x252xf32>, vector<32x252xf32> -> vector<32x252xf32>
    %286 = arith.addf %281, %285 : vector<32x252xf32>
    %c0_204 = arith.constant 0 : index
    %c39 = arith.constant 39 : index
    %287 = vector.load %arg12[%c0_204, %c39] : memref<16x384xf32, #tpu.memory_space<vmem>>, vector<16x252xf32>
    %c13_205 = arith.constant 13 : index
    %c0_206 = arith.constant 0 : index
    %c0_207 = arith.constant 0 : index
    %288 = vector.load %arg5[%c13_205, %c0_206, %c0_207] : memref<25x32x16xf32, #tpu.memory_space<vmem>>, vector<1x32x16xf32>
    %289 = vector.shape_cast %288 : vector<1x32x16xf32> to vector<32x16xf32>
    %cst_208 = arith.constant dense<0.000000e+00> : vector<32x252xf32>
    %290 = tpu.matmul %289, %287, %cst_208 {dimension_numbers = #tpu.dot_dimension_numbers<[1], [0], [0], [1], [0, 0, 1, 1], [], []>} : vector<32x16xf32>, vector<16x252xf32>, vector<32x252xf32> -> vector<32x252xf32>
    %291 = arith.addf %286, %290 : vector<32x252xf32>
    %c0_209 = arith.constant 0 : index
    %c40 = arith.constant 40 : index
    %292 = vector.load %arg12[%c0_209, %c40] : memref<16x384xf32, #tpu.memory_space<vmem>>, vector<16x252xf32>
    %c14_210 = arith.constant 14 : index
    %c0_211 = arith.constant 0 : index
    %c0_212 = arith.constant 0 : index
    %293 = vector.load %arg5[%c14_210, %c0_211, %c0_212] : memref<25x32x16xf32, #tpu.memory_space<vmem>>, vector<1x32x16xf32>
    %294 = vector.shape_cast %293 : vector<1x32x16xf32> to vector<32x16xf32>
    %cst_213 = arith.constant dense<0.000000e+00> : vector<32x252xf32>
    %295 = tpu.matmul %294, %292, %cst_213 {dimension_numbers = #tpu.dot_dimension_numbers<[1], [0], [0], [1], [0, 0, 1, 1], [], []>} : vector<32x16xf32>, vector<16x252xf32>, vector<32x252xf32> -> vector<32x252xf32>
    %296 = arith.addf %291, %295 : vector<32x252xf32>
    %c0_214 = arith.constant 0 : index
    %c54 = arith.constant 54 : index
    %297 = vector.load %arg12[%c0_214, %c54] : memref<16x384xf32, #tpu.memory_space<vmem>>, vector<16x252xf32>
    %c15_215 = arith.constant 15 : index
    %c0_216 = arith.constant 0 : index
    %c0_217 = arith.constant 0 : index
    %298 = vector.load %arg5[%c15_215, %c0_216, %c0_217] : memref<25x32x16xf32, #tpu.memory_space<vmem>>, vector<1x32x16xf32>
    %299 = vector.shape_cast %298 : vector<1x32x16xf32> to vector<32x16xf32>
    %cst_218 = arith.constant dense<0.000000e+00> : vector<32x252xf32>
    %300 = tpu.matmul %299, %297, %cst_218 {dimension_numbers = #tpu.dot_dimension_numbers<[1], [0], [0], [1], [0, 0, 1, 1], [], []>} : vector<32x16xf32>, vector<16x252xf32>, vector<32x252xf32> -> vector<32x252xf32>
    %301 = arith.addf %296, %300 : vector<32x252xf32>
    %c0_219 = arith.constant 0 : index
    %c55 = arith.constant 55 : index
    %302 = vector.load %arg12[%c0_219, %c55] : memref<16x384xf32, #tpu.memory_space<vmem>>, vector<16x252xf32>
    %c16_220 = arith.constant 16 : index
    %c0_221 = arith.constant 0 : index
    %c0_222 = arith.constant 0 : index
    %303 = vector.load %arg5[%c16_220, %c0_221, %c0_222] : memref<25x32x16xf32, #tpu.memory_space<vmem>>, vector<1x32x16xf32>
    %304 = vector.shape_cast %303 : vector<1x32x16xf32> to vector<32x16xf32>
    %cst_223 = arith.constant dense<0.000000e+00> : vector<32x252xf32>
    %305 = tpu.matmul %304, %302, %cst_223 {dimension_numbers = #tpu.dot_dimension_numbers<[1], [0], [0], [1], [0, 0, 1, 1], [], []>} : vector<32x16xf32>, vector<16x252xf32>, vector<32x252xf32> -> vector<32x252xf32>
    %306 = arith.addf %301, %305 : vector<32x252xf32>
    %c0_224 = arith.constant 0 : index
    %c56 = arith.constant 56 : index
    %307 = vector.load %arg12[%c0_224, %c56] : memref<16x384xf32, #tpu.memory_space<vmem>>, vector<16x252xf32>
    %c17_225 = arith.constant 17 : index
    %c0_226 = arith.constant 0 : index
    %c0_227 = arith.constant 0 : index
    %308 = vector.load %arg5[%c17_225, %c0_226, %c0_227] : memref<25x32x16xf32, #tpu.memory_space<vmem>>, vector<1x32x16xf32>
    %309 = vector.shape_cast %308 : vector<1x32x16xf32> to vector<32x16xf32>
    %cst_228 = arith.constant dense<0.000000e+00> : vector<32x252xf32>
    %310 = tpu.matmul %309, %307, %cst_228 {dimension_numbers = #tpu.dot_dimension_numbers<[1], [0], [0], [1], [0, 0, 1, 1], [], []>} : vector<32x16xf32>, vector<16x252xf32>, vector<32x252xf32> -> vector<32x252xf32>
    %311 = arith.addf %306, %310 : vector<32x252xf32>
    %c0_229 = arith.constant 0 : index
    %c57 = arith.constant 57 : index
    %312 = vector.load %arg12[%c0_229, %c57] : memref<16x384xf32, #tpu.memory_space<vmem>>, vector<16x252xf32>
    %c18_230 = arith.constant 18 : index
    %c0_231 = arith.constant 0 : index
    %c0_232 = arith.constant 0 : index
    %313 = vector.load %arg5[%c18_230, %c0_231, %c0_232] : memref<25x32x16xf32, #tpu.memory_space<vmem>>, vector<1x32x16xf32>
    %314 = vector.shape_cast %313 : vector<1x32x16xf32> to vector<32x16xf32>
    %cst_233 = arith.constant dense<0.000000e+00> : vector<32x252xf32>
    %315 = tpu.matmul %314, %312, %cst_233 {dimension_numbers = #tpu.dot_dimension_numbers<[1], [0], [0], [1], [0, 0, 1, 1], [], []>} : vector<32x16xf32>, vector<16x252xf32>, vector<32x252xf32> -> vector<32x252xf32>
    %316 = arith.addf %311, %315 : vector<32x252xf32>
    %c0_234 = arith.constant 0 : index
    %c58 = arith.constant 58 : index
    %317 = vector.load %arg12[%c0_234, %c58] : memref<16x384xf32, #tpu.memory_space<vmem>>, vector<16x252xf32>
    %c19_235 = arith.constant 19 : index
    %c0_236 = arith.constant 0 : index
    %c0_237 = arith.constant 0 : index
    %318 = vector.load %arg5[%c19_235, %c0_236, %c0_237] : memref<25x32x16xf32, #tpu.memory_space<vmem>>, vector<1x32x16xf32>
    %319 = vector.shape_cast %318 : vector<1x32x16xf32> to vector<32x16xf32>
    %cst_238 = arith.constant dense<0.000000e+00> : vector<32x252xf32>
    %320 = tpu.matmul %319, %317, %cst_238 {dimension_numbers = #tpu.dot_dimension_numbers<[1], [0], [0], [1], [0, 0, 1, 1], [], []>} : vector<32x16xf32>, vector<16x252xf32>, vector<32x252xf32> -> vector<32x252xf32>
    %321 = arith.addf %316, %320 : vector<32x252xf32>
    %c0_239 = arith.constant 0 : index
    %c72 = arith.constant 72 : index
    %322 = vector.load %arg12[%c0_239, %c72] : memref<16x384xf32, #tpu.memory_space<vmem>>, vector<16x252xf32>
    %c20_240 = arith.constant 20 : index
    %c0_241 = arith.constant 0 : index
    %c0_242 = arith.constant 0 : index
    %323 = vector.load %arg5[%c20_240, %c0_241, %c0_242] : memref<25x32x16xf32, #tpu.memory_space<vmem>>, vector<1x32x16xf32>
    %324 = vector.shape_cast %323 : vector<1x32x16xf32> to vector<32x16xf32>
    %cst_243 = arith.constant dense<0.000000e+00> : vector<32x252xf32>
    %325 = tpu.matmul %324, %322, %cst_243 {dimension_numbers = #tpu.dot_dimension_numbers<[1], [0], [0], [1], [0, 0, 1, 1], [], []>} : vector<32x16xf32>, vector<16x252xf32>, vector<32x252xf32> -> vector<32x252xf32>
    %326 = arith.addf %321, %325 : vector<32x252xf32>
    %c0_244 = arith.constant 0 : index
    %c73 = arith.constant 73 : index
    %327 = vector.load %arg12[%c0_244, %c73] : memref<16x384xf32, #tpu.memory_space<vmem>>, vector<16x252xf32>
    %c21_245 = arith.constant 21 : index
    %c0_246 = arith.constant 0 : index
    %c0_247 = arith.constant 0 : index
    %328 = vector.load %arg5[%c21_245, %c0_246, %c0_247] : memref<25x32x16xf32, #tpu.memory_space<vmem>>, vector<1x32x16xf32>
    %329 = vector.shape_cast %328 : vector<1x32x16xf32> to vector<32x16xf32>
    %cst_248 = arith.constant dense<0.000000e+00> : vector<32x252xf32>
    %330 = tpu.matmul %329, %327, %cst_248 {dimension_numbers = #tpu.dot_dimension_numbers<[1], [0], [0], [1], [0, 0, 1, 1], [], []>} : vector<32x16xf32>, vector<16x252xf32>, vector<32x252xf32> -> vector<32x252xf32>
    %331 = arith.addf %326, %330 : vector<32x252xf32>
    %c0_249 = arith.constant 0 : index
    %c74 = arith.constant 74 : index
    %332 = vector.load %arg12[%c0_249, %c74] : memref<16x384xf32, #tpu.memory_space<vmem>>, vector<16x252xf32>
    %c22_250 = arith.constant 22 : index
    %c0_251 = arith.constant 0 : index
    %c0_252 = arith.constant 0 : index
    %333 = vector.load %arg5[%c22_250, %c0_251, %c0_252] : memref<25x32x16xf32, #tpu.memory_space<vmem>>, vector<1x32x16xf32>
    %334 = vector.shape_cast %333 : vector<1x32x16xf32> to vector<32x16xf32>
    %cst_253 = arith.constant dense<0.000000e+00> : vector<32x252xf32>
    %335 = tpu.matmul %334, %332, %cst_253 {dimension_numbers = #tpu.dot_dimension_numbers<[1], [0], [0], [1], [0, 0, 1, 1], [], []>} : vector<32x16xf32>, vector<16x252xf32>, vector<32x252xf32> -> vector<32x252xf32>
    %336 = arith.addf %331, %335 : vector<32x252xf32>
    %c0_254 = arith.constant 0 : index
    %c75 = arith.constant 75 : index
    %337 = vector.load %arg12[%c0_254, %c75] : memref<16x384xf32, #tpu.memory_space<vmem>>, vector<16x252xf32>
    %c23_255 = arith.constant 23 : index
    %c0_256 = arith.constant 0 : index
    %c0_257 = arith.constant 0 : index
    %338 = vector.load %arg5[%c23_255, %c0_256, %c0_257] : memref<25x32x16xf32, #tpu.memory_space<vmem>>, vector<1x32x16xf32>
    %339 = vector.shape_cast %338 : vector<1x32x16xf32> to vector<32x16xf32>
    %cst_258 = arith.constant dense<0.000000e+00> : vector<32x252xf32>
    %340 = tpu.matmul %339, %337, %cst_258 {dimension_numbers = #tpu.dot_dimension_numbers<[1], [0], [0], [1], [0, 0, 1, 1], [], []>} : vector<32x16xf32>, vector<16x252xf32>, vector<32x252xf32> -> vector<32x252xf32>
    %341 = arith.addf %336, %340 : vector<32x252xf32>
    %c0_259 = arith.constant 0 : index
    %c76 = arith.constant 76 : index
    %342 = vector.load %arg12[%c0_259, %c76] : memref<16x384xf32, #tpu.memory_space<vmem>>, vector<16x252xf32>
    %c24_260 = arith.constant 24 : index
    %c0_261 = arith.constant 0 : index
    %c0_262 = arith.constant 0 : index
    %343 = vector.load %arg5[%c24_260, %c0_261, %c0_262] : memref<25x32x16xf32, #tpu.memory_space<vmem>>, vector<1x32x16xf32>
    %344 = vector.shape_cast %343 : vector<1x32x16xf32> to vector<32x16xf32>
    %cst_263 = arith.constant dense<0.000000e+00> : vector<32x252xf32>
    %345 = tpu.matmul %344, %342, %cst_263 {dimension_numbers = #tpu.dot_dimension_numbers<[1], [0], [0], [1], [0, 0, 1, 1], [], []>} : vector<32x16xf32>, vector<16x252xf32>, vector<32x252xf32> -> vector<32x252xf32>
    %346 = arith.addf %341, %345 : vector<32x252xf32>
    %c0_264 = arith.constant 0 : index
    %c0_265 = arith.constant 0 : index
    %347 = vector.load %arg6[%c0_264, %c0_265] : memref<32x1xf32, #tpu.memory_space<vmem>>, vector<32x1xf32>
    %348 = vector.broadcast %347 : vector<32x1xf32> to vector<32x252xf32>
    %349 = arith.addf %346, %348 : vector<32x252xf32>
    %cst_266 = arith.constant 0.000000e+00 : f32
    %350 = vector.broadcast %cst_266 : f32 to vector<32x252xf32>
    %351 = arith.maximumf %349, %350 : vector<32x252xf32>
    %cst_267 = arith.constant 0.000000e+00 : f32
    %352 = vector.broadcast %cst_267 : f32 to vector<32x36xf32>
    %c0_268 = arith.constant 0 : index
    %c252 = arith.constant 252 : index
    %353 = vector.load %arg13[%c0_268, %c252] : memref<32x288xf32, #tpu.memory_space<vmem>>, vector<32x36xf32>
    tpu.vector_store %arg13[%c0_268, %c252], %352 {strides = array<i32>} : memref<32x288xf32, #tpu.memory_space<vmem>>, vector<32x36xf32>,
    %c0_269 = arith.constant 0 : index
    %c0_270 = arith.constant 0 : index
    %354 = vector.load %arg13[%c0_269, %c0_270] : memref<32x288xf32, #tpu.memory_space<vmem>>, vector<32x252xf32>
    tpu.vector_store %arg13[%c0_269, %c0_270], %351 {strides = array<i32>} : memref<32x288xf32, #tpu.memory_space<vmem>>, vector<32x252xf32>,
    %c0_271 = arith.constant 0 : index
    %c0_272 = arith.constant 0 : index
    %355 = vector.load %arg13[%c0_271, %c0_272] : memref<32x288xf32, #tpu.memory_space<vmem>>, vector<32x252xf32>
    %c0_273 = arith.constant 0 : index
    %c1_274 = arith.constant 1 : index
    %356 = vector.load %arg13[%c0_273, %c1_274] : memref<32x288xf32, #tpu.memory_space<vmem>>, vector<32x252xf32>
    %357 = arith.maximumf %355, %356 : vector<32x252xf32>
    %c0_275 = arith.constant 0 : index
    %c18_276 = arith.constant 18 : index
    %358 = vector.load %arg13[%c0_275, %c18_276] : memref<32x288xf32, #tpu.memory_space<vmem>>, vector<32x252xf32>
    %c0_277 = arith.constant 0 : index
    %c19_278 = arith.constant 19 : index
    %359 = vector.load %arg13[%c0_277, %c19_278] : memref<32x288xf32, #tpu.memory_space<vmem>>, vector<32x252xf32>
    %360 = arith.maximumf %358, %359 : vector<32x252xf32>
    %361 = arith.maximumf %357, %360 : vector<32x252xf32>
    %c0_279 = arith.constant 0 : index
    %c0_280 = arith.constant 0 : index
    %362 = vector.load %arg7[%c0_279, %c0_280] : memref<252x49xf32, #tpu.memory_space<vmem>>, vector<252x49xf32>
    %cst_281 = arith.constant dense<0.000000e+00> : vector<32x49xf32>
    %363 = tpu.matmul %361, %362, %cst_281 {dimension_numbers = #tpu.dot_dimension_numbers<[1], [0], [0], [1], [0, 0, 1, 1], [], []>} : vector<32x252xf32>, vector<252x49xf32>, vector<32x49xf32> -> vector<32x49xf32>
    %c0_282 = arith.constant 0 : index
    %c0_283 = arith.constant 0 : index
    %364 = vector.load %arg9[%c0_282, %c0_283] : memref<1x10xf32, #tpu.memory_space<vmem>>, vector<1x10xf32>
    %365 = vector.extract_strided_slice %363 {offsets = [0, 0], sizes = [1, 49], strides = [1, 1]} : vector<32x49xf32> to vector<1x49xf32>
    %c0_284 = arith.constant 0 : index
    %c0_285 = arith.constant 0 : index
    %c0_286 = arith.constant 0 : index
    %366 = vector.load %arg8[%c0_284, %c0_285, %c0_286] : memref<32x49x10xf32, #tpu.memory_space<vmem>>, vector<1x49x10xf32>
    %367 = vector.shape_cast %366 : vector<1x49x10xf32> to vector<49x10xf32>
    %cst_287 = arith.constant dense<0.000000e+00> : vector<1x10xf32>
    %368 = tpu.matmul %365, %367, %cst_287 {dimension_numbers = #tpu.dot_dimension_numbers<[1], [0], [0], [1], [0, 0, 1, 1], [], []>} : vector<1x49xf32>, vector<49x10xf32>, vector<1x10xf32> -> vector<1x10xf32>
    %369 = arith.addf %364, %368 : vector<1x10xf32>
    %370 = vector.extract_strided_slice %363 {offsets = [1, 0], sizes = [1, 49], strides = [1, 1]} : vector<32x49xf32> to vector<1x49xf32>
    %c1_288 = arith.constant 1 : index
    %c0_289 = arith.constant 0 : index
    %c0_290 = arith.constant 0 : index
    %371 = vector.load %arg8[%c1_288, %c0_289, %c0_290] : memref<32x49x10xf32, #tpu.memory_space<vmem>>, vector<1x49x10xf32>
    %372 = vector.shape_cast %371 : vector<1x49x10xf32> to vector<49x10xf32>
    %cst_291 = arith.constant dense<0.000000e+00> : vector<1x10xf32>
    %373 = tpu.matmul %370, %372, %cst_291 {dimension_numbers = #tpu.dot_dimension_numbers<[1], [0], [0], [1], [0, 0, 1, 1], [], []>} : vector<1x49xf32>, vector<49x10xf32>, vector<1x10xf32> -> vector<1x10xf32>
    %374 = arith.addf %369, %373 : vector<1x10xf32>
    %375 = vector.extract_strided_slice %363 {offsets = [2, 0], sizes = [1, 49], strides = [1, 1]} : vector<32x49xf32> to vector<1x49xf32>
    %c2_292 = arith.constant 2 : index
    %c0_293 = arith.constant 0 : index
    %c0_294 = arith.constant 0 : index
    %376 = vector.load %arg8[%c2_292, %c0_293, %c0_294] : memref<32x49x10xf32, #tpu.memory_space<vmem>>, vector<1x49x10xf32>
    %377 = vector.shape_cast %376 : vector<1x49x10xf32> to vector<49x10xf32>
    %cst_295 = arith.constant dense<0.000000e+00> : vector<1x10xf32>
    %378 = tpu.matmul %375, %377, %cst_295 {dimension_numbers = #tpu.dot_dimension_numbers<[1], [0], [0], [1], [0, 0, 1, 1], [], []>} : vector<1x49xf32>, vector<49x10xf32>, vector<1x10xf32> -> vector<1x10xf32>
    %379 = arith.addf %374, %378 : vector<1x10xf32>
    %380 = vector.extract_strided_slice %363 {offsets = [3, 0], sizes = [1, 49], strides = [1, 1]} : vector<32x49xf32> to vector<1x49xf32>
    %c3_296 = arith.constant 3 : index
    %c0_297 = arith.constant 0 : index
    %c0_298 = arith.constant 0 : index
    %381 = vector.load %arg8[%c3_296, %c0_297, %c0_298] : memref<32x49x10xf32, #tpu.memory_space<vmem>>, vector<1x49x10xf32>
    %382 = vector.shape_cast %381 : vector<1x49x10xf32> to vector<49x10xf32>
    %cst_299 = arith.constant dense<0.000000e+00> : vector<1x10xf32>
    %383 = tpu.matmul %380, %382, %cst_299 {dimension_numbers = #tpu.dot_dimension_numbers<[1], [0], [0], [1], [0, 0, 1, 1], [], []>} : vector<1x49xf32>, vector<49x10xf32>, vector<1x10xf32> -> vector<1x10xf32>
    %384 = arith.addf %379, %383 : vector<1x10xf32>
    %385 = vector.extract_strided_slice %363 {offsets = [4, 0], sizes = [1, 49], strides = [1, 1]} : vector<32x49xf32> to vector<1x49xf32>
    %c4_300 = arith.constant 4 : index
    %c0_301 = arith.constant 0 : index
    %c0_302 = arith.constant 0 : index
    %386 = vector.load %arg8[%c4_300, %c0_301, %c0_302] : memref<32x49x10xf32, #tpu.memory_space<vmem>>, vector<1x49x10xf32>
    %387 = vector.shape_cast %386 : vector<1x49x10xf32> to vector<49x10xf32>
    %cst_303 = arith.constant dense<0.000000e+00> : vector<1x10xf32>
    %388 = tpu.matmul %385, %387, %cst_303 {dimension_numbers = #tpu.dot_dimension_numbers<[1], [0], [0], [1], [0, 0, 1, 1], [], []>} : vector<1x49xf32>, vector<49x10xf32>, vector<1x10xf32> -> vector<1x10xf32>
    %389 = arith.addf %384, %388 : vector<1x10xf32>
    %390 = vector.extract_strided_slice %363 {offsets = [5, 0], sizes = [1, 49], strides = [1, 1]} : vector<32x49xf32> to vector<1x49xf32>
    %c5_304 = arith.constant 5 : index
    %c0_305 = arith.constant 0 : index
    %c0_306 = arith.constant 0 : index
    %391 = vector.load %arg8[%c5_304, %c0_305, %c0_306] : memref<32x49x10xf32, #tpu.memory_space<vmem>>, vector<1x49x10xf32>
    %392 = vector.shape_cast %391 : vector<1x49x10xf32> to vector<49x10xf32>
    %cst_307 = arith.constant dense<0.000000e+00> : vector<1x10xf32>
    %393 = tpu.matmul %390, %392, %cst_307 {dimension_numbers = #tpu.dot_dimension_numbers<[1], [0], [0], [1], [0, 0, 1, 1], [], []>} : vector<1x49xf32>, vector<49x10xf32>, vector<1x10xf32> -> vector<1x10xf32>
    %394 = arith.addf %389, %393 : vector<1x10xf32>
    %395 = vector.extract_strided_slice %363 {offsets = [6, 0], sizes = [1, 49], strides = [1, 1]} : vector<32x49xf32> to vector<1x49xf32>
    %c6_308 = arith.constant 6 : index
    %c0_309 = arith.constant 0 : index
    %c0_310 = arith.constant 0 : index
    %396 = vector.load %arg8[%c6_308, %c0_309, %c0_310] : memref<32x49x10xf32, #tpu.memory_space<vmem>>, vector<1x49x10xf32>
    %397 = vector.shape_cast %396 : vector<1x49x10xf32> to vector<49x10xf32>
    %cst_311 = arith.constant dense<0.000000e+00> : vector<1x10xf32>
    %398 = tpu.matmul %395, %397, %cst_311 {dimension_numbers = #tpu.dot_dimension_numbers<[1], [0], [0], [1], [0, 0, 1, 1], [], []>} : vector<1x49xf32>, vector<49x10xf32>, vector<1x10xf32> -> vector<1x10xf32>
    %399 = arith.addf %394, %398 : vector<1x10xf32>
    %400 = vector.extract_strided_slice %363 {offsets = [7, 0], sizes = [1, 49], strides = [1, 1]} : vector<32x49xf32> to vector<1x49xf32>
    %c7_312 = arith.constant 7 : index
    %c0_313 = arith.constant 0 : index
    %c0_314 = arith.constant 0 : index
    %401 = vector.load %arg8[%c7_312, %c0_313, %c0_314] : memref<32x49x10xf32, #tpu.memory_space<vmem>>, vector<1x49x10xf32>
    %402 = vector.shape_cast %401 : vector<1x49x10xf32> to vector<49x10xf32>
    %cst_315 = arith.constant dense<0.000000e+00> : vector<1x10xf32>
    %403 = tpu.matmul %400, %402, %cst_315 {dimension_numbers = #tpu.dot_dimension_numbers<[1], [0], [0], [1], [0, 0, 1, 1], [], []>} : vector<1x49xf32>, vector<49x10xf32>, vector<1x10xf32> -> vector<1x10xf32>
    %404 = arith.addf %399, %403 : vector<1x10xf32>
    %405 = vector.extract_strided_slice %363 {offsets = [8, 0], sizes = [1, 49], strides = [1, 1]} : vector<32x49xf32> to vector<1x49xf32>
    %c8_316 = arith.constant 8 : index
    %c0_317 = arith.constant 0 : index
    %c0_318 = arith.constant 0 : index
    %406 = vector.load %arg8[%c8_316, %c0_317, %c0_318] : memref<32x49x10xf32, #tpu.memory_space<vmem>>, vector<1x49x10xf32>
    %407 = vector.shape_cast %406 : vector<1x49x10xf32> to vector<49x10xf32>
    %cst_319 = arith.constant dense<0.000000e+00> : vector<1x10xf32>
    %408 = tpu.matmul %405, %407, %cst_319 {dimension_numbers = #tpu.dot_dimension_numbers<[1], [0], [0], [1], [0, 0, 1, 1], [], []>} : vector<1x49xf32>, vector<49x10xf32>, vector<1x10xf32> -> vector<1x10xf32>
    %409 = arith.addf %404, %408 : vector<1x10xf32>
    %410 = vector.extract_strided_slice %363 {offsets = [9, 0], sizes = [1, 49], strides = [1, 1]} : vector<32x49xf32> to vector<1x49xf32>
    %c9_320 = arith.constant 9 : index
    %c0_321 = arith.constant 0 : index
    %c0_322 = arith.constant 0 : index
    %411 = vector.load %arg8[%c9_320, %c0_321, %c0_322] : memref<32x49x10xf32, #tpu.memory_space<vmem>>, vector<1x49x10xf32>
    %412 = vector.shape_cast %411 : vector<1x49x10xf32> to vector<49x10xf32>
    %cst_323 = arith.constant dense<0.000000e+00> : vector<1x10xf32>
    %413 = tpu.matmul %410, %412, %cst_323 {dimension_numbers = #tpu.dot_dimension_numbers<[1], [0], [0], [1], [0, 0, 1, 1], [], []>} : vector<1x49xf32>, vector<49x10xf32>, vector<1x10xf32> -> vector<1x10xf32>
    %414 = arith.addf %409, %413 : vector<1x10xf32>
    %415 = vector.extract_strided_slice %363 {offsets = [10, 0], sizes = [1, 49], strides = [1, 1]} : vector<32x49xf32> to vector<1x49xf32>
    %c10_324 = arith.constant 10 : index
    %c0_325 = arith.constant 0 : index
    %c0_326 = arith.constant 0 : index
    %416 = vector.load %arg8[%c10_324, %c0_325, %c0_326] : memref<32x49x10xf32, #tpu.memory_space<vmem>>, vector<1x49x10xf32>
    %417 = vector.shape_cast %416 : vector<1x49x10xf32> to vector<49x10xf32>
    %cst_327 = arith.constant dense<0.000000e+00> : vector<1x10xf32>
    %418 = tpu.matmul %415, %417, %cst_327 {dimension_numbers = #tpu.dot_dimension_numbers<[1], [0], [0], [1], [0, 0, 1, 1], [], []>} : vector<1x49xf32>, vector<49x10xf32>, vector<1x10xf32> -> vector<1x10xf32>
    %419 = arith.addf %414, %418 : vector<1x10xf32>
    %420 = vector.extract_strided_slice %363 {offsets = [11, 0], sizes = [1, 49], strides = [1, 1]} : vector<32x49xf32> to vector<1x49xf32>
    %c11_328 = arith.constant 11 : index
    %c0_329 = arith.constant 0 : index
    %c0_330 = arith.constant 0 : index
    %421 = vector.load %arg8[%c11_328, %c0_329, %c0_330] : memref<32x49x10xf32, #tpu.memory_space<vmem>>, vector<1x49x10xf32>
    %422 = vector.shape_cast %421 : vector<1x49x10xf32> to vector<49x10xf32>
    %cst_331 = arith.constant dense<0.000000e+00> : vector<1x10xf32>
    %423 = tpu.matmul %420, %422, %cst_331 {dimension_numbers = #tpu.dot_dimension_numbers<[1], [0], [0], [1], [0, 0, 1, 1], [], []>} : vector<1x49xf32>, vector<49x10xf32>, vector<1x10xf32> -> vector<1x10xf32>
    %424 = arith.addf %419, %423 : vector<1x10xf32>
    %425 = vector.extract_strided_slice %363 {offsets = [12, 0], sizes = [1, 49], strides = [1, 1]} : vector<32x49xf32> to vector<1x49xf32>
    %c12_332 = arith.constant 12 : index
    %c0_333 = arith.constant 0 : index
    %c0_334 = arith.constant 0 : index
    %426 = vector.load %arg8[%c12_332, %c0_333, %c0_334] : memref<32x49x10xf32, #tpu.memory_space<vmem>>, vector<1x49x10xf32>
    %427 = vector.shape_cast %426 : vector<1x49x10xf32> to vector<49x10xf32>
    %cst_335 = arith.constant dense<0.000000e+00> : vector<1x10xf32>
    %428 = tpu.matmul %425, %427, %cst_335 {dimension_numbers = #tpu.dot_dimension_numbers<[1], [0], [0], [1], [0, 0, 1, 1], [], []>} : vector<1x49xf32>, vector<49x10xf32>, vector<1x10xf32> -> vector<1x10xf32>
    %429 = arith.addf %424, %428 : vector<1x10xf32>
    %430 = vector.extract_strided_slice %363 {offsets = [13, 0], sizes = [1, 49], strides = [1, 1]} : vector<32x49xf32> to vector<1x49xf32>
    %c13_336 = arith.constant 13 : index
    %c0_337 = arith.constant 0 : index
    %c0_338 = arith.constant 0 : index
    %431 = vector.load %arg8[%c13_336, %c0_337, %c0_338] : memref<32x49x10xf32, #tpu.memory_space<vmem>>, vector<1x49x10xf32>
    %432 = vector.shape_cast %431 : vector<1x49x10xf32> to vector<49x10xf32>
    %cst_339 = arith.constant dense<0.000000e+00> : vector<1x10xf32>
    %433 = tpu.matmul %430, %432, %cst_339 {dimension_numbers = #tpu.dot_dimension_numbers<[1], [0], [0], [1], [0, 0, 1, 1], [], []>} : vector<1x49xf32>, vector<49x10xf32>, vector<1x10xf32> -> vector<1x10xf32>
    %434 = arith.addf %429, %433 : vector<1x10xf32>
    %435 = vector.extract_strided_slice %363 {offsets = [14, 0], sizes = [1, 49], strides = [1, 1]} : vector<32x49xf32> to vector<1x49xf32>
    %c14_340 = arith.constant 14 : index
    %c0_341 = arith.constant 0 : index
    %c0_342 = arith.constant 0 : index
    %436 = vector.load %arg8[%c14_340, %c0_341, %c0_342] : memref<32x49x10xf32, #tpu.memory_space<vmem>>, vector<1x49x10xf32>
    %437 = vector.shape_cast %436 : vector<1x49x10xf32> to vector<49x10xf32>
    %cst_343 = arith.constant dense<0.000000e+00> : vector<1x10xf32>
    %438 = tpu.matmul %435, %437, %cst_343 {dimension_numbers = #tpu.dot_dimension_numbers<[1], [0], [0], [1], [0, 0, 1, 1], [], []>} : vector<1x49xf32>, vector<49x10xf32>, vector<1x10xf32> -> vector<1x10xf32>
    %439 = arith.addf %434, %438 : vector<1x10xf32>
    %440 = vector.extract_strided_slice %363 {offsets = [15, 0], sizes = [1, 49], strides = [1, 1]} : vector<32x49xf32> to vector<1x49xf32>
    %c15_344 = arith.constant 15 : index
    %c0_345 = arith.constant 0 : index
    %c0_346 = arith.constant 0 : index
    %441 = vector.load %arg8[%c15_344, %c0_345, %c0_346] : memref<32x49x10xf32, #tpu.memory_space<vmem>>, vector<1x49x10xf32>
    %442 = vector.shape_cast %441 : vector<1x49x10xf32> to vector<49x10xf32>
    %cst_347 = arith.constant dense<0.000000e+00> : vector<1x10xf32>
    %443 = tpu.matmul %440, %442, %cst_347 {dimension_numbers = #tpu.dot_dimension_numbers<[1], [0], [0], [1], [0, 0, 1, 1], [], []>} : vector<1x49xf32>, vector<49x10xf32>, vector<1x10xf32> -> vector<1x10xf32>
    %444 = arith.addf %439, %443 : vector<1x10xf32>
    %445 = vector.extract_strided_slice %363 {offsets = [16, 0], sizes = [1, 49], strides = [1, 1]} : vector<32x49xf32> to vector<1x49xf32>
    %c16_348 = arith.constant 16 : index
    %c0_349 = arith.constant 0 : index
    %c0_350 = arith.constant 0 : index
    %446 = vector.load %arg8[%c16_348, %c0_349, %c0_350] : memref<32x49x10xf32, #tpu.memory_space<vmem>>, vector<1x49x10xf32>
    %447 = vector.shape_cast %446 : vector<1x49x10xf32> to vector<49x10xf32>
    %cst_351 = arith.constant dense<0.000000e+00> : vector<1x10xf32>
    %448 = tpu.matmul %445, %447, %cst_351 {dimension_numbers = #tpu.dot_dimension_numbers<[1], [0], [0], [1], [0, 0, 1, 1], [], []>} : vector<1x49xf32>, vector<49x10xf32>, vector<1x10xf32> -> vector<1x10xf32>
    %449 = arith.addf %444, %448 : vector<1x10xf32>
    %450 = vector.extract_strided_slice %363 {offsets = [17, 0], sizes = [1, 49], strides = [1, 1]} : vector<32x49xf32> to vector<1x49xf32>
    %c17_352 = arith.constant 17 : index
    %c0_353 = arith.constant 0 : index
    %c0_354 = arith.constant 0 : index
    %451 = vector.load %arg8[%c17_352, %c0_353, %c0_354] : memref<32x49x10xf32, #tpu.memory_space<vmem>>, vector<1x49x10xf32>
    %452 = vector.shape_cast %451 : vector<1x49x10xf32> to vector<49x10xf32>
    %cst_355 = arith.constant dense<0.000000e+00> : vector<1x10xf32>
    %453 = tpu.matmul %450, %452, %cst_355 {dimension_numbers = #tpu.dot_dimension_numbers<[1], [0], [0], [1], [0, 0, 1, 1], [], []>} : vector<1x49xf32>, vector<49x10xf32>, vector<1x10xf32> -> vector<1x10xf32>
    %454 = arith.addf %449, %453 : vector<1x10xf32>
    %455 = vector.extract_strided_slice %363 {offsets = [18, 0], sizes = [1, 49], strides = [1, 1]} : vector<32x49xf32> to vector<1x49xf32>
    %c18_356 = arith.constant 18 : index
    %c0_357 = arith.constant 0 : index
    %c0_358 = arith.constant 0 : index
    %456 = vector.load %arg8[%c18_356, %c0_357, %c0_358] : memref<32x49x10xf32, #tpu.memory_space<vmem>>, vector<1x49x10xf32>
    %457 = vector.shape_cast %456 : vector<1x49x10xf32> to vector<49x10xf32>
    %cst_359 = arith.constant dense<0.000000e+00> : vector<1x10xf32>
    %458 = tpu.matmul %455, %457, %cst_359 {dimension_numbers = #tpu.dot_dimension_numbers<[1], [0], [0], [1], [0, 0, 1, 1], [], []>} : vector<1x49xf32>, vector<49x10xf32>, vector<1x10xf32> -> vector<1x10xf32>
    %459 = arith.addf %454, %458 : vector<1x10xf32>
    %460 = vector.extract_strided_slice %363 {offsets = [19, 0], sizes = [1, 49], strides = [1, 1]} : vector<32x49xf32> to vector<1x49xf32>
    %c19_360 = arith.constant 19 : index
    %c0_361 = arith.constant 0 : index
    %c0_362 = arith.constant 0 : index
    %461 = vector.load %arg8[%c19_360, %c0_361, %c0_362] : memref<32x49x10xf32, #tpu.memory_space<vmem>>, vector<1x49x10xf32>
    %462 = vector.shape_cast %461 : vector<1x49x10xf32> to vector<49x10xf32>
    %cst_363 = arith.constant dense<0.000000e+00> : vector<1x10xf32>
    %463 = tpu.matmul %460, %462, %cst_363 {dimension_numbers = #tpu.dot_dimension_numbers<[1], [0], [0], [1], [0, 0, 1, 1], [], []>} : vector<1x49xf32>, vector<49x10xf32>, vector<1x10xf32> -> vector<1x10xf32>
    %464 = arith.addf %459, %463 : vector<1x10xf32>
    %465 = vector.extract_strided_slice %363 {offsets = [20, 0], sizes = [1, 49], strides = [1, 1]} : vector<32x49xf32> to vector<1x49xf32>
    %c20_364 = arith.constant 20 : index
    %c0_365 = arith.constant 0 : index
    %c0_366 = arith.constant 0 : index
    %466 = vector.load %arg8[%c20_364, %c0_365, %c0_366] : memref<32x49x10xf32, #tpu.memory_space<vmem>>, vector<1x49x10xf32>
    %467 = vector.shape_cast %466 : vector<1x49x10xf32> to vector<49x10xf32>
    %cst_367 = arith.constant dense<0.000000e+00> : vector<1x10xf32>
    %468 = tpu.matmul %465, %467, %cst_367 {dimension_numbers = #tpu.dot_dimension_numbers<[1], [0], [0], [1], [0, 0, 1, 1], [], []>} : vector<1x49xf32>, vector<49x10xf32>, vector<1x10xf32> -> vector<1x10xf32>
    %469 = arith.addf %464, %468 : vector<1x10xf32>
    %470 = vector.extract_strided_slice %363 {offsets = [21, 0], sizes = [1, 49], strides = [1, 1]} : vector<32x49xf32> to vector<1x49xf32>
    %c21_368 = arith.constant 21 : index
    %c0_369 = arith.constant 0 : index
    %c0_370 = arith.constant 0 : index
    %471 = vector.load %arg8[%c21_368, %c0_369, %c0_370] : memref<32x49x10xf32, #tpu.memory_space<vmem>>, vector<1x49x10xf32>
    %472 = vector.shape_cast %471 : vector<1x49x10xf32> to vector<49x10xf32>
    %cst_371 = arith.constant dense<0.000000e+00> : vector<1x10xf32>
    %473 = tpu.matmul %470, %472, %cst_371 {dimension_numbers = #tpu.dot_dimension_numbers<[1], [0], [0], [1], [0, 0, 1, 1], [], []>} : vector<1x49xf32>, vector<49x10xf32>, vector<1x10xf32> -> vector<1x10xf32>
    %474 = arith.addf %469, %473 : vector<1x10xf32>
    %475 = vector.extract_strided_slice %363 {offsets = [22, 0], sizes = [1, 49], strides = [1, 1]} : vector<32x49xf32> to vector<1x49xf32>
    %c22_372 = arith.constant 22 : index
    %c0_373 = arith.constant 0 : index
    %c0_374 = arith.constant 0 : index
    %476 = vector.load %arg8[%c22_372, %c0_373, %c0_374] : memref<32x49x10xf32, #tpu.memory_space<vmem>>, vector<1x49x10xf32>
    %477 = vector.shape_cast %476 : vector<1x49x10xf32> to vector<49x10xf32>
    %cst_375 = arith.constant dense<0.000000e+00> : vector<1x10xf32>
    %478 = tpu.matmul %475, %477, %cst_375 {dimension_numbers = #tpu.dot_dimension_numbers<[1], [0], [0], [1], [0, 0, 1, 1], [], []>} : vector<1x49xf32>, vector<49x10xf32>, vector<1x10xf32> -> vector<1x10xf32>
    %479 = arith.addf %474, %478 : vector<1x10xf32>
    %480 = vector.extract_strided_slice %363 {offsets = [23, 0], sizes = [1, 49], strides = [1, 1]} : vector<32x49xf32> to vector<1x49xf32>
    %c23_376 = arith.constant 23 : index
    %c0_377 = arith.constant 0 : index
    %c0_378 = arith.constant 0 : index
    %481 = vector.load %arg8[%c23_376, %c0_377, %c0_378] : memref<32x49x10xf32, #tpu.memory_space<vmem>>, vector<1x49x10xf32>
    %482 = vector.shape_cast %481 : vector<1x49x10xf32> to vector<49x10xf32>
    %cst_379 = arith.constant dense<0.000000e+00> : vector<1x10xf32>
    %483 = tpu.matmul %480, %482, %cst_379 {dimension_numbers = #tpu.dot_dimension_numbers<[1], [0], [0], [1], [0, 0, 1, 1], [], []>} : vector<1x49xf32>, vector<49x10xf32>, vector<1x10xf32> -> vector<1x10xf32>
    %484 = arith.addf %479, %483 : vector<1x10xf32>
    %485 = vector.extract_strided_slice %363 {offsets = [24, 0], sizes = [1, 49], strides = [1, 1]} : vector<32x49xf32> to vector<1x49xf32>
    %c24_380 = arith.constant 24 : index
    %c0_381 = arith.constant 0 : index
    %c0_382 = arith.constant 0 : index
    %486 = vector.load %arg8[%c24_380, %c0_381, %c0_382] : memref<32x49x10xf32, #tpu.memory_space<vmem>>, vector<1x49x10xf32>
    %487 = vector.shape_cast %486 : vector<1x49x10xf32> to vector<49x10xf32>
    %cst_383 = arith.constant dense<0.000000e+00> : vector<1x10xf32>
    %488 = tpu.matmul %485, %487, %cst_383 {dimension_numbers = #tpu.dot_dimension_numbers<[1], [0], [0], [1], [0, 0, 1, 1], [], []>} : vector<1x49xf32>, vector<49x10xf32>, vector<1x10xf32> -> vector<1x10xf32>
    %489 = arith.addf %484, %488 : vector<1x10xf32>
    %490 = vector.extract_strided_slice %363 {offsets = [25, 0], sizes = [1, 49], strides = [1, 1]} : vector<32x49xf32> to vector<1x49xf32>
    %c25 = arith.constant 25 : index
    %c0_384 = arith.constant 0 : index
    %c0_385 = arith.constant 0 : index
    %491 = vector.load %arg8[%c25, %c0_384, %c0_385] : memref<32x49x10xf32, #tpu.memory_space<vmem>>, vector<1x49x10xf32>
    %492 = vector.shape_cast %491 : vector<1x49x10xf32> to vector<49x10xf32>
    %cst_386 = arith.constant dense<0.000000e+00> : vector<1x10xf32>
    %493 = tpu.matmul %490, %492, %cst_386 {dimension_numbers = #tpu.dot_dimension_numbers<[1], [0], [0], [1], [0, 0, 1, 1], [], []>} : vector<1x49xf32>, vector<49x10xf32>, vector<1x10xf32> -> vector<1x10xf32>
    %494 = arith.addf %489, %493 : vector<1x10xf32>
    %495 = vector.extract_strided_slice %363 {offsets = [26, 0], sizes = [1, 49], strides = [1, 1]} : vector<32x49xf32> to vector<1x49xf32>
    %c26 = arith.constant 26 : index
    %c0_387 = arith.constant 0 : index
    %c0_388 = arith.constant 0 : index
    %496 = vector.load %arg8[%c26, %c0_387, %c0_388] : memref<32x49x10xf32, #tpu.memory_space<vmem>>, vector<1x49x10xf32>
    %497 = vector.shape_cast %496 : vector<1x49x10xf32> to vector<49x10xf32>
    %cst_389 = arith.constant dense<0.000000e+00> : vector<1x10xf32>
    %498 = tpu.matmul %495, %497, %cst_389 {dimension_numbers = #tpu.dot_dimension_numbers<[1], [0], [0], [1], [0, 0, 1, 1], [], []>} : vector<1x49xf32>, vector<49x10xf32>, vector<1x10xf32> -> vector<1x10xf32>
    %499 = arith.addf %494, %498 : vector<1x10xf32>
    %500 = vector.extract_strided_slice %363 {offsets = [27, 0], sizes = [1, 49], strides = [1, 1]} : vector<32x49xf32> to vector<1x49xf32>
    %c27 = arith.constant 27 : index
    %c0_390 = arith.constant 0 : index
    %c0_391 = arith.constant 0 : index
    %501 = vector.load %arg8[%c27, %c0_390, %c0_391] : memref<32x49x10xf32, #tpu.memory_space<vmem>>, vector<1x49x10xf32>
    %502 = vector.shape_cast %501 : vector<1x49x10xf32> to vector<49x10xf32>
    %cst_392 = arith.constant dense<0.000000e+00> : vector<1x10xf32>
    %503 = tpu.matmul %500, %502, %cst_392 {dimension_numbers = #tpu.dot_dimension_numbers<[1], [0], [0], [1], [0, 0, 1, 1], [], []>} : vector<1x49xf32>, vector<49x10xf32>, vector<1x10xf32> -> vector<1x10xf32>
    %504 = arith.addf %499, %503 : vector<1x10xf32>
    %505 = vector.extract_strided_slice %363 {offsets = [28, 0], sizes = [1, 49], strides = [1, 1]} : vector<32x49xf32> to vector<1x49xf32>
    %c28 = arith.constant 28 : index
    %c0_393 = arith.constant 0 : index
    %c0_394 = arith.constant 0 : index
    %506 = vector.load %arg8[%c28, %c0_393, %c0_394] : memref<32x49x10xf32, #tpu.memory_space<vmem>>, vector<1x49x10xf32>
    %507 = vector.shape_cast %506 : vector<1x49x10xf32> to vector<49x10xf32>
    %cst_395 = arith.constant dense<0.000000e+00> : vector<1x10xf32>
    %508 = tpu.matmul %505, %507, %cst_395 {dimension_numbers = #tpu.dot_dimension_numbers<[1], [0], [0], [1], [0, 0, 1, 1], [], []>} : vector<1x49xf32>, vector<49x10xf32>, vector<1x10xf32> -> vector<1x10xf32>
    %509 = arith.addf %504, %508 : vector<1x10xf32>
    %510 = vector.extract_strided_slice %363 {offsets = [29, 0], sizes = [1, 49], strides = [1, 1]} : vector<32x49xf32> to vector<1x49xf32>
    %c29 = arith.constant 29 : index
    %c0_396 = arith.constant 0 : index
    %c0_397 = arith.constant 0 : index
    %511 = vector.load %arg8[%c29, %c0_396, %c0_397] : memref<32x49x10xf32, #tpu.memory_space<vmem>>, vector<1x49x10xf32>
    %512 = vector.shape_cast %511 : vector<1x49x10xf32> to vector<49x10xf32>
    %cst_398 = arith.constant dense<0.000000e+00> : vector<1x10xf32>
    %513 = tpu.matmul %510, %512, %cst_398 {dimension_numbers = #tpu.dot_dimension_numbers<[1], [0], [0], [1], [0, 0, 1, 1], [], []>} : vector<1x49xf32>, vector<49x10xf32>, vector<1x10xf32> -> vector<1x10xf32>
    %514 = arith.addf %509, %513 : vector<1x10xf32>
    %515 = vector.extract_strided_slice %363 {offsets = [30, 0], sizes = [1, 49], strides = [1, 1]} : vector<32x49xf32> to vector<1x49xf32>
    %c30 = arith.constant 30 : index
    %c0_399 = arith.constant 0 : index
    %c0_400 = arith.constant 0 : index
    %516 = vector.load %arg8[%c30, %c0_399, %c0_400] : memref<32x49x10xf32, #tpu.memory_space<vmem>>, vector<1x49x10xf32>
    %517 = vector.shape_cast %516 : vector<1x49x10xf32> to vector<49x10xf32>
    %cst_401 = arith.constant dense<0.000000e+00> : vector<1x10xf32>
    %518 = tpu.matmul %515, %517, %cst_401 {dimension_numbers = #tpu.dot_dimension_numbers<[1], [0], [0], [1], [0, 0, 1, 1], [], []>} : vector<1x49xf32>, vector<49x10xf32>, vector<1x10xf32> -> vector<1x10xf32>
    %519 = arith.addf %514, %518 : vector<1x10xf32>
    %520 = vector.extract_strided_slice %363 {offsets = [31, 0], sizes = [1, 49], strides = [1, 1]} : vector<32x49xf32> to vector<1x49xf32>
    %c31 = arith.constant 31 : index
    %c0_402 = arith.constant 0 : index
    %c0_403 = arith.constant 0 : index
    %521 = vector.load %arg8[%c31, %c0_402, %c0_403] : memref<32x49x10xf32, #tpu.memory_space<vmem>>, vector<1x49x10xf32>
    %522 = vector.shape_cast %521 : vector<1x49x10xf32> to vector<49x10xf32>
    %cst_404 = arith.constant dense<0.000000e+00> : vector<1x10xf32>
    %523 = tpu.matmul %520, %522, %cst_404 {dimension_numbers = #tpu.dot_dimension_numbers<[1], [0], [0], [1], [0, 0, 1, 1], [], []>} : vector<1x49xf32>, vector<49x10xf32>, vector<1x10xf32> -> vector<1x10xf32>
    %524 = arith.addf %519, %523 : vector<1x10xf32>
    %c0_405 = arith.constant 0 : index
    %c0_406 = arith.constant 0 : index
    %c0_407 = arith.constant 0 : index
    %525 = vector.load %arg10[%c0_405, %c0_406, %c0_407] : memref<1x1x10xf32, #tpu.memory_space<vmem>>, vector<1x1x10xf32>
    %526 = vector.shape_cast %525 : vector<1x1x10xf32> to vector<1x10xf32>
    %527 = vector.shape_cast %524 : vector<1x10xf32> to vector<1x1x10xf32>
    tpu.vector_store %arg10[%c0_405, %c0_406, %c0_407], %527 {strides = array<i32>} : memref<1x1x10xf32, #tpu.memory_space<vmem>>, vector<1x1x10xf32>,
    return
  }
  func.func @transform_0(%arg0: i32) -> (i32, i32, i32) {
    %c0_i32 = arith.constant 0 : i32
    %c0_i32_0 = arith.constant 0 : i32
    %c0_i32_1 = arith.constant 0 : i32
    return %arg0, %c0_i32, %c0_i32_0 : i32, i32, i32
  }
  func.func @transform_1(%arg0: i32) -> (i32, i32, i32) {
    %c0_i32 = arith.constant 0 : i32
    %c0_i32_0 = arith.constant 0 : i32
    %c0_i32_1 = arith.constant 0 : i32
    %c0_i32_2 = arith.constant 0 : i32
    return %c0_i32, %c0_i32_0, %c0_i32_1 : i32, i32, i32
  }
  func.func @transform_2(%arg0: i32) -> (i32, i32) {
    %c0_i32 = arith.constant 0 : i32
    %c0_i32_0 = arith.constant 0 : i32
    %c0_i32_1 = arith.constant 0 : i32
    return %c0_i32, %c0_i32_0 : i32, i32
  }
  func.func @transform_3(%arg0: i32) -> (i32, i32) {
    %c0_i32 = arith.constant 0 : i32
    %c0_i32_0 = arith.constant 0 : i32
    %c0_i32_1 = arith.constant 0 : i32
    return %c0_i32, %c0_i32_0 : i32, i32
  }
  func.func @transform_4(%arg0: i32) -> (i32, i32, i32) {
    %c0_i32 = arith.constant 0 : i32
    %c0_i32_0 = arith.constant 0 : i32
    %c0_i32_1 = arith.constant 0 : i32
    %c0_i32_2 = arith.constant 0 : i32
    return %c0_i32, %c0_i32_0, %c0_i32_1 : i32, i32, i32
  }
  func.func @transform_5(%arg0: i32) -> (i32, i32) {
    %c0_i32 = arith.constant 0 : i32
    %c0_i32_0 = arith.constant 0 : i32
    %c0_i32_1 = arith.constant 0 : i32
    return %c0_i32, %c0_i32_0 : i32, i32
  }
  func.func @transform_6(%arg0: i32) -> (i32, i32) {
    %c0_i32 = arith.constant 0 : i32
    %c0_i32_0 = arith.constant 0 : i32
    %c0_i32_1 = arith.constant 0 : i32
    return %c0_i32, %c0_i32_0 : i32, i32
  }
  func.func @transform_7(%arg0: i32) -> (i32, i32, i32) {
    %c0_i32 = arith.constant 0 : i32
    %c0_i32_0 = arith.constant 0 : i32
    %c0_i32_1 = arith.constant 0 : i32
    %c0_i32_2 = arith.constant 0 : i32
    return %c0_i32, %c0_i32_0, %c0_i32_1 : i32, i32, i32
  }
  func.func @transform_8(%arg0: i32) -> (i32, i32) {
    %c0_i32 = arith.constant 0 : i32
    %c0_i32_0 = arith.constant 0 : i32
    %c0_i32_1 = arith.constant 0 : i32
    return %c0_i32, %c0_i32_0 : i32, i32
  }
  func.func @transform_9(%arg0: i32) -> (i32, i32, i32) {
    %c0_i32 = arith.constant 0 : i32
    %c0_i32_0 = arith.constant 0 : i32
    %c0_i32_1 = arith.constant 0 : i32
    return %arg0, %c0_i32, %c0_i32_0 : i32, i32, i32
  }
}

</mosaic_0001>

<bundles_post_ra>
// kernel: cnn_forward.1
= control target key start
LH: loop header
LB: loop body
LE: loop exit
PB: predicated region body
PF: predicated region fallthrough
CT: control target
= control target key end

     0   :  { %s21057_s0 = inlined_call_operand.vmem [shape: f32[2,1,1152], index: 0, kind: input, shape index: {}]   ;;  %s21058_s1 = inlined_call_operand.vmem [shape: f32[25,16,1], index: 1, kind: input, shape index: {}]   ;;  %s21059_s2 = inlined_call_operand.vmem [shape: f32[16,1], index: 2, kind: input, shape index: {}]   ;;  %s21060_s3 = inlined_call_operand.vmem [shape: f32[896,324], index: 3, kind: input, shape index: {}]   ;;  %s21061_s4 = inlined_call_operand.vmem [shape: f32[25,32,16], index: 4, kind: input, shape index: {}]   ;;  %s21062_s5 = inlined_call_operand.vmem [shape: f32[32,1], index: 5, kind: input, shape index: {}]   ;;  %s21063_s6 = inlined_call_operand.vmem [shape: f32[252,49], index: 6, kind: input, shape index: {}]   ;;  %s21064_s7 = inlined_call_operand.vmem [shape: f32[32,49,10], index: 7, kind: input, shape index: {}]   ;;  %s21065_s8 = inlined_call_operand.vmem [shape: f32[1,10], index: 8, kind: input, shape index: {}]   ;;  %s21066_s9 = inlined_call_operand.hbm [shape: f32[2,1,10], index: 9, kind: output, shape index: {}]  }
   0x1   :  { %21419 = sst [smem:[#allocation202_spill]] %s21057_s0 }
   0x2   :  { %21420 = sst [smem:[#allocation203_spill]] %s21058_s1 }
   0x3   :  { %21421 = sst [smem:[#allocation204_spill]] %s21066_s9 }
   0x4   :  { %14 = vsyncpa [#allocation6], 0 }
   0x5   :  { %16 = vsyncpa [#allocation6 + $0x1], 0  ;;  %s14242_s30 = smov 0   ;;  %s14244_s10 = smov 0  }
   0x6   :  { %s14246_s11 = smov 0   ;;  %s14248_s12 = smov 0  }
   0x7 LB: > { %21422 = sst [smem:[#allocation8_spill]] %s14134_s30  ;;  %s14263_s13 = sadd.s32 4294967295, %s14146_s12   ;;  %s14146_s12 = sphi %s14248_s12, %s22243_s12   ;;  %s14142_s11 = sphi %s14246_s11, %s22245_s11   ;;  %s14138_s10 = sphi %s14244_s10, %s22247_s10   ;;  %s14134_s30 = sphi %s14242_s30, %s22246_s30  }
   0x8   : > { %21423 = sst [smem:[#allocation9_spill]] %s14142_s11  ;;  %s10991_s14 = sadd.s32 4294967294, %s14146_s12  }
   0x9   : > { %21424 = sst [smem:[#allocation10_spill]] %s14146_s12  ;;  %s14267_s15 = sadd.s32 1, %s14146_s12  }
   0xa   : > { %21425 = sst [smem:[#allocation11_spill]] %s14267_s15  ;;  %s223_s16 = sadd.s32 1, %s14142_s11 }
   0xb   : > { %s220_s17 = ssub.s32 %s14146_s12, %s14267_s15  ;;  %p233_p0 = scmp.ne.s32.totalorder %s14142_s11, %s14138_s10 }
   0xc   : > { %p221_p1 = scmp.eq.s32.totalorder %s220_s17, 0  ;;  %p234_p2 = scmp.eq.s32.totalorder %s14263_s13, 1 }
   0xd   : > { %p239_p3 = scmp.ne.s32.totalorder %s14138_s10, %s14134_s30  ;;  %p240_p4 = scmp.eq.s32.totalorder %s10991_s14, 1 }
   0xe   : > { %s14278_s18 = scalar_select %p221_p1, %s14142_s11, %s223_s16  }
   0xf   : > { %p14280_p5 = por %p234_p2, %p233_p0  ;;  %p14284_p6 = por %p240_p4, %p239_p3 }
  0x10   : > { %21426 = sst [smem:[#allocation12_spill]] %s14278_s18  ;;  %p10994_p7 = scmp.ge.s32.totalorder %s14146_s12, 1 }
  0x11   : > { %s21428_s20 = scalar_select %p14284_p6, 1, 0 }
  0x12   : > { %p289_p8 = scmp.lt.s32.totalorder %s14146_s12, 3 }
  0x13   : > { %21429 = sst [smem:[#allocation13_spill]] %s21428_s20 }
  0x14   : > { %p290_p9 = pnand %p10994_p7, %p289_p8 }
  0x16   : > { %293 = sbr.rel (%p290_p9) target bundleno = 3414 (0xd56), region = 56 }
  0x1d   : > { %s21430_s1 = sld [smem:[#allocation203_spill]]  ;;  %v14148_v2 = vmov 0   ;;  %p323_p10 = scmp.lt.s32.totalorder %s14263_s13, 1  ;;  %v341_v48 = vlaneseq  ;;  %vm21406_vm0 = vcmask 1039360   ;;  %vm21404_vm1 = vcmask 1031168  }
  0x1e   : > { %13662 = vset.pattern.permute.xlu1 %v14148_v2  ;;  %13661 = vset.pattern.permute.xlu0 %v14148_v2  ;;  %s21432_s0 = sld [smem:[#allocation202_spill]]  ;;  %s21291_s24 = smov 127   ;;  %vm21405_vm2 = vcmask 1022976   ;;  %vm883_vm3 = vcmask 1014784   ;;  %vm1123_vm4 = vcmask 777216   ;;  %vm1003_vm5 = vcmask 785408  }
  0x1f   : > { %s324_s16 = scalar_select %p323_p10, %s14263_s13, 1  ;;  %v14433_v49 = vshrl.u32 %v341_v48, 7  ;;  %vm21302_vm6 = vcmask 760832   ;;  %vm1243_vm7 = vcmask 769024   ;;  %vm21299_vm8 = vcmask 752640  }
  0x20   : > { %s21289_s25 = smov 126   ;;  %s21220_s26 = smov 125   ;;  %vm1603_vm9 = vcmask 523264   ;;  %vm21301_vm10 = vcmask 515072   ;;  %vm1963_vm11 = vcmask 498688   ;;  %vm1843_vm12 = vcmask 506880  }
  0x21   : > { %s13578_s17 = smul.u32 9, %s324_s16  ;;  %21431 = vst [vmem:[#allocation14_spill] sm:$0xff] %v14433_v49  ;;  %v21076_v50 = vsub.s32 2, %v14433_v49  ;;  %v21078_v51 = vsub.s32 1, %v14433_v49  ;;  %v14456_v55 = vsub.s32 4, %v14433_v49  ;;  %v21077_v56 = vsub.s32 3, %v14433_v49 }
  0x22   : > { %v21075_v59 = vsub.s32 0, %v14433_v49  ;;  %s21246_s27 = smov 124   ;;  %s21229_s28 = smov 96   ;;  %vm2083_vm13 = vcmask 490496   ;;  %vm2203_vm14 = vcmask 261120   ;;  %vm2323_vm15 = vcmask 252928  }
  0x23   : > { %v10999_v0 = vld [vmem:[%s21430_s1 + $0x30] sm:$0xff]  ;;  %v11001_v3 = vld [vmem:[%s21430_s1 + $0x40] sm:$0xff]  ;;  %v10996_v16 = vld [vmem:[%s21430_s1 + $0x18] sm:$0xff]  ;;  %21433 = vst [vmem:[#allocation15_spill] sm:$0xff] %v14456_v55  ;;  %s21236_s29 = smov 95   ;;  %s21071_s14 = smov 94  }
  0x24   : > { %v10995_v1 = vld [vmem:[%s21430_s1 + $0x10] sm:$0xff]  ;;  %691 = vperm.xlu1 %13662, %v10999_v0   ;;  %v10997_v4 = vld [vmem:[%s21430_s1 + $0x20] sm:$0xff]  ;;  %v10998_v18 = vld [vmem:[%s21430_s1 + $0x28] sm:$0xff]  ;;  %s14438_s23 = scalar_lea.vmem %s21432_s0, %s13578_s17  ;;  %s21069_s16 = smov 93  }
  0x25   : > { %410 = vperm.xlu0 %13661, %v10995_v1   ;;  %v11005_v5 = vld [vmem:[%s21430_s1 + $0x60] sm:$0xff]  ;;  %v11003_v6 = vld [vmem:[%s21430_s1 + $0x50] sm:$0xff]  ;;  %v11000_v20 = vld [vmem:[%s21430_s1 + $0x38] sm:$0xff]  ;;  %s21067_s17 = smov 92   ;;  %s21073_s21 = smov 64  }
  0x26   : > { %v11009_v7 = vld [vmem:[%s21430_s1 + $0x80] sm:$0xff]  ;;  %v11007_v8 = vld [vmem:[%s21430_s1 + $0x70] sm:$0xff]  ;;  %v11002_v22 = vld [vmem:[%s21430_s1 + $0x48] sm:$0xff]  ;;  %s21272_s22 = smov 63   ;;  %s21715_s0 = smov 29  }
  0x27   : > { %v11013_v9 = vld [vmem:[%s21430_s1 + $0xa0] sm:$0xff]  ;;  %v11011_v10 = vld [vmem:[%s21430_s1 + $0x90] sm:$0xff]  ;;  %v11004_v24 = vld [vmem:[%s21430_s1 + $0x58] sm:$0xff]  ;;  %s21746_s18 = smov 28   ;;  %s21750_s11 = smov 125  }
  0x28   : > { %811 = vperm.xlu1 %13662, %v11001_v3   ;;  %v11017_v11 = vld [vmem:[%s21430_s1 + $0xc0] sm:$0xff]  ;;  %v11015_v12 = vld [vmem:[%s21430_s1 + $0xb0] sm:$0xff]  ;;  %v11008_v25 = vld [vmem:[%s21430_s1 + $0x78] sm:$0xff]  ;;  %s21751_s15 = smov 63   ;;  %s21757_s20 = smov 124  }
  0x29   : > { %571 = vperm.xlu0 %13661, %v10997_v4   ;;  %v11021_v13 = vld [vmem:[%s21430_s1 + $0xe0] sm:$0xff]  ;;  %v11019_v14 = vld [vmem:[%s21430_s1 + $0xd0] sm:$0xff]  ;;  %v11006_v26 = vld [vmem:[%s21430_s1 + $0x68] sm:$0xff]  ;;  %s21767_s30 = smov 96   ;;  %s21783_s9 = smov 95  }
  0x2a   : > { %v11023_v15 = vld [vmem:[%s21430_s1 + $0xf0] sm:$0xff]  ;;  %v11025_v17 = vld [vmem:[%s21430_s1 + $0x100] sm:$0xff]  ;;  %v11010_v27 = vld [vmem:[%s21430_s1 + $0x88] sm:$0xff]  ;;  %s14173_s12 = smov 106  }
  0x2b   : > { %v11027_v19 = vld [vmem:[%s21430_s1 + $0x110] sm:$0xff]  ;;  %v11029_v21 = vld [vmem:[%s21430_s1 + $0x120] sm:$0xff]  ;;  %v11012_v29 = vld [vmem:[%s21430_s1 + $0x98] sm:$0xff] }
  0x2c   : > { %1051 = vperm.xlu1 %13662, %v11005_v5   ;;  %v11031_v23 = vld [vmem:[%s21430_s1 + $0x130] sm:$0xff]  ;;  %v11037_v30 = vld [vmem:[%s21430_s1 + $0x160] sm:$0xff]  ;;  %v11014_v31 = vld [vmem:[%s21430_s1 + $0xa8] sm:$0xff] }
  0x2d   : > { %931 = vperm.xlu0 %13661, %v11003_v6   ;;  %v11035_v28 = vld [vmem:[%s21430_s1 + $0x150] sm:$0xff]  ;;  %v11016_v33 = vld [vmem:[%s21430_s1 + $0xb8] sm:$0xff]  ;;  %v11041_v34 = vld [vmem:[%s21430_s1 + $0x180] sm:$0xff] }
  0x2e   : > { %v11039_v32 = vld [vmem:[%s21430_s1 + $0x170] sm:$0xff]  ;;  %v11020_v35 = vld [vmem:[%s21430_s1 + $0xd8] sm:$0xff]  ;;  %v11018_v36 = vld [vmem:[%s21430_s1 + $0xc8] sm:$0xff] }
  0x2f   : > { %v11024_v37 = vld [vmem:[%s21430_s1 + $0xf8] sm:$0xff]  ;;  %v11022_v38 = vld [vmem:[%s21430_s1 + $0xe8] sm:$0xff]  ;;  %v328_v40 = vld [vmem:[%s21430_s1] sm:$0xff] }
  0x30   : > { %1291 = vperm.xlu1 %13662, %v11009_v7   ;;  %v11026_v39 = vld [vmem:[%s21430_s1 + $0x108] sm:$0xff]  ;;  %v11028_v41 = vld [vmem:[%s21430_s1 + $0x118] sm:$0xff]  ;;  %v14443_v52 = vld [vmem:[%s14438_s23] sm:$0xff] }
  0x31   : > { %1171 = vperm.xlu0 %13661, %v11007_v8   ;;  %v11030_v42 = vld [vmem:[%s21430_s1 + $0x128] sm:$0xff]  ;;  %v11032_v43 = vld [vmem:[%s21430_s1 + $0x138] sm:$0xff]  ;;  %v14448_v53 = vrot.slane %v14443_v52, %v21076_v50  ;;  %v14453_v54 = vrot.slane %v14443_v52, %v21078_v51  ;;  %v14470_v62 = vrot.slane %v14443_v52, %v14456_v55  ;;  %v14475_v63 = vrot.slane %v14443_v52, %v21077_v56 }
  0x32   : > { %v11036_v44 = vld [vmem:[%s21430_s1 + $0x158] sm:$0xff]  ;;  %v11038_v45 = vld [vmem:[%s21430_s1 + $0x168] sm:$0xff]  ;;  %v14490_v4 = vrot.slane %v14443_v52, %v21075_v59 }
  0x33   : > { %v11040_v46 = vld [vmem:[%s21430_s1 + $0x178] sm:$0xff]  ;;  %v11042_v47 = vld [vmem:[%s21430_s1 + $0x188] sm:$0xff] }
  0x34   : > { %1531 = vperm.xlu1 %13662, %v11013_v9   ;;  %21434 = vst [vmem:[#allocation16_spill] sm:$0xff] %v14490_v4 }
  0x35   : > { %1411 = vperm.xlu0 %13661, %v11011_v10  }
  0x38   : > { %1771 = vperm.xlu1 %13662, %v11017_v11  }
  0x39   : > { %1651 = vperm.xlu0 %13661, %v11015_v12  }
  0x3c   : > { %2011 = vperm.xlu1 %13662, %v11021_v13  }
  0x3d   : > { %1891 = vperm.xlu0 %13661, %v11019_v14  }
  0x40   : > { %2131 = vperm.xlu1 %13662, %v11023_v15  }
  0x41   : > { %415 = vperm.xlu0 %13661, %v10996_v16  }
  0x44   : > { %2251 = vperm.xlu1 %13662, %v11025_v17  }
  0x45   : > { %576 = vperm.xlu0 %13661, %v10998_v18  }
  0x48   : > { %2371 = vperm.xlu1 %13662, %v11027_v19  }
  0x49   : > { %696 = vperm.xlu0 %13661, %v11000_v20  }
  0x4c   : > { %2491 = vperm.xlu1 %13662, %v11029_v21  }
  0x4d   : > { %816 = vperm.xlu0 %13661, %v11002_v22  }
  0x50   : > { %2611 = vperm.xlu1 %13662, %v11031_v23  }
  0x51   : > { %936 = vperm.xlu0 %13661, %v11004_v24  }
  0x54   : > { %1176 = vperm.xlu1 %13662, %v11008_v25  }
  0x55   : > { %1056 = vperm.xlu0 %13661, %v11006_v26  }
  0x58   : > { %1296 = vperm.xlu1 %13662, %v11010_v27  }
  0x59   : > { %2810 = vperm.xlu0 %13661, %v11035_v28  }
  0x5c   : > { %1416 = vperm.xlu1 %13662, %v11012_v29  }
  0x5d   : > { %2970 = vperm.xlu0 %13661, %v11037_v30  }
  0x60   : > { %1536 = vperm.xlu1 %13662, %v11014_v31  }
  0x61   : > { %3089 = vperm.xlu0 %13661, %v11039_v32  }
  0x64   : > { %1656 = vperm.xlu1 %13662, %v11016_v33  }
  0x65   : > { %3208 = vperm.xlu0 %13661, %v11041_v34  }
  0x68   : > { %1896 = vperm.xlu1 %13662, %v11020_v35  }
  0x69   : > { %1776 = vperm.xlu0 %13661, %v11018_v36  }
  0x6c   : > { %2136 = vperm.xlu1 %13662, %v11024_v37  }
  0x6d   : > { %2016 = vperm.xlu0 %13661, %v11022_v38  }
  0x70   : > { %332 = vperm.xlu1 %13662, %v328_v40  }
  0x71   : > { %2256 = vperm.xlu0 %13661, %v11026_v39  }
  0x74   : > { %2496 = vperm.xlu1 %13662, %v11030_v42  }
  0x75   : > { %2376 = vperm.xlu0 %13661, %v11028_v41  }
  0x79   : > { %2616 = vperm.xlu0 %13661, %v11032_v43  }
  0x7d   : > { %2815 = vperm.xlu0 %13661, %v11036_v44  }
  0x81   : > { %2975 = vperm.xlu0 %13661, %v11038_v45  }
  0x85   : > { %3094 = vperm.xlu0 %13661, %v11040_v46  }
  0x89   : > { %3213 = vperm.xlu0 %13661, %v11042_v47  }
  0xa3   : > { %v14459_v57 = vpop.permute.xlu1 %691 }
  0xa4   : > { %v14461_v58 = vpop.permute.xlu0 %410  ;;  %v701_v13 = vmul.f32 %v14459_v57, %v14448_v53  ;;  %v703_v17 = vmul.f32 %v14459_v57, %v14470_v62  ;;  %v700_v22 = vmul.f32 %v14459_v57, %v14453_v54  ;;  %v702_v27 = vmul.f32 %v14459_v57, %v14475_v63 }
  0xa5   : > { %v461_v60 = vmul.f32 %v14448_v53, %v14461_v58  ;;  %v460_v61 = vmul.f32 %v14453_v54, %v14461_v58  ;;  %v463_v2 = vmul.f32 %v14470_v62, %v14461_v58  ;;  %v462_v3 = vmul.f32 %v14475_v63, %v14461_v58 }
  0xa6   : > { %v459_v8 = vmul.f32 %v14490_v4, %v14461_v58  ;;  %v699_v30 = vmul.f32 %v14459_v57, %v14490_v4 }
  0xa7   : > { %495 = vrot.lane.b32.xlu0 %v461_v60, %s21291_s24  ;;  %493 = vrot.lane.b32.xlu1 %v460_v61, %s21291_s24  ;;  %v14479_v0 = vpop.permute.xlu1 %811 }
  0xa8   : > { %v14481_v1 = vpop.permute.xlu0 %571  ;;  %v821_v21 = vmul.f32 %v14479_v0, %v14448_v53  ;;  %v823_v26 = vmul.f32 %v14479_v0, %v14470_v62  ;;  %v820_v34 = vmul.f32 %v14479_v0, %v14453_v54  ;;  %v822_v38 = vmul.f32 %v14479_v0, %v14475_v63 }
  0xa9   : > { %v581_v7 = vmul.f32 %v14481_v1, %v14448_v53  ;;  %v583_v11 = vmul.f32 %v14481_v1, %v14470_v62  ;;  %v580_v12 = vmul.f32 %v14481_v1, %v14453_v54  ;;  %v582_v16 = vmul.f32 %v14481_v1, %v14475_v63 }
  0xaa   : > { %v579_v19 = vmul.f32 %v14481_v1, %v14490_v4  ;;  %v819_v41 = vmul.f32 %v14479_v0, %v14490_v4 }
  0xab   : > { %499 = vrot.lane.b32.xlu0 %v463_v2, %s21291_s24  ;;  %497 = vrot.lane.b32.xlu1 %v462_v3, %s21291_s24  ;;  %v14494_v5 = vpop.permute.xlu1 %1051 }
  0xac   : > { %v14496_v6 = vpop.permute.xlu0 %931  ;;  %v1060_v37 = vmul.f32 %v14494_v5, %v14453_v54  ;;  %v1062_v40 = vmul.f32 %v14494_v5, %v14475_v63  ;;  %v1059_v44 = vmul.f32 %v14494_v5, %v14490_v4 }
  0xad   : > { %v941_v29 = vmul.f32 %v14496_v6, %v14448_v53  ;;  %v943_v33 = vmul.f32 %v14496_v6, %v14470_v62  ;;  %v940_v45 = vmul.f32 %v14496_v6, %v14453_v54  ;;  %v942_v60 = vmul.f32 %v14496_v6, %v14475_v63 }
  0xae   : > { %v939_v3 = vmul.f32 %v14496_v6, %v14490_v4 }
  0xaf   : > { %615 = vrot.lane.b32.xlu0 %v581_v7, %s21289_s25  ;;  %491 = vrot.lane.b32.xlu1 %v459_v8, %s21291_s24  ;;  %v14504_v9 = vpop.permute.xlu1 %1291 }
  0xb0   : > { %v14506_v10 = vpop.permute.xlu0 %1171 }
  0xb1   : > { %v1181_v48 = vmul.f32 %v14506_v10, %v14448_v53  ;;  %v1183_v2 = vmul.f32 %v14506_v10, %v14470_v62 }
  0xb3   : > { %619 = vrot.lane.b32.xlu0 %v583_v11, %s21289_s25  ;;  %613 = vrot.lane.b32.xlu1 %v580_v12, %s21289_s25  ;;  %v14518_v15 = vpop.permute.xlu1 %1531  ;;  %v1300_v11 = vmul.f32 %v14504_v9, %v14453_v54  ;;  %v1061_v12 = vmul.f32 %v14494_v5, %v14448_v53 }
  0xb4   : > { %v14516_v14 = vpop.permute.xlu0 %1411  ;;  %21435 = vst [vmem:[#allocation17_spill] sm:$0xff] %v14518_v15 }
  0xb7   : > { %735 = vrot.lane.b32.xlu0 %v701_v13, %s21220_s26  ;;  %617 = vrot.lane.b32.xlu1 %v582_v16, %s21289_s25  ;;  %v14530_v20 = vpop.permute.xlu1 %1771 }
  0xb8   : > { %v14526_v18 = vpop.permute.xlu0 %1651  ;;  %21437 = vst [vmem:[#allocation19_spill] sm:$0xff] %v14530_v20 }
  0xb9   : > { %21436 = vst [vmem:[#allocation18_spill] sm:$0xff] %v14526_v18 }
  0xbb   : > { %739 = vrot.lane.b32.xlu0 %v703_v17, %s21220_s26  ;;  %611 = vrot.lane.b32.xlu1 %v579_v19, %s21289_s25  ;;  %v14544_v25 = vpop.permute.xlu1 %2011  ;;  %v1302_v17 = vmul.f32 %v14504_v9, %v14475_v63  ;;  %v1063_v19 = vmul.f32 %v14494_v5, %v14470_v62 }
  0xbc   : > { %v14538_v23 = vpop.permute.xlu0 %1891  ;;  %21439 = vst [vmem:[#allocation21_spill] sm:$0xff] %v14544_v25 }
  0xbd   : > { %21438 = vst [vmem:[#allocation20_spill] sm:$0xff] %v14538_v23 }
  0xbf   : > { %855 = vrot.lane.b32.xlu0 %v821_v21, %s21246_s27  ;;  %733 = vrot.lane.b32.xlu1 %v700_v22, %s21220_s26  ;;  %v14558_v31 = vpop.permute.xlu1 %2131  ;;  %v1299_v22 = vmul.f32 %v14504_v9, %v14490_v4 }
  0xc0   : > { %v14542_v24 = vpop.permute.xlu0 %415  ;;  %21441 = vst [vmem:[#allocation23_spill] sm:$0xff] %v14558_v31 }
  0xc3   : > { %859 = vrot.lane.b32.xlu0 %v823_v26, %s21246_s27  ;;  %737 = vrot.lane.b32.xlu1 %v702_v27, %s21220_s26  ;;  %v14572_v36 = vpop.permute.xlu1 %2251  ;;  %v1180_v26 = vmul.f32 %v14506_v10, %v14453_v54 }
  0xc4   : > { %v14552_v28 = vpop.permute.xlu0 %576  ;;  %21444 = vst [vmem:[#allocation26_spill] sm:$0xff] %v14572_v36 }
  0xc5   : > { %21440 = vst [vmem:[#allocation22_spill] sm:$0xff] %v14552_v28 }
  0xc7   : > { %975 = vrot.lane.b32.xlu0 %v941_v29, %s21229_s28  ;;  %731 = vrot.lane.b32.xlu1 %v699_v30, %s21220_s26  ;;  %v14586_v42 = vpop.permute.xlu1 %2371  ;;  %v1421_v30 = vmul.f32 %v14516_v14, %v14448_v53 }
  0xc8   : > { %v14562_v32 = vpop.permute.xlu0 %696  ;;  %21446 = vst [vmem:[#allocation28_spill] sm:$0xff] %v14586_v42 }
  0xc9   : > { %21442 = vst [vmem:[#allocation24_spill] sm:$0xff] %v14562_v32 }
  0xcb   : > { %979 = vrot.lane.b32.xlu0 %v943_v33, %s21229_s28  ;;  %853 = vrot.lane.b32.xlu1 %v820_v34, %s21246_s27  ;;  %v14600_v47 = vpop.permute.xlu1 %2491  ;;  %v1182_v33 = vmul.f32 %v14506_v10, %v14475_v63 }
  0xcc   : > { %v14570_v35 = vpop.permute.xlu0 %816  ;;  %21449 = vst [vmem:[#allocation31_spill] sm:$0xff] %v14600_v47 }
  0xcd   : > { %21443 = vst [vmem:[#allocation25_spill] sm:$0xff] %v14570_v35 }
  0xcf   : > { %1093 = vrot.lane.b32.xlu0 %v1060_v37, %s21236_s29  ;;  %857 = vrot.lane.b32.xlu1 %v822_v38, %s21246_s27  ;;  %v14614_v7 = vpop.permute.xlu1 %2611  ;;  %v1423_v38 = vmul.f32 %v14516_v14, %v14470_v62 }
  0xd0   : > { %v14580_v39 = vpop.permute.xlu0 %936  ;;  %21451 = vst [vmem:[#allocation33_spill] sm:$0xff] %v14614_v7 }
  0xd1   : > { %21445 = vst [vmem:[#allocation27_spill] sm:$0xff] %v14580_v39 }
  0xd3   : > { %1097 = vrot.lane.b32.xlu0 %v1062_v40, %s21236_s29  ;;  %851 = vrot.lane.b32.xlu1 %v819_v41, %s21246_s27  ;;  %v14628_v16 = vpop.permute.xlu1 %1176  ;;  %v1179_v40 = vmul.f32 %v14506_v10, %v14490_v4  ;;  %v1540_v41 = vmul.f32 %v14518_v15, %v14453_v54 }
  0xd4   : > { %v14590_v43 = vpop.permute.xlu0 %1056  ;;  %21454 = vst [vmem:[#allocation36_spill] sm:$0xff] %v14628_v16 }
  0xd5   : > { %21447 = vst [vmem:[#allocation29_spill] sm:$0xff] %v14590_v43 }
  0xd7   : > { %1091 = vrot.lane.b32.xlu0 %v1059_v44, %s21236_s29  ;;  %973 = vrot.lane.b32.xlu1 %v940_v45, %s21229_s28  ;;  %v14642_v27 = vpop.permute.xlu1 %1296  ;;  %v1301_v44 = vmul.f32 %v14504_v9, %v14448_v53 }
  0xd8   : > { %v14598_v46 = vpop.permute.xlu0 %2810  ;;  %21456 = vst [vmem:[#allocation38_spill] sm:$0xff] %v14642_v27 }
  0xd9   : > { %21448 = vst [vmem:[#allocation30_spill] sm:$0xff] %v14598_v46 }
  0xdb   : > { %1215 = vrot.lane.b32.xlu0 %v1181_v48, %s21071_s14  ;;  %977 = vrot.lane.b32.xlu1 %v942_v60, %s21229_s28  ;;  %v14654_v34 = vpop.permute.xlu1 %1416  ;;  %v1542_v60 = vmul.f32 %v14518_v15, %v14475_v63 }
  0xdc   : > { %v14608_v61 = vpop.permute.xlu0 %2970  ;;  %21458 = vst [vmem:[#allocation40_spill] sm:$0xff] %v14654_v34 }
  0xdd   : > { %21450 = vst [vmem:[#allocation32_spill] sm:$0xff] %v14608_v61 }
  0xdf   : > { %1219 = vrot.lane.b32.xlu0 %v1183_v2, %s21071_s14  ;;  %971 = vrot.lane.b32.xlu1 %v939_v3, %s21229_s28  ;;  %v14668_v45 = vpop.permute.xlu1 %1536  ;;  %v1303_v2 = vmul.f32 %v14504_v9, %v14470_v62 }
  0xe0   : > { %v14618_v8 = vpop.permute.xlu0 %3089  ;;  %21460 = vst [vmem:[#allocation42_spill] sm:$0xff] %v14668_v45 }
  0xe1   : > { %21452 = vst [vmem:[#allocation34_spill] sm:$0xff] %v14618_v8 }
  0xe3   : > { %1333 = vrot.lane.b32.xlu0 %v1300_v11, %s21069_s16  ;;  %1095 = vrot.lane.b32.xlu1 %v1061_v12, %s21236_s29  ;;  %v14680_v3 = vpop.permute.xlu1 %1656  ;;  %v1539_v12 = vmul.f32 %v14518_v15, %v14490_v4 }
  0xe4   : > { %v14626_v13 = vpop.permute.xlu0 %3208  ;;  %21462 = vst [vmem:[#allocation44_spill] sm:$0xff] %v14680_v3 }
  0xe5   : > { %21453 = vst [vmem:[#allocation35_spill] sm:$0xff] %v14626_v13 }
  0xe7   : > { %1337 = vrot.lane.b32.xlu0 %v1302_v17, %s21069_s16  ;;  %1099 = vrot.lane.b32.xlu1 %v1063_v19, %s21236_s29  ;;  %v1420_v17 = vmul.f32 %v14516_v14, %v14453_v54  ;;  %v1660_v19 = vmul.f32 %v14526_v18, %v14453_v54 }
  0xe8   : > { %v14636_v21 = vpop.permute.xlu0 %1776 }
  0xe9   : > { %21455 = vst [vmem:[#allocation37_spill] sm:$0xff] %v14636_v21 }
  0xeb   : > { %1331 = vrot.lane.b32.xlu0 %v1299_v22, %s21069_s16  ;;  %1213 = vrot.lane.b32.xlu1 %v1180_v26, %s21071_s14  ;;  %v1422_v22 = vmul.f32 %v14516_v14, %v14475_v63  ;;  %v14694_v26 = vpop.permute.xlu1 %1896 }
  0xec   : > { %v14646_v29 = vpop.permute.xlu0 %2016  ;;  %21464 = vst [vmem:[#allocation46_spill] sm:$0xff] %v14694_v26 }
  0xed   : > { %21457 = vst [vmem:[#allocation39_spill] sm:$0xff] %v14646_v29 }
  0xef   : > { %1455 = vrot.lane.b32.xlu0 %v1421_v30, %s21067_s17  ;;  %1217 = vrot.lane.b32.xlu1 %v1182_v33, %s21071_s14  ;;  %v1662_v33 = vmul.f32 %v14526_v18, %v14475_v63 }
  0xf0   : > { %v14656_v37 = vpop.permute.xlu0 %2256 }
  0xf1   : > { %21459 = vst [vmem:[#allocation41_spill] sm:$0xff] %v14656_v37 }
  0xf3   : > { %1459 = vrot.lane.b32.xlu0 %v1423_v38, %s21067_s17  ;;  %1211 = vrot.lane.b32.xlu1 %v1179_v40, %s21071_s14  ;;  %v1419_v38 = vmul.f32 %v14516_v14, %v14490_v4  ;;  %v14706_v40 = vpop.permute.xlu1 %2136  ;;  %s21097_s14 = smov 60  }
  0xf4   : > { %v14670_v48 = vpop.permute.xlu0 %2376  ;;  %21466 = vst [vmem:[#allocation48_spill] sm:$0xff] %v14706_v40 }
  0xf5   : > { %21461 = vst [vmem:[#allocation43_spill] sm:$0xff] %v14670_v48 }
  0xf7   : > { %1573 = vrot.lane.b32.xlu0 %v1540_v41, %s21073_s21  ;;  %1335 = vrot.lane.b32.xlu1 %v1301_v44, %s21069_s16  ;;  %v1659_v44 = vmul.f32 %v14526_v18, %v14490_v4 }
  0xf8   : > { %v14682_v11 = vpop.permute.xlu0 %2616 }
  0xf9   : > { %21463 = vst [vmem:[#allocation45_spill] sm:$0xff] %v14682_v11 }
  0xfb   : > { %1577 = vrot.lane.b32.xlu0 %v1542_v60, %s21073_s21  ;;  %1339 = vrot.lane.b32.xlu1 %v1303_v2, %s21069_s16  ;;  %v1541_v60 = vmul.f32 %v14518_v15, %v14448_v53  ;;  %v1781_v2 = vmul.f32 %v14530_v20, %v14448_v53  ;;  %s21183_s16 = smov 32  }
  0xfc   : > { %v14696_v30 = vpop.permute.xlu0 %2815 }
  0xfd   : > { %21465 = vst [vmem:[#allocation47_spill] sm:$0xff] %v14696_v30 }
  0xff   : > { %1571 = vrot.lane.b32.xlu0 %v1539_v12, %s21073_s21  ;;  %1453 = vrot.lane.b32.xlu1 %v1420_v17, %s21067_s17  ;;  %v1543_v12 = vmul.f32 %v14518_v15, %v14470_v62  ;;  %v14720_v17 = vpop.permute.xlu1 %332 }
 0x100   : > { %v14708_v41 = vpop.permute.xlu0 %2975  ;;  %21468 = vst [vmem:[#allocation50_spill] sm:$0xff] %v14720_v17 }
 0x101   : > { %21467 = vst [vmem:[#allocation49_spill] sm:$0xff] %v14708_v41  ;;  %v1779_v41 = vmul.f32 %v14530_v20, %v14490_v4 }
 0x103   : > { %1693 = vrot.lane.b32.xlu0 %v1660_v19, %s21272_s22  ;;  %1457 = vrot.lane.b32.xlu1 %v1422_v22, %s21067_s17  ;;  %v329_v22 = vld [vmem:[%s21430_s1 + $0x8] sm:$0xff] }
 0x104   : > { %v14722_v19 = vpop.permute.xlu0 %3094 }
 0x105   : > { %21469 = vst [vmem:[#allocation51_spill] sm:$0xff] %v14722_v19 }
 0x107   : > { %1697 = vrot.lane.b32.xlu0 %v1662_v33, %s21272_s22  ;;  %1451 = vrot.lane.b32.xlu1 %v1419_v38, %s21067_s17  ;;  %s21103_s17 = smov 62   ;;  %v1783_v33 = vmul.f32 %v14530_v20, %v14470_v62  ;;  %v14732_v38 = vpop.permute.xlu1 %2496 }
 0x108   : > { %21470 = vst [vmem:[#allocation52_spill] sm:$0xff] %v14732_v38 }
 0x10b   : > { %1691 = vrot.lane.b32.xlu0 %v1659_v44, %s21272_s22  ;;  %1575 = vrot.lane.b32.xlu1 %v1541_v60, %s21073_s21  ;;  %v14734_v44 = vpop.permute.xlu0 %3213  ;;  %v1900_v60 = vmul.f32 %v14538_v23, %v14453_v54 }
 0x10c   : > { %21471 = vst [vmem:[#allocation53_spill] sm:$0xff] %v14734_v44 }
 0x10f   : > { %1815 = vrot.lane.b32.xlu0 %v1781_v2, %s21103_s17  ;;  %1579 = vrot.lane.b32.xlu1 %v1543_v12, %s21073_s21  ;;  %v1661_v2 = vmul.f32 %v14526_v18, %v14448_v53  ;;  %s21101_s21 = smov 61  }
 0x113   : > { %1819 = vrot.lane.b32.xlu0 %v1783_v33, %s21103_s17  ;;  %337 = vperm.xlu1 %13662, %v329_v22   ;;  %v1902_v22 = vmul.f32 %v14538_v23, %v14475_v63  ;;  %v1663_v33 = vmul.f32 %v14526_v18, %v14470_v62 }
 0x117   : > { %1933 = vrot.lane.b32.xlu0 %v1900_v60, %s21101_s21  ;;  %1695 = vrot.lane.b32.xlu1 %v1661_v2, %s21272_s22  ;;  %v1899_v60 = vmul.f32 %v14538_v23, %v14490_v4  ;;  %v1780_v2 = vmul.f32 %v14530_v20, %v14453_v54 }
 0x119   : > { %v14742_v12 = vpop.permute.xlu0 %495  ;;  %v14744_v59 = vpop.permute.xlu1 %493 }
 0x11b   : > { %1937 = vrot.lane.b32.xlu0 %v1902_v22, %s21101_s21  ;;  %1699 = vrot.lane.b32.xlu1 %v1663_v33, %s21272_s22  ;;  %v2021_v22 = vmul.f32 %v14544_v25, %v14448_v53  ;;  %v1782_v33 = vmul.f32 %v14530_v20, %v14475_v63 }
 0x11d   : > { %v14752_v50 = vpop.permute.xlu0 %499  ;;  %v14754_v56 = vpop.permute.xlu1 %497 }
 0x11e   : > { %21472 = vst [vmem:[#allocation54_spill] sm:$0xff] %v14752_v50 }
 0x11f   : > { %1931 = vrot.lane.b32.xlu0 %v1899_v60, %s21101_s21  ;;  %1813 = vrot.lane.b32.xlu1 %v1780_v2, %s21103_s17  ;;  %v2023_v2 = vmul.f32 %v14544_v25, %v14470_v62 }
 0x121   : > { %v14762_v51 = vpop.permute.xlu0 %615  ;;  %v14764_v44 = vpop.permute.xlu1 %491 }
 0x123   : > { %2055 = vrot.lane.b32.xlu0 %v2021_v22, %s21097_s14  ;;  %1817 = vrot.lane.b32.xlu1 %v1782_v33, %s21103_s17  ;;  %v468_v22 = vmul.f32 %v14453_v54, %v14542_v24  ;;  %v1901_v33 = vmul.f32 %v14538_v23, %v14448_v53 }
 0x125   : > { %v14772_v19 = vpop.permute.xlu0 %619  ;;  %v14774_v60 = vpop.permute.xlu1 %613 }
 0x126   : > { %21473 = vst [vmem:[#allocation55_spill] sm:$0xff] %v14772_v19 }
 0x127   : > { %2059 = vrot.lane.b32.xlu0 %v2023_v2, %s21097_s14  ;;  %1811 = vrot.lane.b32.xlu1 %v1779_v41, %s21103_s17  ;;  %v470_v41 = vmul.f32 %v14475_v63, %v14542_v24  ;;  %v1903_v2 = vmul.f32 %v14538_v23, %v14470_v62  ;;  %s21136_s17 = smov 30  }
 0x129   : > { %v14782_v30 = vpop.permute.xlu0 %735  ;;  %v14784_v11 = vpop.permute.xlu1 %617 }
 0x12a   : > { %21474 = vst [vmem:[#allocation56_spill] sm:$0xff] %v14782_v30  ;;  %21475 = vst [vmem:[#allocation57_spill] sm:$0xff] %v14784_v11 }
 0x12b   : > { %509 = vrot.lane.b32.xlu0 %v468_v22, %s21291_s24  ;;  %1935 = vrot.lane.b32.xlu1 %v1901_v33, %s21101_s21  ;;  %v2140_v22 = vmul.f32 %v14558_v31, %v14453_v54  ;;  %v2020_v33 = vmul.f32 %v14544_v25, %v14453_v54 }
 0x12d   : > { %v14792_v38 = vpop.permute.xlu0 %739  ;;  %v14794_v48 = vpop.permute.xlu1 %611 }
 0x12e   : > { %21476 = vst [vmem:[#allocation58_spill] sm:$0xff] %v14792_v38 }
 0x12f   : > { %513 = vrot.lane.b32.xlu0 %v470_v41, %s21291_s24  ;;  %1939 = vrot.lane.b32.xlu1 %v1903_v2, %s21101_s21  ;;  %v2142_v2 = vmul.f32 %v14558_v31, %v14475_v63  ;;  %s21169_s21 = smov 29  }
 0x131   : > { %v14802_v19 = vpop.permute.xlu0 %855  ;;  %v14804_v30 = vpop.permute.xlu1 %733 }
 0x132   : > { %21477 = vst [vmem:[#allocation59_spill] sm:$0xff] %v14802_v19  ;;  %v2022_v19 = vmul.f32 %v14544_v25, %v14475_v63 }
 0x133   : > { %2173 = vrot.lane.b32.xlu0 %v2140_v22, %s21183_s16  ;;  %2053 = vrot.lane.b32.xlu1 %v2020_v33, %s21097_s14  ;;  %v467_v22 = vmul.f32 %v14490_v4, %v14542_v24  ;;  %v2019_v33 = vmul.f32 %v14544_v25, %v14490_v4 }
 0x135   : > { %v14812_v38 = vpop.permute.xlu0 %859  ;;  %v14814_v41 = vpop.permute.xlu1 %737 }
 0x136   : > { %21478 = vst [vmem:[#allocation60_spill] sm:$0xff] %v14812_v38  ;;  %21479 = vst [vmem:[#allocation61_spill] sm:$0xff] %v14814_v41 }
 0x137   : > { %2177 = vrot.lane.b32.xlu0 %v2142_v2, %s21183_s16  ;;  %2057 = vrot.lane.b32.xlu1 %v2022_v19, %s21097_s14  ;;  %v588_v19 = vmul.f32 %v14552_v28, %v14453_v54  ;;  %v469_v2 = vmul.f32 %v14448_v53, %v14542_v24 }
 0x139   : > { %v14822_v11 = vpop.permute.xlu0 %975  ;;  %v14824_v50 = vpop.permute.xlu1 %731 }
 0x13a   : > { %21480 = vst [vmem:[#allocation62_spill] sm:$0xff] %v14822_v11  ;;  %21481 = vst [vmem:[#allocation63_spill] sm:$0xff] %v14824_v50 }
 0x13b   : > { %507 = vrot.lane.b32.xlu0 %v467_v22, %s21291_s24  ;;  %2051 = vrot.lane.b32.xlu1 %v2019_v33, %s21097_s14  ;;  %v590_v22 = vmul.f32 %v14552_v28, %v14475_v63  ;;  %v471_v33 = vmul.f32 %v14470_v62, %v14542_v24  ;;  %s21181_s14 = smov 31  }
 0x13d   : > { %v14832_v38 = vpop.permute.xlu0 %979  ;;  %v14834_v41 = vpop.permute.xlu1 %853 }
 0x13e   : > { %21482 = vst [vmem:[#allocation64_spill] sm:$0xff] %v14832_v38  ;;  %21483 = vst [vmem:[#allocation65_spill] sm:$0xff] %v14834_v41 }
 0x13f   : > { %629 = vrot.lane.b32.xlu0 %v588_v19, %s21289_s25  ;;  %511 = vrot.lane.b32.xlu1 %v469_v2, %s21291_s24  ;;  %v2260_v19 = vmul.f32 %v14572_v36, %v14453_v54  ;;  %v2141_v2 = vmul.f32 %v14558_v31, %v14448_v53 }
 0x141   : > { %v14842_v11 = vpop.permute.xlu0 %1093  ;;  %v14844_v50 = vpop.permute.xlu1 %857 }
 0x142   : > { %21484 = vst [vmem:[#allocation66_spill] sm:$0xff] %v14842_v11  ;;  %21485 = vst [vmem:[#allocation67_spill] sm:$0xff] %v14844_v50 }
 0x143   : > { %633 = vrot.lane.b32.xlu0 %v590_v22, %s21289_s25  ;;  %515 = vrot.lane.b32.xlu1 %v471_v33, %s21291_s24  ;;  %v2262_v33 = vmul.f32 %v14572_v36, %v14475_v63 }
 0x145   : > { %v14852_v38 = vpop.permute.xlu0 %1097  ;;  %v14854_v41 = vpop.permute.xlu1 %851 }
 0x146   : > { %21486 = vst [vmem:[#allocation68_spill] sm:$0xff] %v14852_v38  ;;  %21487 = vst [vmem:[#allocation69_spill] sm:$0xff] %v14854_v41  ;;  %v2143_v38 = vmul.f32 %v14558_v31, %v14470_v62 }
 0x147   : > { %2293 = vrot.lane.b32.xlu0 %v2260_v19, %s21181_s14  ;;  %2175 = vrot.lane.b32.xlu1 %v2141_v2, %s21183_s16  ;;  %v11033_v19 = vld [vmem:[%s21430_s1 + $0x140] sm:$0xff] }
 0x149   : > { %v14862_v11 = vpop.permute.xlu0 %1091  ;;  %v14864_v22 = vpop.permute.xlu1 %973 }
 0x14a   : > { %21488 = vst [vmem:[#allocation70_spill] sm:$0xff] %v14862_v11  ;;  %21489 = vst [vmem:[#allocation71_spill] sm:$0xff] %v14864_v22  ;;  %v2139_v11 = vmul.f32 %v14558_v31, %v14490_v4 }
 0x14b   : > { %2297 = vrot.lane.b32.xlu0 %v2262_v33, %s21181_s14  ;;  %2179 = vrot.lane.b32.xlu1 %v2143_v38, %s21183_s16  ;;  %v2259_v38 = vmul.f32 %v14572_v36, %v14490_v4  ;;  %v589_v33 = vmul.f32 %v14552_v28, %v14448_v53 }
 0x14d   : > { %v14875_v50 = vpop.permute.xlu0 %1215  ;;  %v14877_v2 = vpop.permute.xlu1 %977 }
 0x14e   : > { %21490 = vst [vmem:[#allocation72_spill] sm:$0xff] %v14875_v50  ;;  %21491 = vst [vmem:[#allocation73_spill] sm:$0xff] %v14877_v2 }
 0x14f   : > { %2732 = vperm.xlu0 %13661, %v11033_v19   ;;  %2171 = vrot.lane.b32.xlu1 %v2139_v11, %s21183_s16  ;;  %v709_v11 = vmul.f32 %v14562_v32, %v14448_v53  ;;  %v591_v19 = vmul.f32 %v14552_v28, %v14470_v62  ;;  %s21580_s16 = smov 64  }
 0x151   : > { %v14882_v22 = vpop.permute.xlu0 %1219  ;;  %v14884_v41 = vpop.permute.xlu1 %971 }
 0x152   : > { %21492 = vst [vmem:[#allocation74_spill] sm:$0xff] %v14882_v22  ;;  %21493 = vst [vmem:[#allocation75_spill] sm:$0xff] %v14884_v41 }
 0x153   : > { %2291 = vrot.lane.b32.xlu0 %v2259_v38, %s21181_s14  ;;  %631 = vrot.lane.b32.xlu1 %v589_v33, %s21289_s25  ;;  %v711_v38 = vmul.f32 %v14562_v32, %v14470_v62  ;;  %v2261_v33 = vmul.f32 %v14572_v36, %v14448_v53 }
 0x155   : > { %v14892_v50 = vpop.permute.xlu0 %1333  ;;  %v14894_v2 = vpop.permute.xlu1 %1095 }
 0x156   : > { %21494 = vst [vmem:[#allocation76_spill] sm:$0xff] %v14892_v50  ;;  %21495 = vst [vmem:[#allocation77_spill] sm:$0xff] %v14894_v2 }
 0x157   : > { %751 = vrot.lane.b32.xlu0 %v709_v11, %s21220_s26  ;;  %635 = vrot.lane.b32.xlu1 %v591_v19, %s21289_s25  ;;  %v2381_v11 = vmul.f32 %v14586_v42, %v14448_v53  ;;  %v2263_v19 = vmul.f32 %v14572_v36, %v14470_v62 }
 0x159   : > { %v14902_v22 = vpop.permute.xlu0 %1337  ;;  %v14904_v41 = vpop.permute.xlu1 %1099 }
 0x15a   : > { %21496 = vst [vmem:[#allocation78_spill] sm:$0xff] %v14902_v22  ;;  %21497 = vst [vmem:[#allocation79_spill] sm:$0xff] %v14904_v41  ;;  %v21118_v22 = vsub.s32 7, %v14433_v49  ;;  %v587_v41 = vmul.f32 %v14552_v28, %v14490_v4 }
 0x15b   : > { %755 = vrot.lane.b32.xlu0 %v711_v38, %s21220_s26  ;;  %2295 = vrot.lane.b32.xlu1 %v2261_v33, %s21181_s14 }
 0x15c   : > { %v14934_v36 = vrot.slane %v14443_v52, %v21118_v22 }
 0x15d   : > { %v14912_v50 = vpop.permute.xlu0 %1331  ;;  %v14914_v2 = vpop.permute.xlu1 %1213 }
 0x15e   : > { %21498 = vst [vmem:[#allocation80_spill] sm:$0xff] %v14912_v50  ;;  %v2383_v50 = vmul.f32 %v14586_v42, %v14470_v62  ;;  %21501 = vst [vmem:[#allocation83_spill] sm:$0xff] %v14934_v36 }
 0x15f   : > { %2415 = vrot.lane.b32.xlu0 %v2381_v11, %s21136_s17  ;;  %2299 = vrot.lane.b32.xlu1 %v2263_v19, %s21181_s14  ;;  %s21567_s14 = smov 92  }
 0x161   : > { %v14923_v38 = vpop.permute.xlu0 %1455  ;;  %v14925_v33 = vpop.permute.xlu1 %1217 }
 0x162   : > { %21499 = vst [vmem:[#allocation81_spill] sm:$0xff] %v14923_v38  ;;  %21500 = vst [vmem:[#allocation82_spill] sm:$0xff] %v14925_v33  ;;  %v466_v38 = vmul.f32 %v14934_v36, %v14461_v58  ;;  %v708_v33 = vmul.f32 %v14562_v32, %v14453_v54 }
 0x163   : > { %2419 = vrot.lane.b32.xlu0 %v2383_v50, %s21136_s17  ;;  %627 = vrot.lane.b32.xlu1 %v587_v41, %s21289_s25  ;;  %v2379_v50 = vmul.f32 %v14586_v42, %v14490_v4  ;;  %v710_v41 = vmul.f32 %v14562_v32, %v14475_v63 }
 0x165   : > { %v14938_v11 = vpop.permute.xlu0 %1459  ;;  %v14940_v19 = vpop.permute.xlu1 %1211 }
 0x166   : > { %21502 = vst [vmem:[#allocation84_spill] sm:$0xff] %v14938_v11  ;;  %21503 = vst [vmem:[#allocation85_spill] sm:$0xff] %v14940_v19 }
 0x167   : > { %505 = vrot.lane.b32.xlu0 %v466_v38, %s21291_s24  ;;  %749 = vrot.lane.b32.xlu1 %v708_v33, %s21220_s26  ;;  %v829_v38 = vmul.f32 %v14570_v35, %v14448_v53  ;;  %v2380_v33 = vmul.f32 %v14586_v42, %v14453_v54 }
 0x169   : > { %v14948_v22 = vpop.permute.xlu0 %1573  ;;  %v14954_v28 = vpop.permute.xlu1 %1335 }
 0x16a   : > { %21504 = vst [vmem:[#allocation86_spill] sm:$0xff] %v14948_v22  ;;  %21505 = vst [vmem:[#allocation87_spill] sm:$0xff] %v14954_v28  ;;  %v21126_v22 = vsub.s32 6, %v14433_v49 }
 0x16b   : > { %2411 = vrot.lane.b32.xlu0 %v2379_v50, %s21136_s17  ;;  %753 = vrot.lane.b32.xlu1 %v710_v41, %s21220_s26  ;;  %v831_v50 = vmul.f32 %v14570_v35, %v14470_v62  ;;  %v2382_v41 = vmul.f32 %v14586_v42, %v14475_v63 }
 0x16d   : > { %v14958_v11 = vpop.permute.xlu0 %1577  ;;  %v14967_v19 = vpop.permute.xlu1 %1339 }
 0x16e   : > { %21506 = vst [vmem:[#allocation88_spill] sm:$0xff] %v14958_v11  ;;  %21507 = vst [vmem:[#allocation89_spill] sm:$0xff] %v14967_v19  ;;  %v14978_v11 = vrot.slane %v14443_v52, %v21126_v22 }
 0x16f   : > { %871 = vrot.lane.b32.xlu0 %v829_v38, %s21246_s27  ;;  %2413 = vrot.lane.b32.xlu1 %v2380_v33, %s21136_s17  ;;  %v2501_v33 = vmul.f32 %v14600_v47, %v14448_v53 }
 0x170   : > { %21509 = vst [vmem:[#allocation91_spill] sm:$0xff] %v14978_v11 }
 0x171   : > { %v14969_v28 = vpop.permute.xlu0 %1571  ;;  %v14988_v19 = vpop.permute.xlu1 %1453 }
 0x172   : > { %21508 = vst [vmem:[#allocation90_spill] sm:$0xff] %v14969_v28  ;;  %v465_v28 = vmul.f32 %v14978_v11, %v14461_v58 }
 0x173   : > { %875 = vrot.lane.b32.xlu0 %v831_v50, %s21246_s27  ;;  %2417 = vrot.lane.b32.xlu1 %v2382_v41, %s21136_s17  ;;  %v2503_v50 = vmul.f32 %v14600_v47, %v14470_v62  ;;  %v707_v41 = vmul.f32 %v14562_v32, %v14490_v4  ;;  %s21154_s17 = smov 28  }
 0x175   : > { %v14982_v38 = vpop.permute.xlu0 %1693  ;;  %v15000_v42 = vpop.permute.xlu1 %1457 }
 0x176   : > { %21510 = vst [vmem:[#allocation92_spill] sm:$0xff] %v14982_v38  ;;  %21512 = vst [vmem:[#allocation94_spill] sm:$0xff] %v15000_v42 }
 0x177   : > { %2535 = vrot.lane.b32.xlu0 %v2501_v33, %s21169_s21  ;;  %503 = vrot.lane.b32.xlu1 %v465_v28, %s21291_s24  ;;  %v586_v33 = vmul.f32 %v14481_v1, %v14934_v36  ;;  %v828_v28 = vmul.f32 %v14570_v35, %v14453_v54 }
 0x179   : > { %v14992_v22 = vpop.permute.xlu0 %1697  ;;  %v15016_v32 = vpop.permute.xlu1 %1451 }
 0x17a   : > { %21511 = vst [vmem:[#allocation93_spill] sm:$0xff] %v14992_v22  ;;  %21515 = vst [vmem:[#allocation97_spill] sm:$0xff] %v15016_v32 }
 0x17b   : > { %2539 = vrot.lane.b32.xlu0 %v2503_v50, %s21169_s21  ;;  %747 = vrot.lane.b32.xlu1 %v707_v41, %s21220_s26  ;;  %v2499_v50 = vmul.f32 %v14600_v47, %v14490_v4  ;;  %v830_v41 = vmul.f32 %v14570_v35, %v14475_v63 }
 0x17d   : > { %v15002_v38 = vpop.permute.xlu0 %1691 }
 0x17e   : > { %21513 = vst [vmem:[#allocation95_spill] sm:$0xff] %v15002_v38 }
 0x17f   : > { %625 = vrot.lane.b32.xlu0 %v586_v33, %s21289_s25  ;;  %869 = vrot.lane.b32.xlu1 %v828_v28, %s21246_s27  ;;  %v949_v33 = vmul.f32 %v14580_v39, %v14448_v53  ;;  %v2500_v28 = vmul.f32 %v14600_v47, %v14453_v54 }
 0x181   : > { %v15010_v22 = vpop.permute.xlu0 %1815 }
 0x182   : > { %21514 = vst [vmem:[#allocation96_spill] sm:$0xff] %v15010_v22  ;;  %v15028_v22 = vpop.permute.xlu1 %1575 }
 0x183   : > { %2531 = vrot.lane.b32.xlu0 %v2499_v50, %s21169_s21  ;;  %873 = vrot.lane.b32.xlu1 %v830_v41, %s21246_s27  ;;  %21517 = vst [vmem:[#allocation99_spill] sm:$0xff] %v15028_v22  ;;  %v951_v50 = vmul.f32 %v14580_v39, %v14470_v62  ;;  %v2502_v41 = vmul.f32 %v14600_v47, %v14475_v63 }
 0x185   : > { %v15020_v38 = vpop.permute.xlu0 %1819 }
 0x186   : > { %21516 = vst [vmem:[#allocation98_spill] sm:$0xff] %v15020_v38  ;;  %v15044_v32 = vpop.permute.xlu1 %1579 }
 0x187   : > { %991 = vrot.lane.b32.xlu0 %v949_v33, %s21229_s28  ;;  %2533 = vrot.lane.b32.xlu1 %v2500_v28, %s21169_s21  ;;  %v2621_v33 = vmul.f32 %v14614_v7, %v14448_v53  ;;  %v585_v28 = vmul.f32 %v14481_v1, %v14978_v11  ;;  %21520 = vst [vmem:[#allocation102_spill] sm:$0xff] %v15044_v32 }
 0x189   : > { %v15030_v42 = vpop.permute.xlu0 %1933 }
 0x18a   : > { %21518 = vst [vmem:[#allocation100_spill] sm:$0xff] %v15030_v42 }
 0x18b   : > { %995 = vrot.lane.b32.xlu0 %v951_v50, %s21229_s28  ;;  %2537 = vrot.lane.b32.xlu1 %v2502_v41, %s21169_s21  ;;  %v2623_v50 = vmul.f32 %v14614_v7, %v14470_v62  ;;  %v827_v41 = vmul.f32 %v14570_v35, %v14490_v4  ;;  %s21551_s21 = smov 93  }
 0x18d   : > { %v15038_v38 = vpop.permute.xlu0 %1937 }
 0x18e   : > { %21519 = vst [vmem:[#allocation101_spill] sm:$0xff] %v15038_v38 }
 0x18f   : > { %2655 = vrot.lane.b32.xlu0 %v2621_v33, %s21154_s17  ;;  %623 = vrot.lane.b32.xlu1 %v585_v28, %s21289_s25  ;;  %v706_v33 = vmul.f32 %v14459_v57, %v14934_v36  ;;  %v948_v28 = vmul.f32 %v14580_v39, %v14453_v54 }
 0x191   : > { %v15048_v47 = vpop.permute.xlu0 %1931 }
 0x192   : > { %21521 = vst [vmem:[#allocation103_spill] sm:$0xff] %v15048_v47  ;;  %v15054_v38 = vpop.permute.xlu1 %337 }
 0x193   : > { %21522 = vst [vmem:[#allocation104_spill] sm:$0xff] %v15054_v38  ;;  %2659 = vrot.lane.b32.xlu0 %v2623_v50, %s21154_s17  ;;  %867 = vrot.lane.b32.xlu1 %v827_v41, %s21246_s27  ;;  %v2619_v50 = vmul.f32 %v14614_v7, %v14490_v4  ;;  %v950_v41 = vmul.f32 %v14580_v39, %v14475_v63 }
 0x195   : > { %v15058_v42 = vpop.permute.xlu0 %2055 }
 0x196   : > { %21523 = vst [vmem:[#allocation105_spill] sm:$0xff] %v15058_v42  ;;  %v15064_v47 = vpop.permute.xlu1 %1695 }
 0x197   : > { %21524 = vst [vmem:[#allocation106_spill] sm:$0xff] %v15064_v47  ;;  %745 = vrot.lane.b32.xlu0 %v706_v33, %s21220_s26  ;;  %989 = vrot.lane.b32.xlu1 %v948_v28, %s21229_s28  ;;  %v1069_v33 = vmul.f32 %v14590_v43, %v14448_v53  ;;  %v2620_v28 = vmul.f32 %v14614_v7, %v14453_v54 }
 0x199   : > { %v15068_v35 = vpop.permute.xlu0 %2059 }
 0x19a   : > { %21525 = vst [vmem:[#allocation107_spill] sm:$0xff] %v15068_v35  ;;  %v15074_v38 = vpop.permute.xlu1 %1699 }
 0x19b   : > { %21526 = vst [vmem:[#allocation108_spill] sm:$0xff] %v15074_v38  ;;  %2651 = vrot.lane.b32.xlu0 %v2619_v50, %s21154_s17  ;;  %993 = vrot.lane.b32.xlu1 %v950_v41, %s21229_s28  ;;  %v1071_v50 = vmul.f32 %v14590_v43, %v14470_v62  ;;  %v2622_v41 = vmul.f32 %v14614_v7, %v14475_v63 }
 0x19c   : > { %v1188_v7 = vmul.f32 %v14628_v16, %v14453_v54 }
 0x19d   : > { %v15078_v42 = vpop.permute.xlu0 %509 }
 0x19e   : > { %21527 = vst [vmem:[#allocation109_spill] sm:$0xff] %v15078_v42  ;;  %v15084_v35 = vpop.permute.xlu1 %1813 }
 0x19f   : > { %21528 = vst [vmem:[#allocation110_spill] sm:$0xff] %v15084_v35  ;;  %1111 = vrot.lane.b32.xlu0 %v1069_v33, %s21236_s29  ;;  %2653 = vrot.lane.b32.xlu1 %v2620_v28, %s21154_s17  ;;  %v826_v33 = vmul.f32 %v14479_v0, %v14934_v36  ;;  %v705_v28 = vmul.f32 %v14459_v57, %v14978_v11 }
 0x1a1   : > { %v15088_v38 = vpop.permute.xlu0 %513 }
 0x1a2   : > { %21529 = vst [vmem:[#allocation111_spill] sm:$0xff] %v15088_v38  ;;  %v15094_v42 = vpop.permute.xlu1 %1817 }
 0x1a3   : > { %21530 = vst [vmem:[#allocation112_spill] sm:$0xff] %v15094_v42  ;;  %1115 = vrot.lane.b32.xlu0 %v1071_v50, %s21236_s29  ;;  %2657 = vrot.lane.b32.xlu1 %v2622_v41, %s21154_s17  ;;  %v947_v50 = vmul.f32 %v14580_v39, %v14490_v4  ;;  %v2804_v42 = vld [vmem:[%s14438_s23 + $0x1] sm:$0xff]  ;;  %s21534_s17 = smov 94  }
 0x1a5   : > { %v15102_v35 = vpop.permute.xlu0 %2173 }
 0x1a6   : > { %21531 = vst [vmem:[#allocation113_spill] sm:$0xff] %v15102_v35  ;;  %v15104_v38 = vpop.permute.xlu1 %1811 }
 0x1a7   : > { %21532 = vst [vmem:[#allocation114_spill] sm:$0xff] %v15104_v38  ;;  %865 = vrot.lane.b32.xlu0 %v826_v33, %s21246_s27  ;;  %743 = vrot.lane.b32.xlu1 %v705_v28, %s21220_s26  ;;  %v1190_v33 = vmul.f32 %v14628_v16, %v14475_v63  ;;  %v1068_v28 = vmul.f32 %v14590_v43, %v14453_v54  ;;  %v21536_v38 = vsub.s32 1, %v14433_v49 }
 0x1a9   : > { %v15117_v35 = vpop.permute.xlu0 %2177  ;;  %v15125_v32 = vrot.slane %v2804_v42, %v21536_v38 }
 0x1aa   : > { %v15112_v41 = vpop.permute.xlu1 %1935  ;;  %21535 = vst [vmem:[#allocation116_spill] sm:$0xff] %v15117_v35  ;;  %v21539_v35 = vsub.s32 3, %v14433_v49 }
 0x1ab   : > { %21533 = vst [vmem:[#allocation115_spill] sm:$0xff] %v15112_v41  ;;  %1229 = vrot.lane.b32.xlu0 %v1188_v7, %s21534_s17  ;;  %987 = vrot.lane.b32.xlu1 %v947_v50, %s21229_s28  ;;  %21537 = vst [vmem:[#allocation117_spill] sm:$0xff] %v15125_v32  ;;  %v2860_v7 = vmul.f32 %v15125_v32, %v14598_v46  ;;  %v1070_v50 = vmul.f32 %v14590_v43, %v14475_v63 }
 0x1ac   : > { %v15137_v41 = vrot.slane %v2804_v42, %v21539_v35 }
 0x1ad   : > { %v15139_v47 = vpop.permute.xlu0 %507 }
 0x1ae   : > { %v15127_v39 = vpop.permute.xlu1 %1939  ;;  %21540 = vst [vmem:[#allocation119_spill] sm:$0xff] %v15137_v41  ;;  %21541 = vst [vmem:[#allocation120_spill] sm:$0xff] %v15139_v47  ;;  %v945_v47 = vmul.f32 %v14496_v6, %v14978_v11 }
 0x1af   : > { %21538 = vst [vmem:[#allocation118_spill] sm:$0xff] %v15127_v39  ;;  %1233 = vrot.lane.b32.xlu0 %v1190_v33, %s21534_s17  ;;  %1109 = vrot.lane.b32.xlu1 %v1068_v28, %s21236_s29  ;;  %v2862_v33 = vmul.f32 %v15137_v41, %v14598_v46  ;;  %v825_v28 = vmul.f32 %v14479_v0, %v14978_v11 }
 0x1b1   : > { %v15153_v35 = vpop.permute.xlu0 %629 }
 0x1b2   : > { %v15141_v38 = vpop.permute.xlu1 %2053  ;;  %21544 = vst [vmem:[#allocation123_spill] sm:$0xff] %v15153_v35 }
 0x1b3   : > { %21542 = vst [vmem:[#allocation121_spill] sm:$0xff] %v15141_v38  ;;  %2893 = vrot.lane.b32.xlu0 %v2860_v7, %s21291_s24  ;;  %1113 = vrot.lane.b32.xlu1 %v1070_v50, %s21236_s29  ;;  %v1067_v7 = vmul.f32 %v14590_v43, %v14490_v4  ;;  %v1308_v43 = vmul.f32 %v14642_v27, %v14453_v54 }
 0x1b6   : > { %v15149_v39 = vpop.permute.xlu1 %2057 }
 0x1b7   : > { %21543 = vst [vmem:[#allocation122_spill] sm:$0xff] %v15149_v39  ;;  %2897 = vrot.lane.b32.xlu0 %v2862_v33, %s21291_s24  ;;  %863 = vrot.lane.b32.xlu1 %v825_v28, %s21246_s27  ;;  %v1187_v39 = vmul.f32 %v14628_v16, %v14490_v4  ;;  %v1189_v33 = vmul.f32 %v14628_v16, %v14448_v53  ;;  %v15167_v28 = vpop.permute.xlu0 %633 }
 0x1b8   : > { %21546 = vst [vmem:[#allocation125_spill] sm:$0xff] %v15167_v28 }
 0x1ba   : > { %v15159_v50 = vpop.permute.xlu1 %2051 }
 0x1bb   : > { %21545 = vst [vmem:[#allocation124_spill] sm:$0xff] %v15159_v50  ;;  %983 = vrot.lane.b32.xlu0 %v945_v47, %s21229_s28  ;;  %1107 = vrot.lane.b32.xlu1 %v1067_v7, %s21236_s29  ;;  %v1191_v47 = vmul.f32 %v14628_v16, %v14470_v62  ;;  %v21548_v7 = vsub.s32 2, %v14433_v49  ;;  %v15185_v28 = vpop.permute.xlu0 %2293 }
 0x1bc   : > { %21552 = vst [vmem:[#allocation129_spill] sm:$0xff] %v15185_v28 }
 0x1bd   : > { %v15179_v50 = vrot.slane %v2804_v42, %v21548_v7 }
 0x1be   : > { %v15169_v35 = vpop.permute.xlu1 %511 }
 0x1bf   : > { %21547 = vst [vmem:[#allocation126_spill] sm:$0xff] %v15169_v35  ;;  %1227 = vrot.lane.b32.xlu0 %v1187_v39, %s21534_s17  ;;  %1231 = vrot.lane.b32.xlu1 %v1189_v33, %s21534_s17  ;;  %21549 = vst [vmem:[#allocation127_spill] sm:$0xff] %v15179_v50  ;;  %v1310_v39 = vmul.f32 %v14642_v27, %v14475_v63  ;;  %v2861_v33 = vmul.f32 %v15179_v50, %v14598_v46  ;;  %v15202_v7 = vpop.permute.xlu0 %2297 }
 0x1c0   : > { %v15192_v35 = vrot.slane %v2804_v42, %v14456_v55  ;;  %21555 = vst [vmem:[#allocation132_spill] sm:$0xff] %v15202_v7  ;;  %v2981_v55 = vmul.f32 %v14608_v61, %v15137_v41 }
 0x1c2   : > { %v15181_v38 = vpop.permute.xlu1 %515  ;;  %21553 = vst [vmem:[#allocation130_spill] sm:$0xff] %v15192_v35 }
 0x1c3   : > { %21550 = vst [vmem:[#allocation128_spill] sm:$0xff] %v15181_v38  ;;  %1349 = vrot.lane.b32.xlu0 %v1308_v43, %s21551_s21  ;;  %1235 = vrot.lane.b32.xlu1 %v1191_v47, %s21534_s17  ;;  %v2979_v43 = vmul.f32 %v14608_v61, %v15125_v32  ;;  %v2863_v47 = vmul.f32 %v15192_v35, %v14598_v46 }
 0x1c6   : > { %v15194_v16 = vpop.permute.xlu1 %2175 }
 0x1c7   : > { %21554 = vst [vmem:[#allocation131_spill] sm:$0xff] %v15194_v16  ;;  %1353 = vrot.lane.b32.xlu0 %v1310_v39, %s21551_s21  ;;  %2895 = vrot.lane.b32.xlu1 %v2861_v33, %s21291_s24  ;;  %v946_v39 = vmul.f32 %v14496_v6, %v14934_v36  ;;  %v21557_v33 = vsub.s32 0, %v14433_v49 }
 0x1c9   : > { %v15214_v28 = vrot.slane %v2804_v42, %v21557_v33  ;;  %v1065_v42 = vmul.f32 %v14494_v5, %v14978_v11 }
 0x1ca   : > { %v15204_v38 = vpop.permute.xlu1 %2179 }
 0x1cb   : > { %21556 = vst [vmem:[#allocation133_spill] sm:$0xff] %v15204_v38  ;;  %3012 = vrot.lane.b32.xlu0 %v2979_v43, %s21289_s25  ;;  %2899 = vrot.lane.b32.xlu1 %v2863_v47, %s21291_s24  ;;  %21558 = vst [vmem:[#allocation134_spill] sm:$0xff] %v15214_v28  ;;  %v3322_v43 = vld [vmem:[%s21059_s2] sm:$0xff]  ;;  %v2859_v47 = vmul.f32 %v15214_v28, %v14598_v46 }
 0x1ce   : > { %v15216_v16 = vpop.permute.xlu0 %2732  ;;  %v15218_v22 = vpop.permute.xlu1 %2171 }
 0x1cf   : > { %21559 = vst [vmem:[#allocation135_spill] sm:$0xff] %v15216_v16  ;;  %21560 = vst [vmem:[#allocation136_spill] sm:$0xff] %v15218_v22  ;;  %3016 = vrot.lane.b32.xlu0 %v2981_v55, %s21289_s25  ;;  %985 = vrot.lane.b32.xlu1 %v946_v39, %s21229_s28  ;;  %v1309_v55 = vmul.f32 %v14642_v27, %v14448_v53 }
 0x1d2   : > { %v15227_v7 = vpop.permute.xlu0 %2291  ;;  %v15229_v38 = vpop.permute.xlu1 %631 }
 0x1d3   : > { %21561 = vst [vmem:[#allocation137_spill] sm:$0xff] %v15227_v7  ;;  %21562 = vst [vmem:[#allocation138_spill] sm:$0xff] %v15229_v38  ;;  %3326 = vperm.xlu0 %13661, %v3322_v43   ;;  %2891 = vrot.lane.b32.xlu1 %v2859_v47, %s21291_s24  ;;  %v1307_v38 = vmul.f32 %v14642_v27, %v14490_v4  ;;  %v1311_v43 = vmul.f32 %v14642_v27, %v14470_v62 }
 0x1d6   : > { %v15236_v39 = vpop.permute.xlu0 %751  ;;  %v15238_v33 = vpop.permute.xlu1 %635 }
 0x1d7   : > { %21563 = vst [vmem:[#allocation139_spill] sm:$0xff] %v15236_v39  ;;  %21564 = vst [vmem:[#allocation140_spill] sm:$0xff] %v15238_v33  ;;  %1103 = vrot.lane.b32.xlu0 %v1065_v42, %s21236_s29  ;;  %1351 = vrot.lane.b32.xlu1 %v1309_v55, %s21551_s21  ;;  %v1428_v39 = vmul.f32 %v14654_v34, %v14453_v54  ;;  %v2980_v42 = vmul.f32 %v14608_v61, %v15179_v50  ;;  %v21198_v55 = vsub.s32 5, %v14433_v49 }
 0x1da   : > { %v15246_v47 = vpop.permute.xlu0 %755  ;;  %v15248_v46 = vpop.permute.xlu1 %2295 }
 0x1db   : > { %21565 = vst [vmem:[#allocation141_spill] sm:$0xff] %v15246_v47  ;;  %1347 = vrot.lane.b32.xlu0 %v1307_v38, %s21551_s21  ;;  %1355 = vrot.lane.b32.xlu1 %v1311_v43, %s21551_s21  ;;  %v1430_v38 = vmul.f32 %v14654_v34, %v14475_v63  ;;  %v2982_v43 = vmul.f32 %v14608_v61, %v15192_v35 }
 0x1dc   : > { %v15270_v47 = vrot.slane %v14443_v52, %v21198_v55  ;;  %v3100_v52 = vmul.f32 %v14618_v8, %v15137_v41 }
 0x1de   : > { %v15257_v33 = vpop.permute.xlu0 %2415  ;;  %v15259_v7 = vpop.permute.xlu1 %2299  ;;  %21568 = vst [vmem:[#allocation143_spill] sm:$0xff] %v15270_v47 }
 0x1df   : > { %21566 = vst [vmem:[#allocation142_spill] sm:$0xff] %v15259_v7  ;;  %1469 = vrot.lane.b32.xlu0 %v1428_v39, %s21567_s14  ;;  %3014 = vrot.lane.b32.xlu1 %v2980_v42, %s21289_s25  ;;  %v3098_v39 = vmul.f32 %v14618_v8, %v15125_v32  ;;  %v464_v42 = vmul.f32 %v15270_v47, %v14461_v58 }
 0x1e0   : > { %v584_v58 = vmul.f32 %v14481_v1, %v15270_v47 }
 0x1e2   : > { %v15272_v27 = vpop.permute.xlu0 %2419  ;;  %v15274_v22 = vpop.permute.xlu1 %627 }
 0x1e3   : > { %21569 = vst [vmem:[#allocation144_spill] sm:$0xff] %v15272_v27  ;;  %21570 = vst [vmem:[#allocation145_spill] sm:$0xff] %v15274_v22  ;;  %1473 = vrot.lane.b32.xlu0 %v1430_v38, %s21567_s14  ;;  %3018 = vrot.lane.b32.xlu1 %v2982_v43, %s21289_s25  ;;  %v1066_v38 = vmul.f32 %v14494_v5, %v14934_v36 }
 0x1e6   : > { %v15282_v16 = vpop.permute.xlu0 %505  ;;  %v15284_v49 = vpop.permute.xlu1 %749 }
 0x1e7   : > { %21571 = vst [vmem:[#allocation146_spill] sm:$0xff] %v15282_v16  ;;  %21572 = vst [vmem:[#allocation147_spill] sm:$0xff] %v15284_v49  ;;  %3131 = vrot.lane.b32.xlu0 %v3098_v39, %s21220_s26  ;;  %501 = vrot.lane.b32.xlu1 %v464_v42, %s21291_s24  ;;  %v2978_v39 = vmul.f32 %v14608_v61, %v15214_v28  ;;  %s21683_s24 = smov 30  }
 0x1ea   : > { %v15292_v43 = vpop.permute.xlu0 %2411  ;;  %v15294_v55 = vpop.permute.xlu1 %753 }
 0x1eb   : > { %21573 = vst [vmem:[#allocation148_spill] sm:$0xff] %v15292_v43  ;;  %21574 = vst [vmem:[#allocation149_spill] sm:$0xff] %v15294_v55  ;;  %3135 = vrot.lane.b32.xlu0 %v3100_v52, %s21220_s26  ;;  %1105 = vrot.lane.b32.xlu1 %v1066_v38, %s21236_s29  ;;  %v1186_v55 = vmul.f32 %v14506_v10, %v14934_v36  ;;  %v1429_v52 = vmul.f32 %v14654_v34, %v14448_v53 }
 0x1ee   : > { %v15302_v42 = vpop.permute.xlu0 %871  ;;  %v15304_v16 = vpop.permute.xlu1 %2413 }
 0x1ef   : > { %21575 = vst [vmem:[#allocation150_spill] sm:$0xff] %v15302_v42  ;;  %621 = vrot.lane.b32.xlu0 %v584_v58, %s21289_s25  ;;  %3010 = vrot.lane.b32.xlu1 %v2978_v39, %s21289_s25  ;;  %v3097_v42 = vmul.f32 %v14618_v8, %v15214_v28  ;;  %v1431_v58 = vmul.f32 %v14654_v34, %v14470_v62  ;;  %s21702_s25 = smov 127  }
 0x1f2   : > { %v15312_v38 = vpop.permute.xlu0 %875  ;;  %v15314_v1 = vpop.permute.xlu1 %2417 }
 0x1f3   : > { %21576 = vst [vmem:[#allocation151_spill] sm:$0xff] %v15312_v38  ;;  %1225 = vrot.lane.b32.xlu0 %v1186_v55, %s21534_s17  ;;  %1471 = vrot.lane.b32.xlu1 %v1429_v52, %s21567_s14  ;;  %v1549_v38 = vmul.f32 %v14668_v45, %v14448_v53  ;;  %v3099_v55 = vmul.f32 %v14618_v8, %v15179_v50 }
 0x1f6   : > { %v15322_v39 = vpop.permute.xlu0 %2535  ;;  %v15324_v49 = vpop.permute.xlu1 %503 }
 0x1f7   : > { %21577 = vst [vmem:[#allocation152_spill] sm:$0xff] %v15324_v49  ;;  %3129 = vrot.lane.b32.xlu0 %v3097_v42, %s21220_s26  ;;  %1475 = vrot.lane.b32.xlu1 %v1431_v58, %s21567_s14  ;;  %v1551_v49 = vmul.f32 %v14668_v45, %v14470_v62  ;;  %v3101_v42 = vmul.f32 %v14618_v8, %v15192_v35 }
 0x1fa   : > { %v15332_v52 = vpop.permute.xlu0 %2539  ;;  %v15334_v22 = vpop.permute.xlu1 %747 }
 0x1fb   : > { %21578 = vst [vmem:[#allocation153_spill] sm:$0xff] %v15332_v52  ;;  %21579 = vst [vmem:[#allocation154_spill] sm:$0xff] %v15334_v22  ;;  %1591 = vrot.lane.b32.xlu0 %v1549_v38, %s21580_s16  ;;  %3133 = vrot.lane.b32.xlu1 %v3099_v55, %s21220_s26  ;;  %v3218_v22 = vmul.f32 %v14626_v13, %v15179_v50  ;;  %v1185_v38 = vmul.f32 %v14506_v10, %v14978_v11  ;;  %v21641_v50 = vld [vmem:[#allocation59_spill] sm:$0xff] }
 0x1fe   : > { %v15342_v58 = vpop.permute.xlu0 %625  ;;  %v15344_v61 = vpop.permute.xlu1 %869 }
 0x1ff   : > { %21581 = vst [vmem:[#allocation155_spill] sm:$0xff] %v15342_v58  ;;  %21582 = vst [vmem:[#allocation156_spill] sm:$0xff] %v15344_v61  ;;  %1595 = vrot.lane.b32.xlu0 %v1551_v49, %s21580_s16  ;;  %3137 = vrot.lane.b32.xlu1 %v3101_v42, %s21220_s26  ;;  %v3220_v58 = vmul.f32 %v14626_v13, %v15192_v35  ;;  %v1427_v49 = vmul.f32 %v14654_v34, %v14490_v4 }
 0x202   : > { %v15352_v55 = vpop.permute.xlu0 %2531  ;;  %v15354_v43 = vpop.permute.xlu1 %873 }
 0x203   : > { %21583 = vst [vmem:[#allocation157_spill] sm:$0xff] %v15352_v55  ;;  %21584 = vst [vmem:[#allocation158_spill] sm:$0xff] %v15354_v43  ;;  %3252 = vrot.lane.b32.xlu0 %v3218_v22, %s21246_s27  ;;  %1223 = vrot.lane.b32.xlu1 %v1185_v38, %s21534_s17  ;;  %v1305_v43 = vmul.f32 %v14504_v9, %v14978_v11  ;;  %v1548_v22 = vmul.f32 %v14668_v45, %v14453_v54 }
 0x206   : > { %v15362_v42 = vpop.permute.xlu0 %991  ;;  %v15364_v61 = vpop.permute.xlu1 %2533 }
 0x207   : > { %21585 = vst [vmem:[#allocation159_spill] sm:$0xff] %v15362_v42  ;;  %3256 = vrot.lane.b32.xlu0 %v3220_v58, %s21246_s27  ;;  %1467 = vrot.lane.b32.xlu1 %v1427_v49, %s21567_s14  ;;  %v1547_v42 = vmul.f32 %v14668_v45, %v14490_v4  ;;  %v1550_v58 = vmul.f32 %v14668_v45, %v14475_v63 }
 0x20a   : > { %v15372_v38 = vpop.permute.xlu0 %995  ;;  %v15374_v8 = vpop.permute.xlu1 %2537 }
 0x20b   : > { %21586 = vst [vmem:[#allocation160_spill] sm:$0xff] %v15372_v38  ;;  %1343 = vrot.lane.b32.xlu0 %v1305_v43, %s21551_s21  ;;  %1589 = vrot.lane.b32.xlu1 %v1548_v22, %s21580_s16  ;;  %v1668_v38 = vmul.f32 %v14680_v3, %v14453_v54  ;;  %v3217_v43 = vmul.f32 %v14626_v13, %v15125_v32 }
 0x20e   : > { %v15382_v49 = vpop.permute.xlu0 %2655  ;;  %v15384_v34 = vpop.permute.xlu1 %623 }
 0x20f   : > { %21587 = vst [vmem:[#allocation161_spill] sm:$0xff] %v15384_v34  ;;  %1587 = vrot.lane.b32.xlu0 %v1547_v42, %s21580_s16  ;;  %1593 = vrot.lane.b32.xlu1 %v1550_v58, %s21580_s16  ;;  %v1670_v34 = vmul.f32 %v14680_v3, %v14475_v63  ;;  %v3219_v42 = vmul.f32 %v14626_v13, %v15137_v41  ;;  %v21634_v41 = vld [vmem:[#allocation56_spill] sm:$0xff] }
 0x212   : > { %v15392_v22 = vpop.permute.xlu0 %2659  ;;  %v15394_v35 = vpop.permute.xlu1 %867 }
 0x213   : > { %21588 = vst [vmem:[#allocation162_spill] sm:$0xff] %v15392_v22  ;;  %21589 = vst [vmem:[#allocation163_spill] sm:$0xff] %v15394_v35  ;;  %1709 = vrot.lane.b32.xlu0 %v1668_v38, %s21272_s22  ;;  %3250 = vrot.lane.b32.xlu1 %v3217_v43, %s21246_s27  ;;  %v824_v35 = vmul.f32 %v14479_v0, %v15270_v47  ;;  %v704_v38 = vmul.f32 %v14459_v57, %v15270_v47 }
 0x214   : > { %v1788_v57 = vmul.f32 %v14636_v21, %v14453_v54 }
 0x216   : > { %v15402_v58 = vpop.permute.xlu0 %745  ;;  %v15404_v45 = vpop.permute.xlu1 %989 }
 0x217   : > { %21590 = vst [vmem:[#allocation164_spill] sm:$0xff] %v15402_v58  ;;  %21591 = vst [vmem:[#allocation165_spill] sm:$0xff] %v15404_v45  ;;  %1713 = vrot.lane.b32.xlu0 %v1670_v34, %s21272_s22  ;;  %3254 = vrot.lane.b32.xlu1 %v3219_v42, %s21246_s27  ;;  %v1426_v58 = vmul.f32 %v14516_v14, %v14934_v36  ;;  %v1306_v34 = vmul.f32 %v14504_v9, %v14934_v36 }
 0x21a   : > { %v15412_v43 = vpop.permute.xlu0 %2651  ;;  %v15414_v55 = vpop.permute.xlu1 %993 }
 0x21b   : > { %21592 = vst [vmem:[#allocation166_spill] sm:$0xff] %v15412_v43  ;;  %21593 = vst [vmem:[#allocation167_spill] sm:$0xff] %v15414_v55  ;;  %861 = vrot.lane.b32.xlu0 %v824_v35, %s21246_s27  ;;  %741 = vrot.lane.b32.xlu1 %v704_v38, %s21220_s26  ;;  %v3216_v35 = vmul.f32 %v14626_v13, %v15214_v28  ;;  %s21596_s26 = smov 62   ;;  %v377_v28 = vmul.f32 %v14453_v54, %v14720_v17 }
 0x21c   : > { %v379_v43 = vmul.f32 %v14475_v63, %v14720_v17 }
 0x21e   : > { %v15422_v42 = vpop.permute.xlu0 %1111  ;;  %v15424_v0 = vpop.permute.xlu1 %2653 }
 0x21f   : > { %21594 = vst [vmem:[#allocation168_spill] sm:$0xff] %v15422_v42  ;;  %1465 = vrot.lane.b32.xlu0 %v1426_v58, %s21567_s14  ;;  %1345 = vrot.lane.b32.xlu1 %v1306_v34, %s21551_s21  ;;  %v1790_v42 = vmul.f32 %v14636_v21, %v14475_v63  ;;  %v1669_v58 = vmul.f32 %v14680_v3, %v14448_v53 }
 0x222   : > { %v15432_v38 = vpop.permute.xlu0 %1115  ;;  %v15434_v55 = vpop.permute.xlu1 %2657 }
 0x223   : > { %21595 = vst [vmem:[#allocation169_spill] sm:$0xff] %v15432_v38  ;;  %1829 = vrot.lane.b32.xlu0 %v1788_v57, %s21596_s26  ;;  %3248 = vrot.lane.b32.xlu1 %v3216_v35, %s21246_s27  ;;  %v944_v38 = vmul.f32 %v14496_v6, %v15270_v47  ;;  %v1671_v57 = vmul.f32 %v14680_v3, %v14470_v62  ;;  %s21621_s27 = smov 32  }
 0x226   : > { %v15442_v34 = vpop.permute.xlu0 %865  ;;  %v15444_v45 = vpop.permute.xlu1 %743 }
 0x227   : > { %21597 = vst [vmem:[#allocation170_spill] sm:$0xff] %v15442_v34  ;;  %21598 = vst [vmem:[#allocation171_spill] sm:$0xff] %v15444_v45  ;;  %1833 = vrot.lane.b32.xlu0 %v1790_v42, %s21596_s26  ;;  %1711 = vrot.lane.b32.xlu1 %v1669_v58, %s21272_s22  ;;  %v1546_v34 = vmul.f32 %v14518_v15, %v14934_v36  ;;  %v1425_v42 = vmul.f32 %v14516_v14, %v14978_v11 }
 0x228   : > { %v1908_v45 = vmul.f32 %v14694_v26, %v14453_v54 }
 0x22a   : > { %v15452_v35 = vpop.permute.xlu0 %1229  ;;  %v15454_v13 = vpop.permute.xlu1 %987 }
 0x22b   : > { %21599 = vst [vmem:[#allocation172_spill] sm:$0xff] %v15452_v35  ;;  %21600 = vst [vmem:[#allocation173_spill] sm:$0xff] %v15454_v13  ;;  %981 = vrot.lane.b32.xlu0 %v944_v38, %s21229_s28  ;;  %1715 = vrot.lane.b32.xlu1 %v1671_v57, %s21272_s22  ;;  %v1667_v38 = vmul.f32 %v14680_v3, %v14490_v4  ;;  %s21604_s28 = smov 61  }
 0x22e   : > { %v15462_v58 = vpop.permute.xlu0 %1233  ;;  %v15464_v6 = vpop.permute.xlu1 %1109 }
 0x22f   : > { %21601 = vst [vmem:[#allocation174_spill] sm:$0xff] %v15462_v58  ;;  %21602 = vst [vmem:[#allocation175_spill] sm:$0xff] %v15464_v6  ;;  %1585 = vrot.lane.b32.xlu0 %v1546_v34, %s21580_s16  ;;  %1463 = vrot.lane.b32.xlu1 %v1425_v42, %s21567_s14  ;;  %v1910_v58 = vmul.f32 %v14694_v26, %v14475_v63  ;;  %v1789_v34 = vmul.f32 %v14636_v21, %v14448_v53 }
 0x232   : > { %v15472_v57 = vpop.permute.xlu0 %2893  ;;  %v15474_v35 = vpop.permute.xlu1 %1113 }
 0x233   : > { %21603 = vst [vmem:[#allocation176_spill] sm:$0xff] %v15474_v35  ;;  %1949 = vrot.lane.b32.xlu0 %v1908_v45, %s21604_s28  ;;  %1707 = vrot.lane.b32.xlu1 %v1667_v38, %s21272_s22  ;;  %v1064_v35 = vmul.f32 %v14494_v5, %v15270_v47  ;;  %v1791_v45 = vmul.f32 %v14636_v21, %v14470_v62 }
 0x236   : > { %v15482_v42 = vpop.permute.xlu0 %2897  ;;  %v15484_v6 = vpop.permute.xlu1 %863 }
 0x237   : > { %21605 = vst [vmem:[#allocation177_spill] sm:$0xff] %v15482_v42  ;;  %21606 = vst [vmem:[#allocation178_spill] sm:$0xff] %v15484_v6  ;;  %1953 = vrot.lane.b32.xlu0 %v1910_v58, %s21604_s28  ;;  %1831 = vrot.lane.b32.xlu1 %v1789_v34, %s21596_s26  ;;  %v1666_v6 = vmul.f32 %v14526_v18, %v14934_v36  ;;  %v1545_v58 = vmul.f32 %v14518_v15, %v14978_v11 }
 0x23a   : > { %v15492_v38 = vpop.permute.xlu0 %983  ;;  %v15494_v13 = vpop.permute.xlu1 %1107 }
 0x23b   : > { %21607 = vst [vmem:[#allocation179_spill] sm:$0xff] %v15492_v38  ;;  %21608 = vst [vmem:[#allocation180_spill] sm:$0xff] %v15494_v13  ;;  %1101 = vrot.lane.b32.xlu0 %v1064_v35, %s21236_s29  ;;  %1835 = vrot.lane.b32.xlu1 %v1791_v45, %s21596_s26  ;;  %v2028_v38 = vmul.f32 %v14646_v29, %v14453_v54  ;;  %v1787_v35 = vmul.f32 %v14636_v21, %v14490_v4  ;;  %s21613_s29 = smov 60  }
 0x23c   : > { %v2148_v21 = vmul.f32 %v14706_v40, %v14453_v54 }
 0x23e   : > { %v15502_v34 = vpop.permute.xlu0 %1227  ;;  %v15504_v5 = vpop.permute.xlu1 %1231 }
 0x23f   : > { %21609 = vst [vmem:[#allocation181_spill] sm:$0xff] %v15502_v34  ;;  %21610 = vst [vmem:[#allocation182_spill] sm:$0xff] %v15504_v5  ;;  %1705 = vrot.lane.b32.xlu0 %v1666_v6, %s21272_s22  ;;  %1583 = vrot.lane.b32.xlu1 %v1545_v58, %s21580_s16  ;;  %v2030_v5 = vmul.f32 %v14646_v29, %v14475_v63  ;;  %v1909_v6 = vmul.f32 %v14694_v26, %v14448_v53 }
 0x242   : > { %v15512_v45 = vpop.permute.xlu0 %1349  ;;  %v15514_v13 = vpop.permute.xlu1 %1235 }
 0x243   : > { %21611 = vst [vmem:[#allocation183_spill] sm:$0xff] %v15512_v45  ;;  %21612 = vst [vmem:[#allocation184_spill] sm:$0xff] %v15514_v13  ;;  %2069 = vrot.lane.b32.xlu0 %v2028_v38, %s21613_s29  ;;  %1827 = vrot.lane.b32.xlu1 %v1787_v35, %s21596_s26  ;;  %v1184_v13 = vmul.f32 %v14506_v10, %v15270_v47  ;;  %v1911_v38 = vmul.f32 %v14694_v26, %v14470_v62 }
 0x246   : > { %v15522_v58 = vpop.permute.xlu0 %1353  ;;  %v15524_v34 = vpop.permute.xlu1 %2895 }
 0x247   : > { %21614 = vst [vmem:[#allocation185_spill] sm:$0xff] %v15522_v58  ;;  %2073 = vrot.lane.b32.xlu0 %v2030_v5, %s21613_s29  ;;  %1951 = vrot.lane.b32.xlu1 %v1909_v6, %s21604_s28  ;;  %v1786_v58 = vmul.f32 %v14530_v20, %v14934_v36  ;;  %v1665_v5 = vmul.f32 %v14526_v18, %v14978_v11 }
 0x24a   : > { %v15532_v35 = vpop.permute.xlu0 %3012  ;;  %v15534_v45 = vpop.permute.xlu1 %2899 }
 0x24b   : > { %21615 = vst [vmem:[#allocation186_spill] sm:$0xff] %v15532_v35  ;;  %21616 = vst [vmem:[#allocation187_spill] sm:$0xff] %v15534_v45  ;;  %1221 = vrot.lane.b32.xlu0 %v1184_v13, %s21534_s17  ;;  %1955 = vrot.lane.b32.xlu1 %v1911_v38, %s21604_s28  ;;  %v1907_v13 = vmul.f32 %v14694_v26, %v14490_v4  ;;  %v1304_v26 = vmul.f32 %v14504_v9, %v15270_v47 }
 0x24c   : > { %v1785_v9 = vmul.f32 %v14530_v20, %v14978_v11  ;;  %v2149_v20 = vmul.f32 %v14706_v40, %v14448_v53  ;;  %v15664_v45 = vmul.f32 %v14656_v37, %v14448_v53 }
 0x24e   : > { %v15542_v6 = vpop.permute.xlu0 %3016  ;;  %v15544_v10 = vpop.permute.xlu1 %985 }
 0x24f   : > { %21617 = vst [vmem:[#allocation188_spill] sm:$0xff] %v15542_v6  ;;  %21618 = vst [vmem:[#allocation189_spill] sm:$0xff] %v15544_v10  ;;  %1825 = vrot.lane.b32.xlu0 %v1786_v58, %s21596_s26  ;;  %1703 = vrot.lane.b32.xlu1 %v1665_v5, %s21272_s22  ;;  %v2150_v10 = vmul.f32 %v14706_v40, %v14475_v63  ;;  %v2029_v58 = vmul.f32 %v14646_v29, %v14448_v53  ;;  %s21631_s22 = smov 31  }
 0x252   : > { %v15552_v38 = vpop.permute.xlu0 %3326  ;;  %v15554_v3 = vpop.permute.xlu1 %2891 }
 0x253   : > { %21619 = vst [vmem:[#allocation190_spill] sm:$0xff] %v15552_v38  ;;  %21620 = vst [vmem:[#allocation191_spill] sm:$0xff] %v15554_v3  ;;  %2189 = vrot.lane.b32.xlu0 %v2148_v21, %s21621_s27  ;;  %1947 = vrot.lane.b32.xlu1 %v1907_v13, %s21604_s28  ;;  %v2031_v21 = vmul.f32 %v14646_v29, %v14470_v62  ;;  %v644_v38 = vsel %vm21404_vm1, %v14794_v48, %v14774_v60 }
 0x254   : > { %v526_v48 = vsel %vm21406_vm0, %v14742_v12, %v14754_v56 }
 0x256   : > { %v15562_v5 = vpop.permute.xlu0 %1103  ;;  %v15564_v18 = vpop.permute.xlu1 %1351 }
 0x257   : > { %21622 = vst [vmem:[#allocation192_spill] sm:$0xff] %v15562_v5  ;;  %21623 = vst [vmem:[#allocation193_spill] sm:$0xff] %v15564_v18  ;;  %2193 = vrot.lane.b32.xlu0 %v2150_v10, %s21621_s27  ;;  %2071 = vrot.lane.b32.xlu1 %v2029_v58, %s21613_s29  ;;  %v1906_v10 = vmul.f32 %v14538_v23, %v14934_v36  ;;  %v15584_v58 = vmul.f32 %v14544_v25, %v14978_v11 }
 0x258   : > { %v15588_v5 = vmul.f32 %v14538_v23, %v14978_v11  ;;  %v15600_v18 = vmul.f32 %v14516_v14, %v15270_v47  ;;  %v15608_v23 = vmul.f32 %v14544_v25, %v14934_v36  ;;  %v2027_v14 = vmul.f32 %v14646_v29, %v14490_v4 }
 0x259   : > { %v376_v25 = vmul.f32 %v14490_v4, %v14720_v17  ;;  %v378_v29 = vmul.f32 %v14448_v53, %v14720_v17  ;;  %v15649_v47 = vmul.f32 %v14656_v37, %v14490_v4 }
 0x25a   : > { %v15572_v13 = vpop.permute.xlu0 %1347  ;;  %v15574_v3 = vpop.permute.xlu1 %1355 }
 0x25b   : > { %21624 = vst [vmem:[#allocation194_spill] sm:$0xff] %v15572_v13  ;;  %21625 = vst [vmem:[#allocation195_spill] sm:$0xff] %v15574_v3  ;;  %1341 = vrot.lane.b32.xlu0 %v1304_v26, %s21551_s21  ;;  %2075 = vrot.lane.b32.xlu1 %v2031_v21, %s21613_s29  ;;  %v15596_v3 = vmul.f32 %v14934_v36, %v14542_v24  ;;  %v15604_v13 = vmul.f32 %v14558_v31, %v14978_v11 }
 0x25c   : > { %v2268_v31 = vmul.f32 %v14656_v37, %v14453_v54 }
 0x25e   : > { %v15590_v26 = vpop.permute.xlu0 %1469  ;;  %v15592_v21 = vpop.permute.xlu1 %3014 }
 0x25f   : > { %21626 = vst [vmem:[#allocation196_spill] sm:$0xff] %v15590_v26  ;;  %21627 = vst [vmem:[#allocation197_spill] sm:$0xff] %v15592_v21  ;;  %v524_v26 = vsel %vm21406_vm0, %v14764_v44, %v14744_v59  ;;  %1945 = vrot.lane.b32.xlu0 %v1906_v10, %s21604_s28  ;;  %1823 = vrot.lane.b32.xlu1 %v1785_v9, %s21596_s26  ;;  %v2151_v44 = vmul.f32 %v14706_v40, %v14470_v62 }
 0x260   : > { %v15627_v10 = vmul.f32 %v14706_v40, %v14490_v4  ;;  %v525_v9 = vsel %vm21406_vm0, %v14744_v59, %v14742_v12  ;;  %v552_v6 = vadd.f32 %v524_v26, %v376_v25  ;;  %v2270_v59 = vmul.f32 %v14656_v37, %v14475_v63  ;;  %v21630_v26 = vld [vmem:[#allocation63_spill] sm:$0xff] }
 0x261   : > { %v645_v25 = vsel %vm21404_vm1, %v14774_v60, %v14762_v51  ;;  %v553_v17 = vadd.f32 %v525_v9, %v377_v28  ;;  %v15668_v12 = vmul.f32 %v14656_v37, %v14470_v62  ;;  %v21632_v60 = vld [vmem:[#allocation54_spill] sm:$0xff]  ;;  %v765_v28 = vsel %vm21405_vm2, %v14804_v30, %v21634_v41  ;;  %v21637_v37 = vld [vmem:[#allocation55_spill] sm:$0xff] }
 0x262   : > { %v15641_v40 = vpop.permute.xlu0 %1473  ;;  %v15643_v15 = vpop.permute.xlu1 %3018  ;;  %v527_v42 = vsel %vm21406_vm0, %v14754_v56, %v21632_v60  ;;  %v554_v9 = vadd.f32 %v526_v48, %v378_v29  ;;  %v21642_v29 = vld [vmem:[#allocation71_spill] sm:$0xff] }
 0x263   : > { %21628 = vst [vmem:[#allocation198_spill] sm:$0xff] %v15641_v40  ;;  %21629 = vst [vmem:[#allocation199_spill] sm:$0xff] %v15643_v15  ;;  %v764_v40 = vsel %vm21405_vm2, %v21630_v26, %v14804_v30  ;;  %2309 = vrot.lane.b32.xlu0 %v2268_v31, %s21631_s22  ;;  %2067 = vrot.lane.b32.xlu1 %v2027_v14, %s21613_s29  ;;  %v672_v15 = vadd.f32 %v644_v38, %v552_v6  ;;  %v21633_v26 = vld [vmem:[#allocation57_spill] sm:$0xff] }
 0x264   : > { %v646_v31 = vsel %vm21404_vm1, %v14762_v51, %v21633_v26  ;;  %v21635_v6 = vld [vmem:[#allocation65_spill] sm:$0xff]  ;;  %v673_v36 = vadd.f32 %v645_v25, %v553_v17  ;;  %v647_v35 = vsel %vm21404_vm1, %v21633_v26, %v21637_v37  ;;  %v21643_v17 = vld [vmem:[#allocation75_spill] sm:$0xff]  ;;  %v21644_v37 = vld [vmem:[#allocation58_spill] sm:$0xff] }
 0x265   : > { %v21636_v38 = vld [vmem:[#allocation69_spill] sm:$0xff]  ;;  %v792_v21 = vadd.f32 %v764_v40, %v672_v15  ;;  %v1004_v48 = vsel %vm1003_vm5, %v21643_v17, %v21642_v29  ;;  %v555_v15 = vadd.f32 %v527_v42, %v379_v43  ;;  %v674_v40 = vadd.f32 %v646_v31, %v554_v9  ;;  %v21647_v43 = vld [vmem:[#allocation43_spill] sm:$0xff]  ;;  %v21649_v9 = vld [vmem:[#allocation60_spill] sm:$0xff] }
 0x266   : > { %v884_v14 = vsel %vm883_vm3, %v21636_v38, %v21635_v6  ;;  %v15685_v56 = vpop.permute.xlu0 %3131  ;;  %v15687_v60 = vpop.permute.xlu1 %501  ;;  %v21640_v51 = vld [vmem:[#allocation61_spill] sm:$0xff]  ;;  %v885_v38 = vsel %vm883_vm3, %v21635_v6, %v21641_v50  ;;  %v793_v25 = vadd.f32 %v765_v28, %v673_v36  ;;  %v15714_v36 = vmul.f32 %v21647_v43, %v14448_v53 }
 0x267   : > { %21638 = vst [vmem:[#allocation63_spill] sm:$0xff] %v15685_v56  ;;  %21639 = vst [vmem:[#allocation57_spill] sm:$0xff] %v15687_v60  ;;  %v766_v30 = vsel %vm21405_vm2, %v21634_v41, %v21640_v51  ;;  %2313 = vrot.lane.b32.xlu0 %v2270_v59, %s21631_s22  ;;  %2191 = vrot.lane.b32.xlu1 %v2149_v20, %s21621_s27  ;;  %v912_v26 = vadd.f32 %v884_v14, %v792_v21  ;;  %v11034_v41 = vld [vmem:[%s21430_s1 + $0x148] sm:$0xff]  ;;  %v21645_v60 = vld [vmem:[#allocation67_spill] sm:$0xff]  ;;  %s21732_s1 = smov 126  }
 0x268   : > { %v767_v6 = vsel %vm21405_vm2, %v21640_v51, %v21644_v37  ;;  %v886_v17 = vsel %vm883_vm3, %v21641_v50, %v21645_v60  ;;  %v21646_v56 = vld [vmem:[#allocation62_spill] sm:$0xff]  ;;  %v675_v42 = vadd.f32 %v647_v35, %v555_v15  ;;  %v794_v21 = vadd.f32 %v766_v30, %v674_v40  ;;  %v21650_v51 = vld [vmem:[#allocation77_spill] sm:$0xff] }
 0x269   : > { %v1005_v20 = vsel %vm1003_vm5, %v21642_v29, %v21646_v56  ;;  %v913_v59 = vadd.f32 %v885_v38, %v793_v25  ;;  %v1032_v31 = vadd.f32 %v1004_v48, %v912_v26  ;;  %v887_v50 = vsel %vm883_vm3, %v21645_v60, %v21649_v9  ;;  %v21651_v37 = vld [vmem:[#allocation66_spill] sm:$0xff]  ;;  %v21653_v25 = vld [vmem:[#allocation73_spill] sm:$0xff]  ;;  %v21655_v9 = vld [vmem:[#allocation72_spill] sm:$0xff] }
 0x26a   : > { %v15716_v28 = vpop.permute.xlu0 %3135  ;;  %v15718_v14 = vpop.permute.xlu1 %1105  ;;  %v1125_v29 = vsel %vm1123_vm4, %v21651_v37, %v21650_v51  ;;  %v15729_v35 = vmul.f32 %v21647_v43, %v14470_v62  ;;  %v795_v30 = vadd.f32 %v767_v6, %v675_v42  ;;  %v914_v38 = vadd.f32 %v886_v17, %v794_v21  ;;  %v21652_v60 = vld [vmem:[#allocation70_spill] sm:$0xff]  ;;  %v21656_v21 = vld [vmem:[#allocation85_spill] sm:$0xff] }
 0x26b   : > { %21648 = vst [vmem:[#allocation56_spill] sm:$0xff] %v15718_v14  ;;  %2737 = vperm.xlu0 %13661, %v11034_v41   ;;  %2195 = vrot.lane.b32.xlu1 %v2151_v44, %s21621_s27  ;;  %v1033_v48 = vadd.f32 %v1005_v20, %v913_v59  ;;  %v15733_v15 = vmul.f32 %v21647_v43, %v14490_v4  ;;  %v21654_v44 = vld [vmem:[#allocation64_spill] sm:$0xff]  ;;  %v21661_v4 = vld [vmem:[#allocation87_spill] sm:$0xff] }
 0x26c   : > { %v1124_v40 = vsel %vm1123_vm4, %v21652_v60, %v21651_v37  ;;  %v1006_v26 = vsel %vm1003_vm5, %v21646_v56, %v21653_v25  ;;  %v1007_v41 = vsel %vm1003_vm5, %v21653_v25, %v21654_v44  ;;  %v1245_v6 = vsel %vm1243_vm7, %v14914_v2, %v21655_v9  ;;  %v21659_v56 = vld [vmem:[#allocation68_spill] sm:$0xff]  ;;  %v21660_v25 = vld [vmem:[#allocation79_spill] sm:$0xff] }
 0x26d   : > { %v915_v17 = vadd.f32 %v887_v50, %v795_v30  ;;  %v1153_v20 = vadd.f32 %v1125_v29, %v1033_v48  ;;  %v1152_v42 = vadd.f32 %v1124_v40, %v1032_v31  ;;  %v1244_v59 = vsel %vm1243_vm7, %v21656_v21, %v14914_v2  ;;  %v21662_v50 = vld [vmem:[#allocation76_spill] sm:$0xff]  ;;  %v21664_v40 = vld [vmem:[#allocation74_spill] sm:$0xff] }
 0x26e   : > { %v15750_v37 = vpop.permute.xlu0 %621  ;;  %v15752_v60 = vpop.permute.xlu1 %3010  ;;  %v1126_v14 = vsel %vm1123_vm4, %v21650_v51, %v21659_v56  ;;  %v1127_v44 = vsel %vm1123_vm4, %v21659_v56, %v21660_v25  ;;  %v1365_v31 = vsel %vm21302_vm6, %v21662_v50, %v21661_v4  ;;  %v1034_v2 = vadd.f32 %v1006_v26, %v914_v38  ;;  %v21663_v51 = vld [vmem:[#allocation82_spill] sm:$0xff]  ;;  %v21665_v25 = vld [vmem:[#allocation81_spill] sm:$0xff] }
 0x26f   : > { %21657 = vst [vmem:[#allocation65_spill] sm:$0xff] %v15750_v37  ;;  %21658 = vst [vmem:[#allocation69_spill] sm:$0xff] %v15752_v60  ;;  %2063 = vrot.lane.b32.xlu0 %v15584_v58, %s21613_s29  ;;  %1943 = vrot.lane.b32.xlu1 %v15588_v5, %s21604_s28  ;;  %v1035_v29 = vadd.f32 %v1007_v41, %v915_v17  ;;  %v1273_v30 = vadd.f32 %v1245_v6, %v1153_v20  ;;  %v21668_v41 = vld [vmem:[#allocation78_spill] sm:$0xff]  ;;  %v21669_v6 = vld [vmem:[#allocation89_spill] sm:$0xff] }
 0x270   : > { %v1246_v48 = vsel %vm1243_vm7, %v21655_v9, %v21663_v51  ;;  %v1247_v21 = vsel %vm1243_vm7, %v21663_v51, %v21664_v40  ;;  %v1272_v56 = vadd.f32 %v1244_v59, %v1152_v42  ;;  %v1485_v58 = vsel %vm21299_vm8, %v14988_v19, %v21665_v25  ;;  %v21670_v20 = vld [vmem:[#allocation99_spill] sm:$0xff]  ;;  %v21671_v42 = vld [vmem:[#allocation86_spill] sm:$0xff]  ;;  %v21674_v51 = vld [vmem:[#allocation84_spill] sm:$0xff] }
 0x271   : > { %v1154_v37 = vadd.f32 %v1126_v14, %v1034_v2  ;;  %v1155_v60 = vadd.f32 %v1127_v44, %v1035_v29  ;;  %v1393_v5 = vadd.f32 %v1365_v31, %v1273_v30  ;;  %v1366_v9 = vsel %vm21302_vm6, %v21661_v4, %v21668_v41  ;;  %v21672_v14 = vld [vmem:[#allocation80_spill] sm:$0xff]  ;;  %v21673_v29 = vld [vmem:[#allocation94_spill] sm:$0xff] }
 0x272   : > { %v15776_v38 = vpop.permute.xlu0 %1225  ;;  %v15778_v26 = vpop.permute.xlu1 %1471  ;;  %v1367_v17 = vsel %vm21302_vm6, %v21668_v41, %v21669_v6  ;;  %v1605_v59 = vsel %vm1603_vm9, %v21671_v42, %v21670_v20  ;;  %v1364_v44 = vsel %vm21302_vm6, %v21672_v14, %v21662_v50  ;;  %v1486_v30 = vsel %vm21299_vm8, %v21665_v25, %v21673_v29  ;;  %v21676_v40 = vld [vmem:[#allocation92_spill] sm:$0xff]  ;;  %v21677_v50 = vld [vmem:[#allocation97_spill] sm:$0xff] }
 0x273   : > { %21666 = vst [vmem:[#allocation61_spill] sm:$0xff] %v15776_v38  ;;  %21667 = vst [vmem:[#allocation59_spill] sm:$0xff] %v15778_v26  ;;  %2307 = vrot.lane.b32.xlu0 %v15649_v47, %s21631_s22  ;;  %2187 = vrot.lane.b32.xlu1 %v15627_v10, %s21621_s27  ;;  %v1274_v4 = vadd.f32 %v1246_v48, %v1154_v37  ;;  %v1275_v31 = vadd.f32 %v1247_v21, %v1155_v60  ;;  %v21675_v47 = vld [vmem:[#allocation106_spill] sm:$0xff]  ;;  %v21679_v25 = vld [vmem:[#allocation88_spill] sm:$0xff]  ;;  %vm21407_vm6 = vcmask 228352  }
 0x274   : > { %v1513_v2 = vadd.f32 %v1485_v58, %v1393_v5  ;;  %v1487_v41 = vsel %vm21299_vm8, %v21673_v29, %v21674_v51  ;;  %v1392_v6 = vadd.f32 %v1364_v44, %v1272_v56  ;;  %v1725_v10 = vsel %vm21301_vm10, %v21676_v40, %v21675_v47  ;;  %v21680_v56 = vld [vmem:[#allocation102_spill] sm:$0xff]  ;;  %v21681_v14 = vld [vmem:[#allocation96_spill] sm:$0xff] }
 0x275   : > { %v1394_v38 = vadd.f32 %v1366_v9, %v1274_v4  ;;  %v1395_v26 = vadd.f32 %v1367_v17, %v1275_v31  ;;  %v1484_v37 = vsel %vm21299_vm8, %v21677_v50, %v14988_v19  ;;  %v1606_v58 = vsel %vm1603_vm9, %v21670_v20, %v21679_v25  ;;  %v21682_v9 = vld [vmem:[#allocation110_spill] sm:$0xff]  ;;  %v21684_v4 = vld [vmem:[#allocation93_spill] sm:$0xff]  ;;  %v21686_v50 = vld [vmem:[#allocation115_spill] sm:$0xff] }
 0x276   : > { %v1633_v60 = vadd.f32 %v1605_v59, %v1513_v2  ;;  %v15808_v48 = vpop.permute.xlu0 %3129  ;;  %v15810_v21 = vpop.permute.xlu1 %1475  ;;  %v1607_v5 = vsel %vm1603_vm9, %v21679_v25, %v21680_v56  ;;  %v1845_v17 = vsel %vm1843_vm12, %v21682_v9, %v21681_v14  ;;  %v1512_v20 = vadd.f32 %v1484_v37, %v1392_v6  ;;  %v21685_v2 = vld [vmem:[#allocation108_spill] sm:$0xff]  ;;  %v21691_v37 = vld [vmem:[#allocation121_spill] sm:$0xff] }
 0x277   : > { %21678 = vst [vmem:[#allocation71_spill] sm:$0xff] %v15810_v21  ;;  %2431 = vrot.lane.b32.xlu0 %v15714_v36, %s21683_s24  ;;  %2311 = vrot.lane.b32.xlu1 %v15664_v45, %s21631_s22  ;;  %v1514_v19 = vadd.f32 %v1486_v30, %v1394_v38  ;;  %v1515_v59 = vadd.f32 %v1487_v41, %v1395_v26  ;;  %v21687_v25 = vld [vmem:[#allocation100_spill] sm:$0xff]  ;;  %v21689_v41 = vld [vmem:[#allocation98_spill] sm:$0xff]  ;;  %vm2443_vm8 = vcmask 244736   ;;  %v21697_v21 = vld [vmem:[#allocation95_spill] sm:$0xff] }
 0x278   : > { %v1753_v44 = vadd.f32 %v1725_v10, %v1633_v60  ;;  %v1726_v31 = vsel %vm21301_vm10, %v21675_v47, %v21684_v4  ;;  %v1727_v29 = vsel %vm21301_vm10, %v21684_v4, %v21685_v2  ;;  %v1965_v36 = vsel %vm1963_vm11, %v21687_v25, %v21686_v50  ;;  %v21688_v6 = vld [vmem:[#allocation112_spill] sm:$0xff]  ;;  %v21690_v10 = vld [vmem:[#allocation105_spill] sm:$0xff] }
 0x279   : > { %v1634_v56 = vadd.f32 %v1606_v58, %v1514_v19  ;;  %v1635_v51 = vadd.f32 %v1607_v5, %v1515_v59  ;;  %v1846_v30 = vsel %vm1843_vm12, %v21681_v14, %v21688_v6  ;;  %v1847_v47 = vsel %vm1843_vm12, %v21688_v6, %v21689_v41  ;;  %v21692_v58 = vld [vmem:[#allocation90_spill] sm:$0xff]  ;;  %v21696_v2 = vld [vmem:[#allocation113_spill] sm:$0xff] }
 0x27a   : > { %v1873_v45 = vadd.f32 %v1845_v17, %v1753_v44  ;;  %v15834_v38 = vpop.permute.xlu0 %1591  ;;  %v15836_v26 = vpop.permute.xlu1 %3133  ;;  %v2085_v60 = vsel %vm2083_vm13, %v21691_v37, %v21690_v10  ;;  %v1604_v5 = vsel %vm1603_vm9, %v21692_v58, %v21671_v42  ;;  %v21693_v44 = vld [vmem:[#allocation101_spill] sm:$0xff]  ;;  %v21694_v6 = vld [vmem:[#allocation118_spill] sm:$0xff]  ;;  %v1724_v42 = vsel %vm21301_vm10, %v21697_v21, %v21676_v40 }
 0x27b   : > { %2435 = vrot.lane.b32.xlu0 %v15729_v35, %s21683_s24  ;;  %2315 = vrot.lane.b32.xlu1 %v15668_v12, %s21631_s22  ;;  %v1754_v14 = vadd.f32 %v1726_v31, %v1634_v56  ;;  %v1755_v17 = vadd.f32 %v1727_v29, %v1635_v51  ;;  %v1632_v59 = vadd.f32 %v1604_v5, %v1512_v20  ;;  %v21695_v35 = vld [vmem:[#allocation131_spill] sm:$0xff]  ;;  %v21701_v5 = vld [vmem:[#allocation129_spill] sm:$0xff]  ;;  %vm21417_vm10 = vcmask 236544  }
 0x27c   : > { %v1993_v19 = vadd.f32 %v1965_v36, %v1873_v45  ;;  %v1966_v4 = vsel %vm1963_vm11, %v21686_v50, %v21693_v44  ;;  %v1967_v41 = vsel %vm1963_vm11, %v21693_v44, %v21694_v6  ;;  %v2205_v12 = vsel %vm2203_vm14, %v21696_v2, %v21695_v35  ;;  %v21699_v50 = vld [vmem:[#allocation122_spill] sm:$0xff]  ;;  %v21700_v45 = vld [vmem:[#allocation107_spill] sm:$0xff]  ;;  %v21770_v6 = vld [vmem:[#allocation20_spill] sm:$0xff] }
 0x27d   : > { %v1874_v56 = vadd.f32 %v1846_v30, %v1754_v14  ;;  %v1875_v51 = vadd.f32 %v1847_v47, %v1755_v17  ;;  %v2086_v36 = vsel %vm2083_vm13, %v21690_v10, %v21699_v50  ;;  %v2087_v58 = vsel %vm2083_vm13, %v21699_v50, %v21700_v45  ;;  %v21703_v47 = vld [vmem:[#allocation116_spill] sm:$0xff] }
 0x27e   : > { %v2113_v31 = vadd.f32 %v2085_v60, %v1993_v19  ;;  %v15866_v20 = vpop.permute.xlu0 %1595  ;;  %v15868_v29 = vpop.permute.xlu1 %3137  ;;  %v2325_v44 = vsel %vm2323_vm15, %v21701_v5, %v15248_v46  ;;  %v2206_v10 = vsel %vm2203_vm14, %v21695_v35, %v21703_v47  ;;  %v21704_v60 = vld [vmem:[#allocation133_spill] sm:$0xff]  ;;  %v2445_v17 = vsel %vm2443_vm8, %v15304_v16, %v15257_v33  ;;  %v21707_v35 = vld [vmem:[#allocation132_spill] sm:$0xff] }
 0x27f   : > { %21698 = vst [vmem:[#allocation75_spill] sm:$0xff] %v15868_v29  ;;  %521 = vrot.lane.b32.xlu0 %v15596_v3, %s21702_s25  ;;  %1461 = vrot.lane.b32.xlu1 %v15600_v18, %s21567_s14  ;;  %v1994_v40 = vadd.f32 %v1966_v4, %v1874_v56  ;;  %v1995_v21 = vadd.f32 %v1967_v41, %v1875_v51  ;;  %v21705_v3 = vld [vmem:[#allocation114_spill] sm:$0xff] }
 0x280   : > { %v2233_v30 = vadd.f32 %v2205_v12, %v2113_v31  ;;  %v2207_v14 = vsel %vm2203_vm14, %v21703_v47, %v21704_v60  ;;  %v1844_v18 = vsel %vm1843_vm12, %v21705_v3, %v21682_v9  ;;  %v2326_v51 = vsel %vm2323_vm15, %v15248_v46, %v21707_v35  ;;  %v21768_v60 = vld [vmem:[#allocation21_spill] sm:$0xff] }
 0x281   : > { %v2114_v41 = vadd.f32 %v2086_v36, %v1994_v40  ;;  %v2115_v19 = vadd.f32 %v2087_v58, %v1995_v21  ;;  %v2327_v31 = vsel %vm2323_vm15, %v21707_v35, %v15259_v7  ;;  %v2565_v50 = vsel %vm21417_vm10, %v15364_v61, %v15322_v39  ;;  %v21730_v7 = vld [vmem:[#allocation199_spill] sm:$0xff] }
 0x282   : > { %v2353_v4 = vadd.f32 %v2325_v44, %v2233_v30  ;;  %v15895_v12 = vpop.permute.xlu0 %3252  ;;  %v15897_v56 = vpop.permute.xlu1 %1223  ;;  %v1752_v9 = vadd.f32 %v1724_v42, %v1632_v59  ;;  %v2446_v46 = vsel %vm2443_vm8, %v15257_v33, %v15314_v1  ;;  %v2447_v40 = vsel %vm2443_vm8, %v15314_v1, %v15272_v27 }
 0x283   : > { %21706 = vst [vmem:[#allocation67_spill] sm:$0xff] %v15897_v56  ;;  %2183 = vrot.lane.b32.xlu0 %v15604_v13, %s21621_s27  ;;  %2065 = vrot.lane.b32.xlu1 %v15608_v23, %s21613_s29  ;;  %v2234_v36 = vadd.f32 %v2206_v10, %v2114_v41  ;;  %v2235_v58 = vadd.f32 %v2207_v14, %v2115_v19  ;;  %v21709_v14 = vld [vmem:[#allocation52_spill] sm:$0xff] }
 0x284   : > { %v2473_v44 = vadd.f32 %v2445_v17, %v2353_v4  ;;  %v2685_v21 = vsel %vm21407_vm6, %v15424_v0, %v15382_v49  ;;  %v2388_v13 = vmul.f32 %v21647_v43, %v14453_v54  ;;  %v1872_v23 = vadd.f32 %v1844_v18, %v1752_v9 }
 0x285   : > { %v2354_v59 = vadd.f32 %v2326_v51, %v2234_v36  ;;  %v2355_v42 = vadd.f32 %v2327_v31, %v2235_v58  ;;  %v2566_v33 = vsel %vm21417_vm10, %v15322_v39, %v15374_v8  ;;  %v2567_v1 = vsel %vm21417_vm10, %v15374_v8, %v15332_v52  ;;  %v21710_v39 = vld [vmem:[#allocation103_spill] sm:$0xff]  ;;  %v21711_v8 = vld [vmem:[#allocation124_spill] sm:$0xff] }
 0x286   : > { %v2593_v30 = vadd.f32 %v2565_v50, %v2473_v44  ;;  %v15923_v47 = vpop.permute.xlu0 %3256  ;;  %v15925_v10 = vpop.permute.xlu1 %1467  ;;  %v2509_v17 = vmul.f32 %v21709_v14, %v14448_v53  ;;  %v2390_v19 = vmul.f32 %v21647_v43, %v14475_v63  ;;  %v1964_v4 = vsel %vm1963_vm11, %v21710_v39, %v21687_v25  ;;  %v21712_v36 = vld [vmem:[#allocation135_spill] sm:$0xff]  ;;  %v21721_v39 = vld [vmem:[#allocation137_spill] sm:$0xff] }
 0x287   : > { %21708 = vst [vmem:[#allocation62_spill] sm:$0xff] %v15923_v47  ;;  %2427 = vrot.lane.b32.xlu0 %v15733_v15, %s21683_s24  ;;  %2429 = vrot.lane.b32.xlu1 %v2388_v13, %s21683_s24  ;;  %v2474_v3 = vadd.f32 %v2446_v46, %v2354_v59  ;;  %v2475_v18 = vadd.f32 %v2447_v40, %v2355_v42  ;;  %v21716_v59 = vld [vmem:[#allocation127_spill] sm:$0xff] }
 0x288   : > { %v2713_v41 = vadd.f32 %v2685_v21, %v2593_v30  ;;  %v2084_v35 = vsel %vm2083_vm13, %v21711_v8, %v21691_v37  ;;  %v2686_v15 = vsel %vm21407_vm6, %v15382_v49, %v15434_v55  ;;  %v2687_v51 = vsel %vm21407_vm6, %v15434_v55, %v15392_v22  ;;  %v21714_v37 = vld [vmem:[#allocation136_spill] sm:$0xff]  ;;  %v21717_v30 = vld [vmem:[#allocation197_spill] sm:$0xff] }
 0x289   : > { %v1992_v31 = vadd.f32 %v1964_v4, %v1872_v23  ;;  %v2594_v50 = vadd.f32 %v2566_v33, %v2474_v3  ;;  %v2595_v9 = vadd.f32 %v2567_v1, %v2475_v18  ;;  %v2777_v58 = vmul.f32 %v15125_v32, %v21712_v36  ;;  %v21720_v3 = vld [vmem:[#allocation22_spill] sm:$0xff] }
 0x28a   : > { %v15954_v44 = vpop.permute.xlu0 %1343  ;;  %v15956_v25 = vpop.permute.xlu1 %1589  ;;  %v2204_v46 = vsel %vm2203_vm14, %v21714_v37, %v21696_v2  ;;  %v2924_v49 = vsel %vm21406_vm0, %v15472_v57, %v15524_v34  ;;  %v473_v55 = vmul.f32 %v14978_v11, %v14542_v24  ;;  %v2778_v42 = vmul.f32 %v21716_v59, %v21712_v36  ;;  %v21718_v2 = vld [vmem:[#allocation186_spill] sm:$0xff]  ;;  %v21725_v37 = vld [vmem:[#allocation63_spill] sm:$0xff] }
 0x28b   : > { %21713 = vst [vmem:[#allocation77_spill] sm:$0xff] %v15954_v44  ;;  %2551 = vrot.lane.b32.xlu0 %v2509_v17, %s21715_s0  ;;  %2433 = vrot.lane.b32.xlu1 %v2390_v19, %s21683_s24  ;;  %v2112_v40 = vadd.f32 %v2084_v35, %v1992_v31  ;;  %v2714_v21 = vadd.f32 %v2686_v15, %v2594_v50  ;;  %v21719_v17 = vld [vmem:[#allocation83_spill] sm:$0xff]  ;;  %v21723_v31 = vld [vmem:[#allocation177_spill] sm:$0xff] }
 0x28c   : > { %v2715_v13 = vadd.f32 %v2687_v51, %v2595_v9  ;;  %v2791_v23 = vadd.f32 %v2777_v58, %v2713_v41  ;;  %v3043_v33 = vsel %vm21404_vm1, %v21718_v2, %v21717_v30  ;;  %v2511_v1 = vmul.f32 %v21709_v14, %v14470_v62  ;;  %v21722_v41 = vld [vmem:[#allocation119_spill] sm:$0xff] }
 0x28d   : > { %v594_v18 = vmul.f32 %v21720_v3, %v21719_v17  ;;  %v2232_v19 = vadd.f32 %v2204_v46, %v2112_v40  ;;  %v2324_v4 = vsel %vm2323_vm15, %v21721_v39, %v21701_v5  ;;  %v2779_v35 = vmul.f32 %v21722_v41, %v21712_v36  ;;  %v21724_v9 = vld [vmem:[#allocation187_spill] sm:$0xff]  ;;  %v21727_v39 = vld [vmem:[#allocation17_spill] sm:$0xff] }
 0x28e   : > { %v2952_v8 = vadd.f32 %v2924_v49, %v2791_v23  ;;  %v15982_v15 = vpop.permute.xlu0 %1587  ;;  %v15984_v51 = vpop.permute.xlu1 %1593  ;;  %v2925_v50 = vsel %vm21406_vm0, %v15524_v34, %v21723_v31  ;;  %v2926_v58 = vsel %vm21406_vm0, %v21723_v31, %v21724_v9  ;;  %v3162_v5 = vsel %vm21405_vm2, %v21725_v37, %v15836_v26  ;;  %v21726_v23 = vld [vmem:[#allocation143_spill] sm:$0xff]  ;;  %v21728_v34 = vld [vmem:[#allocation148_spill] sm:$0xff] }
 0x28f   : > { %2555 = vrot.lane.b32.xlu0 %v2511_v1, %s21715_s0  ;;  %519 = vrot.lane.b32.xlu1 %v473_v55, %s21702_s25  ;;  %v2792_v46 = vadd.f32 %v2778_v42, %v2714_v21  ;;  %v2793_v49 = vadd.f32 %v2779_v35, %v2715_v13  ;;  %v1544_v22 = vmul.f32 %v21727_v39, %v21726_v23  ;;  %v21729_v31 = vld [vmem:[#allocation188_spill] sm:$0xff]  ;;  %v21731_v55 = vld [vmem:[#allocation157_spill] sm:$0xff] }
 0x290   : > { %v3071_v40 = vadd.f32 %v3043_v33, %v2952_v8  ;;  %v2352_v52 = vadd.f32 %v2324_v4, %v2232_v19  ;;  %v2444_v27 = vsel %vm2443_vm8, %v21728_v34, %v15304_v16  ;;  %v3044_v9 = vsel %vm21404_vm1, %v21717_v30, %v21729_v31 }
 0x291   : > { %v3045_v1 = vsel %vm21404_vm1, %v21729_v31, %v21730_v7  ;;  %v2564_v21 = vsel %vm21417_vm10, %v21731_v55, %v15364_v61  ;;  %v2953_v13 = vadd.f32 %v2925_v50, %v2792_v46  ;;  %v2954_v42 = vadd.f32 %v2926_v58, %v2793_v49 }
 0x292   : > { %v3190_v33 = vadd.f32 %v3162_v5, %v3071_v40  ;;  %v16011_v19 = vpop.permute.xlu0 %1709  ;;  %v3251_v4 = vpop.permute.xlu1 %3250  ;;  %v3163_v16 = vsel %vm21405_vm2, %v15836_v26, %v15716_v28  ;;  %v3164_v30 = vsel %vm21405_vm2, %v15716_v28, %v15868_v29  ;;  %v2472_v61 = vadd.f32 %v2444_v27, %v2352_v52  ;;  %v21733_v5 = vld [vmem:[#allocation166_spill] sm:$0xff]  ;;  %v21735_v28 = vld [vmem:[#allocation23_spill] sm:$0xff] }
 0x293   : > { %v3281_v8 = vsel %vm883_vm3, %v3251_v4, %v15895_v12  ;;  %641 = vrot.lane.b32.xlu0 %v594_v18, %s21732_s1  ;;  %1581 = vrot.lane.b32.xlu1 %v1544_v22, %s21580_s16  ;;  %v3072_v35 = vadd.f32 %v3044_v9, %v2953_v13  ;;  %v3073_v50 = vadd.f32 %v3045_v1, %v2954_v42  ;;  %v21734_v26 = vld [vmem:[#allocation26_spill] sm:$0xff]  ;;  %v21737_v42 = vld [vmem:[#allocation16_spill] sm:$0xff] }
 0x294   : > { %v3309_v58 = vadd.f32 %v3281_v8, %v3190_v33  ;;  %v2684_v46 = vsel %vm21407_vm6, %v21733_v5, %v15424_v0  ;;  %v2265_v49 = vmul.f32 %v21734_v26, %v14978_v11  ;;  %v2146_v40 = vmul.f32 %v21735_v28, %v21719_v17  ;;  %v21736_v18 = vld [vmem:[#allocation190_spill] sm:$0xff] }
 0x295   : > { %v2592_v39 = vadd.f32 %v2564_v21, %v2472_v61  ;;  %v3191_v34 = vadd.f32 %v3163_v16, %v3072_v35  ;;  %v3192_v31 = vadd.f32 %v3164_v30, %v3073_v50  ;;  %v2507_v33 = vmul.f32 %v21709_v14, %v21737_v42  ;;  %v21738_v16 = vld [vmem:[#allocation134_spill] sm:$0xff] }
 0x296   : > { %v3335_v55 = vadd.f32 %v21736_v18, %v3309_v58  ;;  %v16031_v22 = vpop.permute.xlu0 %1713  ;;  %v3255_v27 = vpop.permute.xlu1 %3254  ;;  %v2776_v30 = vmul.f32 %v21738_v16, %v21712_v36  ;;  %v2508_v50 = vmul.f32 %v21709_v14, %v14453_v54  ;;  %v21741_v58 = vld [vmem:[#allocation191_spill] sm:$0xff]  ;;  %v2024_v45 = vmul.f32 %v21768_v60, %v21726_v23 }
 0x297   : > { %v3282_v52 = vsel %vm883_vm3, %v15895_v12, %v3255_v27  ;;  %v3283_v0 = vsel %vm883_vm3, %v3255_v27, %v15923_v47  ;;  %2303 = vrot.lane.b32.xlu0 %v2265_v49, %s21631_s22  ;;  %2185 = vrot.lane.b32.xlu1 %v2146_v40, %s21621_s27  ;;  %v2712_v9 = vadd.f32 %v2684_v46, %v2592_v39  ;;  %v21742_v39 = vld [vmem:[#allocation69_spill] sm:$0xff] }
 0x298   : > { %v3349_v1 = vmax.f32 %v3335_v55, 0.0  ;;  %v3310_v21 = vadd.f32 %v3282_v52, %v3191_v34  ;;  %v3311_v13 = vadd.f32 %v3283_v0, %v3192_v31  ;;  %v2923_v5 = vsel %vm21406_vm0, %v21741_v58, %v15472_v57  ;;  %v21743_v31 = vld [vmem:[#allocation45_spill] sm:$0xff] }
 0x299   : > { %v2790_v46 = vadd.f32 %v2776_v30, %v2712_v9  ;;  %v3042_v34 = vsel %vm21404_vm1, %v21742_v39, %v21718_v2  ;;  %v2629_v55 = vmul.f32 %v21743_v31, %v14448_v53  ;;  %v2510_v0 = vmul.f32 %v21709_v14, %v14475_v63  ;;  %v21752_v39 = vld [vmem:[#allocation28_spill] sm:$0xff] }
 0x29a   : > { %3365 = vst [vmem:[#allocation2 + $0x8] sm:$0xff] %v3349_v1  ;;  %v16044_v12 = vadd.f32 %v21736_v18, %v3310_v21  ;;  %v3337_v8 = vadd.f32 %v21736_v18, %v3311_v13  ;;  %v16047_v61 = vpop.permute.xlu0 %861  ;;  %v16049_v35 = vpop.permute.xlu1 %741  ;;  %v3161_v9 = vsel %vm21405_vm2, %v15808_v48, %v21725_v37  ;;  %v2631_v1 = vmul.f32 %v21743_v31, %v14470_v62  ;;  %v21747_v37 = vld [vmem:[#allocation24_spill] sm:$0xff] }
 0x29b   : > { %21739 = vst [vmem:[#allocation66_spill] sm:$0xff] %v16047_v61  ;;  %21740 = vst [vmem:[#allocation70_spill] sm:$0xff] %v16049_v35  ;;  %2547 = vrot.lane.b32.xlu0 %v2507_v33, %s21715_s0  ;;  %2549 = vrot.lane.b32.xlu1 %v2508_v50, %s21715_s0  ;;  %v2951_v27 = vadd.f32 %v2923_v5, %v2790_v46  ;;  %v593_v30 = vmul.f32 %v21720_v3, %v14978_v11  ;;  %v21749_v46 = vld [vmem:[#allocation18_spill] sm:$0xff] }
 0x29c   : > { %v21311_v49 = vmax.f32 %v16044_v12, 0.0  ;;  %v3351_v40 = vmax.f32 %v3337_v8, 0.0  ;;  %v714_v50 = vmul.f32 %v21747_v37, %v21719_v17  ;;  %v2386_v29 = vmul.f32 %v21752_v39, %v21719_v17 }
 0x29d   : > { %v3070_v2 = vadd.f32 %v3042_v34, %v2951_v27  ;;  %v2385_v34 = vmul.f32 %v21752_v39, %v14978_v11  ;;  %v1904_v36 = vmul.f32 %v21770_v6, %v21726_v23  ;;  %v21774_v6 = vld [vmem:[#allocation49_spill] sm:$0xff] }
 0x29e   : > { %3366 = vst [vmem:[#allocation2 + $0x10] sm:$0xff] %v21311_v49  ;;  %3367 = vst [vmem:[#allocation2 + $0x18] sm:$0xff] %v3351_v40  ;;  %v16066_v57 = vpop.permute.xlu0 %1465  ;;  %v16068_v52 = vpop.permute.xlu1 %1345  ;;  %v1664_v40 = vmul.f32 %v21749_v46, %v21726_v23  ;;  %v2987_v61 = vmul.f32 %v21774_v6, %v15125_v32  ;;  %v2986_v44 = vmul.f32 %v21774_v6, %v21738_v16 }
 0x29f   : > { %21744 = vst [vmem:[#allocation73_spill] sm:$0xff] %v16066_v57  ;;  %21745 = vst [vmem:[#allocation72_spill] sm:$0xff] %v16068_v52  ;;  %2671 = vrot.lane.b32.xlu0 %v2629_v55, %s21746_s18  ;;  %2553 = vrot.lane.b32.xlu1 %v2510_v0, %s21715_s0  ;;  %v3189_v21 = vadd.f32 %v3161_v9, %v3070_v2  ;;  %v2266_v0 = vmul.f32 %v21734_v26, %v21719_v17 }
 0x2a0   : > { %v2627_v9 = vmul.f32 %v21743_v31, %v21737_v42 }
 0x2a2   : > { %v16079_v13 = vpop.permute.xlu0 %1829  ;;  %v3249_v33 = vpop.permute.xlu1 %3248 }
 0x2a3   : > { %v3280_v8 = vsel %vm883_vm3, %v3249_v33, %v3251_v4  ;;  %2675 = vrot.lane.b32.xlu0 %v2631_v1, %s21746_s18  ;;  %639 = vrot.lane.b32.xlu1 %v593_v30, %s21732_s1  ;;  %v21756_v33 = vld [vmem:[#allocation25_spill] sm:$0xff] }
 0x2a4   : > { %v3308_v48 = vadd.f32 %v3280_v8, %v3189_v21  ;;  %v2628_v21 = vmul.f32 %v21743_v31, %v14453_v54  ;;  %v834_v30 = vmul.f32 %v21756_v33, %v21719_v17 }
 0x2a6   : > { %v3334_v58 = vadd.f32 %v21736_v18, %v3308_v48  ;;  %v16089_v62 = vpop.permute.xlu0 %1833  ;;  %v16091_v5 = vpop.permute.xlu1 %1711  ;;  %v833_v18 = vmul.f32 %v21756_v33, %v14978_v11 }
 0x2a7   : > { %21748 = vst [vmem:[#allocation85_spill] sm:$0xff] %v16089_v62  ;;  %761 = vrot.lane.b32.xlu0 %v714_v50, %s21750_s11  ;;  %1701 = vrot.lane.b32.xlu1 %v1664_v40, %s21751_s15  ;;  %v2630_v50 = vmul.f32 %v21743_v31, %v14475_v63 }
 0x2a8   : > { %v3348_v4 = vmax.f32 %v3334_v58, 0.0  ;;  %v21758_v58 = vld [vmem:[#allocation31_spill] sm:$0xff] }
 0x2a9   : > { %v2505_v46 = vmul.f32 %v21758_v58, %v14978_v11  ;;  %v2506_v60 = vmul.f32 %v21758_v58, %v21719_v17 }
 0x2aa   : > { %3364 = vst [vmem:[#allocation2] sm:$0xff] %v3348_v4  ;;  %v16099_v55 = vpop.permute.xlu0 %981  ;;  %v16101_v27 = vpop.permute.xlu1 %1715 }
 0x2ab   : > { %21753 = vst [vmem:[#allocation68_spill] sm:$0xff] %v16099_v55  ;;  %2423 = vrot.lane.b32.xlu0 %v2385_v34, %s21683_s24  ;;  %2305 = vrot.lane.b32.xlu1 %v2266_v0, %s21631_s22  ;;  %v713_v34 = vmul.f32 %v21747_v37, %v14978_v11  ;;  %v21760_v0 = vld [vmem:[#allocation47_spill] sm:$0xff] }
 0x2ac   : > { %v2870_v47 = vmul.f32 %v21722_v41, %v21760_v0  ;;  %v2869_v35 = vmul.f32 %v21716_v59, %v21760_v0  ;;  %v2867_v52 = vmul.f32 %v21738_v16, %v21760_v0 }
 0x2ae   : > { %v16109_v2 = vpop.permute.xlu0 %1585  ;;  %v16111_v1 = vpop.permute.xlu1 %1463 }
 0x2af   : > { %21754 = vst [vmem:[#allocation87_spill] sm:$0xff] %v16109_v2  ;;  %21755 = vst [vmem:[#allocation76_spill] sm:$0xff] %v16111_v1  ;;  %2667 = vrot.lane.b32.xlu0 %v2627_v9, %s21746_s18  ;;  %2669 = vrot.lane.b32.xlu1 %v2628_v21, %s21746_s18  ;;  %v2868_v9 = vmul.f32 %v15125_v32, %v21760_v0  ;;  %v21780_v2 = vld [vmem:[#allocation29_spill] sm:$0xff] }
 0x2b0   : > { %v1074_v1 = vmul.f32 %v21780_v2, %v21719_v17 }
 0x2b2   : > { %v16119_v8 = vpop.permute.xlu0 %1949  ;;  %v16121_v48 = vpop.permute.xlu1 %1707 }
 0x2b3   : > { %881 = vrot.lane.b32.xlu0 %v834_v30, %s21757_s20  ;;  %2673 = vrot.lane.b32.xlu1 %v2630_v50, %s21746_s18  ;;  %v21763_v50 = vld [vmem:[#allocation19_spill] sm:$0xff] }
 0x2b4   : > { %v1784_v49 = vmul.f32 %v21763_v50, %v21726_v23  ;;  %v21766_v50 = vld [vmem:[#allocation27_spill] sm:$0xff] }
 0x2b5   : > { %v953_v7 = vmul.f32 %v21766_v50, %v14978_v11 }
 0x2b6   : > { %v16129_v40 = vpop.permute.xlu0 %1953  ;;  %v16131_v4 = vpop.permute.xlu1 %1831 }
 0x2b7   : > { %21759 = vst [vmem:[#allocation82_spill] sm:$0xff] %v16129_v40  ;;  %2543 = vrot.lane.b32.xlu0 %v2505_v46, %s21715_s0  ;;  %759 = vrot.lane.b32.xlu1 %v713_v34, %s21750_s11  ;;  %v1073_v40 = vmul.f32 %v21780_v2, %v14978_v11 }
 0x2ba   : > { %v16139_v21 = vpop.permute.xlu0 %1101  ;;  %v16141_v30 = vpop.permute.xlu1 %1835 }
 0x2bb   : > { %21761 = vst [vmem:[#allocation81_spill] sm:$0xff] %v16139_v21  ;;  %21762 = vst [vmem:[#allocation78_spill] sm:$0xff] %v16141_v30  ;;  %2909 = vrot.lane.b32.xlu0 %v2868_v9, %s21702_s25  ;;  %1821 = vrot.lane.b32.xlu1 %v1784_v49, %s21596_s26  ;;  %v21771_v21 = vld [vmem:[#allocation33_spill] sm:$0xff] }
 0x2bc   : > { %v2626_v55 = vmul.f32 %v21771_v21, %v21719_v17  ;;  %v2625_v57 = vmul.f32 %v21771_v21, %v14978_v11 }
 0x2be   : > { %v16149_v46 = vpop.permute.xlu0 %1705  ;;  %v16151_v34 = vpop.permute.xlu1 %1583 }
 0x2bf   : > { %21764 = vst [vmem:[#allocation99_spill] sm:$0xff] %v16149_v46  ;;  %21765 = vst [vmem:[#allocation86_spill] sm:$0xff] %v16151_v34  ;;  %2913 = vrot.lane.b32.xlu0 %v2870_v47, %s21702_s25  ;;  %2425 = vrot.lane.b32.xlu1 %v2386_v29, %s21683_s24  ;;  %v21777_v46 = vld [vmem:[#allocation130_spill] sm:$0xff] }
 0x2c0   : > { %v2871_v34 = vmul.f32 %v21777_v46, %v21760_v0 }
 0x2c2   : > { %v16159_v9 = vpop.permute.xlu0 %2069  ;;  %v16161_v49 = vpop.permute.xlu1 %1827 }
 0x2c3   : > { %999 = vrot.lane.b32.xlu0 %v953_v7, %s21767_s30  ;;  %879 = vrot.lane.b32.xlu1 %v833_v18, %s21757_s20 }
 0x2c6   : > { %v16169_v47 = vpop.permute.xlu0 %2073  ;;  %v16171_v29 = vpop.permute.xlu1 %1951 }
 0x2c7   : > { %21769 = vst [vmem:[#allocation80_spill] sm:$0xff] %v16169_v47  ;;  %2061 = vrot.lane.b32.xlu0 %v2024_v45, %s21613_s29  ;;  %1941 = vrot.lane.b32.xlu1 %v1904_v36, %s21604_s28 }
 0x2ca   : > { %v16179_v7 = vpop.permute.xlu0 %1221  ;;  %v16181_v18 = vpop.permute.xlu1 %1955 }
 0x2cb   : > { %21772 = vst [vmem:[#allocation94_spill] sm:$0xff] %v16179_v7  ;;  %21773 = vst [vmem:[#allocation106_spill] sm:$0xff] %v16181_v18  ;;  %2665 = vrot.lane.b32.xlu0 %v2626_v55, %s21746_s18  ;;  %2545 = vrot.lane.b32.xlu1 %v2506_v60, %s21715_s0  ;;  %v2989_v7 = vmul.f32 %v21774_v6, %v21722_v41 }
 0x2ce   : > { %v16189_v45 = vpop.permute.xlu0 %1825  ;;  %v16191_v36 = vpop.permute.xlu1 %1703 }
 0x2cf   : > { %21775 = vst [vmem:[#allocation92_spill] sm:$0xff] %v16189_v45  ;;  %21776 = vst [vmem:[#allocation97_spill] sm:$0xff] %v16191_v36  ;;  %3028 = vrot.lane.b32.xlu0 %v2987_v61, %s21732_s1  ;;  %2911 = vrot.lane.b32.xlu1 %v2869_v35, %s21702_s25  ;;  %v3323_v61 = vld [vmem:[%s21059_s2 + $0x8] sm:$0xff]  ;;  %v954_v36 = vmul.f32 %v21766_v50, %v21719_v17 }
 0x2d2   : > { %v16199_v55 = vpop.permute.xlu0 %2189  ;;  %v16201_v60 = vpop.permute.xlu1 %1947 }
 0x2d3   : > { %3032 = vrot.lane.b32.xlu0 %v2989_v7, %s21732_s1  ;;  %2915 = vrot.lane.b32.xlu1 %v2871_v34, %s21702_s25 }
 0x2d6   : > { %v16210_v45 = vpop.permute.xlu0 %2193  ;;  %v16212_v35 = vpop.permute.xlu1 %2071 }
 0x2d7   : > { %21778 = vst [vmem:[#allocation88_spill] sm:$0xff] %v16210_v45  ;;  %21779 = vst [vmem:[#allocation96_spill] sm:$0xff] %v16212_v35  ;;  %3331 = vperm.xlu0 %13661, %v3323_v61   ;;  %1001 = vrot.lane.b32.xlu1 %v954_v36, %s21767_s30  ;;  %v2990_v45 = vmul.f32 %v21774_v6, %v21777_v46 }
 0x2da   : > { %v16219_v7 = vpop.permute.xlu0 %1341  ;;  %v16221_v34 = vpop.permute.xlu1 %2075 }
 0x2db   : > { %21781 = vst [vmem:[#allocation110_spill] sm:$0xff] %v16219_v7  ;;  %21782 = vst [vmem:[#allocation93_spill] sm:$0xff] %v16221_v34  ;;  %1121 = vrot.lane.b32.xlu0 %v1074_v1, %s21783_s9  ;;  %2663 = vrot.lane.b32.xlu1 %v2625_v57, %s21746_s18  ;;  %v21786_v7 = vld [vmem:[#allocation51_spill] sm:$0xff] }
 0x2dc   : > { %v3107_v1 = vmul.f32 %v21786_v7, %v21716_v59 }
 0x2de   : > { %v16229_v61 = vpop.permute.xlu0 %1945  ;;  %v16231_v36 = vpop.permute.xlu1 %1823 }
 0x2df   : > { %21784 = vst [vmem:[#allocation115_spill] sm:$0xff] %v16229_v61  ;;  %21785 = vst [vmem:[#allocation100_spill] sm:$0xff] %v16231_v36  ;;  %3026 = vrot.lane.b32.xlu0 %v2986_v44, %s21732_s1  ;;  %2907 = vrot.lane.b32.xlu1 %v2867_v52, %s21702_s25  ;;  %v2988_v61 = vmul.f32 %v21774_v6, %v21716_v59  ;;  %v3109_v36 = vmul.f32 %v21786_v7, %v21777_v46 }
 0x2e2   : > { %v16239_v56 = vpop.permute.xlu0 %2309  ;;  %v16241_v57 = vpop.permute.xlu1 %2067 }
 0x2e3   : > { %21787 = vst [vmem:[#allocation112_spill] sm:$0xff] %v16239_v56  ;;  %3149 = vrot.lane.b32.xlu0 %v3107_v1, %s21750_s11  ;;  %3030 = vrot.lane.b32.xlu1 %v2988_v61, %s21732_s1  ;;  %v21790_v56 = vld [vmem:[#allocation36_spill] sm:$0xff]  ;;  %v21791_v61 = vld [vmem:[#allocation14_spill] sm:$0xff] }
 0x2e4   : > { %v1194_v34 = vmul.f32 %v21790_v56, %v21719_v17  ;;  %v16260_v1 = vld [vmem:[%s14438_s23 + $0x1] sm:$0xff]  ;;  %v21792_v47 = vsub.s32 6, %v21791_v61 }
 0x2e6   : > { %v16249_v44 = vpop.permute.xlu0 %2313  ;;  %v16251_v52 = vpop.permute.xlu1 %2191  ;;  %v16265_v18 = vrot.slane %v16260_v1, %v21792_v47  ;;  %v2144_v47 = vmul.f32 %v21735_v28, %v21726_v23  ;;  %v21801_v28 = vld [vmem:[#allocation53_spill] sm:$0xff] }
 0x2e7   : > { %21788 = vst [vmem:[#allocation105_spill] sm:$0xff] %v16249_v44  ;;  %21789 = vst [vmem:[#allocation121_spill] sm:$0xff] %v16251_v52  ;;  %3153 = vrot.lane.b32.xlu0 %v3109_v36, %s21750_s11  ;;  %3034 = vrot.lane.b32.xlu1 %v2990_v45, %s21732_s1  ;;  %v21796_v45 = vld [vmem:[#allocation30_spill] sm:$0xff] }
 0x2e8   : > { %21793 = vst [vmem:[#allocation90_spill] sm:$0xff] %v16265_v18  ;;  %v2865_v36 = vmul.f32 %v16265_v18, %v21796_v45 }
 0x2ea   : > { %v16267_v44 = vpop.permute.xlu0 %2737  ;;  %v16269_v52 = vpop.permute.xlu1 %2195 }
 0x2eb   : > { %21794 = vst [vmem:[#allocation101_spill] sm:$0xff] %v16267_v44  ;;  %21795 = vst [vmem:[#allocation131_spill] sm:$0xff] %v16269_v52  ;;  %1241 = vrot.lane.b32.xlu0 %v1194_v34, %s21534_s17  ;;  %1119 = vrot.lane.b32.xlu1 %v1073_v40, %s21783_s9  ;;  %v3105_v44 = vmul.f32 %v21786_v7, %v21738_v16  ;;  %v3106_v52 = vmul.f32 %v21786_v7, %v15125_v32 }
 0x2ee   : > { %v16277_v35 = vpop.permute.xlu0 %2063  ;;  %v16279_v30 = vpop.permute.xlu1 %1943 }
 0x2ef   : > { %21797 = vst [vmem:[#allocation113_spill] sm:$0xff] %v16277_v35  ;;  %21798 = vst [vmem:[#allocation95_spill] sm:$0xff] %v16279_v30  ;;  %2903 = vrot.lane.b32.xlu0 %v2865_v36, %s21702_s25  ;;  %2181 = vrot.lane.b32.xlu1 %v2144_v47, %s21621_s27  ;;  %v3226_v35 = vmul.f32 %v21801_v28, %v21716_v59  ;;  %v3108_v30 = vmul.f32 %v21786_v7, %v21722_v41 }
 0x2f0   : > { %v1193_v59 = vmul.f32 %v21790_v56, %v14978_v11 }
 0x2f2   : > { %v16287_v34 = vpop.permute.xlu0 %2307  ;;  %v16289_v40 = vpop.permute.xlu1 %2187 }
 0x2f3   : > { %21799 = vst [vmem:[#allocation122_spill] sm:$0xff] %v16287_v34  ;;  %21800 = vst [vmem:[#allocation129_spill] sm:$0xff] %v16289_v40  ;;  %3145 = vrot.lane.b32.xlu0 %v3105_v44, %s21750_s11  ;;  %3147 = vrot.lane.b32.xlu1 %v3106_v52, %s21750_s11  ;;  %v3228_v34 = vmul.f32 %v21801_v28, %v21777_v46  ;;  %v2264_v46 = vmul.f32 %v21734_v26, %v21726_v23 }
 0x2f4   : > { %v3224_v26 = vmul.f32 %v21801_v28, %v21738_v16  ;;  %v3227_v16 = vmul.f32 %v21801_v28, %v21722_v41  ;;  %v21821_v41 = vld [vmem:[#allocation42_spill] sm:$0xff] }
 0x2f6   : > { %v16297_v36 = vpop.permute.xlu0 %2431  ;;  %v16299_v47 = vpop.permute.xlu1 %2311 }
 0x2f7   : > { %21802 = vst [vmem:[#allocation116_spill] sm:$0xff] %v16297_v36  ;;  %21803 = vst [vmem:[#allocation114_spill] sm:$0xff] %v16299_v47  ;;  %3268 = vrot.lane.b32.xlu0 %v3226_v35, %s21757_s20  ;;  %3151 = vrot.lane.b32.xlu1 %v3108_v30, %s21750_s11  ;;  %v21806_v36 = vld [vmem:[#allocation38_spill] sm:$0xff] }
 0x2f8   : > { %v1314_v47 = vmul.f32 %v21806_v36, %v21719_v17 }
 0x2fa   : > { %v16307_v44 = vpop.permute.xlu0 %2435  ;;  %v16309_v52 = vpop.permute.xlu1 %2315 }
 0x2fb   : > { %21804 = vst [vmem:[#allocation132_spill] sm:$0xff] %v16307_v44  ;;  %21805 = vst [vmem:[#allocation52_spill] sm:$0xff] %v16309_v52  ;;  %3272 = vrot.lane.b32.xlu0 %v3228_v34, %s21757_s20  ;;  %1239 = vrot.lane.b32.xlu1 %v1193_v59, %s21534_s17  ;;  %v21809_v44 = vsub.s32 7, %v21791_v61  ;;  %v21810_v59 = vld [vmem:[#allocation32_spill] sm:$0xff] }
 0x2fc   : > { %v2984_v34 = vmul.f32 %v21810_v59, %v16265_v18 }
 0x2fd   : > { %v16326_v52 = vrot.slane %v16260_v1, %v21809_v44 }
 0x2fe   : > { %v16317_v35 = vpop.permute.xlu0 %521  ;;  %v16319_v30 = vpop.permute.xlu1 %1461 }
 0x2ff   : > { %21807 = vst [vmem:[#allocation103_spill] sm:$0xff] %v16317_v35  ;;  %21808 = vst [vmem:[#allocation124_spill] sm:$0xff] %v16319_v30  ;;  %1361 = vrot.lane.b32.xlu0 %v1314_v47, %s21551_s21  ;;  %2301 = vrot.lane.b32.xlu1 %v2264_v46, %s21631_s22  ;;  %v2866_v30 = vmul.f32 %v16326_v52, %v21796_v45  ;;  %v3225_v46 = vmul.f32 %v21801_v28, %v15125_v32  ;;  %v21818_v32 = vld [vmem:[#allocation34_spill] sm:$0xff] }
 0x300   : > { %v3104_v40 = vmul.f32 %v21818_v32, %v16326_v52 }
 0x302   : > { %v16332_v62 = vpop.permute.xlu0 %2183  ;;  %v16334_v35 = vpop.permute.xlu1 %2065 }
 0x303   : > { %21811 = vst [vmem:[#allocation136_spill] sm:$0xff] %v16332_v62  ;;  %21812 = vst [vmem:[#allocation197_spill] sm:$0xff] %v16334_v35  ;;  %3022 = vrot.lane.b32.xlu0 %v2984_v34, %s21732_s1  ;;  %2905 = vrot.lane.b32.xlu1 %v2866_v30, %s21702_s25  ;;  %v21815_v62 = vld [vmem:[#allocation40_spill] sm:$0xff] }
 0x304   : > { %v1434_v35 = vmul.f32 %v21815_v62, %v21719_v17 }
 0x306   : > { %v16342_v47 = vpop.permute.xlu0 %2427  ;;  %v16344_v44 = vpop.permute.xlu1 %2429 }
 0x307   : > { %21813 = vst [vmem:[#allocation186_spill] sm:$0xff] %v16342_v47  ;;  %21814 = vst [vmem:[#allocation83_spill] sm:$0xff] %v16344_v44  ;;  %3264 = vrot.lane.b32.xlu0 %v3224_v26, %s21757_s20  ;;  %3266 = vrot.lane.b32.xlu1 %v3225_v46, %s21757_s20  ;;  %v3103_v47 = vmul.f32 %v21818_v32, %v16265_v18  ;;  %v1313_v44 = vmul.f32 %v21806_v36, %v14978_v11 }
 0x30a   : > { %v16352_v34 = vpop.permute.xlu0 %2551  ;;  %v16354_v30 = vpop.permute.xlu1 %2433 }
 0x30b   : > { %21816 = vst [vmem:[#allocation22_spill] sm:$0xff] %v16352_v34  ;;  %21817 = vst [vmem:[#allocation137_spill] sm:$0xff] %v16354_v30  ;;  %1481 = vrot.lane.b32.xlu0 %v1434_v35, %s21567_s14  ;;  %3270 = vrot.lane.b32.xlu1 %v3227_v16, %s21757_s20  ;;  %v1553_v30 = vmul.f32 %v21821_v41, %v14978_v11  ;;  %v2384_v34 = vmul.f32 %v21752_v39, %v21726_v23  ;;  %v21826_v39 = vld [vmem:[#allocation35_spill] sm:$0xff] }
 0x30e   : > { %v16362_v26 = vpop.permute.xlu0 %2555  ;;  %v16364_v46 = vpop.permute.xlu1 %519 }
 0x30f   : > { %21819 = vst [vmem:[#allocation177_spill] sm:$0xff] %v16362_v26  ;;  %21820 = vst [vmem:[#allocation63_spill] sm:$0xff] %v16364_v46  ;;  %3141 = vrot.lane.b32.xlu0 %v3103_v47, %s21750_s11  ;;  %1359 = vrot.lane.b32.xlu1 %v1313_v44, %s21551_s21  ;;  %v2624_v46 = vmul.f32 %v21771_v21, %v21726_v23  ;;  %v2985_v26 = vmul.f32 %v21810_v59, %v16326_v52 }
 0x310   : > { %v1433_v21 = vmul.f32 %v21815_v62, %v14978_v11 }
 0x312   : > { %v16372_v35 = vpop.permute.xlu0 %641  ;;  %v16374_v16 = vpop.permute.xlu1 %1581 }
 0x313   : > { %21822 = vst [vmem:[#allocation17_spill] sm:$0xff] %v16372_v35  ;;  %21823 = vst [vmem:[#allocation148_spill] sm:$0xff] %v16374_v16  ;;  %1599 = vrot.lane.b32.xlu0 %v1553_v30, %s21580_s16  ;;  %2421 = vrot.lane.b32.xlu1 %v2384_v34, %s21683_s24  ;;  %v3223_v35 = vmul.f32 %v21826_v39, %v16326_v52  ;;  %v21829_v16 = vld [vmem:[#allocation44_spill] sm:$0xff] }
 0x316   : > { %v16382_v47 = vpop.permute.xlu0 %2303  ;;  %v16384_v44 = vpop.permute.xlu1 %2185 }
 0x317   : > { %21824 = vst [vmem:[#allocation188_spill] sm:$0xff] %v16382_v47  ;;  %21825 = vst [vmem:[#allocation157_spill] sm:$0xff] %v16384_v44  ;;  %2661 = vrot.lane.b32.xlu0 %v2624_v46, %s21746_s18  ;;  %3024 = vrot.lane.b32.xlu1 %v2985_v26, %s21732_s1  ;;  %v1674_v47 = vmul.f32 %v21829_v16, %v21719_v17  ;;  %v2504_v44 = vmul.f32 %v21758_v58, %v21726_v23  ;;  %v21835_v58 = vld [vmem:[#allocation46_spill] sm:$0xff] }
 0x31a   : > { %v16392_v30 = vpop.permute.xlu0 %2547  ;;  %v16394_v34 = vpop.permute.xlu1 %2549 }
 0x31b   : > { %21827 = vst [vmem:[#allocation166_spill] sm:$0xff] %v16392_v30  ;;  %21828 = vst [vmem:[#allocation26_spill] sm:$0xff] %v16394_v34  ;;  %3262 = vrot.lane.b32.xlu0 %v3223_v35, %s21757_s20  ;;  %1479 = vrot.lane.b32.xlu1 %v1433_v21, %s21567_s14  ;;  %v21832_v30 = vld [vmem:[#allocation37_spill] sm:$0xff] }
 0x31c   : > { %v1794_v34 = vmul.f32 %v21832_v30, %v21719_v17 }
 0x31e   : > { %v16402_v46 = vpop.permute.xlu0 %2671  ;;  %v16404_v26 = vpop.permute.xlu1 %2553 }
 0x31f   : > { %21830 = vst [vmem:[#allocation23_spill] sm:$0xff] %v16402_v46  ;;  %21831 = vst [vmem:[#allocation16_spill] sm:$0xff] %v16404_v26  ;;  %1721 = vrot.lane.b32.xlu0 %v1674_v47, %s21751_s15  ;;  %2541 = vrot.lane.b32.xlu1 %v2504_v44, %s21715_s0  ;;  %v1913_v26 = vmul.f32 %v21835_v58, %v14978_v11  ;;  %v1554_v46 = vmul.f32 %v21821_v41, %v21719_v17 }
 0x322   : > { %v16412_v35 = vpop.permute.xlu0 %2675  ;;  %v16414_v21 = vpop.permute.xlu1 %639 }
 0x323   : > { %21833 = vst [vmem:[#allocation191_spill] sm:$0xff] %v16412_v35  ;;  %21834 = vst [vmem:[#allocation69_spill] sm:$0xff] %v16414_v21  ;;  %1841 = vrot.lane.b32.xlu0 %v1794_v34, %s21596_s26  ;;  %3143 = vrot.lane.b32.xlu1 %v3104_v40, %s21750_s11  ;;  %v21838_v21 = vsub.s32 5, %v21791_v61  ;;  %v21842_v61 = vld [vmem:[#allocation39_spill] sm:$0xff] }
 0x325   : > { %v16432_v35 = vrot.slane %v16260_v1, %v21838_v21  ;;  %v2034_v1 = vmul.f32 %v21842_v61, %v21719_v17  ;;  %v21845_v21 = vld [vmem:[#allocation48_spill] sm:$0xff] }
 0x326   : > { %v16422_v47 = vpop.permute.xlu0 %761  ;;  %v16424_v44 = vpop.permute.xlu1 %1701 }
 0x327   : > { %21836 = vst [vmem:[#allocation24_spill] sm:$0xff] %v16422_v47  ;;  %21837 = vst [vmem:[#allocation18_spill] sm:$0xff] %v16424_v44  ;;  %1959 = vrot.lane.b32.xlu0 %v1913_v26, %s21604_s28  ;;  %1601 = vrot.lane.b32.xlu1 %v1554_v46, %s21580_s16  ;;  %v2983_v40 = vmul.f32 %v21810_v59, %v16432_v35  ;;  %v3222_v44 = vmul.f32 %v21826_v39, %v16265_v18 }
 0x328   : > { %21839 = vst [vmem:[#allocation28_spill] sm:$0xff] %v16432_v35  ;;  %v1673_v59 = vmul.f32 %v21829_v16, %v14978_v11 }
 0x32a   : > { %v16437_v34 = vpop.permute.xlu0 %2423  ;;  %v16439_v47 = vpop.permute.xlu1 %2305 }
 0x32b   : > { %21840 = vst [vmem:[#allocation25_spill] sm:$0xff] %v16437_v34  ;;  %21841 = vst [vmem:[#allocation31_spill] sm:$0xff] %v16439_v47  ;;  %3020 = vrot.lane.b32.xlu0 %v2983_v40, %s21732_s1  ;;  %3260 = vrot.lane.b32.xlu1 %v3222_v44, %s21757_s20  ;;  %v2153_v34 = vmul.f32 %v21845_v21, %v14978_v11  ;;  %v1793_v47 = vmul.f32 %v21832_v30, %v14978_v11 }
 0x32e   : > { %v16447_v26 = vpop.permute.xlu0 %2667  ;;  %v16449_v46 = vpop.permute.xlu1 %2669 }
 0x32f   : > { %21843 = vst [vmem:[#allocation47_spill] sm:$0xff] %v16447_v26  ;;  %21844 = vst [vmem:[#allocation19_spill] sm:$0xff] %v16449_v46  ;;  %2081 = vrot.lane.b32.xlu0 %v2034_v1, %s21613_s29  ;;  %1719 = vrot.lane.b32.xlu1 %v1673_v59, %s21751_s15  ;;  %v3221_v26 = vmul.f32 %v21826_v39, %v16432_v35  ;;  %v2864_v46 = vmul.f32 %v16432_v35, %v21796_v45 }
 0x330   : > { %v1914_v39 = vmul.f32 %v21835_v58, %v21719_v17  ;;  %v2394_v45 = vmul.f32 %v21647_v43, %v21719_v17 }
 0x332   : > { %v16457_v40 = vpop.permute.xlu0 %881  ;;  %v16459_v44 = vpop.permute.xlu1 %2673 }
 0x333   : > { %21846 = vst [vmem:[#allocation27_spill] sm:$0xff] %v16457_v40  ;;  %21847 = vst [vmem:[#allocation21_spill] sm:$0xff] %v16459_v44  ;;  %2199 = vrot.lane.b32.xlu0 %v2153_v34, %s21621_s27  ;;  %1839 = vrot.lane.b32.xlu1 %v1793_v47, %s21596_s26  ;;  %v21850_v40 = vld [vmem:[#allocation41_spill] sm:$0xff] }
 0x334   : > { %v2274_v44 = vmul.f32 %v21850_v40, %v21719_v17 }
 0x336   : > { %v16467_v1 = vpop.permute.xlu0 %2543  ;;  %v16469_v59 = vpop.permute.xlu1 %759 }
 0x337   : > { %21848 = vst [vmem:[#allocation20_spill] sm:$0xff] %v16467_v1  ;;  %21849 = vst [vmem:[#allocation33_spill] sm:$0xff] %v16469_v59  ;;  %3258 = vrot.lane.b32.xlu0 %v3221_v26, %s21757_s20  ;;  %2901 = vrot.lane.b32.xlu1 %v2864_v46, %s21702_s25  ;;  %v21375_v26 = vmov 0.0   ;;  %v2514_v59 = vmul.f32 %v21709_v14, %v21719_v17 }
 0x338   : > { %3362 = vst.msk [vmem:[#allocation2 + $0x38] sm:$0xff] %vm1603_vm9, %v21375_v26  ;;  %3363 = vst.msk [vmem:[#allocation2 + $0x78] sm:$0xff] %vm1603_vm9, %v21375_v26 }
 0x339   : > { %7903 = vst.msk [vmem:[#allocation4 + $0x10] sm:$0xff] %vm2203_vm14, %v21375_v26  ;;  %7905 = vst.msk [vmem:[#allocation4 + $0x28] sm:$0xff] %vm2203_vm14, %v21375_v26 }
 0x33a   : > { %v16477_v34 = vpop.permute.xlu0 %2909  ;;  %v16479_v47 = vpop.permute.xlu1 %1821  ;;  %7907 = vst.msk [vmem:[#allocation4 + $0x40] sm:$0xff] %vm2203_vm14, %v21375_v26  ;;  %7909 = vst.msk [vmem:[#allocation4 + $0x58] sm:$0xff] %vm2203_vm14, %v21375_v26  ;;  %v3102_v26 = vmul.f32 %v21818_v32, %v16432_v35  ;;  %v21859_v32 = vld [vmem:[#allocation15_spill] sm:$0xff] }
 0x33b   : > { %21851 = vst [vmem:[#allocation130_spill] sm:$0xff] %v16477_v34  ;;  %21852 = vst [vmem:[#allocation29_spill] sm:$0xff] %v16479_v47  ;;  %2321 = vrot.lane.b32.xlu0 %v2274_v44, %s21631_s22  ;;  %1961 = vrot.lane.b32.xlu1 %v1914_v39, %s21604_s28  ;;  %v2033_v39 = vmul.f32 %v21842_v61, %v14978_v11 }
 0x33e   : > { %v16499_v46 = vpop.permute.xlu0 %2913  ;;  %v16501_v44 = vpop.permute.xlu1 %2425 }
 0x33f   : > { %21853 = vst [vmem:[#allocation36_spill] sm:$0xff] %v16499_v46  ;;  %21854 = vst [vmem:[#allocation14_spill] sm:$0xff] %v16501_v44  ;;  %2441 = vrot.lane.b32.xlu0 %v2394_v45, %s21683_s24  ;;  %2079 = vrot.lane.b32.xlu1 %v2033_v39, %s21613_s29  ;;  %v2634_v44 = vmul.f32 %v21743_v31, %v21719_v17  ;;  %v2154_v46 = vmul.f32 %v21845_v21, %v21719_v17  ;;  %v21863_v17 = vld [vmem:[#allocation50_spill] sm:$0xff] }
 0x342   : > { %v16509_v47 = vpop.permute.xlu0 %999  ;;  %v16511_v1 = vpop.permute.xlu1 %879 }
 0x343   : > { %21855 = vst [vmem:[#allocation30_spill] sm:$0xff] %v16509_v47  ;;  %21856 = vst [vmem:[#allocation38_spill] sm:$0xff] %v16511_v1  ;;  %2561 = vrot.lane.b32.xlu0 %v2514_v59, %s21715_s0  ;;  %3139 = vrot.lane.b32.xlu1 %v3102_v26, %s21750_s11  ;;  %v14074_v47 = vld [vmem:[%s14438_s23] sm:$0xff]  ;;  %v2874_v59 = vmul.f32 %v16326_v52, %v21760_v0 }
 0x344   : > { %v16529_v1 = vrot.slane %v14074_v47, %v21859_v32  ;;  %v2992_v32 = vmul.f32 %v21774_v6, %v16265_v18 }
 0x346   : > { %v16519_v45 = vpop.permute.xlu0 %2061  ;;  %v16521_v39 = vpop.permute.xlu1 %1941  ;;  %21860 = vst [vmem:[#allocation34_spill] sm:$0xff] %v16529_v1  ;;  %v16547_v47 = vmul.f32 %v16529_v1, %v21863_v17  ;;  %v2513_v1 = vmul.f32 %v21709_v14, %v14978_v11 }
 0x347   : > { %21857 = vst [vmem:[#allocation32_spill] sm:$0xff] %v16519_v45  ;;  %21858 = vst [vmem:[#allocation40_spill] sm:$0xff] %v16521_v39  ;;  %2681 = vrot.lane.b32.xlu0 %v2634_v44, %s21746_s18  ;;  %2201 = vrot.lane.b32.xlu1 %v2154_v46, %s21621_s27  ;;  %v2273_v45 = vmul.f32 %v21850_v40, %v14978_v11  ;;  %v16542_v44 = vmul.f32 %v14978_v11, %v21863_v17 }
 0x348   : > { %21864 = vst [vmem:[#allocation44_spill] sm:$0xff] %v16547_v47  ;;  %v16551_v46 = vmul.f32 %v21726_v23, %v21863_v17  ;;  %v2633_v17 = vmul.f32 %v21743_v31, %v14978_v11  ;;  %v16578_v47 = vmul.f32 %v21726_v23, %v14542_v24  ;;  %v16599_v24 = vmul.f32 %v21766_v50, %v21726_v23  ;;  %v21869_v31 = vld [vmem:[#allocation120_spill] sm:$0xff] }
 0x349   : > { %v16618_v50 = vmul.f32 %v21842_v61, %v21726_v23  ;;  %v21876_v61 = vld [vmem:[#allocation123_spill] sm:$0xff] }
 0x34a   : > { %v16533_v26 = vpop.permute.xlu0 %2665  ;;  %v16535_v58 = vpop.permute.xlu1 %2545  ;;  %21865 = vst [vmem:[#allocation37_spill] sm:$0xff] %v16551_v46  ;;  %v16574_v46 = vmul.f32 %v16265_v18, %v21760_v0 }
 0x34b   : > { %21861 = vst [vmem:[#allocation42_spill] sm:$0xff] %v16533_v26  ;;  %21862 = vst [vmem:[#allocation35_spill] sm:$0xff] %v16535_v58  ;;  %2921 = vrot.lane.b32.xlu0 %v2874_v59, %s21702_s25  ;;  %2319 = vrot.lane.b32.xlu1 %v2273_v45, %s21631_s22  ;;  %v2393_v59 = vmul.f32 %v21647_v43, %v14978_v11  ;;  %v592_v45 = vmul.f32 %v21720_v3, %v21726_v23  ;;  %v21870_v43 = vld [vmem:[#allocation104_spill] sm:$0xff] }
 0x34c   : > { %v16569_v58 = vmul.f32 %v21756_v33, %v21726_v23  ;;  %v16582_v3 = vmul.f32 %v21780_v2, %v21726_v23  ;;  %v16586_v11 = vmul.f32 %v21806_v36, %v21726_v23  ;;  %v16591_v33 = vmul.f32 %v21747_v37, %v21726_v23  ;;  %v21868_v36 = vld [vmem:[#allocation109_spill] sm:$0xff] }
 0x34d   : > { %v16603_v2 = vmul.f32 %v21832_v30, %v21726_v23  ;;  %v16610_v37 = vmul.f32 %v21774_v6, %v16326_v52  ;;  %v383_v30 = vmul.f32 %v21737_v42, %v21870_v43  ;;  %v16632_v6 = vmul.f32 %v21850_v40, %v21726_v23 }
 0x34e   : > { %v16557_v39 = vpop.permute.xlu0 %3028  ;;  %v16559_v26 = vpop.permute.xlu1 %2911  ;;  %v16650_v40 = vmul.f32 %v21829_v16, %v21726_v23 }
 0x34f   : > { %21866 = vst [vmem:[#allocation39_spill] sm:$0xff] %v16557_v39  ;;  %21867 = vst [vmem:[#allocation41_spill] sm:$0xff] %v16559_v26  ;;  %3038 = vrot.lane.b32.xlu0 %v2992_v32, %s21732_s1  ;;  %2439 = vrot.lane.b32.xlu1 %v2393_v59, %s21683_s24  ;;  %v16595_v32 = vmul.f32 %v21821_v41, %v21726_v23  ;;  %v531_v59 = vsel %vm21406_vm0, %v21869_v31, %v21868_v36  ;;  %v21877_v26 = vld [vmem:[#allocation145_spill] sm:$0xff] }
 0x350   : > { %v16614_v41 = vmul.f32 %v21790_v56, %v21726_v23  ;;  %v16628_v31 = vmul.f32 %v21815_v62, %v21726_v23  ;;  %21874 = vst [vmem:[#allocation200_spill] sm:$0xff] %v16632_v6  ;;  %v16636_v56 = vmul.f32 %v21709_v14, %v21726_v23  ;;  %v651_v42 = vsel %vm21404_vm1, %v21877_v26, %v21876_v61  ;;  %v21880_v14 = vld [vmem:[#allocation126_spill] sm:$0xff]  ;;  %v21890_v6 = vld [vmem:[#allocation156_spill] sm:$0xff] }
 0x351   : > { %v16646_v62 = vmul.f32 %v16432_v35, %v21760_v0  ;;  %21879 = vst [vmem:[#allocation145_spill] sm:$0xff] %v16650_v40  ;;  %v3230_v26 = vmul.f32 %v21801_v28, %v16265_v18  ;;  %v384_v0 = vmul.f32 %v14453_v54, %v21870_v43  ;;  %v385_v35 = vmul.f32 %v14448_v53, %v21870_v43 }
 0x352   : > { %v16622_v39 = vpop.permute.xlu0 %3032  ;;  %v16624_v21 = vpop.permute.xlu1 %2915  ;;  %21873 = vst [vmem:[#allocation120_spill] sm:$0xff] %v16628_v31  ;;  %21875 = vst [vmem:[#allocation201_spill] sm:$0xff] %v16636_v56  ;;  %v532_v56 = vsel %vm21406_vm0, %v21868_v36, %v21880_v14  ;;  %v21889_v31 = vld [vmem:[#allocation140_spill] sm:$0xff] }
 0x353   : > { %21871 = vst [vmem:[#allocation50_spill] sm:$0xff] %v16622_v39  ;;  %21872 = vst [vmem:[#allocation109_spill] sm:$0xff] %v16624_v21  ;;  %637 = vrot.lane.b32.xlu0 %v592_v45, %s21732_s1  ;;  %v3112_v39 = vmul.f32 %v21786_v7, %v16326_v52  ;;  %v559_v21 = vadd.f32 %v531_v59, %v383_v30  ;;  %2559 = vrot.lane.b32.xlu1 %v2513_v1, %s21715_s0  ;;  %v21882_v59 = vld [vmem:[#allocation128_spill] sm:$0xff]  ;;  %v21883_v30 = vld [vmem:[#allocation147_spill] sm:$0xff] }
 0x354   : > { %21878 = vst [vmem:[#allocation123_spill] sm:$0xff] %v16646_v62  ;;  %v16660_v45 = vmul.f32 %v21786_v7, %v16265_v18  ;;  %v21881_v62 = vld [vmem:[#allocation111_spill] sm:$0xff]  ;;  %v21884_v1 = vld [vmem:[#allocation154_spill] sm:$0xff]  ;;  %v386_v18 = vmul.f32 %v14475_v63, %v21870_v43 }
 0x355   : > { %v533_v16 = vsel %vm21406_vm0, %v21880_v14, %v21881_v62  ;;  %v534_v36 = vsel %vm21406_vm0, %v21881_v62, %v21882_v59  ;;  %v771_v40 = vsel %vm21405_vm2, %v21884_v1, %v21883_v30  ;;  %v21885_v7 = vld [vmem:[#allocation138_spill] sm:$0xff]  ;;  %v679_v23 = vadd.f32 %v651_v42, %v559_v21  ;;  %v21888_v59 = vld [vmem:[#allocation125_spill] sm:$0xff]  ;;  %v21891_v63 = vld [vmem:[#allocation163_spill] sm:$0xff] }
 0x356   : > { %v652_v54 = vsel %vm21404_vm1, %v21876_v61, %v21885_v7  ;;  %v16680_v14 = vpop.permute.xlu0 %3331  ;;  %v16682_v34 = vpop.permute.xlu1 %1001  ;;  %v560_v62 = vadd.f32 %v532_v56, %v384_v0  ;;  %v653_v1 = vsel %vm21404_vm1, %v21885_v7, %v21888_v59  ;;  %v654_v53 = vsel %vm21404_vm1, %v21888_v59, %v21889_v31  ;;  %v21892_v0 = vld [vmem:[#allocation139_spill] sm:$0xff]  ;;  %v21893_v31 = vld [vmem:[#allocation149_spill] sm:$0xff] }
 0x357   : > { %21886 = vst [vmem:[#allocation126_spill] sm:$0xff] %v16680_v14  ;;  %21887 = vst [vmem:[#allocation111_spill] sm:$0xff] %v16682_v34  ;;  %v891_v43 = vsel %vm883_vm3, %v21891_v63, %v21890_v6  ;;  %3159 = vrot.lane.b32.xlu0 %v3112_v39, %s21750_s11  ;;  %v561_v21 = vadd.f32 %v533_v16, %v385_v35  ;;  %v562_v61 = vadd.f32 %v534_v36, %v386_v18  ;;  %v21894_v34 = vld [vmem:[#allocation165_spill] sm:$0xff]  ;;  %v21908_v14 = vld [vmem:[#allocation159_spill] sm:$0xff] }
 0x358   : > { %v799_v42 = vadd.f32 %v771_v40, %v679_v23  ;;  %2679 = vrot.lane.b32.xlu1 %v2633_v17, %s21746_s18  ;;  %v16697_v56 = vmul.f32 %v21801_v28, %v16326_v52  ;;  %v680_v7 = vadd.f32 %v652_v54, %v560_v62  ;;  %v772_v59 = vsel %vm21405_vm2, %v21883_v30, %v21892_v0  ;;  %v21895_v39 = vld [vmem:[#allocation173_spill] sm:$0xff]  ;;  %v21899_v30 = vld [vmem:[#allocation146_spill] sm:$0xff]  ;;  %v21900_v54 = vld [vmem:[#allocation152_spill] sm:$0xff] }
 0x359   : > { %v773_v63 = vsel %vm21405_vm2, %v21892_v0, %v21893_v31  ;;  %v1011_v18 = vsel %vm1003_vm5, %v21895_v39, %v21894_v34  ;;  %v681_v23 = vadd.f32 %v653_v1, %v561_v21  ;;  %v682_v35 = vadd.f32 %v654_v53, %v562_v61  ;;  %v21896_v17 = vld [vmem:[#allocation141_spill] sm:$0xff]  ;;  %v21901_v0 = vld [vmem:[#allocation150_spill] sm:$0xff]  ;;  %v21903_v53 = vld [vmem:[#allocation175_spill] sm:$0xff] }
 0x35a   : > { %v774_v52 = vsel %vm21405_vm2, %v21893_v31, %v21896_v17  ;;  %v919_v40 = vadd.f32 %v891_v43, %v799_v42  ;;  %v16711_v16 = vpop.permute.xlu0 %1121  ;;  %v16713_v36 = vpop.permute.xlu1 %2663  ;;  %v530_v62 = vsel %vm21406_vm0, %v21900_v54, %v21899_v30  ;;  %v892_v28 = vsel %vm883_vm3, %v21890_v6, %v21901_v0  ;;  %v21902_v39 = vld [vmem:[#allocation158_spill] sm:$0xff]  ;;  %v21904_v21 = vld [vmem:[#allocation180_spill] sm:$0xff]  ;;  %v21905_v42 = vld [vmem:[#allocation151_spill] sm:$0xff] }
 0x35b   : > { %21897 = vst [vmem:[#allocation147_spill] sm:$0xff] %v16711_v16  ;;  %21898 = vst [vmem:[#allocation154_spill] sm:$0xff] %v16713_v36  ;;  %v893_v1 = vsel %vm883_vm3, %v21901_v0, %v21902_v39  ;;  %v1131_v43 = vsel %vm1123_vm4, %v21904_v21, %v21903_v53  ;;  %3276 = vrot.lane.b32.xlu0 %v3230_v26, %s21757_s20  ;;  %v800_v31 = vadd.f32 %v772_v59, %v680_v7  ;;  %v21906_v16 = vld [vmem:[#allocation155_spill] sm:$0xff]  ;;  %v21907_v36 = vld [vmem:[#allocation161_spill] sm:$0xff]  ;;  %vm21936_vm0 = vcmask 760832  }
 0x35c   : > { %v801_v61 = vadd.f32 %v773_v63, %v681_v23  ;;  %v894_v30 = vsel %vm883_vm3, %v21902_v39, %v21905_v42  ;;  %v1039_v17 = vadd.f32 %v1011_v18, %v919_v40  ;;  %2919 = vrot.lane.b32.xlu1 %v16574_v46, %s21702_s25  ;;  %v802_v6 = vadd.f32 %v774_v52, %v682_v35  ;;  %v21909_v26 = vld [vmem:[#allocation172_spill] sm:$0xff]  ;;  %v21910_v7 = vld [vmem:[#allocation181_spill] sm:$0xff]  ;;  %v21911_v52 = vld [vmem:[#allocation167_spill] sm:$0xff] }
 0x35d   : > { %v650_v0 = vsel %vm21404_vm1, %v21907_v36, %v21906_v16  ;;  %v1012_v21 = vsel %vm1003_vm5, %v21894_v34, %v21908_v14  ;;  %v1251_v59 = vsel %vm1243_vm7, %v21910_v7, %v21909_v26  ;;  %v558_v63 = vadd.f32 %v530_v62, %v16542_v44  ;;  %v21912_v42 = vld [vmem:[#allocation168_spill] sm:$0xff]  ;;  %v21913_v36 = vld [vmem:[#allocation183_spill] sm:$0xff]  ;;  %v21914_v7 = vld [vmem:[#allocation194_spill] sm:$0xff] }
 0x35e   : > { %v920_v23 = vadd.f32 %v892_v28, %v800_v31  ;;  %v921_v18 = vadd.f32 %v893_v1, %v801_v61  ;;  %v1159_v40 = vadd.f32 %v1131_v43, %v1039_v17  ;;  %v16743_v39 = vpop.permute.xlu0 %3026  ;;  %v16745_v46 = vpop.permute.xlu1 %2907  ;;  %v922_v35 = vadd.f32 %v894_v30, %v802_v6  ;;  %v21916_v62 = vld [vmem:[#allocation160_spill] sm:$0xff]  ;;  %v21918_v31 = vld [vmem:[#allocation171_spill] sm:$0xff]  ;;  %v21920_v6 = vld [vmem:[#allocation182_spill] sm:$0xff] }
 0x35f   : > { %v1013_v16 = vsel %vm1003_vm5, %v21908_v14, %v21911_v52  ;;  %v1132_v34 = vsel %vm1123_vm4, %v21903_v53, %v21912_v42  ;;  %vm21915_vm1 = vcmask 760832   ;;  %877 = vrot.lane.b32.xlu0 %v16569_v58, %s21757_s20  ;;  %v678_v28 = vadd.f32 %v650_v0, %v558_v63  ;;  %v21917_v14 = vld [vmem:[#allocation164_spill] sm:$0xff] }
 0x360   : > { %v1371_v44 = vsel %vm21915_vm1, %v21914_v7, %v21913_v36  ;;  %v1040_v17 = vadd.f32 %v1012_v21, %v920_v23  ;;  %v1014_v1 = vsel %vm1003_vm5, %v21911_v52, %v21916_v62  ;;  %v1279_v43 = vadd.f32 %v1251_v59, %v1159_v40  ;;  %517 = vrot.lane.b32.xlu1 %v16578_v47, %s21702_s25  ;;  %v21919_v61 = vld [vmem:[#allocation176_spill] sm:$0xff]  ;;  %v21923_v23 = vld [vmem:[#allocation169_spill] sm:$0xff] }
 0x361   : > { %v770_v53 = vsel %vm21405_vm2, %v21918_v31, %v21917_v14  ;;  %v1133_v30 = vsel %vm1123_vm4, %v21912_v42, %v21919_v61  ;;  %v1252_v58 = vsel %vm1243_vm7, %v21909_v26, %v21920_v6  ;;  %v21921_v0 = vld [vmem:[#allocation196_spill] sm:$0xff]  ;;  %vm21922_vm1 = vcmask 752640   ;;  %v21924_v14 = vld [vmem:[#allocation174_spill] sm:$0xff]  ;;  %v21925_v62 = vld [vmem:[#allocation193_spill] sm:$0xff] }
 0x362   : > { %v1491_v21 = vsel %vm21922_vm1, %v15925_v10, %v21921_v0  ;;  %v1041_v59 = vadd.f32 %v1013_v16, %v921_v18  ;;  %v1160_v63 = vadd.f32 %v1132_v34, %v1040_v17  ;;  %v1134_v47 = vsel %vm1123_vm4, %v21919_v61, %v21923_v23  ;;  %v16778_v52 = vpop.permute.xlu0 %3149  ;;  %v16780_v7 = vpop.permute.xlu1 %3030 }
 0x363   : > { %v1399_v40 = vadd.f32 %v1371_v44, %v1279_v43  ;;  %v1042_v42 = vadd.f32 %v1014_v1, %v922_v35  ;;  %v1253_v26 = vsel %vm1243_vm7, %v21920_v6, %v21924_v14  ;;  %vm21926_vm2 = vcmask 760832   ;;  %1117 = vrot.lane.b32.xlu0 %v16582_v3, %s21783_s9  ;;  %v21927_v1 = vld [vmem:[#allocation184_spill] sm:$0xff]  ;;  %v21931_v3 = vld [vmem:[#allocation170_spill] sm:$0xff]  ;;  %s14171_s9 = smov 108  }
 0x364   : > { %v1372_v10 = vsel %vm21926_vm2, %v21913_v36, %v21925_v62  ;;  %v1611_v18 = vsel %vm1603_vm9, %v15982_v15, %v15956_v25  ;;  %v798_v16 = vadd.f32 %v770_v53, %v678_v28  ;;  %v1161_v34 = vadd.f32 %v1133_v30, %v1041_v59  ;;  %3040 = vrot.lane.b32.xlu1 %v16610_v37, %s21732_s1  ;;  %v21928_v36 = vld [vmem:[#allocation59_spill] sm:$0xff]  ;;  %vm21929_vm2 = vmmov %vm21922_vm1  ;;  %v21932_v28 = vld [vmem:[#allocation178_spill] sm:$0xff] }
 0x365   : > { %v1280_v44 = vadd.f32 %v1252_v58, %v1160_v63  ;;  %v1519_v17 = vadd.f32 %v1491_v21, %v1399_v40  ;;  %v1162_v35 = vadd.f32 %v1134_v47, %v1042_v42  ;;  %v1254_v43 = vsel %vm1243_vm7, %v21924_v14, %v21927_v1  ;;  %v3379_v59 = vld [vmem:[#allocation2 + $0x8] sm:$0xff]  ;;  %v21937_v47 = vld [vmem:[#allocation195_spill] sm:$0xff] }
 0x366   : > { %v1492_v61 = vsel %vm21929_vm2, %v21921_v0, %v21928_v36  ;;  %vm21930_vm1 = vcmask 515072   ;;  %v890_v53 = vsel %vm883_vm3, %v21932_v28, %v21931_v3  ;;  %v1281_v30 = vadd.f32 %v1253_v26, %v1161_v34  ;;  %v16807_v58 = vpop.permute.xlu0 %3153  ;;  %v16809_v21 = vpop.permute.xlu1 %3034  ;;  %v21935_v63 = vld [vmem:[#allocation185_spill] sm:$0xff]  ;;  %vm21938_vm2 = vmmov %vm21936_vm0  ;;  %v21939_v26 = vld [vmem:[#allocation198_spill] sm:$0xff] }
 0x367   : > { %v1731_v15 = vsel %vm21930_vm1, %v16121_v48, %v16011_v19  ;;  %v1400_v6 = vadd.f32 %v1372_v10, %v1280_v44  ;;  %v1639_v37 = vadd.f32 %v1611_v18, %v1519_v17  ;;  %21933 = vst [vmem:[#allocation138_spill] sm:$0xff] %v16807_v58  ;;  %21934 = vst [vmem:[#allocation125_spill] sm:$0xff] %v16809_v21  ;;  %1357 = vrot.lane.b32.xlu0 %v16586_v11, %s21551_s21  ;;  %vm21940_vm1 = vcmask 752640   ;;  %v21941_v34 = vld [vmem:[#allocation71_spill] sm:$0xff] }
 0x368   : > { %v1373_v0 = vsel %vm21936_vm0, %v21925_v62, %v21935_v63  ;;  %v1374_v48 = vsel %vm21938_vm2, %v21935_v63, %v21937_v47  ;;  %v1612_v40 = vsel %vm1603_vm9, %v15956_v25, %v15834_v38  ;;  %v1851_v42 = vsel %vm1843_vm12, %v16161_v49, %v16079_v13  ;;  %3157 = vrot.lane.b32.xlu1 %v16660_v45, %s21750_s11  ;;  %vm21942_vm0 = vmmov %vm21940_vm1 }
 0x369   : > { %v1282_v14 = vadd.f32 %v1254_v43, %v1162_v35  ;;  %v1493_v62 = vsel %vm21940_vm1, %v21928_v36, %v21939_v26  ;;  %v1520_v10 = vadd.f32 %v1492_v61, %v1400_v6  ;;  %v1759_v18 = vadd.f32 %v1731_v15, %v1639_v37 }
 0x36a   : > { %v1494_v25 = vsel %vm21942_vm0, %v21939_v26, %v21941_v34  ;;  %vm21943_vm2 = vcmask 515072   ;;  %v1971_v11 = vsel %vm1963_vm11, %v16201_v60, %v16119_v8  ;;  %v21944_v44 = vmax.f32 %v16044_v12, 0.0  ;;  %v16841_v45 = vpop.permute.xlu0 %1241  ;;  %v16843_v15 = vpop.permute.xlu1 %1119  ;;  %v21948_v26 = vld [vmem:[#allocation85_spill] sm:$0xff] }
 0x36b   : > { %v1732_v49 = vsel %vm21943_vm2, %v16011_v19, %v16091_v5  ;;  %v1401_v35 = vadd.f32 %v1373_v0, %v1281_v30  ;;  %v1402_v43 = vadd.f32 %v1374_v48, %v1282_v14  ;;  %v1640_v36 = vadd.f32 %v1612_v40, %v1520_v10  ;;  %vm21945_vm1 = vmmov %vm21943_vm2  ;;  %v21950_v10 = vld [vmem:[#allocation96_spill] sm:$0xff] }
 0x36c   : > { %v13663_v17 = vpack.i.bf16 %v21944_v44, %v3379_v59  ;;  %v1879_v61 = vadd.f32 %v1851_v42, %v1759_v18  ;;  %v1613_v3 = vsel %vm1603_vm9, %v15834_v38, %v15984_v51  ;;  %v1614_v19 = vsel %vm1603_vm9, %v15984_v51, %v15866_v20  ;;  %757 = vrot.lane.b32.xlu1 %v16591_v33, %s21750_s11  ;;  %vm21946_vm0 = vmmov %vm21945_vm1 }
 0x36d   : > { %v1852_v12 = vsel %vm1843_vm12, %v16079_v13, %v16131_v4  ;;  %v2091_v60 = vsel %vm2083_vm13, %v16241_v57, %v16159_v9  ;;  %v1521_v30 = vadd.f32 %v1493_v62, %v1401_v35  ;;  %v1522_v6 = vadd.f32 %v1494_v25, %v1402_v43  ;;  %v21947_v57 = vld [vmem:[#allocation129_spill] sm:$0xff]  ;;  %v21949_v62 = vld [vmem:[#allocation78_spill] sm:$0xff] }
 0x36e   : > { %13664 = vrot.lane.b32.xlu0 %v13663_v17, %s21702_s25  ;;  %v1760_v37 = vadd.f32 %v1732_v49, %v1640_v36  ;;  %v1999_v59 = vadd.f32 %v1971_v11, %v1879_v61  ;;  %v1733_v38 = vsel %vm21945_vm1, %v16091_v5, %v16031_v22  ;;  %v1734_v51 = vsel %vm21946_vm0, %v16031_v22, %v16101_v27  ;;  %v16872_v42 = vpop.permute.xlu0 %2903  ;;  %v16874_v14 = vpop.permute.xlu1 %2181  ;;  %v21953_v17 = vld [vmem:[#allocation82_spill] sm:$0xff] }
 0x36f   : > { %v1972_v13 = vsel %vm1963_vm11, %v16119_v8, %v16171_v29  ;;  %v2211_v63 = vsel %vm2203_vm14, %v21947_v57, %v16199_v55  ;;  %v1641_v0 = vadd.f32 %v1613_v3, %v1521_v30  ;;  %v1642_v48 = vadd.f32 %v1614_v19, %v1522_v6  ;;  %v21954_v43 = vld [vmem:[#allocation106_spill] sm:$0xff]  ;;  %v21956_v19 = vld [vmem:[#allocation80_spill] sm:$0xff] }
 0x370   : > { %v1880_v40 = vadd.f32 %v1852_v12, %v1760_v37  ;;  %v2119_v33 = vadd.f32 %v2091_v60, %v1999_v59  ;;  %v918_v5 = vadd.f32 %v890_v53, %v798_v16  ;;  %v1853_v22 = vsel %vm1843_vm12, %v16131_v4, %v21948_v26  ;;  %3278 = vrot.lane.b32.xlu1 %v16697_v56, %s21757_s20  ;;  %v21951_v16 = vld [vmem:[#allocation189_spill] sm:$0xff]  ;;  %v21952_v4 = vld [vmem:[#allocation179_spill] sm:$0xff]  ;;  %v21958_v37 = vld [vmem:[#allocation112_spill] sm:$0xff] }
 0x371   : > { %v1854_v8 = vsel %vm1843_vm12, %v21948_v26, %v21949_v62  ;;  %v2092_v18 = vsel %vm2083_vm13, %v16159_v9, %v21950_v10  ;;  %v1761_v25 = vadd.f32 %v1733_v38, %v1641_v0  ;;  %v1762_v49 = vadd.f32 %v1734_v51, %v1642_v48  ;;  %v21959_v59 = vld [vmem:[#allocation122_spill] sm:$0xff]  ;;  %v21963_v26 = vld [vmem:[#allocation88_spill] sm:$0xff] }
 0x372   : > { %1597 = vrot.lane.b32.xlu0 %v16595_v32, %s21580_s16  ;;  %v2000_v11 = vadd.f32 %v1972_v13, %v1880_v40  ;;  %v2239_v44 = vadd.f32 %v2211_v63, %v2119_v33  ;;  %v1010_v53 = vsel %vm1003_vm5, %v21952_v4, %v21951_v16  ;;  %v1973_v35 = vsel %vm1963_vm11, %v16171_v29, %v21953_v17  ;;  %v21955_v32 = vld [vmem:[#allocation121_spill] sm:$0xff]  ;;  %v16904_v60 = vpop.permute.xlu0 %3145  ;;  %v16906_v30 = vpop.permute.xlu1 %3147  ;;  %v21961_v13 = vld [vmem:[#allocation83_spill] sm:$0xff]  ;;  %v21962_v57 = vld [vmem:[#allocation186_spill] sm:$0xff]  ;;  %s14182_s16 = smov 70  }
 0x373   : > { %v1974_v9 = vsel %vm1963_vm11, %v21953_v17, %v21954_v43  ;;  %v2212_v36 = vsel %vm2203_vm14, %v16199_v55, %v21955_v32  ;;  %v1881_v61 = vadd.f32 %v1853_v22, %v1761_v25  ;;  %v1882_v3 = vadd.f32 %v1854_v8, %v1762_v49  ;;  %v21957_v29 = vld [vmem:[#allocation93_spill] sm:$0xff]  ;;  %v21960_v55 = vld [vmem:[#allocation114_spill] sm:$0xff]  ;;  %v21964_v8 = vld [vmem:[#allocation131_spill] sm:$0xff] }
 0x374   : > { %v2093_v56 = vsel %vm2083_vm13, %v21950_v10, %v21956_v19  ;;  %v2120_v12 = vadd.f32 %v2092_v18, %v2000_v11  ;;  %v2094_v6 = vsel %vm2083_vm13, %v21956_v19, %v21957_v29  ;;  %v2331_v38 = vsel %vm2323_vm15, %v21959_v59, %v21958_v37  ;;  %997 = vrot.lane.b32.xlu1 %v16599_v24, %s21767_s30  ;;  %v21965_v18 = vld [vmem:[#allocation116_spill] sm:$0xff]  ;;  %v21967_v49 = vld [vmem:[#allocation166_spill] sm:$0xff] }
 0x375   : > { %v2332_v51 = vsel %vm2323_vm15, %v21958_v37, %v21960_v55  ;;  %v2451_v63 = vsel %vm2443_vm8, %v21962_v57, %v21961_v13  ;;  %v2001_v0 = vadd.f32 %v1973_v35, %v1881_v61  ;;  %v2002_v48 = vadd.f32 %v1974_v9, %v1882_v3  ;;  %v21969_v61 = vld [vmem:[#allocation52_spill] sm:$0xff]  ;;  %v21970_v19 = vld [vmem:[#allocation22_spill] sm:$0xff]  ;;  %v21973_v57 = vld [vmem:[#allocation137_spill] sm:$0xff] }
 0x376   : > { %1837 = vrot.lane.b32.xlu0 %v16603_v2, %s21596_s26  ;;  %v2240_v40 = vadd.f32 %v2212_v36, %v2120_v12  ;;  %v2359_v33 = vadd.f32 %v2331_v38, %v2239_v44  ;;  %v2213_v22 = vsel %vm2203_vm14, %v21955_v32, %v21963_v26  ;;  %v2214_v10 = vsel %vm2203_vm14, %v21963_v26, %v21964_v8  ;;  %v21966_v2 = vld [vmem:[#allocation26_spill] sm:$0xff]  ;;  %v16936_v35 = vpop.permute.xlu0 %3268  ;;  %v16938_v9 = vpop.permute.xlu1 %3151  ;;  %v21968_v32 = vld [vmem:[#allocation105_spill] sm:$0xff]  ;;  %s14176_s26 = smov 89  }
 0x377   : > { %v2452_v25 = vsel %vm2443_vm8, %v21961_v13, %v21965_v18  ;;  %v2571_v11 = vsel %vm21417_vm10, %v21967_v49, %v21966_v2  ;;  %v2121_v44 = vadd.f32 %v2093_v56, %v2001_v0  ;;  %v2122_v16 = vadd.f32 %v2094_v6, %v2002_v48  ;;  %v21971_v56 = vld [vmem:[#allocation19_spill] sm:$0xff]  ;;  %v21974_v0 = vld [vmem:[#allocation132_spill] sm:$0xff]  ;;  %v21979_v49 = vld [vmem:[#allocation61_spill] sm:$0xff] }
 0x378   : > { %v2360_v17 = vadd.f32 %v2332_v51, %v2240_v40  ;;  %v2479_v24 = vadd.f32 %v2451_v63, %v2359_v33  ;;  %v2333_v36 = vsel %vm2323_vm15, %v21960_v55, %v21968_v32  ;;  %v2334_v3 = vsel %vm2323_vm15, %v21968_v32, %v21969_v61  ;;  %v21972_v6 = vld [vmem:[#allocation47_spill] sm:$0xff]  ;;  %1237 = vrot.lane.b32.xlu1 %v16614_v41, %s21534_s17  ;;  %v22015_v61 = vld [vmem:[#allocation73_spill] sm:$0xff]  ;;  %v22018_v29 = vld [vmem:[#allocation50_spill] sm:$0xff]  ;;  %s14191_s17 = smov [#allocation5]  }
 0x379   : > { %v2572_v12 = vsel %vm21417_vm10, %v21966_v2, %v21970_v19  ;;  %v2691_v37 = vsel %vm21407_vm6, %v21972_v6, %v21971_v56  ;;  %v2241_v59 = vadd.f32 %v2213_v22, %v2121_v44  ;;  %v2242_v38 = vadd.f32 %v2214_v10, %v2122_v16  ;;  %v21975_v40 = vld [vmem:[#allocation23_spill] sm:$0xff]  ;;  %v21978_v2 = vld [vmem:[#allocation192_spill] sm:$0xff]  ;;  %v21984_v6 = vld [vmem:[#allocation101_spill] sm:$0xff] }
 0x37a   : > { %2077 = vrot.lane.b32.xlu0 %v16618_v50, %s21613_s29  ;;  %v2480_v51 = vadd.f32 %v2452_v25, %v2360_v17  ;;  %v2599_v13 = vadd.f32 %v2571_v11, %v2479_v24  ;;  %v1038_v55 = vadd.f32 %v1010_v53, %v918_v5  ;;  %v2453_v63 = vsel %vm2443_vm8, %v21965_v18, %v21973_v57  ;;  %v16965_v25 = vpop.permute.xlu0 %3272  ;;  %v16967_v41 = vpop.permute.xlu1 %1239  ;;  %v3378_v5 = vld [vmem:[#allocation2] sm:$0xff]  ;;  %v21982_v24 = vld [vmem:[#allocation177_spill] sm:$0xff]  ;;  %s22239_s29 = sld [smem:[#allocation204_spill]] }
 0x37b   : > { %v2454_v48 = vsel %vm2443_vm8, %v21973_v57, %v21974_v0  ;;  %v2692_v50 = vsel %vm21407_vm6, %v21971_v56, %v21975_v40  ;;  %v2361_v33 = vadd.f32 %v2333_v36, %v2241_v59  ;;  %v2362_v26 = vadd.f32 %v2334_v3, %v2242_v38  ;;  %21976 = vst [vmem:[#allocation156_spill] sm:$0xff] %v16965_v25  ;;  %v21977_v53 = vld [vmem:[#allocation56_spill] sm:$0xff]  ;;  %v21980_v11 = vld [vmem:[#allocation67_spill] sm:$0xff] }
 0x37c   : > { %v2600_v22 = vadd.f32 %v2572_v12, %v2480_v51  ;;  %v2719_v10 = vadd.f32 %v2691_v37, %v2599_v13  ;;  %v1130_v18 = vsel %vm1123_vm4, %v21978_v2, %v21977_v53  ;;  %v1250_v44 = vsel %vm1243_vm7, %v21980_v11, %v21979_v49  ;;  %v21981_v16 = vld [vmem:[#allocation16_spill] sm:$0xff]  ;;  %v21985_v37 = vld [vmem:[#allocation134_spill] sm:$0xff]  ;;  %v21987_v13 = vld [vmem:[#allocation21_spill] sm:$0xff] }
 0x37d   : > { %v2573_v17 = vsel %vm21417_vm10, %v21970_v19, %v21981_v16  ;;  %v2574_v32 = vsel %vm21417_vm10, %v21981_v16, %v21982_v24  ;;  %v21983_v36 = vld [vmem:[#allocation200_spill] sm:$0xff]  ;;  %v2481_v3 = vadd.f32 %v2453_v63, %v2361_v33  ;;  %v2482_v12 = vadd.f32 %v2454_v48, %v2362_v26  ;;  %v3381_v51 = vld [vmem:[#allocation2 + $0x18] sm:$0xff]  ;;  %v21991_v26 = vld [vmem:[#allocation117_spill] sm:$0xff] }
 0x37e   : > { %2317 = vrot.lane.b32.xlu0 %v21983_v36, %s21631_s22  ;;  %v2720_v56 = vadd.f32 %v2692_v50, %v2600_v22  ;;  %v2783_v59 = vmul.f32 %v21985_v37, %v21984_v6  ;;  %v21986_v38 = vld [vmem:[#allocation120_spill] sm:$0xff]  ;;  %v2693_v19 = vsel %vm21407_vm6, %v21975_v40, %v21987_v13  ;;  %v21988_v57 = vld [vmem:[#allocation191_spill] sm:$0xff]  ;;  %v21989_v49 = vld [vmem:[#allocation130_spill] sm:$0xff]  ;;  %vm21990_vm2 = vcmask 1039360   ;;  %v16998_v36 = vpop.permute.xlu0 %1361  ;;  %v17000_v37 = vpop.permute.xlu1 %2301 }
 0x37f   : > { %1477 = vrot.lane.b32.xlu1 %v21986_v38, %s21567_s14  ;;  %v2694_v53 = vsel %vm21407_vm6, %v21987_v13, %v21988_v57  ;;  %v2930_v63 = vsel %vm21990_vm2, %v16745_v46, %v21989_v49  ;;  %v13668_v48 = vpack.i.bf16 %v3378_v5, %v3381_v51  ;;  %v2601_v50 = vadd.f32 %v2573_v17, %v2481_v3  ;;  %v21992_v38 = vld [vmem:[#allocation41_spill] sm:$0xff]  ;;  %vm21993_vm1 = vmmov %vm21990_vm2  ;;  %v21995_v46 = vld [vmem:[#allocation143_spill] sm:$0xff] }
 0x380   : > { %v2602_v33 = vadd.f32 %v2574_v32, %v2482_v12  ;;  %v2784_v22 = vmul.f32 %v21991_v26, %v21984_v6  ;;  %v2797_v16 = vadd.f32 %v2783_v59, %v2719_v10  ;;  %v1158_v40 = vadd.f32 %v1130_v18, %v1038_v55  ;;  %v21994_v57 = vld [vmem:[#allocation201_spill] sm:$0xff]  ;;  %v21996_v5 = vld [vmem:[#allocation46_spill] sm:$0xff]  ;;  %v21997_v32 = vld [vmem:[#allocation48_spill] sm:$0xff] }
 0x381   : > { %v2931_v13 = vsel %vm21993_vm1, %v21989_v49, %v21992_v38  ;;  %v1912_v17 = vmul.f32 %v21996_v5, %v21995_v46  ;;  %v17011_v3 = vmul.f32 %v21997_v32, %v21995_v46  ;;  %v2721_v10 = vadd.f32 %v2693_v19, %v2601_v50  ;;  %v21998_v18 = vld [vmem:[#allocation39_spill] sm:$0xff]  ;;  %v22000_v26 = vld [vmem:[#allocation28_spill] sm:$0xff]  ;;  %vm22005_vm2 = vmmov %vm21993_vm1 }
 0x382   : > { %2557 = vrot.lane.b32.xlu0 %v21994_v57, %s21715_s0  ;;  %v2722_v12 = vadd.f32 %v2694_v53, %v2602_v33  ;;  %v2798_v59 = vadd.f32 %v2784_v22, %v2720_v56  ;;  %v2958_v51 = vadd.f32 %v2930_v63, %v2797_v16  ;;  %v1278_v55 = vadd.f32 %v1250_v44, %v1158_v40  ;;  %v22001_v57 = vld [vmem:[#allocation51_spill] sm:$0xff]  ;;  %v22004_v53 = vld [vmem:[#allocation36_spill] sm:$0xff]  ;;  %v17030_v50 = vpop.permute.xlu0 %3022  ;;  %v17032_v33 = vpop.permute.xlu1 %2905  ;;  %v22007_v22 = vld [vmem:[#allocation109_spill] sm:$0xff]  ;;  %s14172_s0 = smov 107  }
 0x383   : > { %13669 = vrot.lane.b32.xlu1 %v13668_v48, %s21702_s25  ;;  %vm21999_vm0 = vcmask 1031168   ;;  %v3110_v24 = vmul.f32 %v22001_v57, %v22000_v26  ;;  %v22002_v5 = vld [vmem:[#allocation43_spill] sm:$0xff]  ;;  %v2932_v56 = vsel %vm22005_vm2, %v21992_v38, %v22004_v53  ;;  %v2933_v16 = vsel %vm21993_vm1, %v22004_v53, %v22007_v22  ;;  %v22011_v53 = vld [vmem:[#allocation145_spill] sm:$0xff]  ;;  %v22012_v22 = vld [vmem:[#allocation72_spill] sm:$0xff] }
 0x384   : > { %v3050_v49 = vsel %vm21999_vm0, %v21998_v18, %v16780_v7  ;;  %v17021_v0 = vmul.f32 %v22002_v5, %v21995_v46  ;;  %v22003_v32 = vld [vmem:[#allocation127_spill] sm:$0xff]  ;;  %v2959_v63 = vadd.f32 %v2931_v13, %v2798_v59  ;;  %v3049_v40 = vsel %vm21999_vm0, %v16743_v39, %v21998_v18  ;;  %v22013_v39 = vld [vmem:[#allocation77_spill] sm:$0xff] }
 0x385   : > { %v2785_v19 = vmul.f32 %v22003_v32, %v21984_v6  ;;  %v22006_v44 = vld [vmem:[#allocation119_spill] sm:$0xff]  ;;  %vm22008_vm6 = vcmask 1022976   ;;  %v3077_v32 = vadd.f32 %v3049_v40, %v2958_v51  ;;  %vm22014_vm1 = vcmask 760832  }
 0x386   : > { %v2786_v48 = vmul.f32 %v22006_v44, %v21984_v6  ;;  %v3168_v38 = vsel %vm22008_vm6, %v16904_v60, %v16906_v30  ;;  %vm22009_vm2 = vmmov %vm22008_vm6  ;;  %v22010_v59 = vld [vmem:[#allocation123_spill] sm:$0xff]  ;;  %v3078_v44 = vadd.f32 %v3050_v49, %v2959_v63  ;;  %v1370_v18 = vsel %vm22014_vm1, %v22013_v39, %v22012_v22  ;;  %v22016_v60 = vld [vmem:[#allocation76_spill] sm:$0xff]  ;;  %v3265_v63 = vpop.permute.xlu0 %3264 }
 0x387   : > { %v3169_v13 = vsel %vm22009_vm2, %v16906_v30, %v16778_v52  ;;  %2917 = vrot.lane.b32.xlu0 %v22010_v59, %s21702_s25  ;;  %v2799_v57 = vadd.f32 %v2785_v19, %v2721_v10  ;;  %1717 = vrot.lane.b32.xlu1 %v22011_v53, %s21751_s15  ;;  %vm22017_vm6 = vcmask 752640   ;;  %v3051_v30 = vsel %vm21999_vm0, %v16780_v7, %v22018_v29  ;;  %vm22019_vm2 = vmmov %vm21999_vm0  ;;  %v22023_v59 = vld [vmem:[#allocation54_spill] sm:$0xff]  ;;  %s14174_s15 = smov 91  }
 0x388   : > { %v2800_v5 = vadd.f32 %v2786_v48, %v2722_v12  ;;  %v1490_v8 = vsel %vm22017_vm6, %v22016_v60, %v22015_v61  ;;  %v3052_v10 = vsel %vm22019_vm2, %v22018_v29, %v16809_v21  ;;  %v3196_v49 = vadd.f32 %v3168_v38, %v3077_v32  ;;  %v3267_v48 = vpop.permute.xlu1 %3266 }
 0x389   : > { %v2960_v12 = vadd.f32 %v2932_v56, %v2799_v57  ;;  %v3197_v19 = vadd.f32 %v3169_v13, %v3078_v44  ;;  %vm22020_vm1 = vcmask 1022976   ;;  %v3287_v7 = vsel %vm883_vm3, %v3265_v63, %v3267_v48  ;;  %v22022_v13 = vld [vmem:[#allocation57_spill] sm:$0xff]  ;;  %v22031_v63 = vld [vmem:[#allocation86_spill] sm:$0xff] }
 0x38a   : > { %v2961_v51 = vadd.f32 %v2933_v16, %v2800_v5  ;;  %v3170_v22 = vsel %vm22020_vm1, %v16778_v52, %v16938_v9  ;;  %vm22021_vm6 = vmmov %vm22020_vm1  ;;  %v3288_v40 = vsel %vm883_vm3, %v3267_v48, %v16936_v35  ;;  %v3315_v16 = vadd.f32 %v3287_v7, %v3196_v49  ;;  %v22026_v57 = vld [vmem:[#allocation65_spill] sm:$0xff]  ;;  %v22027_v5 = vld [vmem:[#allocation55_spill] sm:$0xff] }
 0x38b   : > { %v3171_v61 = vsel %vm22021_vm6, %v16938_v9, %v16807_v58  ;;  %3155 = vrot.lane.b32.xlu0 %v3110_v24, %s21750_s11  ;;  %v3079_v29 = vadd.f32 %v3051_v30, %v2960_v12  ;;  %v3316_v38 = vadd.f32 %v3288_v40, %v3197_v19  ;;  %1957 = vrot.lane.b32.xlu1 %v1912_v17, %s21604_s28  ;;  %vm22024_vm0 = vcmask 1039360   ;;  %v22029_v30 = vld [vmem:[#allocation126_spill] sm:$0xff]  ;;  %v17086_v17 = vpop.permute.xlu0 %1481  ;;  %v22030_v19 = vld [vmem:[#allocation87_spill] sm:$0xff]  ;;  %v22032_v40 = vld [vmem:[#allocation44_spill] sm:$0xff]  ;;  %s14180_s28 = smov 72  }
 0x38c   : > { %v3080_v56 = vadd.f32 %v3052_v10, %v2961_v51  ;;  %v528_v52 = vsel %vm22024_vm0, %v22023_v59, %v22022_v13  ;;  %vm22025_vm2 = vmmov %vm22024_vm0  ;;  %vm22028_vm1 = vcmask 1031168   ;;  %v1398_v44 = vadd.f32 %v1370_v18, %v1278_v55  ;;  %v3271_v51 = vpop.permute.xlu1 %3270 }
 0x38d   : > { %v529_v9 = vsel %vm22025_vm2, %v22022_v13, %v21900_v54  ;;  %v648_v32 = vsel %vm22028_vm1, %v22027_v5, %v22026_v57  ;;  %v3198_v24 = vadd.f32 %v3170_v22, %v3079_v29  ;;  %v3341_v10 = vadd.f32 %v22029_v30, %v3315_v16  ;;  %v22033_v29 = vld [vmem:[#allocation37_spill] sm:$0xff]  ;;  %vm22035_vm6 = vmmov %vm22028_vm1  ;;  %v22039_v5 = vld [vmem:[#allocation70_spill] sm:$0xff] }
 0x38e   : > { %v3199_v53 = vadd.f32 %v3171_v61, %v3080_v56  ;;  %v17084_v12 = vadd.f32 %v22029_v30, %v3316_v38  ;;  %v1518_v49 = vadd.f32 %v1490_v8, %v1398_v44  ;;  %v1610_v54 = vsel %vm1603_vm9, %v22031_v63, %v22030_v19  ;;  %v22034_v16 = vld [vmem:[#allocation161_spill] sm:$0xff]  ;;  %v22040_v44 = vld [vmem:[#allocation58_spill] sm:$0xff]  ;;  %v22043_v19 = vld [vmem:[#allocation92_spill] sm:$0xff] }
 0x38f   : > { %v3289_v48 = vsel %vm883_vm3, %v16936_v35, %v3271_v51  ;;  %v3290_v55 = vsel %vm883_vm3, %v3271_v51, %v16965_v25  ;;  %v3355_v18 = vmax.f32 %v3341_v10, 0.0  ;;  %2197 = vrot.lane.b32.xlu1 %v17011_v3, %s21621_s27  ;;  %v556_v8 = vadd.f32 %v528_v52, %v22032_v40  ;;  %v22036_v35 = vld [vmem:[#allocation99_spill] sm:$0xff]  ;;  %v22037_v13 = vld [vmem:[#allocation97_spill] sm:$0xff]  ;;  %v22065_v25 = vld [vmem:[#allocation110_spill] sm:$0xff]  ;;  %s14178_s27 = smov 74  }
 0x390   : > { %v21408_v22 = vmax.f32 %v17084_v12, 0.0  ;;  %v3317_v61 = vadd.f32 %v3289_v48, %v3198_v24  ;;  %v3318_v7 = vadd.f32 %v3290_v55, %v3199_v53  ;;  %v557_v56 = vadd.f32 %v529_v9, %v22033_v29  ;;  %v17113_v9 = vpop.permute.xlu0 %3141  ;;  %v22044_v48 = vld [vmem:[#allocation100_spill] sm:$0xff] }
 0x391   : > { %v649_v38 = vsel %vm22035_vm6, %v22026_v57, %v22034_v16  ;;  %vm22038_vm0 = vcmask 515072   ;;  %vm22041_vm2 = vcmask 1022976   ;;  %v1638_v53 = vadd.f32 %v1610_v54, %v1518_v49  ;;  %3371 = vst [vmem:[#allocation2 + $0x40] sm:$0xff] %v3355_v18  ;;  %v17115_v57 = vpop.permute.xlu1 %1359  ;;  %v22046_v16 = vld [vmem:[#allocation95_spill] sm:$0xff] }
 0x392   : > { %v1730_v59 = vsel %vm22038_vm0, %v22037_v13, %v22036_v35  ;;  %v768_v24 = vsel %vm22041_vm2, %v22040_v44, %v22039_v5  ;;  %3372 = vst [vmem:[#allocation2 + $0x48] sm:$0xff] %v21408_v22  ;;  %v3343_v3 = vadd.f32 %v22029_v30, %v3317_v61  ;;  %v3344_v52 = vadd.f32 %v22029_v30, %v3318_v7  ;;  %vm22042_vm1 = vmmov %vm22041_vm2  ;;  %v22045_v7 = vld [vmem:[#allocation115_spill] sm:$0xff]  ;;  %v22048_v44 = vld [vmem:[#allocation197_spill] sm:$0xff] }
 0x393   : > { %v676_v10 = vadd.f32 %v648_v32, %v556_v8  ;;  %v769_v51 = vsel %vm22042_vm1, %v22039_v5, %v21918_v31  ;;  %v1850_v49 = vsel %vm1843_vm12, %v22044_v48, %v22043_v19  ;;  %v677_v54 = vadd.f32 %v649_v38, %v557_v56  ;;  %2437 = vrot.lane.b32.xlu1 %v17021_v0, %s21683_s24  ;;  %v22047_v56 = vld [vmem:[#allocation45_spill] sm:$0xff]  ;;  %v22062_v22 = vld [vmem:[#allocation74_spill] sm:$0xff]  ;;  %s14170_s24 = smov 109  }
 0x394   : > { %v1758_v55 = vadd.f32 %v1730_v59, %v1638_v53  ;;  %v3357_v40 = vmax.f32 %v3343_v3, 0.0  ;;  %v3358_v29 = vmax.f32 %v3344_v52, 0.0  ;;  %v1970_v32 = vsel %vm1963_vm11, %v22046_v16, %v22045_v7  ;;  %v17128_v31 = vpop.permute.xlu0 %1599  ;;  %v22049_v53 = vld [vmem:[#allocation113_spill] sm:$0xff]  ;;  %v22051_v3 = vld [vmem:[#allocation60_spill] sm:$0xff] }
 0x395   : > { %v796_v61 = vadd.f32 %v768_v24, %v676_v10  ;;  %v797_v8 = vadd.f32 %v769_v51, %v677_v54  ;;  %v17130_v5 = vpop.permute.xlu1 %2421  ;;  %v2632_v38 = vmul.f32 %v22047_v56, %v21995_v46  ;;  %v2090_v0 = vsel %vm2083_vm13, %v22049_v53, %v22048_v44  ;;  %v22050_v24 = vld [vmem:[#allocation66_spill] sm:$0xff]  ;;  %v22052_v10 = vld [vmem:[#allocation68_spill] sm:$0xff] }
 0x396   : > { %v1878_v35 = vadd.f32 %v1850_v49, %v1758_v55  ;;  %3373 = vst [vmem:[#allocation2 + $0x50] sm:$0xff] %v3357_v40  ;;  %3374 = vst [vmem:[#allocation2 + $0x58] sm:$0xff] %v3358_v29  ;;  %v13678_v59 = vpack.i.bf16 %v3355_v18, %v3358_v29  ;;  %v888_v52 = vsel %vm883_vm3, %v22051_v3, %v22050_v24  ;;  %v22053_v51 = vld [vmem:[#allocation64_spill] sm:$0xff]  ;;  %v22054_v29 = vld [vmem:[#allocation157_spill] sm:$0xff]  ;;  %vm22067_vm6 = vcmask 760832  }
 0x397   : > { %v1008_v19 = vsel %vm1003_vm5, %v22053_v51, %v22052_v10  ;;  %2677 = vrot.lane.b32.xlu1 %v2632_v38, %s21746_s18  ;;  %v889_v18 = vsel %vm883_vm3, %v22050_v24, %v21932_v28  ;;  %v916_v54 = vadd.f32 %v888_v52, %v796_v61  ;;  %v1009_v55 = vsel %vm1003_vm5, %v22052_v10, %v21952_v4  ;;  %v22055_v7 = vld [vmem:[#allocation136_spill] sm:$0xff]  ;;  %v22056_v3 = vld [vmem:[#allocation81_spill] sm:$0xff]  ;;  %v22059_v52 = vld [vmem:[#allocation31_spill] sm:$0xff]  ;;  %s14175_s18 = smov 90  }
 0x398   : > { %v1998_v49 = vadd.f32 %v1970_v32, %v1878_v35  ;;  %13679 = vrot.lane.b32.xlu0 %v13678_v59, %s21702_s25  ;;  %v2210_v56 = vsel %vm2203_vm14, %v22055_v7, %v22054_v29  ;;  %v917_v44 = vadd.f32 %v889_v18, %v797_v8  ;;  %v22057_v32 = vld [vmem:[#allocation79_spill] sm:$0xff]  ;;  %v17157_v59 = vpop.permute.xlu0 %2661  ;;  %v22058_v28 = vld [vmem:[#allocation49_spill] sm:$0xff]  ;;  %v1129_v4 = vsel %vm1123_vm4, %v22056_v3, %v21978_v2  ;;  %v22060_v10 = vld [vmem:[#allocation188_spill] sm:$0xff] }
 0x399   : > { %v1128_v35 = vsel %vm1123_vm4, %v22057_v32, %v22056_v3  ;;  %v3025_v51 = vpop.permute.xlu1 %3024  ;;  %v2991_v61 = vmul.f32 %v22058_v28, %v22000_v26  ;;  %v1036_v24 = vadd.f32 %v1008_v19, %v916_v54  ;;  %v2330_v8 = vsel %vm2323_vm15, %v22060_v10, %v22059_v52  ;;  %v22061_v29 = vld [vmem:[#allocation94_spill] sm:$0xff]  ;;  %v22064_v28 = vld [vmem:[#allocation25_spill] sm:$0xff]  ;;  %vm22069_vm0 = vmmov %vm22067_vm6 }
 0x39a   : > { %v2118_v38 = vadd.f32 %v2090_v0, %v1998_v49  ;;  %v1037_v18 = vadd.f32 %v1009_v55, %v917_v44  ;;  %v1248_v0 = vsel %vm1243_vm7, %v22062_v22, %v22061_v29  ;;  %v1249_v19 = vsel %vm1243_vm7, %v22061_v29, %v21980_v11  ;;  %v22063_v54 = vld [vmem:[#allocation14_spill] sm:$0xff]  ;;  %v22066_v52 = vld [vmem:[#allocation89_spill] sm:$0xff]  ;;  %v22072_v29 = vld [vmem:[#allocation124_spill] sm:$0xff] }
 0x39b   : > { %3036 = vrot.lane.b32.xlu1 %v2991_v61, %s21732_s1  ;;  %v1156_v32 = vadd.f32 %v1128_v35, %v1036_v24  ;;  %v2450_v2 = vsel %vm2443_vm8, %v22064_v28, %v22063_v54  ;;  %v1368_v55 = vsel %vm22067_vm6, %v22066_v52, %v22065_v25  ;;  %v1369_v11 = vsel %vm22069_vm0, %v22065_v25, %v22013_v39  ;;  %v22070_v61 = vld [vmem:[#allocation35_spill] sm:$0xff]  ;;  %v22071_v24 = vld [vmem:[#allocation20_spill] sm:$0xff] }
 0x39c   : > { %v2238_v49 = vadd.f32 %v2210_v56, %v2118_v38  ;;  %v1157_v3 = vadd.f32 %v1129_v4, %v1037_v18  ;;  %v3263_v21 = vpop.permute.xlu0 %3262  ;;  %v22068_v56 = vmax.f32 %v17084_v12, 0.0  ;;  %v2570_v4 = vsel %vm21417_vm10, %v22071_v24, %v22070_v61  ;;  %v22073_v54 = vld [vmem:[#allocation84_spill] sm:$0xff] }
 0x39d   : > { %v17180_v22 = vpop.permute.xlu1 %1479  ;;  %v1276_v38 = vadd.f32 %v1248_v0, %v1156_v32  ;;  %vm22074_vm2 = vcmask 752640   ;;  %v22077_v0 = vld [vmem:[#allocation154_spill] sm:$0xff]  ;;  %vm22078_vm6 = vcmask 228352   ;;  %v22079_v32 = vld [vmem:[#allocation148_spill] sm:$0xff]  ;;  %vm22084_vm0 = vcmask 515072  }
 0x39e   : > { %v2358_v44 = vadd.f32 %v2330_v8, %v2238_v49  ;;  %v13673_v35 = vpack.i.bf16 %v3357_v40, %v22068_v56  ;;  %v1277_v18 = vadd.f32 %v1249_v19, %v1157_v3  ;;  %v1488_v8 = vsel %vm22074_vm2, %v22073_v54, %v22072_v29  ;;  %vm22075_vm1 = vmmov %vm22074_vm2  ;;  %v22076_v40 = vld [vmem:[#allocation42_spill] sm:$0xff] }
 0x39f   : > { %v1396_v52 = vadd.f32 %v1368_v55, %v1276_v38  ;;  %v1489_v12 = vsel %vm22075_vm1, %v22072_v29, %v22016_v60  ;;  %v2690_v25 = vsel %vm22078_vm6, %v22077_v0, %v22076_v40  ;;  %v22080_v56 = vld [vmem:[#allocation102_spill] sm:$0xff]  ;;  %v22081_v55 = vld [vmem:[#allocation53_spill] sm:$0xff]  ;;  %v1609_v60 = vsel %vm1603_vm9, %v22079_v32, %v22031_v63  ;;  %vm22085_vm2 = vmmov %vm22084_vm0 }
 0x3a0   : > { %v2478_v49 = vadd.f32 %v2450_v2, %v2358_v44  ;;  %13674 = vrot.lane.b32.xlu1 %v13673_v35, %s21702_s25  ;;  %v1397_v39 = vadd.f32 %v1369_v11, %v1277_v18  ;;  %v1608_v19 = vsel %vm1603_vm9, %v22080_v56, %v22079_v32  ;;  %v17203_v61 = vpop.permute.xlu0 %1721  ;;  %v3229_v44 = vmul.f32 %v22081_v55, %v22000_v26  ;;  %v22082_v29 = vld [vmem:[#allocation18_spill] sm:$0xff]  ;;  %v22083_v11 = vld [vmem:[#allocation108_spill] sm:$0xff]  ;;  %v22086_v56 = vld [vmem:[#allocation29_spill] sm:$0xff] }
 0x3a1   : > { %v17205_v2 = vpop.permute.xlu1 %2541  ;;  %v1516_v35 = vadd.f32 %v1488_v8, %v1396_v52  ;;  %v1728_v18 = vsel %vm22084_vm0, %v22083_v11, %v22082_v29  ;;  %v22087_v8 = vld [vmem:[#allocation98_spill] sm:$0xff]  ;;  %v22088_v55 = vld [vmem:[#allocation135_spill] sm:$0xff]  ;;  %vm22090_vm1 = vcmask 1039360   ;;  %vm22093_vm6 = vcmask 1031168  }
 0x3a2   : > { %v2598_v3 = vadd.f32 %v2570_v4, %v2478_v49  ;;  %v1517_v38 = vadd.f32 %v1489_v12, %v1397_v39  ;;  %v1729_v49 = vsel %vm22085_vm2, %v22082_v29, %v22037_v13  ;;  %v1848_v52 = vsel %vm1843_vm12, %v22087_v8, %v22086_v56  ;;  %v22089_v63 = vld [vmem:[#allocation90_spill] sm:$0xff] }
 0x3a3   : > { %v1636_v4 = vadd.f32 %v1608_v19, %v1516_v35  ;;  %v2782_v12 = vmul.f32 %v22089_v63, %v22088_v55  ;;  %v2929_v13 = vsel %vm22090_vm1, %v16872_v42, %v17032_v33  ;;  %vm22094_vm0 = vcmask 1022976  }
 0x3a4   : > { %v2718_v54 = vadd.f32 %v2690_v25, %v2598_v3  ;;  %3274 = vrot.lane.b32.xlu1 %v3229_v44, %s21757_s20  ;;  %v1637_v40 = vadd.f32 %v1609_v60, %v1517_v38  ;;  %v17224_v39 = vpop.permute.xlu0 %1841  ;;  %v1849_v25 = vsel %vm1843_vm12, %v22086_v56, %v22044_v48  ;;  %v22091_v3 = vld [vmem:[#allocation40_spill] sm:$0xff]  ;;  %v22092_v44 = vld [vmem:[#allocation118_spill] sm:$0xff]  ;;  %vm22107_vm2 = vcmask 228352  }
 0x3a5   : > { %v3144_v32 = vpop.permute.xlu1 %3143  ;;  %v1756_v11 = vadd.f32 %v1728_v18, %v1636_v4  ;;  %v1968_v35 = vsel %vm1963_vm11, %v22092_v44, %v22091_v3  ;;  %v1969_v29 = vsel %vm1963_vm11, %v22091_v3, %v22046_v16  ;;  %v3048_v18 = vsel %vm22093_vm6, %v17030_v50, %v3025_v51  ;;  %v22097_v16 = vld [vmem:[#allocation133_spill] sm:$0xff]  ;;  %vm22108_vm1 = vmmov %vm22107_vm2 }
 0x3a6   : > { %v1757_v19 = vadd.f32 %v1729_v49, %v1637_v40  ;;  %v2796_v60 = vadd.f32 %v2782_v12, %v2718_v54  ;;  %v3167_v49 = vsel %vm22094_vm0, %v17113_v9, %v3144_v32  ;;  %v22096_v12 = vld [vmem:[#allocation107_spill] sm:$0xff]  ;;  %v2208_v51 = vsel %vm2203_vm14, %v22097_v16, %v16874_v14 }
 0x3a7   : > { %v1876_v38 = vadd.f32 %v1848_v52, %v1756_v11  ;;  %v22095_v52 = vld [vmem:[#allocation32_spill] sm:$0xff]  ;;  %v2209_v44 = vsel %vm2203_vm14, %v16874_v14, %v22055_v7  ;;  %vm22111_vm6 = vcmask 1039360   ;;  %vm22116_vm0 = vcmask 1031168  }
 0x3a8   : > { %v1877_v4 = vadd.f32 %v1849_v25, %v1757_v19  ;;  %v2957_v48 = vadd.f32 %v2929_v13, %v2796_v60  ;;  %v17240_v56 = vpop.permute.xlu0 %1959  ;;  %v2088_v11 = vsel %vm2083_vm13, %v22096_v12, %v22095_v52  ;;  %v2089_v3 = vsel %vm2083_vm13, %v22095_v52, %v22049_v53  ;;  %v17270_v53 = vld [vmem:[#allocation2 + $0x38] sm:$0xff]  ;;  %v3579_v7 = vld [vmem:[%s21060_s3 + $0x8] sm:$0xff] }
 0x3a9   : > { %v17242_v8 = vpop.permute.xlu1 %1601  ;;  %v1996_v33 = vadd.f32 %v1968_v35, %v1876_v38  ;;  %v22098_v38 = vld [vmem:[#allocation142_spill] sm:$0xff]  ;;  %22099 = vst [vmem:[#allocation163_spill] sm:$0xff] %v17270_v53  ;;  %v22102_v52 = vld [vmem:[#allocation144_spill] sm:$0xff] }
 0x3aa   : > { %v1997_v40 = vadd.f32 %v1969_v29, %v1877_v4  ;;  %v3076_v54 = vadd.f32 %v3048_v18, %v2957_v48  ;;  %v2328_v29 = vsel %vm2323_vm15, %v22098_v38, %v17000_v37  ;;  %v2329_v48 = vsel %vm2323_vm15, %v17000_v37, %v22060_v10  ;;  %v3578_v37 = vld [vmem:[%s21060_s3] sm:$0xff]  ;;  %v3591_v38 = vld [vmem:[%s21060_s3 + $0x68] sm:$0xff] }
 0x3ab   : > { %v2116_v32 = vadd.f32 %v2088_v11, %v1996_v33  ;;  %v2448_v12 = vsel %vm2443_vm8, %v22102_v52, %v17130_v5  ;;  %v2449_v11 = vsel %vm2443_vm8, %v17130_v5, %v22064_v28  ;;  %v3584_v5 = vld [vmem:[%s21060_s3 + $0x30] sm:$0xff]  ;;  %v3587_v28 = vld [vmem:[%s21060_s3 + $0x48] sm:$0xff] }
 0x3ac   : > { %v3195_v25 = vadd.f32 %v3167_v49, %v3076_v54  ;;  %v17252_v13 = vpop.permute.xlu0 %3020  ;;  %v2117_v60 = vadd.f32 %v2089_v3, %v1997_v40  ;;  %v22100_v49 = vld [vmem:[#allocation190_spill] sm:$0xff]  ;;  %v3582_v40 = vld [vmem:[%s21060_s3 + $0x20] sm:$0xff] }
 0x3ad   : > { %v17254_v19 = vpop.permute.xlu1 %3260  ;;  %v2236_v4 = vadd.f32 %v2208_v51, %v2116_v32  ;;  %v12539_v16 = vpack.c.bf16 %v3582_v40, %v3579_v7  ;;  %v3581_v51 = vld [vmem:[%s21060_s3 + $0x18] sm:$0xff]  ;;  %v3588_v3 = vld [vmem:[%s21060_s3 + $0x50] sm:$0xff] }
 0x3ae   : > { %v3286_v35 = vsel %vm883_vm3, %v17254_v19, %v3263_v21  ;;  %v2237_v33 = vadd.f32 %v2209_v44, %v2117_v60 }
 0x3af   : > { %v3314_v18 = vadd.f32 %v3286_v35, %v3195_v25  ;;  %v2356_v10 = vadd.f32 %v2328_v29, %v2236_v4  ;;  %v3585_v25 = vld [vmem:[%s21060_s3 + $0x38] sm:$0xff]  ;;  %v12541_v35 = vpack.c.bf16 %v3581_v51, %v3578_v37  ;;  %v22103_v29 = vld [vmem:[#allocation153_spill] sm:$0xff]  ;;  %v2569_v4 = vsel %vm21417_vm10, %v17205_v2, %v22071_v24  ;;  %12540 = vmatprep.subr.bf16.mxu1 %v12539_v16 }
 0x3b0   : > { %v17275_v14 = vpop.permute.xlu0 %2081  ;;  %v2357_v32 = vadd.f32 %v2329_v48, %v2237_v33  ;;  %v12543_v60 = vpack.c.bf16 %v3588_v3, %v3585_v25  ;;  %v3594_v48 = vld [vmem:[%s21060_s3 + $0x80] sm:$0xff]  ;;  %v12545_v51 = vpack.c.bf16 %v3587_v28, %v3584_v5  ;;  %v22106_v5 = vld [vmem:[#allocation162_spill] sm:$0xff] }
 0x3b1   : > { %v17273_v54 = vadd.f32 %v22100_v49, %v3314_v18  ;;  %v17277_v21 = vpop.permute.xlu1 %1719  ;;  %v2568_v18 = vsel %vm21417_vm10, %v22103_v29, %v17205_v2  ;;  %v2476_v33 = vadd.f32 %v2448_v12, %v2356_v10  ;;  %12542 = vmatpush1.bf16.msra.mxu1 %v12541_v35  ;;  %v12547_v24 = vpack.c.bf16 %v3594_v48, %v3591_v38  ;;  %v3590_v2 = vld [vmem:[%s21060_s3 + $0x60] sm:$0xff]  ;;  %v3593_v10 = vld [vmem:[%s21060_s3 + $0x78] sm:$0xff] }
 0x3b2   : > { %v2477_v7 = vadd.f32 %v2449_v11, %v2357_v32  ;;  %12544 = vmatprep.subr.bf16.mxu1 %v12543_v60  ;;  %v14075_v25 = vld [vmem:[%s14438_s23 + $0x1] sm:$0xff]  ;;  %v12549_v60 = vpack.c.bf16 %v3593_v10, %v3590_v2  ;;  %v2688_v28 = vsel %vm22107_vm2, %v22106_v5, %v17157_v59  ;;  %v2689_v38 = vsel %vm22108_vm1, %v17157_v59, %v22077_v0  ;;  %v22114_v59 = vld [vmem:[#allocation17_spill] sm:$0xff]  ;;  %vm22118_vm2 = vmmov %vm22111_vm6 }
 0x3b3   : > { %22101 = vst [vmem:[#allocation139_spill] sm:$0xff] %v17273_v54  ;;  %v21411_v44 = vmax.f32 %v17273_v54, 0.0  ;;  %v2596_v12 = vadd.f32 %v2568_v18, %v2476_v33  ;;  %v22104_v3 = vld [vmem:[#allocation15_spill] sm:$0xff]  ;;  %v2781_v2 = vmul.f32 %v22000_v26, %v22088_v55  ;;  %v22115_v0 = vld [vmem:[#allocation69_spill] sm:$0xff]  ;;  %vm22119_vm1 = vmmov %vm22118_vm2 }
 0x3b4   : > { %v17322_v40 = vpop.permute.xlu0 %2199  ;;  %v2597_v11 = vadd.f32 %v2569_v4, %v2477_v7  ;;  %v17338_v32 = vrot.slane %v14075_v25, %v22104_v3  ;;  %v22109_v4 = vld [vmem:[#allocation103_spill] sm:$0xff]  ;;  %v22112_v7 = vld [vmem:[#allocation104_spill] sm:$0xff] }
 0x3b5   : > { %v17324_v37 = vpop.permute.xlu1 %1839  ;;  %v13683_v52 = vpack.i.bf16 %v17270_v53, %v21411_v44  ;;  %12546 = vmatpush1.bf16.msra.mxu1 %v12545_v51  ;;  %v2716_v29 = vadd.f32 %v2688_v28, %v2596_v12  ;;  %v22110_v48 = vld [vmem:[#allocation63_spill] sm:$0xff] }
 0x3b6   : > { %22105 = vst [vmem:[#allocation149_spill] sm:$0xff] %v17338_v32  ;;  %12548 = vmatprep.subr.bf16.mxu1 %v12547_v24  ;;  %v2717_v18 = vadd.f32 %v2689_v38, %v2597_v11  ;;  %v537_v33 = vsel %vm22111_vm6, %v22110_v48, %v22109_v4  ;;  %v2780_v51 = vmul.f32 %v17338_v32, %v22088_v55  ;;  %v22117_v12 = vld [vmem:[#allocation187_spill] sm:$0xff]  ;;  %v22121_v55 = vld [vmem:[#allocation33_spill] sm:$0xff]  ;;  %vm22122_vm6 = vcmask 1022976   ;;  %v22124_v32 = vld [vmem:[#allocation38_spill] sm:$0xff] }
 0x3b7   : > { %13684 = vrot.lane.b32.xlu0 %v13683_v52, %s21702_s25  ;;  %v22113_v52 = vld [vmem:[#allocation91_spill] sm:$0xff]  ;;  %v657_v24 = vsel %vm22116_vm0, %v22115_v0, %v22114_v59 }
 0x3b8   : > { %v3259_v16 = vpop.permute.xlu0 %3258  ;;  %v389_v25 = vmul.f32 %v22113_v52, %v22112_v7  ;;  %v2794_v38 = vadd.f32 %v2780_v51, %v2716_v29  ;;  %v2795_v4 = vadd.f32 %v2781_v2, %v2717_v18  ;;  %v22120_v52 = vld [vmem:[#allocation24_spill] sm:$0xff]  ;;  %v22123_v59 = vld [vmem:[#allocation27_spill] sm:$0xff] }
 0x3b9   : > { %v2902_v35 = vpop.permute.xlu1 %2901  ;;  %12550 = vmatpush1.bf16.msra.mxu1 %v12549_v60  ;;  %v777_v44 = vsel %vm22122_vm6, %v22121_v55, %v22120_v52  ;;  %v22127_v18 = vld [vmem:[#allocation199_spill] sm:$0xff] }
 0x3ba   : > { %v2927_v11 = vsel %vm22118_vm2, %v22117_v12, %v2902_v35  ;;  %v2928_v5 = vsel %vm22119_vm1, %v2902_v35, %v16872_v42  ;;  %v565_v28 = vadd.f32 %v537_v33, %v389_v25  ;;  %v897_v12 = vsel %vm883_vm3, %v22124_v32, %v22123_v59  ;;  %v22125_v42 = vld [vmem:[#allocation111_spill] sm:$0xff]  ;;  %v22126_v35 = vld [vmem:[#allocation30_spill] sm:$0xff]  ;;  %vm22128_vm2 = vmmov %vm22116_vm0 }
 0x3bb   : > { %v2955_v53 = vadd.f32 %v2927_v11, %v2794_v38  ;;  %v2956_v60 = vadd.f32 %v2928_v5, %v2795_v4  ;;  %v1017_v29 = vsel %vm1003_vm5, %v22126_v35, %v22125_v42  ;;  %v3046_v33 = vsel %vm22116_vm0, %v22127_v18, %v17252_v13  ;;  %vm22130_vm1 = vmmov %vm22122_vm6  ;;  %v3597_v59 = vld [vmem:[%s21060_s3 + $0x98] sm:$0xff]  ;;  %v3603_v18 = vld [vmem:[%s21060_s3 + $0xc8] sm:$0xff] }
 0x3bc   : > { %v17355_v10 = vpop.permute.xlu0 %2321  ;;  %v685_v54 = vadd.f32 %v657_v24, %v565_v28  ;;  %v3047_v25 = vsel %vm22128_vm2, %v17252_v13, %v17030_v50  ;;  %v22129_v28 = vld [vmem:[#allocation75_spill] sm:$0xff]  ;;  %vm22131_vm6 = vmmov %vm22130_vm1  ;;  %v3596_v50 = vld [vmem:[%s21060_s3 + $0x90] sm:$0xff]  ;;  %vm22134_vm0 = vcmask 760832   ;;  %vm22135_vm2 = vcmask 752640  }
 0x3bd   : > { %v17357_v3 = vpop.permute.xlu1 %1961  ;;  %v3074_v11 = vadd.f32 %v3046_v33, %v2955_v53  ;;  %v3075_v5 = vadd.f32 %v3047_v25, %v2956_v60  ;;  %v22132_v13 = vld [vmem:[#allocation147_spill] sm:$0xff] }
 0x3be   : > { %v805_v43 = vadd.f32 %v777_v44, %v685_v54  ;;  %v1137_v53 = vsel %vm1123_vm4, %v16843_v15, %v22132_v13  ;;  %v3606_v33 = vld [vmem:[%s21060_s3 + $0xe0] sm:$0xff]  ;;  %v3611_v13 = vld [vmem:[%s21060_s3 + $0x108] sm:$0xff] }
 0x3c0   : > { %v17369_v58 = vpop.permute.xlu0 %2441  ;;  %v925_v51 = vadd.f32 %v897_v12, %v805_v43  ;;  %v3600_v43 = vld [vmem:[%s21060_s3 + $0xb0] sm:$0xff]  ;;  %v3285_v12 = vsel %vm883_vm3, %v3259_v16, %v17254_v19 }
 0x3c1   : > { %v17371_v26 = vpop.permute.xlu1 %2079  ;;  %v12551_v42 = vpack.c.bf16 %v3600_v43, %v3597_v59  ;;  %v3609_v43 = vld [vmem:[%s21060_s3 + $0xf8] sm:$0xff] }
 0x3c2   : > { %v1045_v38 = vadd.f32 %v1017_v29, %v925_v51  ;;  %v3599_v29 = vld [vmem:[%s21060_s3 + $0xa8] sm:$0xff] }
 0x3c3   : > { %v12553_v19 = vpack.c.bf16 %v3599_v29, %v3596_v50  ;;  %12552 = vmatprep.subr.bf16.mxu1 %v12551_v42  ;;  %v3612_v50 = vld [vmem:[%s21060_s3 + $0x110] sm:$0xff]  ;;  %v3618_v29 = vld [vmem:[%s21060_s3 + $0x140] sm:$0xff] }
 0x3c4   : > { %v17385_v2 = vpop.permute.xlu0 %2561 }
 0x3c5   : > { %v3140_v24 = vpop.permute.xlu1 %3139  ;;  %12554 = vmatpush1.bf16.msra.mxu1 %v12553_v19  ;;  %v1617_v19 = vsel %vm1603_vm9, %v17128_v31, %v17242_v8  ;;  %v3621_v8 = vld [vmem:[%s21060_s3 + $0x158] sm:$0xff] }
 0x3c6   : > { %v3165_v54 = vsel %vm22130_vm1, %v22129_v28, %v3140_v24  ;;  %v3166_v44 = vsel %vm22131_vm6, %v3140_v24, %v17113_v9  ;;  %v22133_v9 = vld [vmem:[#allocation62_spill] sm:$0xff]  ;;  %vm22136_vm1 = vcmask 515072   ;;  %vm22137_vm6 = vcmask 228352  }
 0x3c7   : > { %v3193_v4 = vadd.f32 %v3165_v54, %v3074_v11  ;;  %v3194_v52 = vadd.f32 %v3166_v44, %v3075_v5  ;;  %v3284_v60 = vsel %vm883_vm3, %v22133_v9, %v3259_v16  ;;  %v12555_v16 = vpack.c.bf16 %v3606_v33, %v3603_v18  ;;  %v3602_v5 = vld [vmem:[%s21060_s3 + $0xc0] sm:$0xff]  ;;  %v3605_v28 = vld [vmem:[%s21060_s3 + $0xd8] sm:$0xff] }
 0x3c8   : > { %v17416_v24 = vpop.permute.xlu0 %2681  ;;  %v1257_v54 = vsel %vm1243_vm7, %v16967_v41, %v16841_v45  ;;  %v1165_v44 = vadd.f32 %v1137_v53, %v1045_v38  ;;  %v12557_v59 = vpack.c.bf16 %v3605_v28, %v3602_v5  ;;  %v1377_v45 = vsel %vm22134_vm0, %v17115_v57, %v16998_v36  ;;  %v3615_v36 = vld [vmem:[%s21060_s3 + $0x128] sm:$0xff]  ;;  %v3614_v5 = vld [vmem:[%s21060_s3 + $0x120] sm:$0xff] }
 0x3c9   : > { %v3312_v25 = vadd.f32 %v3284_v60, %v3193_v4  ;;  %v3313_v51 = vadd.f32 %v3285_v12, %v3194_v52  ;;  %v17418_v11 = vpop.permute.xlu1 %2201  ;;  %12556 = vmatprep.subr.bf16.mxu1 %v12555_v16  ;;  %v12559_v38 = vpack.c.bf16 %v3612_v50, %v3609_v43  ;;  %v1497_v18 = vsel %vm22135_vm2, %v17180_v22, %v17086_v17  ;;  %v3617_v17 = vld [vmem:[%s21060_s3 + $0x138] sm:$0xff] }
 0x3ca   : > { %v1285_v53 = vadd.f32 %v1257_v54, %v1165_v44  ;;  %12558 = vmatpush1.bf16.msra.mxu1 %v12557_v59  ;;  %v12563_v16 = vpack.c.bf16 %v3618_v29, %v3615_v36  ;;  %v3624_v59 = vld [vmem:[%s21060_s3 + $0x170] sm:$0xff]  ;;  %v1737_v43 = vsel %vm22136_vm1, %v17277_v21, %v17203_v61  ;;  %vm22139_vm0 = vcmask 1039360  }
 0x3cb   : > { %v17430_v4 = vadd.f32 %v22100_v49, %v3312_v25  ;;  %v17433_v52 = vadd.f32 %v22100_v49, %v3313_v51  ;;  %v3608_v49 = vld [vmem:[%s21060_s3 + $0xf0] sm:$0xff]  ;;  %12560 = vmatprep.subr.bf16.mxu1 %v12559_v38  ;;  %v1857_v38 = vsel %vm1843_vm12, %v17324_v37, %v17224_v39  ;;  %v3630_v39 = vld [vmem:[%s21060_s3 + $0x1a0] sm:$0xff]  ;;  %vm22140_vm2 = vmmov %vm22139_vm0 }
 0x3cc   : > { %v17452_v12 = vpop.permute.xlu0 %2921  ;;  %v1405_v33 = vadd.f32 %v1377_v45, %v1285_v53  ;;  %v12561_v51 = vpack.c.bf16 %v3611_v13, %v3608_v49  ;;  %v12565_v45 = vpack.c.bf16 %v3617_v17, %v3614_v5  ;;  %v12567_v49 = vpack.c.bf16 %v3624_v59, %v3621_v8  ;;  %v3620_v13 = vld [vmem:[%s21060_s3 + $0x150] sm:$0xff]  ;;  %v3623_v53 = vld [vmem:[%s21060_s3 + $0x168] sm:$0xff]  ;;  %v3626_v5 = vld [vmem:[%s21060_s3 + $0x180] sm:$0xff] }
 0x3cd   : > { %v3352_v9 = vmax.f32 %v17430_v4, 0.0  ;;  %v3353_v60 = vmax.f32 %v17433_v52, 0.0  ;;  %v17454_v42 = vpop.permute.xlu1 %2319  ;;  %v3629_v17 = vld [vmem:[%s21060_s3 + $0x198] sm:$0xff]  ;;  %vm22142_vm1 = vmmov %vm22139_vm0 }
 0x3ce   : > { %v1525_v28 = vadd.f32 %v1497_v18, %v1405_v33  ;;  %12562 = vmatpush1.bf16.msra.mxu1 %v12561_v51  ;;  %v3627_v18 = vld [vmem:[%s21060_s3 + $0x188] sm:$0xff]  ;;  %v1977_v33 = vsel %vm1963_vm11, %v17240_v56, %v17357_v3  ;;  %v12569_v51 = vpack.c.bf16 %v3623_v53, %v3620_v13  ;;  %v3633_v59 = vld [vmem:[%s21060_s3 + $0x1b8] sm:$0xff]  ;;  %v3632_v13 = vld [vmem:[%s21060_s3 + $0x1b0] sm:$0xff] }
 0x3cf   : > { %v13688_v25 = vpack.i.bf16 %v3353_v60, %v3352_v9  ;;  %12564 = vmatprep.subr.bf16.mxu1 %v12563_v16  ;;  %v12571_v16 = vpack.c.bf16 %v3630_v39, %v3627_v18  ;;  %v3635_v53 = vld [vmem:[%s21060_s3 + $0x1c8] sm:$0xff] }
 0x3d0   : > { %v17478_v54 = vpop.permute.xlu0 %3038  ;;  %v1645_v50 = vadd.f32 %v1617_v19, %v1525_v28  ;;  %v2097_v19 = vsel %vm2083_vm13, %v17371_v26, %v17275_v14  ;;  %v3636_v14 = vld [vmem:[%s21060_s3 + $0x1d0] sm:$0xff]  ;;  %v3639_v39 = vld [vmem:[%s21060_s3 + $0x1e8] sm:$0xff] }
 0x3d1   : > { %v17480_v44 = vpop.permute.xlu1 %2439  ;;  %13689 = vrot.lane.b32.xlu1 %v13688_v25, %s21702_s25 }
 0x3d2   : > { %v1765_v36 = vadd.f32 %v1737_v43, %v1645_v50  ;;  %12566 = vmatpush1.bf16.msra.mxu1 %v12565_v45  ;;  %v2217_v43 = vsel %vm2203_vm14, %v17322_v40, %v17418_v11  ;;  %v12573_v45 = vpack.c.bf16 %v3629_v17, %v3626_v5  ;;  %v3638_v5 = vld [vmem:[%s21060_s3 + $0x1e0] sm:$0xff]  ;;  %v3641_v17 = vld [vmem:[%s21060_s3 + $0x1f8] sm:$0xff] }
 0x3d3   : > { %12568 = vmatprep.subr.bf16.mxu1 %v12567_v49  ;;  %v12575_v49 = vpack.c.bf16 %v3636_v14, %v3633_v59  ;;  %v3645_v14 = vld [vmem:[%s21060_s3 + $0x218] sm:$0xff] }
 0x3d4   : > { %v17501_v29 = vpop.permute.xlu0 %637  ;;  %v1885_v25 = vadd.f32 %v1857_v38, %v1765_v36  ;;  %v2337_v38 = vsel %vm2323_vm15, %v17454_v42, %v17355_v10  ;;  %v3642_v10 = vld [vmem:[%s21060_s3 + $0x200] sm:$0xff] }
 0x3d5   : > { %v17503_v61 = vpop.permute.xlu1 %2559 }
 0x3d6   : > { %v2005_v28 = vadd.f32 %v1977_v33, %v1885_v25  ;;  %12570 = vmatpush1.bf16.msra.mxu1 %v12569_v51  ;;  %v2457_v33 = vsel %vm2443_vm8, %v17480_v44, %v17369_v58  ;;  %v12577_v51 = vpack.c.bf16 %v3635_v53, %v3632_v13  ;;  %v3647_v13 = vld [vmem:[%s21060_s3 + $0x228] sm:$0xff] }
 0x3d7   : > { %12572 = vmatprep.subr.bf16.mxu1 %v12571_v16  ;;  %v12579_v16 = vpack.c.bf16 %v3642_v10, %v3639_v39  ;;  %v3654_v10 = vld [vmem:[%s21060_s3 + $0x260] sm:$0xff] }
 0x3d8   : > { %v17523_v8 = vpop.permute.xlu0 %3159  ;;  %v2125_v50 = vadd.f32 %v2097_v19, %v2005_v28  ;;  %v2577_v19 = vsel %vm21417_vm10, %v17503_v61, %v17385_v2  ;;  %v3648_v2 = vld [vmem:[%s21060_s3 + $0x230] sm:$0xff] }
 0x3d9   : > { %v17525_v3 = vpop.permute.xlu1 %2679 }
 0x3da   : > { %v2245_v36 = vadd.f32 %v2217_v43, %v2125_v50  ;;  %12574 = vmatpush1.bf16.msra.mxu1 %v12573_v45  ;;  %v2697_v43 = vsel %vm22137_vm6, %v17525_v3, %v17416_v24  ;;  %v12581_v45 = vpack.c.bf16 %v3641_v17, %v3638_v5  ;;  %v3651_v24 = vld [vmem:[%s21060_s3 + $0x248] sm:$0xff]  ;;  %v3650_v17 = vld [vmem:[%s21060_s3 + $0x240] sm:$0xff]  ;;  %vm22143_vm6 = vcmask 1031168  }
 0x3db   : > { %12576 = vmatprep.subr.bf16.mxu1 %v12575_v49  ;;  %v3644_v49 = vld [vmem:[%s21060_s3 + $0x210] sm:$0xff]  ;;  %v12587_v5 = vpack.c.bf16 %v3654_v10, %v3651_v24 }
 0x3dc   : > { %v17545_v18 = vpop.permute.xlu0 %3276  ;;  %v2365_v25 = vadd.f32 %v2337_v38, %v2245_v36  ;;  %v12583_v38 = vpack.c.bf16 %v3648_v2, %v3645_v14 }
 0x3dd   : > { %v17547_v11 = vpop.permute.xlu1 %2919 }
 0x3de   : > { %v2485_v28 = vadd.f32 %v2457_v33, %v2365_v25  ;;  %12578 = vmatpush1.bf16.msra.mxu1 %v12577_v51  ;;  %v2789_v33 = vmul.f32 %v22089_v63, %v21984_v6  ;;  %v12585_v25 = vpack.c.bf16 %v3647_v13, %v3644_v49  ;;  %v22138_v51 = vld [vmem:[#allocation128_spill] sm:$0xff]  ;;  %v22141_v63 = vld [vmem:[#allocation34_spill] sm:$0xff] }
 0x3df   : > { %12580 = vmatprep.subr.bf16.mxu1 %v12579_v16  ;;  %v387_v2 = vmul.f32 %v22141_v63, %v22112_v7 }
 0x3e0   : > { %v17567_v59 = vpop.permute.xlu0 %877  ;;  %v2605_v50 = vadd.f32 %v2577_v19, %v2485_v28  ;;  %v3653_v28 = vld [vmem:[%s21060_s3 + $0x258] sm:$0xff] }
 0x3e1   : > { %v518_v58 = vpop.permute.xlu1 %517  ;;  %v12589_v49 = vpack.c.bf16 %v3653_v28, %v3650_v17 }
 0x3e2   : > { %v2725_v53 = vadd.f32 %v2697_v43, %v2605_v50  ;;  %12582 = vmatpush1.bf16.msra.mxu1 %v12581_v45  ;;  %v535_v19 = vsel %vm22139_vm0, %v22138_v51, %v518_v58  ;;  %v536_v16 = vsel %vm22140_vm2, %v518_v58, %v22110_v48  ;;  %v388_v43 = vmul.f32 %v21995_v46, %v22112_v7  ;;  %vm22145_vm0 = vmmov %vm22143_vm6 }
 0x3e3   : > { %12584 = vmatprep.subr.bf16.mxu1 %v12583_v38  ;;  %v2936_v58 = vsel %vm22142_vm1, %v17547_v11, %v17452_v12  ;;  %v563_v45 = vadd.f32 %v535_v19, %v387_v2  ;;  %vm22146_vm2 = vmmov %vm22145_vm0  ;;  %vm22147_vm1 = vcmask 1022976  }
 0x3e4   : > { %v17584_v36 = vpop.permute.xlu0 %1117  ;;  %v2803_v14 = vadd.f32 %v2789_v33, %v2725_v53  ;;  %v564_v38 = vadd.f32 %v536_v16, %v388_v43  ;;  %v22144_v53 = vld [vmem:[#allocation140_spill] sm:$0xff]  ;;  %v656_v12 = vsel %vm22146_vm2, %v17501_v29, %v22115_v0  ;;  %vm22149_vm10 = vmmov %vm22147_vm1  ;;  %v3657_v0 = vld [vmem:[%s21060_s3 + $0x278] sm:$0xff]  ;;  %vm22157_vm2 = vcmask 1039360  }
 0x3e5   : > { %v3041_v39 = vpop.permute.xlu1 %3040  ;;  %v655_v46 = vsel %vm22145_vm0, %v22144_v53, %v17501_v29  ;;  %v3660_v29 = vld [vmem:[%s21060_s3 + $0x290] sm:$0xff]  ;;  %v896_v53 = vsel %vm883_vm3, %v17567_v59, %v22124_v32 }
 0x3e6   : > { %12586 = vmatpush1.bf16.msra.mxu1 %v12585_v25  ;;  %v3055_v13 = vsel %vm22143_vm6, %v17478_v54, %v3041_v39  ;;  %v2964_v7 = vadd.f32 %v2936_v58, %v2803_v14  ;;  %v22148_v25 = vld [vmem:[#allocation141_spill] sm:$0xff]  ;;  %vm22150_vm6 = vmmov %vm22147_vm1  ;;  %v683_v16 = vadd.f32 %v655_v46, %v563_v45  ;;  %v12591_v43 = vpack.c.bf16 %v3660_v29, %v3657_v0  ;;  %v3666_v29 = vld [vmem:[%s21060_s3 + $0x2c0] sm:$0xff] }
 0x3e7   : > { %12588 = vmatprep.subr.bf16.mxu1 %v12587_v5  ;;  %v684_v5 = vadd.f32 %v656_v12, %v564_v38  ;;  %v3659_v58 = vld [vmem:[%s21060_s3 + $0x288] sm:$0xff] }
 0x3e8   : > { %v17608_v50 = vpop.permute.xlu0 %1357  ;;  %v3083_v19 = vadd.f32 %v3055_v13, %v2964_v7  ;;  %v3663_v0 = vld [vmem:[%s21060_s3 + $0x2a8] sm:$0xff] }
 0x3e9   : > { %v17610_v48 = vpop.permute.xlu1 %3157 }
 0x3ea   : > { %v3174_v33 = vsel %vm22147_vm1, %v17610_v48, %v17523_v8  ;;  %12590 = vmatpush1.bf16.msra.mxu1 %v12589_v49  ;;  %v22151_v49 = vld [vmem:[#allocation151_spill] sm:$0xff]  ;;  %vm22158_vm1 = vmmov %vm22157_vm2 }
 0x3eb   : > { %v3202_v17 = vadd.f32 %v3174_v33, %v3083_v19  ;;  %v895_v13 = vsel %vm883_vm3, %v22151_v49, %v17567_v59  ;;  %12592 = vmatprep.subr.bf16.mxu1 %v12591_v43  ;;  %v22152_v33 = vld [vmem:[#allocation160_spill] sm:$0xff]  ;;  %v17663_v19 = vld [vmem:[#allocation2 + $0x78] sm:$0xff] }
 0x3ec   : > { %v17620_v10 = vpop.permute.xlu0 %13664 }
 0x3ed   : > { %v758_v24 = vpop.permute.xlu1 %757  ;;  %v13666_v49 = vunpack.i.l.bf16 %v17620_v10 }
 0x3ee   : > { %v775_v39 = vsel %vm22149_vm10, %v22148_v25, %v758_v24  ;;  %v776_v51 = vsel %vm22150_vm6, %v758_v24, %v22121_v55  ;;  %v3656_v55 = vld [vmem:[%s21060_s3 + $0x270] sm:$0xff]  ;;  %vm22159_vm6 = vmmov %vm22158_vm1 }
 0x3ef   : > { %v803_v28 = vadd.f32 %v775_v39, %v683_v16  ;;  %v804_v14 = vadd.f32 %v776_v51, %v684_v5  ;;  %v12593_v38 = vpack.c.bf16 %v3659_v58, %v3656_v55  ;;  %v1135_v5 = vsel %vm1123_vm4, %v21923_v23, %v17584_v36  ;;  %v3662_v23 = vld [vmem:[%s21060_s3 + $0x2a0] sm:$0xff]  ;;  %v3665_v55 = vld [vmem:[%s21060_s3 + $0x2b8] sm:$0xff] }
 0x3f0   : > { %v17632_v2 = vpop.permute.xlu0 %1597  ;;  %v12595_v58 = vpack.c.bf16 %v3666_v29, %v3663_v0  ;;  %v14076_v0 = vld [vmem:[#allocation2 + $0x8] sm:$0xff] }
 0x3f1   : > { %v3279_v63 = vpop.permute.xlu1 %3278  ;;  %v923_v24 = vadd.f32 %v895_v13, %v803_v28  ;;  %v924_v12 = vadd.f32 %v896_v53, %v804_v14  ;;  %12594 = vmatpush1.bf16.msra.mxu1 %v12593_v38  ;;  %v3669_v53 = vld [vmem:[%s21060_s3 + $0x2d8] sm:$0xff] }
 0x3f2   : > { %v3293_v8 = vsel %vm883_vm3, %v17545_v18, %v3279_v63  ;;  %12596 = vmatprep.subr.bf16.mxu1 %v12595_v58 }
 0x3f3   : > { %v3321_v45 = vadd.f32 %v3293_v8, %v3202_v17  ;;  %v1136_v17 = vsel %vm1123_vm4, %v17584_v36, %v16843_v15  ;;  %vm22153_vm4 = vcmask 760832  }
 0x3f4   : > { %v17661_v51 = vpop.permute.xlu0 %1837  ;;  %v1375_v38 = vsel %vm22153_vm4, %v21937_v47, %v17608_v50  ;;  %vm22154_vm10 = vmmov %vm22153_vm4  ;;  %v3668_v47 = vld [vmem:[%s21060_s3 + $0x2d0] sm:$0xff] }
 0x3f5   : > { %v17655_v46 = vadd.f32 %v22029_v30, %v3321_v45  ;;  %v998_v7 = vpop.permute.xlu1 %997  ;;  %v12597_v45 = vpack.c.bf16 %v3665_v55, %v3662_v23  ;;  %v1615_v23 = vsel %vm1603_vm9, %v15866_v20, %v17632_v2  ;;  %v3677_v55 = vld [vmem:[%s21060_s3 + $0x318] sm:$0xff] }
 0x3f6   : > { %v1015_v25 = vsel %vm1003_vm5, %v22152_v33, %v998_v7  ;;  %v1016_v39 = vsel %vm1003_vm5, %v998_v7, %v22126_v35  ;;  %v3672_v7 = vld [vmem:[%s21060_s3 + $0x2f0] sm:$0xff] }
 0x3f7   : > { %v3361_v32 = vmax.f32 %v17655_v46, 0.0  ;;  %v1043_v59 = vadd.f32 %v1015_v25, %v923_v24  ;;  %v1044_v16 = vadd.f32 %v1016_v39, %v924_v12  ;;  %v12599_v12 = vpack.c.bf16 %v3672_v7, %v3669_v53  ;;  %12598 = vmatpush1.bf16.msra.mxu1 %v12597_v45  ;;  %v3680_v45 = vld [vmem:[%s21060_s3 + $0x330] sm:$0xff] }
 0x3f8   : > { %v17700_v13 = vpop.permute.xlu0 %2077 }
 0x3f9   : > { %v1238_v28 = vpop.permute.xlu1 %1237  ;;  %v1163_v14 = vadd.f32 %v1135_v5, %v1043_v59  ;;  %v1164_v63 = vadd.f32 %v1136_v17, %v1044_v16  ;;  %v13693_v35 = vpack.i.bf16 %v17663_v19, %v3361_v32  ;;  %12600 = vmatprep.subr.bf16.mxu1 %v12599_v12 }
 0x3fa   : > { %v1255_v15 = vsel %vm1243_vm7, %v21927_v1, %v1238_v28  ;;  %v1256_v36 = vsel %vm1243_vm7, %v1238_v28, %v16967_v41  ;;  %v1376_v1 = vsel %vm22154_vm10, %v17608_v50, %v17115_v57  ;;  %v13667_v41 = vunpack.i.h.bf16 %v17620_v10  ;;  %v3671_v10 = vld [vmem:[%s21060_s3 + $0x2e8] sm:$0xff] }
 0x3fb   : > { %v1283_v8 = vadd.f32 %v1255_v15, %v1163_v14  ;;  %v1284_v43 = vadd.f32 %v1256_v36, %v1164_v63  ;;  %13694 = vrot.lane.b32.xlu0 %v13693_v35, %s21702_s25  ;;  %vm22155_vm7 = vcmask 752640   ;;  %v12601_v39 = vpack.c.bf16 %v3671_v10, %v3668_v47  ;;  %v3674_v35 = vld [vmem:[%s21060_s3 + $0x300] sm:$0xff] }
 0x3fc   : > { %vm22156_vm0 = vmmov %vm22155_vm7  ;;  %v3443_v59 = vsel %vm22157_vm2, %v13666_v49, %v13667_v41  ;;  %v17721_v28 = vpop.permute.xlu0 %2317  ;;  %v1616_v15 = vsel %vm1603_vm9, %v17632_v2, %v17128_v31  ;;  %v12605_v31 = vpack.c.bf16 %v3677_v55, %v3674_v35  ;;  %vm22160_vm9 = vcmask 515072   ;;  %v22162_v55 = vld [vmem:[#allocation106_spill] sm:$0xff] }
 0x3fd   : > { %v1478_v24 = vpop.permute.xlu1 %1477  ;;  %v1403_v57 = vadd.f32 %v1375_v38, %v1283_v8  ;;  %v1404_v50 = vadd.f32 %v1376_v1, %v1284_v43  ;;  %12602 = vmatpush1.bf16.msra.mxu1 %v12601_v39  ;;  %v17734_v29 = vmax.f32 %v14076_v0, %v3443_v59  ;;  %v3681_v8 = vld [vmem:[%s21060_s3 + $0x338] sm:$0xff]  ;;  %v3684_v43 = vld [vmem:[%s21060_s3 + $0x350] sm:$0xff]  ;;  %v3683_v38 = vld [vmem:[%s21060_s3 + $0x348] sm:$0xff]  ;;  %vm22179_vm10 = vcmask 1022976  }
 0x3fe   : > { %v1495_v33 = vsel %vm22155_vm7, %v21941_v34, %v1478_v24  ;;  %v1496_v25 = vsel %vm22156_vm0, %v1478_v24, %v17180_v22  ;;  %v3675_v34 = vld [vmem:[%s21060_s3 + $0x308] sm:$0xff]  ;;  %v3678_v22 = vld [vmem:[%s21060_s3 + $0x320] sm:$0xff]  ;;  %v12607_v2 = vpack.c.bf16 %v3684_v43, %v3681_v8  ;;  %v14077_v1 = vld [vmem:[#allocation2 + $0x10] sm:$0xff]  ;;  %vm22181_vm7 = vcmask 1031168  }
 0x3ff   : > { %v1523_v16 = vadd.f32 %v1495_v33, %v1403_v57  ;;  %v1524_v5 = vadd.f32 %v1496_v25, %v1404_v50  ;;  %v12603_v36 = vpack.c.bf16 %v3678_v22, %v3675_v34  ;;  %v14078_v24 = vld [vmem:[#allocation2] sm:$0xff]  ;;  %vm22161_vm4 = vmmov %vm22160_vm9  ;;  %v12609_v33 = vpack.c.bf16 %v3683_v38, %v3680_v45  ;;  %v3687_v25 = vld [vmem:[%s21060_s3 + $0x368] sm:$0xff] }
 0x400   : > { %v3870_v50 = vld [vmem:[%s21060_s3 + $0x920] sm:$0xff]  ;;  %v1856_v34 = vsel %vm1843_vm12, %v17661_v51, %v17324_v37  ;;  %v2558_v22 = vpop.permute.xlu0 %2557  ;;  %v22163_v37 = vld [vmem:[#allocation93_spill] sm:$0xff]  ;;  %vm22182_vm0 = vmmov %vm22181_vm7 }
 0x401   : > { %v17719_v17 = vpop.permute.xlu1 %13669  ;;  %v1643_v7 = vadd.f32 %v1615_v23, %v1523_v16  ;;  %v1644_v47 = vadd.f32 %v1616_v15, %v1524_v5  ;;  %12604 = vmatprep.subr.bf16.mxu0 %v12603_v36  ;;  %v3690_v39 = vld [vmem:[%s21060_s3 + $0x380] sm:$0xff]  ;;  %v3689_v5 = vld [vmem:[%s21060_s3 + $0x378] sm:$0xff]  ;;  %vm22183_vm2 = vmmov %vm22179_vm10 }
 0x402   : > { %v13672_v14 = vunpack.i.h.bf16 %v17719_v17  ;;  %v13671_v63 = vunpack.i.l.bf16 %v17719_v17  ;;  %12606 = vmatpush1.bf16.msra.mxu0 %v12605_v31  ;;  %v12611_v0 = vpack.c.bf16 %v3690_v39, %v3687_v25  ;;  %v2096_v31 = vsel %vm2083_vm13, %v17700_v13, %v17371_v26  ;;  %v3771_v17 = vld [vmem:[%s21060_s3 + $0x608] sm:$0xff] }
 0x403   : > { %12608 = vmatprep.subr.bf16.mxu0 %v12607_v2  ;;  %v2336_v26 = vsel %vm2323_vm15, %v17721_v28, %v17454_v42 }
 0x404   : > { %v3442_v58 = vsel %vm22158_vm1, %v13672_v14, %v13666_v49  ;;  %v3444_v20 = vsel %vm22159_vm6, %v13667_v41, %v13671_v63  ;;  %v3867_v41 = vld [vmem:[%s21060_s3 + $0x908] sm:$0xff]  ;;  %v1855_v14 = vsel %vm1843_vm12, %v21949_v62, %v17661_v51  ;;  %v2095_v51 = vsel %vm2083_vm13, %v22163_v37, %v17700_v13  ;;  %vm22184_vm6 = vmmov %vm22158_vm1 }
 0x405   : > { %v17761_v53 = vmax.f32 %v14077_v1, %v3444_v20  ;;  %v1718_v49 = vpop.permute.xlu1 %1717  ;;  %v17763_v57 = vmax.f32 %v14078_v24, %v3442_v58  ;;  %v12731_v35 = vpack.c.bf16 %v3870_v50, %v3867_v41  ;;  %v2918_v1 = vpop.permute.xlu0 %2917  ;;  %v22165_v41 = vld [vmem:[#allocation52_spill] sm:$0xff]  ;;  %vm22171_vm13 = vcmask 228352   ;;  %v22175_v37 = vld [vmem:[#allocation109_spill] sm:$0xff] }
 0x406   : > { %v1735_v12 = vsel %vm22160_vm9, %v16101_v27, %v1718_v49  ;;  %v1736_v10 = vsel %vm22161_vm4, %v1718_v49, %v17277_v21  ;;  %v3686_v21 = vld [vmem:[%s21060_s3 + $0x360] sm:$0xff]  ;;  %12610 = vmatpush1.bf16.msra.mxu0 %v12609_v33  ;;  %v2335_v50 = vsel %vm2323_vm15, %v22165_v41, %v17721_v28  ;;  %vm22177_vm15 = vmmov %vm22158_vm1  ;;  %v22180_v41 = vld [vmem:[#allocation125_spill] sm:$0xff] }
 0x407   : > { %v1763_v59 = vadd.f32 %v1735_v12, %v1643_v7  ;;  %v1764_v16 = vadd.f32 %v1736_v10, %v1644_v47  ;;  %3504 = vrot.lane.b32.xlu0 %v17763_v57, %s21767_s30  ;;  %v13698_v27 = vpack.i.bf16 %v17761_v53, %v17734_v29  ;;  %v12613_v62 = vpack.c.bf16 %v3689_v5, %v3686_v21  ;;  %v22164_v7 = vld [vmem:[#allocation131_spill] sm:$0xff]  ;;  %v22166_v33 = vld [vmem:[#allocation132_spill] sm:$0xff]  ;;  %vm22185_vm9 = vmmov %vm22158_vm1 }
 0x408   : > { %12732 = vmatprep.subr.bf16.mxu1 %v12731_v35  ;;  %12612 = vmatprep.subr.bf16.mxu0 %v12611_v0  ;;  %vm22188_vm4 = vmmov %vm22158_vm1 }
 0x409   : > { %v1883_v23 = vadd.f32 %v1855_v14, %v1763_v59  ;;  %v1884_v15 = vadd.f32 %v1856_v34, %v1764_v16  ;;  %v1958_v36 = vpop.permute.xlu1 %1957  ;;  %13699 = vrot.lane.b32.xlu1 %v13698_v27, %s21767_s30  ;;  %v22167_v16 = vld [vmem:[#allocation177_spill] sm:$0xff]  ;;  %v3156_v5 = vpop.permute.xlu0 %3155  ;;  %v22170_v34 = vld [vmem:[#allocation191_spill] sm:$0xff] }
 0x40a   : > { %v1975_v8 = vsel %vm1963_vm11, %v22162_v55, %v1958_v36  ;;  %v1976_v43 = vsel %vm1963_vm11, %v1958_v36, %v17240_v56  ;;  %12614 = vmatpush1.bf16.msra.mxu0 %v12613_v62  ;;  %vm22168_vm11 = vcmask 236544  }
 0x40b   : > { %v2003_v58 = vadd.f32 %v1975_v8, %v1883_v23  ;;  %v2004_v20 = vadd.f32 %v1976_v43, %v1884_v15  ;;  %v2575_v27 = vsel %vm22168_vm11, %v22167_v16, %v2558_v22  ;;  %vm22169_vm12 = vmmov %vm22168_vm11  ;;  %v22174_v15 = vld [vmem:[#allocation28_spill] sm:$0xff] }
 0x40c   : > { %v2576_v21 = vsel %vm22169_vm12, %v2558_v22, %v17503_v61  ;;  %v2788_v36 = vmul.f32 %v22174_v15, %v21984_v6  ;;  %v3693_v61 = vld [vmem:[%s21060_s3 + $0x398] sm:$0xff]  ;;  %v3696_v22 = vld [vmem:[%s21060_s3 + $0x3b0] sm:$0xff]  ;;  %v14080_v15 = vld [vmem:[#allocation2 + $0x48] sm:$0xff] }
 0x40d   : > { %v2123_v2 = vadd.f32 %v2095_v51, %v2003_v58  ;;  %v2124_v45 = vadd.f32 %v2096_v31, %v2004_v20  ;;  %v2198_v38 = vpop.permute.xlu1 %2197  ;;  %v12615_v20 = vpack.c.bf16 %v3696_v22, %v3693_v61  ;;  %v2935_v31 = vsel %vm22177_vm15, %v2918_v1, %v17547_v11  ;;  %vm22191_vm11 = vmmov %vm22158_vm1 }
 0x40e   : > { %v2215_v56 = vsel %vm2203_vm14, %v22164_v7, %v2198_v38  ;;  %v2216_v47 = vsel %vm2203_vm14, %v2198_v38, %v17322_v40  ;;  %vm22172_vm14 = vmmov %vm22171_vm13  ;;  %v3699_v38 = vld [vmem:[%s21060_s3 + $0x3c8] sm:$0xff] }
 0x40f   : > { %v2243_v49 = vadd.f32 %v2215_v56, %v2123_v2  ;;  %v2244_v24 = vadd.f32 %v2216_v47, %v2124_v45  ;;  %v17850_v2 = vpop.permute.xlu0 %13679  ;;  %12616 = vmatprep.subr.bf16.mxu0 %v12615_v20  ;;  %v3702_v47 = vld [vmem:[%s21060_s3 + $0x3e0] sm:$0xff]  ;;  %vm22192_vm12 = vmmov %vm22158_vm1 }
 0x410   : > { %v3714_v20 = vld [vmem:[%s21060_s3 + $0x440] sm:$0xff]  ;;  %vm22197_vm15 = vmmov %vm22158_vm1 }
 0x411   : > { %v2363_v13 = vadd.f32 %v2335_v50, %v2243_v49  ;;  %v2364_v12 = vadd.f32 %v2336_v26, %v2244_v24  ;;  %v2438_v10 = vpop.permute.xlu1 %2437  ;;  %v22178_v49 = vld [vmem:[#allocation138_spill] sm:$0xff]  ;;  %v12619_v50 = vpack.c.bf16 %v3702_v47, %v3699_v38  ;;  %v3173_v26 = vsel %vm22183_vm2, %v3156_v5, %v17610_v48 }
 0x412   : > { %v2455_v25 = vsel %vm2443_vm8, %v22166_v33, %v2438_v10  ;;  %v2456_v40 = vsel %vm2443_vm8, %v2438_v10, %v17480_v44  ;;  %v22173_v44 = vld [vmem:[#allocation149_spill] sm:$0xff]  ;;  %vm22176_vm8 = vmmov %vm22158_vm1  ;;  %v3172_v24 = vsel %vm22179_vm10, %v22178_v49, %v3156_v5  ;;  %vm22199_vm2 = vcmask 1031168  }
 0x413   : > { %v2483_v39 = vadd.f32 %v2455_v25, %v2363_v13  ;;  %v2484_v59 = vadd.f32 %v2456_v40, %v2364_v12  ;;  %v2787_v23 = vmul.f32 %v22173_v44, %v21984_v6  ;;  %v3695_v6 = vld [vmem:[%s21060_s3 + $0x3a8] sm:$0xff]  ;;  %v2934_v51 = vsel %vm22176_vm8, %v22175_v37, %v2918_v1  ;;  %v3698_v25 = vld [vmem:[%s21060_s3 + $0x3c0] sm:$0xff]  ;;  %v3701_v40 = vld [vmem:[%s21060_s3 + $0x3d8] sm:$0xff] }
 0x414   : > { %v13682_v13 = vunpack.i.h.bf16 %v17850_v2  ;;  %v12621_v16 = vpack.c.bf16 %v3701_v40, %v3698_v25  ;;  %v3708_v5 = vld [vmem:[%s21060_s3 + $0x410] sm:$0xff]  ;;  %v3713_v37 = vld [vmem:[%s21060_s3 + $0x438] sm:$0xff]  ;;  %v3722_v25 = vld [vmem:[%s21060_s3 + $0x480] sm:$0xff] }
 0x415   : > { %v2603_v14 = vadd.f32 %v2575_v27, %v2483_v39  ;;  %v2604_v42 = vadd.f32 %v2576_v21, %v2484_v59  ;;  %v2678_v28 = vpop.permute.xlu1 %2677  ;;  %v3705_v21 = vld [vmem:[%s21060_s3 + $0x3f8] sm:$0xff]  ;;  %v14079_v44 = vld [vmem:[#allocation2 + $0x50] sm:$0xff]  ;;  %vm22196_vm8 = vmmov %vm22158_vm1 }
 0x416   : > { %v2695_v35 = vsel %vm22171_vm13, %v22170_v34, %v2678_v28  ;;  %v2696_v0 = vsel %vm22172_vm14, %v2678_v28, %v17525_v3  ;;  %v3692_v3 = vld [vmem:[%s21060_s3 + $0x390] sm:$0xff]  ;;  %v3725_v40 = vld [vmem:[%s21060_s3 + $0x498] sm:$0xff]  ;;  %vm22193_vm13 = vmmov %vm22158_vm1 }
 0x417   : > { %v2723_v55 = vadd.f32 %v2695_v35, %v2603_v14  ;;  %v2724_v8 = vadd.f32 %v2696_v0, %v2604_v42  ;;  %v12617_v45 = vpack.c.bf16 %v3695_v6, %v3692_v3  ;;  %v3704_v14 = vld [vmem:[%s21060_s3 + $0x3f0] sm:$0xff]  ;;  %v12623_v35 = vpack.c.bf16 %v3708_v5, %v3705_v21  ;;  %v3707_v0 = vld [vmem:[%s21060_s3 + $0x408] sm:$0xff]  ;;  %v3710_v6 = vld [vmem:[%s21060_s3 + $0x420] sm:$0xff] }
 0x418   : > { %v12625_v22 = vpack.c.bf16 %v3707_v0, %v3704_v14  ;;  %v3711_v3 = vld [vmem:[%s21060_s3 + $0x428] sm:$0xff]  ;;  %v12629_v38 = vpack.c.bf16 %v3713_v37, %v3710_v6  ;;  %v12637_v14 = vpack.c.bf16 %v3725_v40, %v3722_v25  ;;  %v3728_v0 = vld [vmem:[%s21060_s3 + $0x4b0] sm:$0xff]  ;;  %v3762_v25 = vld [vmem:[%s21060_s3 + $0x5c0] sm:$0xff] }
 0x419   : > { %v2801_v43 = vadd.f32 %v2787_v23, %v2723_v55  ;;  %v2802_v62 = vadd.f32 %v2788_v36, %v2724_v8  ;;  %v3037_v58 = vpop.permute.xlu1 %3036  ;;  %12618 = vmatpush1.bf16.msra.mxu0 %v12617_v45  ;;  %v14081_v8 = vld [vmem:[#allocation2 + $0x40] sm:$0xff]  ;;  %v12627_v45 = vpack.c.bf16 %v3714_v20, %v3711_v3  ;;  %v3744_v20 = vld [vmem:[%s21060_s3 + $0x530] sm:$0xff]  ;;  %vm22194_vm14 = vmmov %vm22158_vm1 }
 0x41a   : > { %v3053_v11 = vsel %vm22181_vm7, %v22180_v41, %v3037_v58  ;;  %v3054_v1 = vsel %vm22182_vm0, %v3037_v58, %v17478_v54  ;;  %v13681_v54 = vunpack.i.l.bf16 %v17850_v2  ;;  %12620 = vmatprep.subr.bf16.mxu0 %v12619_v50  ;;  %v3719_v41 = vld [vmem:[%s21060_s3 + $0x468] sm:$0xff]  ;;  %v3580_v2 = vld [vmem:[%s21060_s3 + $0x10] sm:$0xff]  ;;  %vm22198_vm10 = vmmov %vm22158_vm1  ;;  %vm4563_vm7 = vcmask 130048  }
 0x41b   : > { %v2962_v7 = vadd.f32 %v2934_v51, %v2801_v43  ;;  %v2963_v56 = vadd.f32 %v2935_v31, %v2802_v62  ;;  %v22186_v43 = vld [vmem:[#allocation156_spill] sm:$0xff]  ;;  %vm4527_vm0 = vcmask 556032  }
 0x41d   : > { %v3081_v12 = vadd.f32 %v3053_v11, %v2962_v7  ;;  %v3082_v10 = vadd.f32 %v3054_v1, %v2963_v56  ;;  %v13675_v33 = vpop.permute.xlu1 %13674  ;;  %12622 = vmatpush1.bf16.msra.mxu0 %v12621_v16  ;;  %v3717_v7 = vld [vmem:[%s21060_s3 + $0x458] sm:$0xff]  ;;  %v3720_v56 = vld [vmem:[%s21060_s3 + $0x470] sm:$0xff] }
 0x41e   : > { %v13677_v39 = vunpack.i.h.bf16 %v13675_v33  ;;  %v13676_v59 = vunpack.i.l.bf16 %v13675_v33  ;;  %12624 = vmatprep.subr.bf16.mxu0 %v12623_v35  ;;  %v12631_v11 = vpack.c.bf16 %v3720_v56, %v3717_v7  ;;  %v3729_v16 = vld [vmem:[%s21060_s3 + $0x4b8] sm:$0xff]  ;;  %v3746_v56 = vld [vmem:[%s21060_s3 + $0x540] sm:$0xff] }
 0x41f   : > { %v3200_v48 = vadd.f32 %v3172_v24, %v3081_v12  ;;  %v3201_v27 = vadd.f32 %v3173_v26, %v3082_v10  ;;  %v3716_v24 = vld [vmem:[%s21060_s3 + $0x450] sm:$0xff]  ;;  %v3726_v26 = vld [vmem:[%s21060_s3 + $0x4a0] sm:$0xff] }
 0x420   : > { %v3451_v42 = vsel %vm22158_vm1, %v13677_v39, %v13681_v54  ;;  %v3449_v28 = vsel %vm22184_vm6, %v13682_v13, %v13676_v59  ;;  %v3450_v34 = vsel %vm22185_vm9, %v13676_v59, %v13677_v39  ;;  %v12633_v13 = vpack.c.bf16 %v3719_v41, %v3716_v24  ;;  %v3749_v24 = vld [vmem:[%s21060_s3 + $0x558] sm:$0xff]  ;;  %vm22200_vm1 = vmmov %vm22199_vm2 }
 0x421   : > { %v17891_v23 = vmax.f32 %v14079_v44, %v3451_v42  ;;  %v17893_v36 = vmax.f32 %v14080_v15, %v3450_v34  ;;  %v3275_v55 = vpop.permute.xlu1 %3274  ;;  %v17895_v61 = vmax.f32 %v14081_v8, %v3449_v28  ;;  %12626 = vmatpush1.bf16.msra.mxu0 %v12625_v22  ;;  %v22189_v42 = vld [vmem:[#allocation139_spill] sm:$0xff]  ;;  %v3731_v44 = vld [vmem:[%s21060_s3 + $0x4c8] sm:$0xff]  ;;  %vm22201_vm6 = vcmask 1022976  }
 0x422   : > { %v3291_v62 = vsel %vm883_vm3, %v22186_v43, %v3275_v55  ;;  %v3292_v58 = vsel %vm883_vm3, %v3275_v55, %v17545_v18  ;;  %12628 = vmatprep.subr.bf16.mxu0 %v12627_v45  ;;  %v22190_v28 = vmax.f32 %v22189_v42, 0.0  ;;  %v3735_v15 = vld [vmem:[%s21060_s3 + $0x4e8] sm:$0xff]  ;;  %v3738_v55 = vld [vmem:[%s21060_s3 + $0x500] sm:$0xff]  ;;  %v12641_v22 = vpack.c.bf16 %v3731_v44, %v3728_v0  ;;  %v3753_v41 = vld [vmem:[%s21060_s3 + $0x578] sm:$0xff] }
 0x423   : > { %v3319_v51 = vadd.f32 %v3291_v62, %v3200_v48  ;;  %v3320_v31 = vadd.f32 %v3292_v58, %v3201_v27  ;;  %3520 = vrot.lane.b32.xlu0 %v17895_v61, %s21767_s30  ;;  %v13703_v18 = vpack.i.bf16 %v17891_v23, %v17893_v36  ;;  %v3732_v48 = vld [vmem:[%s21060_s3 + $0x4d0] sm:$0xff]  ;;  %v22187_v27 = vld [vmem:[#allocation163_spill] sm:$0xff]  ;;  %v12643_v3 = vpack.c.bf16 %v3738_v55, %v3735_v15  ;;  %v3767_v44 = vld [vmem:[%s21060_s3 + $0x5e8] sm:$0xff] }
 0x424   : > { %v12639_v35 = vpack.c.bf16 %v3732_v48, %v3729_v16  ;;  %v3734_v43 = vld [vmem:[%s21060_s3 + $0x4e0] sm:$0xff]  ;;  %v3737_v62 = vld [vmem:[%s21060_s3 + $0x4f8] sm:$0xff]  ;;  %v3764_v0 = vld [vmem:[%s21060_s3 + $0x5d0] sm:$0xff] }
 0x425   : > { %v17924_v47 = vadd.f32 %v22029_v30, %v3319_v51  ;;  %v17927_v49 = vadd.f32 %v22029_v30, %v3320_v31  ;;  %13704 = vrot.lane.b32.xlu1 %v13703_v18, %s21767_s30  ;;  %v3723_v30 = vld [vmem:[%s21060_s3 + $0x488] sm:$0xff]  ;;  %12630 = vmatpush1.bf16.msra.mxu0 %v12629_v38  ;;  %v3741_v58 = vld [vmem:[%s21060_s3 + $0x518] sm:$0xff]  ;;  %v12645_v6 = vpack.c.bf16 %v3737_v62, %v3734_v43  ;;  %v3740_v51 = vld [vmem:[%s21060_s3 + $0x510] sm:$0xff] }
 0x426   : > { %12632 = vmatprep.subr.bf16.mxu0 %v12631_v11  ;;  %v12635_v33 = vpack.c.bf16 %v3726_v26, %v3723_v30  ;;  %v12647_v37 = vpack.c.bf16 %v3744_v20, %v3741_v58  ;;  %v3743_v31 = vld [vmem:[%s21060_s3 + $0x528] sm:$0xff]  ;;  %v3750_v45 = vld [vmem:[%s21060_s3 + $0x560] sm:$0xff]  ;;  %v3756_v11 = vld [vmem:[%s21060_s3 + $0x590] sm:$0xff]  ;;  %v12653_v30 = vpack.c.bf16 %v3749_v24, %v3746_v56  ;;  %v12665_v43 = vpack.c.bf16 %v3767_v44, %v3764_v0 }
 0x427   : > { %v3359_v1 = vmax.f32 %v17924_v47, 0.0  ;;  %v3360_v50 = vmax.f32 %v17927_v49, 0.0  ;;  %v3747_v18 = vld [vmem:[%s21060_s3 + $0x548] sm:$0xff]  ;;  %v12649_v38 = vpack.c.bf16 %v3743_v31, %v3740_v51  ;;  %v12655_v26 = vpack.c.bf16 %v3756_v11, %v3753_v41  ;;  %v3758_v16 = vld [vmem:[%s21060_s3 + $0x5a0] sm:$0xff]  ;;  %v3761_v48 = vld [vmem:[%s21060_s3 + $0x5b8] sm:$0xff] }
 0x428   : > { %v12651_v7 = vpack.c.bf16 %v3750_v45, %v3747_v18  ;;  %v3890_v0 = vld [vmem:[%s21060_s3 + $0x9c0] sm:$0xff]  ;;  %v3893_v44 = vld [vmem:[%s21060_s3 + $0x9d8] sm:$0xff]  ;;  %vm22202_vm9 = vmmov %vm22201_vm6 }
 0x429   : > { %v17944_v12 = vpop.permute.xlu0 %13684  ;;  %v13713_v10 = vpack.i.bf16 %v3360_v50, %v3359_v1  ;;  %12634 = vmatpush1.bf16.msra.mxu0 %v12633_v13  ;;  %v3752_v13 = vld [vmem:[%s21060_s3 + $0x570] sm:$0xff] }
 0x42a   : > { %v13687_v39 = vunpack.i.h.bf16 %v17944_v12  ;;  %v13686_v59 = vunpack.i.l.bf16 %v17944_v12  ;;  %12636 = vmatprep.subr.bf16.mxu0 %v12635_v33  ;;  %v3759_v33 = vld [vmem:[%s21060_s3 + $0x5a8] sm:$0xff]  ;;  %v3866_v12 = vld [vmem:[%s21060_s3 + $0x900] sm:$0xff] }
 0x42b   : > { %13714 = vrot.lane.b32.xlu0 %v13713_v10, %s21702_s25  ;;  %v3755_v10 = vld [vmem:[%s21060_s3 + $0x588] sm:$0xff] }
 0x42c   : > { %v3486_v21 = vmax.f32 %v22187_v27, %v13687_v39  ;;  %v3448_v5 = vsel %vm22188_vm4, %v13686_v59, %v13687_v39  ;;  %v12657_v40 = vpack.c.bf16 %v3755_v10, %v3752_v13  ;;  %v12659_v39 = vpack.c.bf16 %v3762_v25, %v3759_v33  ;;  %v3765_v27 = vld [vmem:[%s21060_s3 + $0x5d8] sm:$0xff]  ;;  %v3875_v13 = vld [vmem:[%s21060_s3 + $0x948] sm:$0xff]  ;;  %v3878_v25 = vld [vmem:[%s21060_s3 + $0x960] sm:$0xff] }
 0x42d   : > { %v17971_v34 = vmax.f32 %v22190_v28, %v3448_v5  ;;  %12638 = vmatpush1.bf16.msra.mxu0 %v12637_v14  ;;  %v12661_v28 = vpack.c.bf16 %v3761_v48, %v3758_v16  ;;  %v3888_v16 = vld [vmem:[%s21060_s3 + $0x9b0] sm:$0xff]  ;;  %vm5179_vm4 = vcmask 900096  }
 0x42e   : > { %12640 = vmatprep.subr.bf16.mxu0 %v12639_v35 }
 0x42f   : > { %v13708_v8 = vpack.i.bf16 %v3486_v21, %v17971_v34  ;;  %v3768_v21 = vld [vmem:[%s21060_s3 + $0x5f0] sm:$0xff] }
 0x430   : > { %v12663_v35 = vpack.c.bf16 %v3768_v21, %v3765_v27  ;;  %v3884_v21 = vld [vmem:[%s21060_s3 + $0x990] sm:$0xff] }
 0x431   : > { %13709 = vrot.lane.b32.xlu1 %v13708_v8, %s21767_s30  ;;  %12642 = vmatpush1.bf16.msra.mxu0 %v12641_v22  ;;  %v14082_v8 = vld [vmem:[#allocation2 + $0x18] sm:$0xff] }
 0x432   : > { %12644 = vmatprep.subr.bf16.mxu0 %v12643_v3 }
 0x435   : > { %12646 = vmatpush1.bf16.msra.mxu0 %v12645_v6 }
 0x436   : > { %12648 = vmatprep.subr.bf16.mxu0 %v12647_v37 }
 0x439   : > { %12650 = vmatpush1.bf16.msra.mxu0 %v12649_v38  ;;  %v3876_v38 = vld [vmem:[%s21060_s3 + $0x950] sm:$0xff] }
 0x43a   : > { %12652 = vmatprep.subr.bf16.mxu0 %v12651_v7 }
 0x43d   : > { %12654 = vmatpush1.bf16.msra.mxu0 %v12653_v30 }
 0x43e   : > { %12656 = vmatprep.subr.bf16.mxu0 %v12655_v26  ;;  %v3872_v26 = vld [vmem:[%s21060_s3 + $0x930] sm:$0xff] }
 0x43f   : > { %v12737_v10 = vpack.c.bf16 %v3875_v13, %v3872_v26  ;;  %v3631_v26 = vld [vmem:[%s21060_s3 + $0x1a8] sm:$0xff] }
 0x441   : > { %12658 = vmatpush1.bf16.msra.mxu0 %v12657_v40  ;;  %v3881_v40 = vld [vmem:[%s21060_s3 + $0x978] sm:$0xff] }
 0x442   : > { %12660 = vmatprep.subr.bf16.mxu0 %v12659_v39  ;;  %v3885_v39 = vld [vmem:[%s21060_s3 + $0x998] sm:$0xff]  ;;  %v12741_v48 = vpack.c.bf16 %v3881_v40, %v3878_v25 }
 0x443   : > { %v13690_v5 = vpop.permute.xlu1 %13689  ;;  %v12743_v27 = vpack.c.bf16 %v3888_v16, %v3885_v39 }
 0x444   : > { %v13692_v14 = vunpack.i.h.bf16 %v13690_v5  ;;  %v13691_v42 = vunpack.i.l.bf16 %v13690_v5  ;;  %v3887_v5 = vld [vmem:[%s21060_s3 + $0x9a8] sm:$0xff] }
 0x445   : > { %12662 = vmatpush1.bf16.msra.mxu0 %v12661_v28  ;;  %v12745_v28 = vpack.c.bf16 %v3887_v5, %v3884_v21 }
 0x446   : > { %v3445_v15 = vsel %vm22191_vm11, %v13671_v63, %v13691_v42  ;;  %v3446_v55 = vsel %vm22192_vm12, %v13691_v42, %v13692_v14  ;;  %12664 = vmatprep.subr.bf16.mxu0 %v12663_v35  ;;  %v3774_v63 = vld [vmem:[%s21060_s3 + $0x620] sm:$0xff]  ;;  %v3447_v18 = vsel %vm22194_vm14, %v13692_v14, %v13686_v59  ;;  %v3869_v59 = vld [vmem:[%s21060_s3 + $0x918] sm:$0xff]  ;;  %v3891_v14 = vld [vmem:[%s21060_s3 + $0x9c8] sm:$0xff]  ;;  %vm5314_vm11 = vcmask 891904  }
 0x447   : > { %v18057_v22 = vmax.f32 %v14082_v8, %v3445_v15  ;;  %v18061_v3 = vmax.f32 %v3352_v9, %v3446_v55  ;;  %v12667_v4 = vpack.c.bf16 %v3774_v63, %v3771_v17  ;;  %v18091_v45 = vmax.f32 %v3353_v60, %v3447_v18  ;;  %v3873_v60 = vld [vmem:[%s21060_s3 + $0x938] sm:$0xff]  ;;  %v3894_v42 = vld [vmem:[%s21060_s3 + $0x9e0] sm:$0xff]  ;;  %v3900_v55 = vld [vmem:[%s21060_s3 + $0xa10] sm:$0xff] }
 0x448   : > { %v12733_v11 = vpack.c.bf16 %v3869_v59, %v3866_v12  ;;  %v12735_v30 = vpack.c.bf16 %v3876_v38, %v3873_v60  ;;  %v12747_v35 = vpack.c.bf16 %v3894_v42, %v3891_v14  ;;  %v3897_v15 = vld [vmem:[%s21060_s3 + $0x9f8] sm:$0xff]  ;;  %v12749_v8 = vpack.c.bf16 %v3893_v44, %v3890_v0  ;;  %v3899_v17 = vld [vmem:[%s21060_s3 + $0xa08] sm:$0xff] }
 0x449   : > { %v13718_v62 = vpack.i.bf16 %v18061_v3, %v18057_v22  ;;  %12666 = vmatpush1.bf16.msra.mxu0 %v12665_v43  ;;  %v12751_v43 = vpack.c.bf16 %v3900_v55, %v3897_v15  ;;  %v3903_v63 = vld [vmem:[%s21060_s3 + $0xa28] sm:$0xff]  ;;  %v3909_v18 = vld [vmem:[%s21060_s3 + $0xa58] sm:$0xff]  ;;  %vm5449_vm12 = vcmask 883712   ;;  %vm5719_vm14 = vcmask 867328  }
 0x44a   : > { %12668 = vmatprep.subr.bf16.mxu0 %v12667_v4  ;;  %v3906_v4 = vld [vmem:[%s21060_s3 + $0xa40] sm:$0xff]  ;;  %v3637_v0 = vld [vmem:[%s21060_s3 + $0x1d8] sm:$0xff] }
 0x44b   : > { %13719 = vrot.lane.b32.xlu1 %v13718_v62, %s21767_s30  ;;  %v3896_v62 = vld [vmem:[%s21060_s3 + $0x9f0] sm:$0xff] }
 0x46d   : > { %v18072_v9 = vpop.permute.xlu0 %13694 }
 0x46e   : > { %v13697_v58 = vunpack.i.h.bf16 %v18072_v9  ;;  %v13696_v20 = vunpack.i.l.bf16 %v18072_v9 }
 0x470   : > { %v3487_v6 = vmax.f32 %v17663_v19, %v13697_v58  ;;  %v3455_v37 = vsel %vm22193_vm13, %v13696_v20, %v13697_v58  ;;  %v12753_v58 = vpack.c.bf16 %v3899_v17, %v3896_v62  ;;  %v3640_v62 = vld [vmem:[%s21060_s3 + $0x1f0] sm:$0xff]  ;;  %vm5584_vm13 = vcmask 875520  }
 0x471   : > { %v18082_v51 = vmax.f32 %v3361_v32, %v3455_v37  ;;  %v3902_v37 = vld [vmem:[%s21060_s3 + $0xa20] sm:$0xff]  ;;  %v3592_v17 = vld [vmem:[%s21060_s3 + $0x70] sm:$0xff] }
 0x473   : > { %v13723_v31 = vpack.i.bf16 %v3487_v6, %v18082_v51  ;;  %v12755_v6 = vpack.c.bf16 %v3906_v4, %v3903_v63  ;;  %v3595_v63 = vld [vmem:[%s21060_s3 + $0x88] sm:$0xff]  ;;  %v3646_v4 = vld [vmem:[%s21060_s3 + $0x220] sm:$0xff] }
 0x475   : > { %13724 = vrot.lane.b32.xlu0 %v13723_v31, %s21767_s30  ;;  %v3905_v31 = vld [vmem:[%s21060_s3 + $0xa38] sm:$0xff] }
 0x476   : > { %v12757_v59 = vpack.c.bf16 %v3905_v31, %v3902_v37  ;;  %v3598_v31 = vld [vmem:[%s21060_s3 + $0xa0] sm:$0xff] }
 0x479   : > { %3514 = vrot.lane.b32.xlu0 %v18091_v45, %s21767_s30  ;;  %v3505_v52 = vpop.permute.xlu0 %3504 }
 0x47b   : > { %v18095_v19 = vpop.permute.xlu1 %13699 }
 0x47c   : > { %v13702_v46 = vunpack.i.h.bf16 %v18095_v19  ;;  %v13701_v32 = vunpack.i.l.bf16 %v18095_v19  ;;  %v3776_v19 = vld [vmem:[%s21060_s3 + $0x630] sm:$0xff] }
 0x47e   : > { %v3537_v7 = vsel %vm1003_vm5, %v13701_v32, %v13702_v46  ;;  %v3536_v56 = vsel %vm1003_vm5, %v3505_v52, %v13701_v32  ;;  %v3912_v32 = vld [vmem:[%s21060_s3 + $0xa70] sm:$0xff] }
 0x47f   : > { %v18116_v24 = vmax.f32 %v17734_v29, %v3537_v7  ;;  %v18119_v41 = vmax.f32 %v17763_v57, %v3536_v56  ;;  %v3879_v29 = vld [vmem:[%s21060_s3 + $0x968] sm:$0xff]  ;;  %v3882_v57 = vld [vmem:[%s21060_s3 + $0x980] sm:$0xff]  ;;  %v12759_v38 = vpack.c.bf16 %v3912_v32, %v3909_v18  ;;  %v3908_v7 = vld [vmem:[%s21060_s3 + $0xa50] sm:$0xff] }
 0x480   : > { %v12739_v33 = vpack.c.bf16 %v3882_v57, %v3879_v29  ;;  %v3911_v56 = vld [vmem:[%s21060_s3 + $0xa68] sm:$0xff]  ;;  %v3601_v18 = vld [vmem:[%s21060_s3 + $0xb8] sm:$0xff]  ;;  %v3652_v32 = vld [vmem:[%s21060_s3 + $0x250] sm:$0xff] }
 0x481   : > { %3978 = vmatprep.mubr.f32.mxu1 %v18116_v24 }
 0x482   : > { %3979 = vmatmul.mubr.f32.vlgmr.msra.gmra.mrb[0].mxu1 %v18119_v41 }
 0x483   : > { %12734 = vmatpush1.bf16.msra.mxu1 %v12733_v11 }
 0x484   : > { %12736 = vmatprep.subr.bf16.mxu1 %v12735_v30  ;;  %v3628_v30 = vld [vmem:[%s21060_s3 + $0x190] sm:$0xff] }
 0x485   : > { %v12763_v25 = vpack.c.bf16 %v3631_v26, %v3628_v30  ;;  %v3661_v30 = vld [vmem:[%s21060_s3 + $0x298] sm:$0xff] }
 0x487   : > { %12738 = vmatpush1.bf16.msra.mxu1 %v12737_v10 }
 0x488   : > { %12740 = vmatprep.subr.bf16.mxu1 %v12739_v33  ;;  %v12761_v33 = vpack.c.bf16 %v3911_v56, %v3908_v7  ;;  %v3604_v7 = vld [vmem:[%s21060_s3 + $0xd0] sm:$0xff]  ;;  %v3607_v56 = vld [vmem:[%s21060_s3 + $0xe8] sm:$0xff] }
 0x489   : > { %v12781_v26 = vpack.c.bf16 %v3607_v56, %v3604_v7 }
 0x48b   : > { %12742 = vmatpush1.bf16.msra.mxu1 %v12741_v48  ;;  %v22195_v48 = vmov 0.0  }
 0x48c   : > { %12744 = vmatprep.subr.bf16.mxu1 %v12743_v27  ;;  %v14083_v27 = vld [vmem:[#allocation2 + $0x58] sm:$0xff] }
 0x48f   : > { %12746 = vmatpush1.bf16.msra.mxu1 %v12745_v28 }
 0x490   : > { %12748 = vmatprep.subr.bf16.mxu1 %v12747_v35  ;;  %v3634_v35 = vld [vmem:[%s21060_s3 + $0x1c0] sm:$0xff] }
 0x491   : > { %v12767_v55 = vpack.c.bf16 %v3637_v0, %v3634_v35  ;;  %v3773_v35 = vld [vmem:[%s21060_s3 + $0x618] sm:$0xff] }
 0x492   : > { %v3777_v0 = vld [vmem:[%s21060_s3 + $0x638] sm:$0xff] }
 0x493   : > { %12750 = vmatpush1.bf16.msra.mxu1 %v12749_v8  ;;  %v3586_v8 = vld [vmem:[%s21060_s3 + $0x40] sm:$0xff] }
 0x494   : > { %12752 = vmatprep.subr.bf16.mxu1 %v12751_v43  ;;  %v3589_v43 = vld [vmem:[%s21060_s3 + $0x58] sm:$0xff] }
 0x495   : > { %v3521_v11 = vpop.permute.xlu0 %3520  ;;  %v12769_v49 = vpack.c.bf16 %v3589_v43, %v3586_v8  ;;  %v3622_v8 = vld [vmem:[%s21060_s3 + $0x160] sm:$0xff]  ;;  %v3625_v43 = vld [vmem:[%s21060_s3 + $0x178] sm:$0xff] }
 0x497   : > { %v18195_v12 = vpop.permute.xlu1 %13704  ;;  %12754 = vmatpush1.bf16.msra.mxu1 %v12753_v58  ;;  %v3649_v58 = vld [vmem:[%s21060_s3 + $0x238] sm:$0xff] }
 0x498   : > { %v13707_v52 = vunpack.i.h.bf16 %v18195_v12  ;;  %v13706_v60 = vunpack.i.l.bf16 %v18195_v12  ;;  %12756 = vmatprep.subr.bf16.mxu1 %v12755_v6  ;;  %v12773_v6 = vpack.c.bf16 %v3595_v63, %v3592_v17  ;;  %v12775_v37 = vpack.c.bf16 %v3649_v58, %v3646_v4  ;;  %v3850_v12 = vld [vmem:[%s21060_s3 + $0x880] sm:$0xff] }
 0x49a   : > { %v3544_v13 = vsel %vm1003_vm5, %v13706_v60, %v13707_v52  ;;  %v3543_v29 = vsel %vm1003_vm5, %v3521_v11, %v13706_v60  ;;  %v12777_v60 = vpack.c.bf16 %v3601_v18, %v3598_v31  ;;  %v3658_v11 = vld [vmem:[%s21060_s3 + $0x280] sm:$0xff] }
 0x49b   : > { %v18216_v57 = vmax.f32 %v17893_v36, %v3544_v13  ;;  %v18219_v10 = vmax.f32 %v17895_v61, %v3543_v29  ;;  %12758 = vmatpush1.bf16.msra.mxu1 %v12757_v59  ;;  %v3655_v59 = vld [vmem:[%s21060_s3 + $0x268] sm:$0xff]  ;;  %v12783_v13 = vpack.c.bf16 %v3661_v30, %v3658_v11  ;;  %v3610_v29 = vld [vmem:[%s21060_s3 + $0x100] sm:$0xff]  ;;  %v3788_v11 = vld [vmem:[%s21060_s3 + $0x690] sm:$0xff] }
 0x49c   : > { %12760 = vmatprep.subr.bf16.mxu1 %v12759_v38  ;;  %v12779_v38 = vpack.c.bf16 %v3655_v59, %v3652_v32  ;;  %v3782_v32 = vld [vmem:[%s21060_s3 + $0x660] sm:$0xff]  ;;  %v3785_v59 = vld [vmem:[%s21060_s3 + $0x678] sm:$0xff]  ;;  %v3791_v30 = vld [vmem:[%s21060_s3 + $0x6a8] sm:$0xff] }
 0x49d   : > { %3984 = vmatprep.mubr.f32.mxu1 %v18216_v57  ;;  %v13715_v40 = vpop.permute.xlu0 %13714  ;;  %v12677_v7 = vpack.c.bf16 %v3785_v59, %v3782_v32  ;;  %v3827_v32 = vld [vmem:[%s21060_s3 + $0x7c8] sm:$0xff] }
 0x49e   : > { %3985 = vmatmul.mubr.f32.gmra.mrb[2].mxu1 %v18219_v10  ;;  %v13717_v39 = vunpack.i.h.bf16 %v13715_v40  ;;  %v13716_v16 = vunpack.i.l.bf16 %v13715_v40  ;;  %v3667_v40 = vld [vmem:[%s21060_s3 + $0x2c8] sm:$0xff] }
 0x49f   : > { %12762 = vmatpush1.bf16.msra.mxu1 %v12761_v33  ;;  %4209 = vmatprep.mubr.f32.mxu1 %v22195_v48  ;;  %v3613_v33 = vld [vmem:[%s21060_s3 + $0x118] sm:$0xff]  ;;  %v3831_v59 = vld [vmem:[%s21060_s3 + $0x7e8] sm:$0xff] }
 0x4a0   : > { %v3452_v36 = vsel %vm22196_vm8, %v13681_v54, %v13716_v16  ;;  %v3453_v61 = vsel %vm22197_vm15, %v13716_v16, %v13717_v39  ;;  %12764 = vmatprep.subr.bf16.mxu1 %v12763_v25  ;;  %v3583_v54 = vld [vmem:[%s21060_s3 + $0x28] sm:$0xff]  ;;  %v3454_v28 = vsel %vm22198_vm10, %v13717_v39, %v13696_v20  ;;  %v3664_v25 = vld [vmem:[%s21060_s3 + $0x2b0] sm:$0xff]  ;;  %v12785_v39 = vpack.c.bf16 %v3613_v33, %v3610_v29 }
 0x4a1   : > { %v18228_v21 = vmax.f32 %v14083_v27, %v3452_v36  ;;  %v18232_v5 = vmax.f32 %v3359_v1, %v3453_v61  ;;  %v12765_v44 = vpack.c.bf16 %v3583_v54, %v3580_v2  ;;  %v18264_v15 = vmax.f32 %v3360_v50, %v3454_v28  ;;  %v3616_v36 = vld [vmem:[%s21060_s3 + $0x130] sm:$0xff]  ;;  %v3619_v61 = vld [vmem:[%s21060_s3 + $0x148] sm:$0xff]  ;;  %v3670_v27 = vld [vmem:[%s21060_s3 + $0x2e0] sm:$0xff] }
 0x4a2   : > { %v12787_v16 = vpack.c.bf16 %v3667_v40, %v3664_v25  ;;  %v12681_v29 = vpack.c.bf16 %v3791_v30, %v3788_v11  ;;  %v3794_v25 = vld [vmem:[%s21060_s3 + $0x6c0] sm:$0xff]  ;;  %v3797_v40 = vld [vmem:[%s21060_s3 + $0x6d8] sm:$0xff]  ;;  %vm6393_vm8 = vcmask 719872   ;;  %vm6528_vm15 = vcmask 605184  }
 0x4a3   : > { %v18234_v14 = vpop.permute.xlu1 %13709  ;;  %v13728_v42 = vpack.i.bf16 %v18232_v5, %v18228_v21  ;;  %v3833_v11 = vld [vmem:[%s21060_s3 + $0x7f8] sm:$0xff]  ;;  %vm22203_vm10 = vcmask 752640  }
 0x4a4   : > { %v13712_v47 = vunpack.i.h.bf16 %v18234_v14  ;;  %v13711_v1 = vunpack.i.l.bf16 %v18234_v14  ;;  %v3796_v14 = vld [vmem:[%s21060_s3 + $0x6d0] sm:$0xff] }
 0x4a5   : > { %13729 = vrot.lane.b32.xlu1 %v13728_v42, %s21767_s30  ;;  %v3673_v42 = vld [vmem:[%s21060_s3 + $0x2f8] sm:$0xff] }
 0x4a6   : > { %v3542_v9 = vsel %vm1003_vm5, %v13711_v1, %v13712_v47  ;;  %v3770_v47 = vld [vmem:[%s21060_s3 + $0x600] sm:$0xff] }
 0x4a7   : > { %v18260_v20 = vmax.f32 %v17971_v34, %v3542_v9  ;;  %v3643_v34 = vld [vmem:[%s21060_s3 + $0x208] sm:$0xff]  ;;  %v12789_v9 = vpack.c.bf16 %v3619_v61, %v3616_v36  ;;  %v12669_v4 = vpack.c.bf16 %v3773_v35, %v3770_v47  ;;  %v12685_v36 = vpack.c.bf16 %v3797_v40, %v3794_v25  ;;  %v3810_v47 = vld [vmem:[%s21060_s3 + $0x740] sm:$0xff] }
 0x4a8   : > { %v12771_v50 = vpack.c.bf16 %v3643_v34, %v3640_v62 }
 0x4a9   : > { %3530 = vrot.lane.b32.xlu1 %v18264_v15, %s21767_s30  ;;  %4210 = vmatmul.mubr.f32.vlgmr.msra.gmra.mrb[4].mxu1 %v18260_v20  ;;  %s14179_s30 = smov 73  }
 0x4aa   : > { %12766 = vmatpush3.bf16.msra.mxu1 %v12765_v44  ;;  %4215 = vmatprep.mubr.f32.mxu1 %v22195_v48  ;;  %v3780_v44 = vld [vmem:[%s21060_s3 + $0x650] sm:$0xff] }
 0x4ab   : > { %12768 = vmatprep.subr.bf16.mxu1 %v12767_v55  ;;  %v12791_v55 = vpack.c.bf16 %v3673_v42, %v3670_v27  ;;  %v12671_v58 = vpack.c.bf16 %v3780_v44, %v3777_v0  ;;  %v3800_v27 = vld [vmem:[%s21060_s3 + $0x6f0] sm:$0xff]  ;;  %v3803_v42 = vld [vmem:[%s21060_s3 + $0x708] sm:$0xff]  ;;  %v3809_v44 = vld [vmem:[%s21060_s3 + $0x738] sm:$0xff] }
 0x4ac   : > { %v12689_v35 = vpack.c.bf16 %v3803_v42, %v3800_v27  ;;  %v3676_v27 = vld [vmem:[%s21060_s3 + $0x310] sm:$0xff]  ;;  %v3679_v42 = vld [vmem:[%s21060_s3 + $0x328] sm:$0xff] }
 0x4ae   : > { %12770 = vmatpush3.bf16.msra.mxu1 %v12769_v49  ;;  %v3724_v49 = vld [vmem:[%s21060_s3 + $0x490] sm:$0xff] }
 0x4af   : > { %12772 = vmatprep.subr.bf16.mxu1 %v12771_v50  ;;  %v3727_v50 = vld [vmem:[%s21060_s3 + $0x4a8] sm:$0xff] }
 0x4b2   : > { %12774 = vmatpush3.bf16.msra.mxu1 %v12773_v6  ;;  %v12793_v6 = vpack.c.bf16 %v3625_v43, %v3622_v8  ;;  %v3816_v8 = vld [vmem:[%s21060_s3 + $0x770] sm:$0xff] }
 0x4b3   : > { %12776 = vmatprep.subr.bf16.mxu1 %v12775_v37  ;;  %v12795_v37 = vpack.c.bf16 %v3727_v50, %v3724_v49  ;;  %v3815_v49 = vld [vmem:[%s21060_s3 + $0x768] sm:$0xff] }
 0x4b4   : > { %v3819_v50 = vld [vmem:[%s21060_s3 + $0x788] sm:$0xff] }
 0x4b6   : > { %12778 = vmatpush3.bf16.msra.mxu1 %v12777_v60  ;;  %v3789_v60 = vld [vmem:[%s21060_s3 + $0x698] sm:$0xff] }
 0x4b7   : > { %12780 = vmatprep.subr.bf16.mxu1 %v12779_v38  ;;  %v3792_v38 = vld [vmem:[%s21060_s3 + $0x6b0] sm:$0xff] }
 0x4b8   : > { %v12679_v56 = vpack.c.bf16 %v3792_v38, %v3789_v60  ;;  %v3834_v60 = vld [vmem:[%s21060_s3 + $0x800] sm:$0xff] }
 0x4ba   : > { %12782 = vmatpush3.bf16.msra.mxu1 %v12781_v26  ;;  %v3795_v26 = vld [vmem:[%s21060_s3 + $0x6c8] sm:$0xff] }
 0x4bb   : > { %12784 = vmatprep.subr.bf16.mxu1 %v12783_v13  ;;  %v3798_v13 = vld [vmem:[%s21060_s3 + $0x6e0] sm:$0xff] }
 0x4bc   : > { %v12683_v33 = vpack.c.bf16 %v3798_v13, %v3795_v26  ;;  %v3837_v26 = vld [vmem:[%s21060_s3 + $0x818] sm:$0xff]  ;;  %v3840_v13 = vld [vmem:[%s21060_s3 + $0x830] sm:$0xff] }
 0x4bd   : > { %v18342_v2 = vpop.permute.xlu1 %13719 }
 0x4be   : > { %v13722_v54 = vunpack.i.h.bf16 %v18342_v2  ;;  %v13721_v28 = vunpack.i.l.bf16 %v18342_v2  ;;  %12786 = vmatpush3.bf16.msra.mxu1 %v12785_v39  ;;  %v3801_v39 = vld [vmem:[%s21060_s3 + $0x6f8] sm:$0xff]  ;;  %v3802_v2 = vld [vmem:[%s21060_s3 + $0x700] sm:$0xff] }
 0x4bf   : > { %12788 = vmatprep.subr.bf16.mxu1 %v12787_v16  ;;  %v3804_v16 = vld [vmem:[%s21060_s3 + $0x710] sm:$0xff] }
 0x4c0   : > { %v3539_v62 = vsel %vm1003_vm5, %v13721_v28, %v13722_v54  ;;  %v3538_v34 = vsel %vm1003_vm5, %v13702_v46, %v13721_v28  ;;  %v3779_v46 = vld [vmem:[%s21060_s3 + $0x648] sm:$0xff]  ;;  %v12687_v61 = vpack.c.bf16 %v3804_v16, %v3801_v39  ;;  %v12711_v39 = vpack.c.bf16 %v3840_v13, %v3837_v26  ;;  %v3836_v16 = vld [vmem:[%s21060_s3 + $0x810] sm:$0xff]  ;;  %v3861_v26 = vld [vmem:[%s21060_s3 + $0x8d8] sm:$0xff] }
 0x4c1   : > { %v18377_v17 = vmax.f32 %v18057_v22, %v3539_v62  ;;  %v18380_v63 = vmax.f32 %v17761_v53, %v3538_v34  ;;  %v3783_v22 = vld [vmem:[%s21060_s3 + $0x668] sm:$0xff]  ;;  %v3786_v53 = vld [vmem:[%s21060_s3 + $0x680] sm:$0xff]  ;;  %v12673_v31 = vpack.c.bf16 %v3779_v46, %v3776_v19  ;;  %v3812_v34 = vld [vmem:[%s21060_s3 + $0x750] sm:$0xff] }
 0x4c2   : > { %12790 = vmatpush3.bf16.msra.mxu1 %v12789_v9  ;;  %v12675_v18 = vpack.c.bf16 %v3786_v53, %v3783_v22  ;;  %v3807_v28 = vld [vmem:[%s21060_s3 + $0x728] sm:$0xff]  ;;  %v3806_v9 = vld [vmem:[%s21060_s3 + $0x720] sm:$0xff]  ;;  %v3825_v22 = vld [vmem:[%s21060_s3 + $0x7b8] sm:$0xff] }
 0x4c3   : > { %4055 = vmatprep.mubr.f32.mxu0 %v18377_v17  ;;  %12792 = vmatprep.subr.bf16.mxu1 %v12791_v55  ;;  %v12691_v0 = vpack.c.bf16 %v3810_v47, %v3807_v28  ;;  %v3813_v55 = vld [vmem:[%s21060_s3 + $0x758] sm:$0xff]  ;;  %v12693_v43 = vpack.c.bf16 %v3809_v44, %v3806_v9  ;;  %v3818_v46 = vld [vmem:[%s21060_s3 + $0x780] sm:$0xff]  ;;  %v3828_v53 = vld [vmem:[%s21060_s3 + $0x7d0] sm:$0xff]  ;;  %v12797_v9 = vpack.c.bf16 %v3679_v42, %v3676_v27 }
 0x4c4   : > { %4056 = vmatmul.mubr.f32.vlgmr.msra.gmra.mrb[0].mxu0 %v18380_v63  ;;  %v12695_v62 = vpack.c.bf16 %v3816_v8, %v3813_v55  ;;  %v3730_v28 = vld [vmem:[%s21060_s3 + $0x4c0] sm:$0xff]  ;;  %v3733_v47 = vld [vmem:[%s21060_s3 + $0x4d8] sm:$0xff]  ;;  %v3864_v13 = vld [vmem:[%s21060_s3 + $0x8f0] sm:$0xff] }
 0x4c5   : > { %12670 = vmatpush1.bf16.msra.mxu0 %v12669_v4  ;;  %v3822_v4 = vld [vmem:[%s21060_s3 + $0x7a0] sm:$0xff]  ;;  %v3845_v55 = vld [vmem:[%s21060_s3 + $0x858] sm:$0xff]  ;;  %v12799_v8 = vpack.c.bf16 %v3733_v47, %v3730_v28  ;;  %v3863_v27 = vld [vmem:[%s21060_s3 + $0x8e8] sm:$0xff] }
 0x4c6   : > { %12672 = vmatprep.subr.bf16.mxu0 %v12671_v58  ;;  %12794 = vmatpush3.bf16.msra.mxu1 %v12793_v6  ;;  %v12697_v58 = vpack.c.bf16 %v3815_v49, %v3812_v34  ;;  %v12699_v19 = vpack.c.bf16 %v3822_v4, %v3819_v50  ;;  %v3821_v6 = vld [vmem:[%s21060_s3 + $0x798] sm:$0xff]  ;;  %v3842_v44 = vld [vmem:[%s21060_s3 + $0x840] sm:$0xff]  ;;  %v3739_v49 = vld [vmem:[%s21060_s3 + $0x508] sm:$0xff] }
 0x4c7   : > { %12796 = vmatprep.subr.bf16.mxu1 %v12795_v37  ;;  %v12701_v37 = vpack.c.bf16 %v3821_v6, %v3818_v46  ;;  %v3849_v50 = vld [vmem:[%s21060_s3 + $0x878] sm:$0xff]  ;;  %v3852_v4 = vld [vmem:[%s21060_s3 + $0x890] sm:$0xff]  ;;  %v3703_v47 = vld [vmem:[%s21060_s3 + $0x3e8] sm:$0xff] }
 0x4c8   : > { %v3688_v46 = vld [vmem:[%s21060_s3 + $0x370] sm:$0xff] }
 0x4c9   : > { %12674 = vmatpush1.bf16.msra.mxu0 %v12673_v31  ;;  %v12703_v31 = vpack.c.bf16 %v3828_v53, %v3825_v22  ;;  %v3848_v6 = vld [vmem:[%s21060_s3 + $0x870] sm:$0xff]  ;;  %v3851_v22 = vld [vmem:[%s21060_s3 + $0x888] sm:$0xff] }
 0x4ca   : > { %12676 = vmatprep.subr.bf16.mxu0 %v12675_v18  ;;  %v3824_v18 = vld [vmem:[%s21060_s3 + $0x7b0] sm:$0xff]  ;;  %v3691_v53 = vld [vmem:[%s21060_s3 + $0x388] sm:$0xff] }
 0x4cb   : > { %v12705_v38 = vpack.c.bf16 %v3827_v32, %v3824_v18  ;;  %v3742_v18 = vld [vmem:[%s21060_s3 + $0x520] sm:$0xff]  ;;  %v3745_v32 = vld [vmem:[%s21060_s3 + $0x538] sm:$0xff]  ;;  %v3700_v28 = vld [vmem:[%s21060_s3 + $0x3d0] sm:$0xff] }
 0x4cd   : > { %12678 = vmatpush1.bf16.msra.mxu0 %v12677_v7  ;;  %v12707_v7 = vpack.c.bf16 %v3834_v60, %v3831_v59  ;;  %v12721_v59 = vpack.c.bf16 %v3851_v22, %v3848_v6  ;;  %v12805_v60 = vpack.c.bf16 %v3691_v53, %v3688_v46  ;;  %v3718_v6 = vld [vmem:[%s21060_s3 + $0x460] sm:$0xff]  ;;  %v3721_v22 = vld [vmem:[%s21060_s3 + $0x478] sm:$0xff]  ;;  %v3823_v53 = vld [vmem:[%s21060_s3 + $0x7a8] sm:$0xff] }
 0x4ce   : > { %12680 = vmatprep.subr.bf16.mxu0 %v12679_v56  ;;  %v3830_v56 = vld [vmem:[%s21060_s3 + $0x7e0] sm:$0xff] }
 0x4cf   : > { %v12709_v25 = vpack.c.bf16 %v3833_v11, %v3830_v56  ;;  %v3854_v56 = vld [vmem:[%s21060_s3 + $0x8a0] sm:$0xff]  ;;  %v3857_v11 = vld [vmem:[%s21060_s3 + $0x8b8] sm:$0xff] }
 0x4d1   : > { %12682 = vmatpush1.bf16.msra.mxu0 %v12681_v29 }
 0x4d2   : > { %12684 = vmatprep.subr.bf16.mxu0 %v12683_v33 }
 0x4d5   : > { %12686 = vmatpush1.bf16.msra.mxu0 %v12685_v36  ;;  %v3839_v36 = vld [vmem:[%s21060_s3 + $0x828] sm:$0xff] }
 0x4d6   : > { %12688 = vmatprep.subr.bf16.mxu0 %v12687_v61 }
 0x4d9   : > { %12690 = vmatpush1.bf16.msra.mxu0 %v12689_v35  ;;  %v3846_v35 = vld [vmem:[%s21060_s3 + $0x860] sm:$0xff] }
 0x4da   : > { %12692 = vmatprep.subr.bf16.mxu0 %v12691_v0  ;;  %v12713_v0 = vpack.c.bf16 %v3839_v36, %v3836_v16  ;;  %v12727_v16 = vpack.c.bf16 %v3864_v13, %v3861_v26  ;;  %v3860_v36 = vld [vmem:[%s21060_s3 + $0x8d0] sm:$0xff] }
 0x4db   : > { %v3784_v13 = vld [vmem:[%s21060_s3 + $0x670] sm:$0xff] }
 0x4dd   : > { %12694 = vmatpush1.bf16.msra.mxu0 %v12693_v43  ;;  %v3682_v43 = vld [vmem:[%s21060_s3 + $0x340] sm:$0xff] }
 0x4de   : > { %12696 = vmatprep.subr.bf16.mxu0 %v12695_v62  ;;  %v3685_v62 = vld [vmem:[%s21060_s3 + $0x358] sm:$0xff] }
 0x4e1   : > { %12698 = vmatpush1.bf16.msra.mxu0 %v12697_v58  ;;  %v12717_v58 = vpack.c.bf16 %v3845_v55, %v3842_v44  ;;  %v3706_v55 = vld [vmem:[%s21060_s3 + $0x400] sm:$0xff] }
 0x4e2   : > { %12700 = vmatprep.subr.bf16.mxu0 %v12699_v19  ;;  %v12801_v19 = vpack.c.bf16 %v3685_v62, %v3682_v43  ;;  %v3760_v43 = vld [vmem:[%s21060_s3 + $0x5b0] sm:$0xff]  ;;  %v3763_v62 = vld [vmem:[%s21060_s3 + $0x5c8] sm:$0xff] }
 0x4e5   : > { %12702 = vmatpush1.bf16.msra.mxu0 %v12701_v37  ;;  %v3855_v37 = vld [vmem:[%s21060_s3 + $0x8a8] sm:$0xff] }
 0x4e6   : > { %12704 = vmatprep.subr.bf16.mxu0 %v12703_v31  ;;  %v3858_v31 = vld [vmem:[%s21060_s3 + $0x8c0] sm:$0xff] }
 0x4e7   : > { %v18498_v30 = vpop.permute.xlu0 %13724 }
 0x4e8   : > { %v13727_v29 = vunpack.i.h.bf16 %v18498_v30  ;;  %v13726_v33 = vunpack.i.l.bf16 %v18498_v30  ;;  %v3856_v30 = vld [vmem:[%s21060_s3 + $0x8b0] sm:$0xff] }
 0x4e9   : > { %12706 = vmatpush1.bf16.msra.mxu0 %v12705_v38  ;;  %v3694_v38 = vld [vmem:[%s21060_s3 + $0x3a0] sm:$0xff] }
 0x4ea   : > { %v3549_v40 = vsel %vm1003_vm5, %v13726_v33, %v13727_v29  ;;  %12708 = vmatprep.subr.bf16.mxu0 %v12707_v7  ;;  %v12723_v7 = vpack.c.bf16 %v3858_v31, %v3855_v37  ;;  %v3748_v29 = vld [vmem:[%s21060_s3 + $0x550] sm:$0xff] }
 0x4eb   : > { %v18518_v61 = vmax.f32 %v18082_v51, %v3549_v40  ;;  %v3843_v51 = vld [vmem:[%s21060_s3 + $0x848] sm:$0xff]  ;;  %v12725_v40 = vpack.c.bf16 %v3857_v11, %v3854_v56  ;;  %v3772_v31 = vld [vmem:[%s21060_s3 + $0x610] sm:$0xff]  ;;  %v3781_v56 = vld [vmem:[%s21060_s3 + $0x658] sm:$0xff] }
 0x4ec   : > { %v12715_v34 = vpack.c.bf16 %v3846_v35, %v3843_v51  ;;  %v3754_v51 = vld [vmem:[%s21060_s3 + $0x580] sm:$0xff]  ;;  %v3757_v35 = vld [vmem:[%s21060_s3 + $0x598] sm:$0xff]  ;;  %v3832_v11 = vld [vmem:[%s21060_s3 + $0x7f0] sm:$0xff] }
 0x4ed   : > { %4216 = vmatmul.mubr.f32.gmra.mrb[6].mxu1 %v18518_v61  ;;  %12710 = vmatpush1.bf16.msra.mxu0 %v12709_v25  ;;  %v3751_v25 = vld [vmem:[%s21060_s3 + $0x568] sm:$0xff]  ;;  %v12815_v44 = vpack.c.bf16 %v3757_v35, %v3754_v51  ;;  %v3844_v51 = vld [vmem:[%s21060_s3 + $0x850] sm:$0xff] }
 0x4ee   : > { %4286 = vmatprep.mubr.f32.mxu1 %v18116_v24  ;;  %12712 = vmatprep.subr.bf16.mxu0 %v12711_v39  ;;  %v3736_v24 = vld [vmem:[%s21060_s3 + $0x4f0] sm:$0xff]  ;;  %v12811_v42 = vpack.c.bf16 %v3751_v25, %v3748_v29  ;;  %v3787_v29 = vld [vmem:[%s21060_s3 + $0x688] sm:$0xff]  ;;  %v3838_v25 = vld [vmem:[%s21060_s3 + $0x820] sm:$0xff] }
 0x4ef   : > { %v3847_v35 = vld [vmem:[%s21060_s3 + $0x868] sm:$0xff] }
 0x4f1   : > { %4287 = vmatmul.mubr.f32.vlgmr.msra.gmra.mrb[8].mxu1 %v18119_v41  ;;  %12714 = vmatpush1.bf16.msra.mxu0 %v12713_v0  ;;  %v12803_v41 = vpack.c.bf16 %v3739_v49, %v3736_v24  ;;  %v12729_v0 = vpack.c.bf16 %v3863_v27, %v3860_v36  ;;  %v3712_v49 = vld [vmem:[%s21060_s3 + $0x430] sm:$0xff]  ;;  %v3790_v27 = vld [vmem:[%s21060_s3 + $0x6a0] sm:$0xff] }
 0x4f2   : > { %12798 = vmatpush3.bf16.msra.mxu1 %v12797_v9  ;;  %4291 = vmatprep.mubr.f32.mxu1 %v18216_v57  ;;  %v12719_v57 = vpack.c.bf16 %v3852_v4, %v3849_v50  ;;  %v12813_v9 = vpack.c.bf16 %v3703_v47, %v3700_v28  ;;  %v3715_v50 = vld [vmem:[%s21060_s3 + $0x448] sm:$0xff]  ;;  %v3766_v4 = vld [vmem:[%s21060_s3 + $0x5e0] sm:$0xff] }
 0x4f3   : > { %12800 = vmatprep.subr.bf16.mxu1 %v12799_v8  ;;  %12716 = vmatprep.subr.bf16.mxu0 %v12715_v34  ;;  %v3709_v8 = vld [vmem:[%s21060_s3 + $0x418] sm:$0xff]  ;;  %v12819_v34 = vpack.c.bf16 %v3763_v62, %v3760_v43 }
 0x4f4   : > { %v12817_v24 = vpack.c.bf16 %v3709_v8, %v3706_v55 }
 0x4f5   : > { %4292 = vmatmul.mubr.f32.gmra.mrb[10].mxu1 %v18219_v10  ;;  %12718 = vmatpush1.bf16.msra.mxu0 %v12717_v58  ;;  %v12807_v10 = vpack.c.bf16 %v3745_v32, %v3742_v18  ;;  %v3769_v58 = vld [vmem:[%s21060_s3 + $0x5f8] sm:$0xff]  ;;  %v3775_v18 = vld [vmem:[%s21060_s3 + $0x628] sm:$0xff]  ;;  %v3826_v32 = vld [vmem:[%s21060_s3 + $0x7c0] sm:$0xff] }
 0x4f6   : > { %12802 = vmatpush3.bf16.msra.mxu1 %v12801_v19  ;;  %4361 = vmatprep.mubr.f32.mxu1 %v18377_v17  ;;  %v3697_v17 = vld [vmem:[%s21060_s3 + $0x3b8] sm:$0xff]  ;;  %v12821_v19 = vpack.c.bf16 %v3715_v50, %v3712_v49  ;;  %v12823_v46 = vpack.c.bf16 %v3769_v58, %v3766_v4 }
 0x4f7   : > { %12804 = vmatprep.subr.bf16.mxu1 %v12803_v41  ;;  %12720 = vmatprep.subr.bf16.mxu0 %v12719_v57  ;;  %v12809_v39 = vpack.c.bf16 %v3697_v17, %v3694_v38  ;;  %v3820_v41 = vld [vmem:[%s21060_s3 + $0x790] sm:$0xff]  ;;  %v12825_v57 = vpack.c.bf16 %v3721_v22, %v3718_v6  ;;  %v3811_v6 = vld [vmem:[%s21060_s3 + $0x748] sm:$0xff] }
 0x4f8   : > { %v12827_v37 = vpack.c.bf16 %v3823_v53, %v3820_v41  ;;  %v3865_v41 = vld [vmem:[%s21060_s3 + $0x8f8] sm:$0xff] }
 0x4f9   : > { %12722 = vmatpush1.bf16.msra.mxu0 %v12721_v59  ;;  %v3829_v59 = vld [vmem:[%s21060_s3 + $0x7d8] sm:$0xff] }
 0x4fa   : > { %12806 = vmatpush3.bf16.msra.mxu1 %v12805_v60  ;;  %12724 = vmatprep.subr.bf16.mxu0 %v12723_v7  ;;  %v12829_v60 = vpack.c.bf16 %v3775_v18, %v3772_v31  ;;  %v12831_v38 = vpack.c.bf16 %v3829_v59, %v3826_v32  ;;  %v3778_v7 = vld [vmem:[%s21060_s3 + $0x640] sm:$0xff]  ;;  %v3868_v31 = vld [vmem:[%s21060_s3 + $0x910] sm:$0xff]  ;;  %v3871_v18 = vld [vmem:[%s21060_s3 + $0x928] sm:$0xff] }
 0x4fb   : > { %12808 = vmatprep.subr.bf16.mxu1 %v12807_v10  ;;  %v3835_v10 = vld [vmem:[%s21060_s3 + $0x808] sm:$0xff]  ;;  %v12833_v17 = vpack.c.bf16 %v3781_v56, %v3778_v7  ;;  %v12859_v59 = vpack.c.bf16 %v3871_v18, %v3868_v31  ;;  %v3880_v56 = vld [vmem:[%s21060_s3 + $0x970] sm:$0xff]  ;;  %v4536_v18 = vld [vmem:[%s21061_s4] sm:$0xff] }
 0x4fc   : > { %v12835_v26 = vpack.c.bf16 %v3835_v10, %v3832_v11  ;;  %v3883_v11 = vld [vmem:[%s21060_s3 + $0x988] sm:$0xff] }
 0x4fd   : > { %12726 = vmatpush1.bf16.msra.mxu0 %v12725_v40  ;;  %v12837_v40 = vpack.c.bf16 %v3787_v29, %v3784_v13  ;;  %v12867_v10 = vpack.c.bf16 %v3883_v11, %v3880_v56  ;;  %v3892_v29 = vld [vmem:[%s21060_s3 + $0x9d0] sm:$0xff] }
 0x4fe   : > { %12810 = vmatpush3.bf16.msra.mxu1 %v12809_v39  ;;  %12728 = vmatprep.subr.bf16.mxu0 %v12727_v16  ;;  %v3515_v39 = vpop.permute.xlu0 %3514 }
 0x4ff   : > { %12812 = vmatprep.subr.bf16.mxu1 %v12811_v42  ;;  %v3793_v42 = vld [vmem:[%s21060_s3 + $0x6b8] sm:$0xff] }
 0x501   : > { %12730 = vmatpush1.bf16.msra.mxu0 %v12729_v0  ;;  %v3541_v0 = vsel %vm1003_vm5, %v3515_v39, %v13711_v1  ;;  %v3799_v1 = vld [vmem:[%s21060_s3 + $0x6e8] sm:$0xff] }
 0x502   : > { %12814 = vmatpush3.bf16.msra.mxu1 %v12813_v9  ;;  %v12845_v49 = vpack.c.bf16 %v3799_v1, %v3796_v14 }
 0x503   : > { %12816 = vmatprep.subr.bf16.mxu1 %v12815_v44  ;;  %v12841_v44 = vpack.c.bf16 %v3793_v42, %v3790_v27  ;;  %v3910_v42 = vld [vmem:[%s21060_s3 + $0xa60] sm:$0xff] }
 0x506   : > { %12818 = vmatpush3.bf16.msra.mxu1 %v12817_v24  ;;  %v12843_v24 = vpack.c.bf16 %v3847_v35, %v3844_v51 }
 0x507   : > { %12820 = vmatprep.subr.bf16.mxu1 %v12819_v34 }
 0x50a   : > { %12822 = vmatpush3.bf16.msra.mxu1 %v12821_v19 }
 0x50b   : > { %12824 = vmatprep.subr.bf16.mxu1 %v12823_v46  ;;  %v3808_v46 = vld [vmem:[%s21060_s3 + $0x730] sm:$0xff] }
 0x50c   : > { %v12853_v53 = vpack.c.bf16 %v3811_v6, %v3808_v46 }
 0x50e   : > { %12826 = vmatpush3.bf16.msra.mxu1 %v12825_v57 }
 0x50f   : > { %12828 = vmatprep.subr.bf16.mxu1 %v12827_v37  ;;  %v3814_v37 = vld [vmem:[%s21060_s3 + $0x760] sm:$0xff] }
 0x511   : > { %4362 = vmatmul.mubr.f32.vlgmr.msra.gmra.mrb[12].mxu1 %v18380_v63  ;;  %v3841_v63 = vld [vmem:[%s21060_s3 + $0x838] sm:$0xff] }
 0x512   : > { %12830 = vmatpush3.bf16.msra.mxu1 %v12829_v60  ;;  %v12839_v36 = vpack.c.bf16 %v3841_v63, %v3838_v25  ;;  %v3874_v60 = vld [vmem:[%s21060_s3 + $0x940] sm:$0xff]  ;;  %v3895_v25 = vld [vmem:[%s21060_s3 + $0x9e8] sm:$0xff] }
 0x513   : > { %12832 = vmatprep.subr.bf16.mxu1 %v12831_v38  ;;  %v3877_v38 = vld [vmem:[%s21060_s3 + $0x958] sm:$0xff]  ;;  %v12875_v63 = vpack.c.bf16 %v3895_v25, %v3892_v29 }
 0x514   : > { %v12863_v7 = vpack.c.bf16 %v3877_v38, %v3874_v60  ;;  %v4537_v38 = vld [vmem:[%s21061_s4 + $0x8] sm:$0xff] }
 0x516   : > { %12834 = vmatpush3.bf16.msra.mxu1 %v12833_v17  ;;  %v3886_v17 = vld [vmem:[%s21060_s3 + $0x9a0] sm:$0xff] }
 0x517   : > { %v13730_v16 = vpop.permute.xlu1 %13729  ;;  %12836 = vmatprep.subr.bf16.mxu1 %v12835_v26  ;;  %v3889_v26 = vld [vmem:[%s21060_s3 + $0x9b8] sm:$0xff] }
 0x518   : > { %v13732_v28 = vunpack.i.h.bf16 %v13730_v16  ;;  %v13731_v47 = vunpack.i.l.bf16 %v13730_v16  ;;  %v12871_v13 = vpack.c.bf16 %v3889_v26, %v3886_v17  ;;  %v3904_v16 = vld [vmem:[%s21060_s3 + $0xa30] sm:$0xff] }
 0x519   : > { %v4538_v17 = vld [vmem:[%s21061_s4 + $0x10] sm:$0xff] }
 0x51a   : > { %12838 = vmatpush3.bf16.msra.mxu1 %v12837_v40  ;;  %v3546_v9 = vsel %vm1003_vm5, %v13731_v47, %v13732_v28  ;;  %v3545_v55 = vsel %vm1003_vm5, %v13707_v52, %v13731_v47  ;;  %v3853_v52 = vld [vmem:[%s21060_s3 + $0x898] sm:$0xff]  ;;  %v3898_v40 = vld [vmem:[%s21060_s3 + $0xa00] sm:$0xff] }
 0x51b   : > { %v3531_v8 = vpop.permute.xlu1 %3530  ;;  %12840 = vmatprep.subr.bf16.mxu1 %v12839_v36  ;;  %v3574_v43 = vmax.f32 %v18228_v21, %v3546_v9  ;;  %v3573_v62 = vmax.f32 %v17891_v23, %v3545_v55  ;;  %v3540_v23 = vsel %vm1003_vm5, %v13722_v54, %v3515_v39  ;;  %v3569_v21 = vmax.f32 %v18091_v45, %v3541_v0  ;;  %v3805_v45 = vld [vmem:[%s21060_s3 + $0x718] sm:$0xff]  ;;  %v3907_v36 = vld [vmem:[%s21060_s3 + $0xa48] sm:$0xff] }
 0x51c   : > { %v3548_v34 = vsel %vm1003_vm5, %v3531_v8, %v13726_v33  ;;  %v12847_v50 = vpack.c.bf16 %v3853_v52, %v3850_v12  ;;  %v3568_v54 = vmax.f32 %v18061_v3, %v3540_v23  ;;  %v3859_v33 = vld [vmem:[%s21060_s3 + $0x8c8] sm:$0xff]  ;;  %v3547_v4 = vsel %vm1003_vm5, %v13732_v28, %v3531_v8  ;;  %v3913_v28 = vld [vmem:[%s21060_s3 + $0xa78] sm:$0xff] }
 0x51d   : > { %4061 = vmatprep.mubr.f32.mxu0 %v3574_v43  ;;  %4366 = vmatprep.mubr.f32.mxu1 %v3574_v43  ;;  %v3576_v58 = vmax.f32 %v18264_v15, %v3548_v34  ;;  %v12849_v19 = vpack.c.bf16 %v3805_v45, %v3802_v2  ;;  %v12851_v3 = vpack.c.bf16 %v3859_v33, %v3856_v30  ;;  %v3862_v15 = vld [vmem:[%s21060_s3 + $0x8e0] sm:$0xff]  ;;  %vm4522_vm5 = vcmask 1048096  }
 0x51e   : > { %12842 = vmatpush3.bf16.msra.mxu1 %v12841_v44  ;;  %4062 = vmatmul.mubr.f32.gmra.mrb[2].mxu0 %v3573_v62  ;;  %v3575_v22 = vmax.f32 %v18232_v5, %v3547_v4  ;;  %v12855_v57 = vpack.c.bf16 %v3865_v41, %v3862_v15  ;;  %v3817_v5 = vld [vmem:[%s21060_s3 + $0x778] sm:$0xff]  ;;  %v12883_v27 = vpack.c.bf16 %v3907_v36, %v3904_v16 }
 0x51f   : > { %4367 = vmatmul.mubr.f32.gmra.mrb[14].mxu1 %v3573_v62  ;;  %4132 = vmatprep.mubr.f32.mxu0 %v3569_v21  ;;  %v12857_v32 = vpack.c.bf16 %v3817_v5, %v3814_v37  ;;  %v12887_v47 = vpack.c.bf16 %v3913_v28, %v3910_v42  ;;  %4524 = vst.msk [vmem:[#allocation3 + $0x28] sm:$0xff] %vm4522_vm5, %v22195_v48  ;;  %4523 = vst.msk [vmem:[#allocation3 + $0x10] sm:$0xff] %vm4522_vm5, %v22195_v48 }
 0x520   : > { %4436 = vmatprep.mubr.f32.mxu1 %v3569_v21  ;;  %12844 = vmatprep.subr.bf16.mxu1 %v12843_v24  ;;  %vm22204_vm5 = vmmov %vm22203_vm10 }
 0x522   : > { %12846 = vmatpush3.bf16.msra.mxu1 %v12845_v49  ;;  %4133 = vmatmul.mubr.f32.vlgmr.msra.gmra.mrb[0].mxu0 %v3568_v54 }
 0x523   : > { %4138 = vmatprep.mubr.f32.mxu0 %v3576_v58  ;;  %12848 = vmatprep.subr.bf16.mxu1 %v12847_v50 }
 0x526   : > { %12850 = vmatpush3.bf16.msra.mxu1 %v12849_v19  ;;  %4139 = vmatmul.mubr.f32.gmra.mrb[2].mxu0 %v3575_v22 }
 0x527   : > { %12852 = vmatprep.subr.bf16.mxu1 %v12851_v3  ;;  %4640 = vmatprep.mubr.f32.mxu0 %v22195_v48 }
 0x52a   : > { %12854 = vmatpush3.bf16.msra.mxu1 %v12853_v53 }
 0x52b   : > { %12856 = vmatprep.subr.bf16.mxu1 %v12855_v57 }
 0x52e   : > { %12858 = vmatpush3.bf16.msra.mxu1 %v12857_v32 }
 0x52f   : > { %12860 = vmatprep.subr.bf16.mxu1 %v12859_v59 }
 0x531   : > { %4437 = vmatmul.mubr.f32.vlgmr.msra.gmra.mrb[16].mxu1 %v3568_v54 }
 0x532   : > { %4441 = vmatprep.mubr.f32.mxu1 %v3576_v58  ;;  %12862 = vmatpush3.bf16.msra.mxu1 %v12859_v59 }
 0x533   : > { %12864 = vmatprep.subr.bf16.mxu1 %v12863_v7 }
 0x535   : > { %4442 = vmatmul.mubr.f32.gmra.mrb[18].mxu1 %v3575_v22 }
 0x536   : > { %12866 = vmatpush3.bf16.msra.mxu1 %v12863_v7  ;;  %11992 = vmatprep.mubr.f32.mxu1 %v18260_v20  ;;  %v3901_v20 = vld [vmem:[%s21060_s3 + $0xa18] sm:$0xff] }
 0x537   : > { %12868 = vmatprep.subr.bf16.mxu1 %v12867_v10  ;;  %v12879_v39 = vpack.c.bf16 %v3901_v20, %v3898_v40 }
 0x53a   : > { %12870 = vmatpush3.bf16.msra.mxu1 %v12867_v10 }
 0x53b   : > { %12872 = vmatprep.subr.bf16.mxu1 %v12871_v13 }
 0x53e   : > { %12874 = vmatpush3.bf16.msra.mxu1 %v12871_v13  ;;  %v4539_v13 = vld [vmem:[%s21061_s4 + $0x18] sm:$0xff] }
 0x53f   : > { %12876 = vmatprep.subr.bf16.mxu1 %v12875_v63 }
 0x542   : > { %12878 = vmatpush3.bf16.msra.mxu1 %v12875_v63 }
 0x543   : > { %12880 = vmatprep.subr.bf16.mxu1 %v12879_v39 }
 0x546   : > { %12882 = vmatpush3.bf16.msra.mxu1 %v12879_v39 }
 0x547   : > { %12884 = vmatprep.subr.bf16.mxu1 %v12883_v27 }
 0x54a   : > { %12886 = vmatpush3.bf16.msra.mxu1 %v12883_v27 }
 0x54b   : > { %12888 = vmatprep.subr.bf16.mxu1 %v12887_v47 }
 0x54e   : > { %12890 = vmatpush3.bf16.msra.mxu1 %v12887_v47 }
 0x551   : > { %11993 = vmatmul.mubr.f32.vlgmr.msra.gmra.mrb[20].mxu1 %v18518_v61 }
 0x552   : > { %4741 = vmatprep.mubr.f32.mxu1 %v22195_v48 }
 0x555   : > { %v3980_v51 = vpop.f32.mrb[0].mxu1 }
 0x556   : > { %v3982_v35 = vpop.f32.mrb[1].mxu1 }
 0x571   : > { %v3986_v0 = vpop.f32.mrb[2].mxu1 }
 0x572   : > { %v3988_v9 = vpop.f32.mrb[3].mxu1 }
 0x57c   : > { %v4211_v44 = vpop.f32.mrb[4].mxu1 }
 0x57d   : > { %v4213_v55 = vpop.f32.mrb[5].mxu1 }
 0x5c0   : > { %v4217_v8 = vpop.f32.mrb[6].mxu1 }
 0x5c1   : > { %v4219_v43 = vpop.f32.mrb[7].mxu1 }
 0x5c4   : > { %v11560_v62 = vpop.f32.mrb[8].mxu1 }
 0x5c5   : > { %v11561_v14 = vpop.f32.mrb[9].mxu1 }
 0x5c6   : > { %v11562_v1 = vadd.f32 %v11561_v14, %v11560_v62 }
 0x5c8   : > { %v11563_v24 = vpop.f32.mrb[10].mxu1 }
 0x5c9   : > { %v11564_v61 = vpop.f32.mrb[11].mxu1 }
 0x5ca   : > { %v11565_v12 = vadd.f32 %v11564_v61, %v11563_v24 }
 0x5e4   : > { %v11598_v52 = vpop.f32.mrb[12].mxu1 }
 0x5e5   : > { %v11599_v23 = vpop.f32.mrb[13].mxu1 }
 0x5e6   : > { %v11600_v21 = vadd.f32 %v11599_v23, %v11598_v52 }
 0x5e8   : > { %v4364_v34 = vadd.f32 %v11600_v21, %v11562_v1 }
 0x5f2   : > { %v11601_v49 = vpop.f32.mrb[14].mxu1 }
 0x5f3   : > { %v11602_v50 = vpop.f32.mrb[15].mxu1 }
 0x5f4   : > { %v11603_v2 = vadd.f32 %v11602_v50, %v11601_v49 }
 0x5f5   : > { %v4134_v45 = vpop.f32.mrb[0].mxu0 }
 0x5f6   : > { %v4369_v54 = vadd.f32 %v11603_v2, %v11565_v12  ;;  %v13312_v30 = vadd.f32 %v4134_v45, %v3980_v51  ;;  %v4136_v33 = vpop.f32.mrb[1].mxu0  ;;  %v11055_v12 = vld [vmem:[%s21061_s4 + $0x40] sm:$0xff]  ;;  %v11056_v45 = vld [vmem:[%s21061_s4 + $0x48] sm:$0xff] }
 0x5f7   : > { %v13314_v4 = vadd.f32 %v4136_v33, %v3982_v35 }
 0x5f8   : > { %v13313_v58 = vadd.f32 %v13312_v30, %v4211_v44  ;;  %v11057_v30 = vld [vmem:[%s21061_s4 + $0x50] sm:$0xff] }
 0x5f9   : > { %v13315_v19 = vadd.f32 %v13314_v4, %v4213_v55  ;;  %v4140_v3 = vpop.f32.mrb[2].mxu0  ;;  %v11058_v4 = vld [vmem:[%s21061_s4 + $0x58] sm:$0xff] }
 0x5fa   : > { %v13316_v46 = vadd.f32 %v4140_v3, %v3986_v0  ;;  %v4142_v6 = vpop.f32.mrb[3].mxu0  ;;  %v11063_v3 = vld [vmem:[%s21061_s4 + $0x60] sm:$0xff] }
 0x5fb   : > { %v13318_v22 = vadd.f32 %v4142_v6, %v3988_v9  ;;  %v18835_v15 = vpack.i.bf16 %v13315_v19, %v13313_v58 }
 0x5fc   : > { %v13317_v41 = vadd.f32 %v13316_v46, %v4217_v8 }
 0x5fd   : > { %v13319_v53 = vadd.f32 %v13318_v22, %v4219_v43  ;;  %13734 = vrot.lane.b32.xlu0 %v18835_v15, %s21732_s1  ;;  %v11064_v22 = vld [vmem:[%s21061_s4 + $0x68] sm:$0xff] }
 0x5fe   : > { %v12897_v57 = vpack.c.bf16 %v13317_v41, %v13313_v58  ;;  %v18839_v37 = vpack.i.bf16 %v13317_v41, %v13313_v58 }
 0x5ff   : > { %v18841_v5 = vpack.i.bf16 %v13319_v53, %v13317_v41  ;;  %v12895_v31 = vpack.c.bf16 %v13319_v53, %v13315_v19  ;;  %v11065_v41 = vld [vmem:[%s21061_s4 + $0x70] sm:$0xff] }
 0x601   : > { %13739 = vrot.lane.b32.xlu1 %v18841_v5, %s21732_s1  ;;  %12896 = vmatprep.subr.bf16.mxu1 %v12895_v31  ;;  %s14181_s1 = smov 71   ;;  %v11072_v31 = vld [vmem:[%s21061_s4 + $0x88] sm:$0xff] }
 0x602   : > { %13744 = vrot.lane.b32.xlu0 %v18835_v15, %s21750_s11  ;;  %12898 = vmatpush1.bf16.msra.mxu1 %v12897_v57  ;;  %v11071_v57 = vld [vmem:[%s21061_s4 + $0x80] sm:$0xff] }
 0x604   : > { %v11636_v32 = vpop.f32.mrb[16].mxu1 }
 0x605   : > { %v11637_v59 = vpop.f32.mrb[17].mxu1  ;;  %13749 = vrot.lane.b32.xlu1 %v18841_v5, %s21750_s11  ;;  %11051 = vmatmul.mubr.msk.f32.vlgmr.msra.gmra.mrb[22].mxu1 %vm4563_vm7, %v4536_v18  ;;  %s14186_s11 = smov 53   ;;  %v11073_v18 = vld [vmem:[%s21061_s4 + $0x90] sm:$0xff] }
 0x606   : > { %v11638_v60 = vadd.f32 %v11637_v59, %v11636_v32  ;;  %13754 = vrot.lane.b32.xlu0 %v18835_v15, %s21757_s20  ;;  %4747 = vmatprep.mubr.f32.mxu1 %v22195_v48 }
 0x608   : > { %v11639_v7 = vpop.f32.mrb[18].mxu1  ;;  %v4439_v56 = vadd.f32 %v11638_v60, %v4364_v34 }
 0x609   : > { %v11640_v11 = vpop.f32.mrb[19].mxu1  ;;  %13759 = vrot.lane.b32.xlu1 %v18841_v5, %s21757_s20  ;;  %11052 = vmatmul.mubr.msk.f32.gmra.mrb[24].mxu1 %vm4563_vm7, %v4537_v38  ;;  %s14169_s20 = smov 110  }
 0x60a   : > { %v11641_v10 = vadd.f32 %v11640_v11, %v11639_v7  ;;  %4753 = vmatprep.mubr.f32.mxu1 %v22195_v48  ;;  %v11074_v11 = vld [vmem:[%s21061_s4 + $0x98] sm:$0xff] }
 0x60c   : > { %v4444_v26 = vadd.f32 %v11641_v10, %v4369_v54 }
 0x60d   : > { %11053 = vmatmul.mubr.msk.f32.gmra.mrb[26].mxu1 %vm4563_vm7, %v4538_v17 }
 0x60e   : > { %4759 = vmatprep.mubr.f32.mxu1 %v22195_v48 }
 0x611   : > { %11054 = vmatmul.mubr.msk.f32.gmra.mrb[28].mxu1 %vm4563_vm7, %v4539_v13 }
 0x612   : > { %4861 = vmatprep.mubr.f32.mxu1 %v22195_v48 }
 0x624   : > { %v11994_v29 = vpop.f32.mrb[20].mxu1 }
 0x625   : > { %v4519_v25 = vadd.f32 %v11994_v29, %v4444_v26  ;;  %v4513_v63 = vpop.f32.mrb[21].mxu1 }
 0x626   : > { %v4514_v40 = vadd.f32 %v4513_v63, %v4439_v56 }
 0x627   : > { %4531 = vst.msk [vmem:[#allocation3 + $0x28] sm:$0xff] %vm4527_vm0, %v4519_v25 }
 0x628   : > { %4528 = vst.msk [vmem:[#allocation3 + $0x10] sm:$0xff] %vm4527_vm0, %v4514_v40  ;;  %vm5988_vm0 = vcmask 744448  }
 0x62e   : > { %v5155_v20 = vld [vmem:[#allocation3 + $0x28] sm:$0xff] }
 0x62f   : > { %v5152_v39 = vld [vmem:[#allocation3 + $0x10] sm:$0xff]  ;;  %v18873_v16 = vpack.i.bf16 %v5155_v20, %v13319_v53  ;;  %v11066_v53 = vld [vmem:[%s21061_s4 + $0x78] sm:$0xff] }
 0x630   : > { %v18875_v36 = vpack.i.bf16 %v5152_v39, %v13315_v19 }
 0x631   : > { %13764 = vrot.lane.b32.xlu1 %v18873_v16, %s14169_s20 }
 0x632   : > { %13769 = vrot.lane.b32.xlu0 %v18875_v36, %s14169_s20 }
 0x635   : > { %13784 = vrot.lane.b32.xlu1 %v18875_v36, %s14170_s24 }
 0x636   : > { %13774 = vrot.lane.b32.xlu0 %v18839_v37, %s14169_s20 }
 0x639   : > { %13789 = vrot.lane.b32.xlu1 %v18839_v37, %s14170_s24 }
 0x63a   : > { %13779 = vrot.lane.b32.xlu0 %v18873_v16, %s14170_s24 }
 0x63d   : > { %13794 = vrot.lane.b32.xlu1 %v18873_v16, %s14171_s9 }
 0x63e   : > { %13799 = vrot.lane.b32.xlu0 %v18875_v36, %s14171_s9 }
 0x641   : > { %13814 = vrot.lane.b32.xlu1 %v18875_v36, %s14172_s0 }
 0x642   : > { %13804 = vrot.lane.b32.xlu0 %v18839_v37, %s14171_s9 }
 0x645   : > { %13819 = vrot.lane.b32.xlu1 %v18839_v37, %s14172_s0 }
 0x646   : > { %13809 = vrot.lane.b32.xlu0 %v18873_v16, %s14172_s0  ;;  %s14183_s0 = smov 56  }
 0x649   : > { %13824 = vrot.lane.b32.xlu1 %v18873_v16, %s14173_s12 }
 0x64a   : > { %13829 = vrot.lane.b32.xlu0 %v18875_v36, %s14173_s12 }
 0x64d   : > { %13844 = vrot.lane.b32.xlu1 %v18875_v36, %s21567_s14 }
 0x64e   : > { %13834 = vrot.lane.b32.xlu0 %v18839_v37, %s14173_s12 }
 0x651   : > { %13849 = vrot.lane.b32.xlu1 %v18839_v37, %s21567_s14 }
 0x652   : > { %13839 = vrot.lane.b32.xlu0 %v18873_v16, %s21567_s14  ;;  %s14177_s14 = smov 88  }
 0x655   : > { %13854 = vrot.lane.b32.xlu1 %v18873_v16, %s14174_s15 }
 0x656   : > { %13859 = vrot.lane.b32.xlu0 %v18875_v36, %s14174_s15 }
 0x659   : > { %13869 = vrot.lane.b32.xlu1 %v18875_v36, %s14175_s18 }
 0x65a   : > { %13864 = vrot.lane.b32.xlu0 %v18839_v37, %s14174_s15 }
 0x65d   : > { %13879 = vrot.lane.b32.xlu1 %v18839_v37, %s14175_s18 }
 0x65e   : > { %13874 = vrot.lane.b32.xlu0 %v18873_v16, %s14175_s18 }
 0x661   : > { %13889 = vrot.lane.b32.xlu1 %v18873_v16, %s14176_s26 }
 0x662   : > { %13884 = vrot.lane.b32.xlu0 %v18875_v36, %s14176_s26 }
 0x665   : > { %13899 = vrot.lane.b32.xlu1 %v18875_v36, %s14177_s14 }
 0x666   : > { %13894 = vrot.lane.b32.xlu0 %v18839_v37, %s14176_s26 }
 0x669   : > { %13909 = vrot.lane.b32.xlu1 %v18839_v37, %s14177_s14 }
 0x66a   : > { %13904 = vrot.lane.b32.xlu0 %v18873_v16, %s14177_s14  ;;  %s14184_s14 = smov 55  }
 0x66d   : > { %13919 = vrot.lane.b32.xlu1 %v18873_v16, %s14178_s27 }
 0x66e   : > { %13914 = vrot.lane.b32.xlu0 %v18875_v36, %s14178_s27 }
 0x66f   : > { %v13735_v27 = vpop.permute.xlu0 %13734 }
 0x670   : > { %v13737_v42 = vunpack.i.h.bf16 %v13735_v27  ;;  %v13736_v28 = vunpack.i.l.bf16 %v13735_v27 }
 0x671   : > { %13929 = vrot.lane.b32.xlu1 %v18875_v36, %s14179_s30 }
 0x672   : > { %13924 = vrot.lane.b32.xlu0 %v18839_v37, %s14178_s27  ;;  %v4779_v9 = vsel %vm22199_vm2, %v13736_v28, %v13737_v42  ;;  %vm6663_vm2 = vcmask 596992  }
 0x673   : > { %v13740_v47 = vpop.permute.xlu1 %13739 }
 0x674   : > { %v13742_v51 = vunpack.i.h.bf16 %v13740_v47  ;;  %v13741_v35 = vunpack.i.l.bf16 %v13740_v47  ;;  %v13745_v0 = vpop.permute.xlu0 %13744 }
 0x675   : > { %13939 = vrot.lane.b32.xlu1 %v18839_v37, %s14179_s30  ;;  %v13747_v8 = vunpack.i.h.bf16 %v13745_v0  ;;  %v13746_v43 = vunpack.i.l.bf16 %v13745_v0 }
 0x676   : > { %13934 = vrot.lane.b32.xlu0 %v18873_v16, %s14179_s30  ;;  %v4780_v44 = vsel %vm22200_vm1, %v13741_v35, %v13742_v51  ;;  %v12899_v55 = vpack.c.bf16 %v13742_v51, %v13737_v42  ;;  %v11079_v35 = vld [vmem:[%s21061_s4 + $0xa0] sm:$0xff]  ;;  %vm6798_vm1 = vcmask 588800  }
 0x677   : > { %v12901_v62 = vpack.c.bf16 %v4780_v44, %v4779_v9  ;;  %v13750_v14 = vpop.permute.xlu1 %13749  ;;  %v4907_v52 = vsel %vm22201_vm6, %v13746_v43, %v13747_v8  ;;  %v19023_v44 = vld [vmem:[#allocation4 + $0x10] sm:$0xff]  ;;  %vm22205_vm6 = vmmov %vm22204_vm5 }
 0x678   : > { %v13752_v1 = vunpack.i.h.bf16 %v13750_v14  ;;  %v13751_v24 = vunpack.i.l.bf16 %v13750_v14  ;;  %12900 = vmatprep.subr.bf16.mxu1 %v12899_v55  ;;  %v13755_v61 = vpop.permute.xlu0 %13754 }
 0x679   : > { %13949 = vrot.lane.b32.xlu1 %v18873_v16, %s14180_s28  ;;  %12902 = vmatpush1.bf16.msra.mxu1 %v12901_v62  ;;  %v13757_v50 = vunpack.i.h.bf16 %v13755_v61  ;;  %v13756_v58 = vunpack.i.l.bf16 %v13755_v61 }
 0x67a   : > { %13944 = vrot.lane.b32.xlu0 %v18875_v36, %s14180_s28  ;;  %v4908_v23 = vsel %vm22202_vm9, %v13751_v24, %v13752_v1  ;;  %v12903_v21 = vpack.c.bf16 %v13752_v1, %v13747_v8  ;;  %vm22206_vm9 = vmmov %vm22204_vm5 }
 0x67b   : > { %v12905_v34 = vpack.c.bf16 %v4908_v23, %v4907_v52  ;;  %v13760_v49 = vpop.permute.xlu1 %13759  ;;  %v5035_v46 = vsel %vm883_vm3, %v13756_v58, %v13757_v50  ;;  %v11080_v23 = vld [vmem:[%s21061_s4 + $0xa8] sm:$0xff] }
 0x67c   : > { %v13762_v2 = vunpack.i.h.bf16 %v13760_v49  ;;  %11059 = vmatmul.mubr.msk.f32.vlgmr.msra.gmra.mrb[22].mxu1 %vm4563_vm7, %v11055_v12  ;;  %12904 = vmatprep.subr.bf16.mxu1 %v12903_v21  ;;  %v13761_v33 = vunpack.i.l.bf16 %v13760_v49 }
 0x67d   : > { %13959 = vrot.lane.b32.xlu1 %v18875_v36, %s14181_s1  ;;  %12906 = vmatpush1.bf16.msra.mxu1 %v12905_v34  ;;  %v7862_v34 = vld [vmem:[%s21062_s5 + $0x8] sm:$0xff] }
 0x67e   : > { %13954 = vrot.lane.b32.xlu0 %v18839_v37, %s14180_s28  ;;  %v12907_v54 = vpack.c.bf16 %v13762_v2, %v13757_v50  ;;  %4867 = vmatprep.mubr.f32.mxu1 %v22195_v48  ;;  %v5036_v19 = vsel %vm883_vm3, %v13761_v33, %v13762_v2  ;;  %s14185_s28 = smov 54  }
 0x67f   : > { %v12909_v6 = vpack.c.bf16 %v5036_v19, %v5035_v46 }
 0x680   : > { %11060 = vmatmul.mubr.msk.f32.gmra.mrb[24].mxu1 %vm4563_vm7, %v11056_v45  ;;  %12908 = vmatprep.subr.bf16.mxu1 %v12907_v54  ;;  %v11081_v45 = vld [vmem:[%s21061_s4 + $0xb0] sm:$0xff] }
 0x681   : > { %13969 = vrot.lane.b32.xlu1 %v18839_v37, %s14181_s1  ;;  %4873 = vmatprep.mubr.f32.mxu1 %v22195_v48 }
 0x682   : > { %13964 = vrot.lane.b32.xlu0 %v18873_v16, %s14181_s1 }
 0x684   : > { %11061 = vmatmul.mubr.msk.f32.gmra.mrb[26].mxu1 %vm4563_vm7, %v11057_v30 }
 0x685   : > { %13979 = vrot.lane.b32.xlu1 %v18873_v16, %s14182_s16  ;;  %4879 = vmatprep.mubr.f32.mxu1 %v22195_v48 }
 0x686   : > { %13974 = vrot.lane.b32.xlu0 %v18875_v36, %s14182_s16 }
 0x688   : > { %11062 = vmatmul.mubr.msk.f32.gmra.mrb[28].mxu1 %vm4563_vm7, %v11058_v4 }
 0x689   : > { %13989 = vrot.lane.b32.xlu1 %v18875_v36, %s14183_s0  ;;  %4989 = vmatprep.mubr.f32.mxu1 %v22195_v48 }
 0x68a   : > { %13984 = vrot.lane.b32.xlu0 %v18839_v37, %s14182_s16  ;;  %s14187_s16 = smov 52  }
 0x68c   : > { %11067 = vmatmul.mubr.msk.f32.vlgmr.msra.gmra.mrb[22].mxu1 %vm4563_vm7, %v11063_v3  ;;  %v11082_v3 = vld [vmem:[%s21061_s4 + $0xb8] sm:$0xff] }
 0x68d   : > { %13999 = vrot.lane.b32.xlu1 %v18839_v37, %s14183_s0  ;;  %12910 = vmatpush1.bf16.msra.mxu1 %v12909_v6 }
 0x68e   : > { %13994 = vrot.lane.b32.xlu0 %v18873_v16, %s14183_s0  ;;  %4995 = vmatprep.mubr.f32.mxu1 %v22195_v48 }
 0x690   : > { %11068 = vmatmul.mubr.msk.f32.gmra.mrb[24].mxu1 %vm4563_vm7, %v11064_v22 }
 0x691   : > { %14009 = vrot.lane.b32.xlu1 %v18873_v16, %s14184_s14  ;;  %5001 = vmatprep.mubr.f32.mxu1 %v22195_v48 }
 0x692   : > { %14004 = vrot.lane.b32.xlu0 %v18875_v36, %s14184_s14 }
 0x694   : > { %11069 = vmatmul.mubr.msk.f32.gmra.mrb[26].mxu1 %vm4563_vm7, %v11065_v41 }
 0x695   : > { %14019 = vrot.lane.b32.xlu1 %v18875_v36, %s14185_s28  ;;  %5007 = vmatprep.mubr.f32.mxu1 %v22195_v48 }
 0x696   : > { %14014 = vrot.lane.b32.xlu0 %v18839_v37, %s14184_s14  ;;  %s11525_s14 = sshll.u32 %s14263_s13, 4 }
 0x697   : > { %s21015_s22 = scalar_lea.hbm %s22239_s29, %s11525_s14 }
 0x698   : > { %11070 = vmatmul.mubr.msk.f32.gmra.mrb[28].mxu1 %vm4563_vm7, %v11066_v53 }
 0x699   : > { %14029 = vrot.lane.b32.xlu1 %v18839_v37, %s14185_s28  ;;  %5117 = vmatprep.mubr.f32.mxu1 %v22195_v48 }
 0x69a   : > { %14024 = vrot.lane.b32.xlu0 %v18873_v16, %s14185_s28 }
 0x69c   : > { %11075 = vmatmul.mubr.msk.f32.vlgmr.msra.gmra.mrb[22].mxu1 %vm4563_vm7, %v11071_v57 }
 0x69d   : > { %14039 = vrot.lane.b32.xlu1 %v18873_v16, %s14186_s11  ;;  %5123 = vmatprep.mubr.f32.mxu1 %v22195_v48 }
 0x69e   : > { %14034 = vrot.lane.b32.xlu0 %v18875_v36, %s14186_s11 }
 0x6a0   : > { %11076 = vmatmul.mubr.msk.f32.gmra.mrb[24].mxu1 %vm4563_vm7, %v11072_v31  ;;  %v11087_v31 = vld [vmem:[%s21061_s4 + $0xc0] sm:$0xff] }
 0x6a1   : > { %14049 = vrot.lane.b32.xlu1 %v18875_v36, %s14187_s16  ;;  %5129 = vmatprep.mubr.f32.mxu1 %v22195_v48  ;;  %v7861_v36 = vld [vmem:[%s21062_s5] sm:$0xff] }
 0x6a2   : > { %14044 = vrot.lane.b32.xlu0 %v18839_v37, %s14186_s11  ;;  %s14088_s11 = sshll.u32 %s14191_s17, 4  ;;  %s14089_s11 = int_to_ptr.vmem [resolvable:$false] %s14088_s11 }
 0x6a3   : > { %v13765_v32 = vpop.permute.xlu1 %13764  ;;  %s14090_s23 = scalar_lea.vmem %s14089_s11, 32 }
 0x6a4   : > { %v13767_v59 = vunpack.i.h.bf16 %v13765_v32  ;;  %v13766_v60 = vunpack.i.l.bf16 %v13765_v32  ;;  %v13770_v38 = vpop.permute.xlu0 %13769  ;;  %11077 = vmatmul.mubr.msk.f32.gmra.mrb[26].mxu1 %vm4563_vm7, %v11073_v18 }
 0x6a5   : > { %v13772_v7 = vunpack.i.h.bf16 %v13770_v38  ;;  %v13771_v56 = vunpack.i.l.bf16 %v13770_v38  ;;  %14059 = vrot.lane.b32.xlu1 %v18835_v15, %s21702_s25  ;;  %5135 = vmatprep.mubr.f32.mxu1 %v22195_v48 }
 0x6a6   : > { %14054 = vrot.lane.b32.xlu0 %v18873_v16, %s14187_s16  ;;  %v5183_v10 = vsel %vm5179_vm4, %v13766_v60, %v13767_v59 }
 0x6a7   : > { %v13785_v17 = vpop.permute.xlu1 %13784  ;;  %v5181_v26 = vsel %vm5179_vm4, %v13771_v56, %v13772_v7 }
 0x6a8   : > { %v13775_v13 = vpop.permute.xlu0 %13774  ;;  %v12911_v29 = vpack.c.bf16 %v5183_v10, %v5181_v26  ;;  %11078 = vmatmul.mubr.msk.f32.gmra.mrb[28].mxu1 %vm4563_vm7, %v11074_v11  ;;  %v13787_v15 = vunpack.i.h.bf16 %v13785_v17  ;;  %v13786_v40 = vunpack.i.l.bf16 %v13785_v17  ;;  %v11089_v17 = vld [vmem:[%s21061_s4 + $0xd0] sm:$0xff] }
 0x6a9   : > { %v13777_v25 = vunpack.i.h.bf16 %v13775_v13  ;;  %v13776_v63 = vunpack.i.l.bf16 %v13775_v13  ;;  %14069 = vrot.lane.b32.xlu1 %v18839_v37, %s14187_s16  ;;  %5264 = vmatprep.mubr.f32.mxu1 %v22195_v48 }
 0x6aa   : > { %14064 = vrot.lane.b32.xlu0 %v18841_v5, %s21702_s25  ;;  %12912 = vmatprep.subr.bf16.mxu1 %v12911_v29  ;;  %v5316_v55 = vsel %vm5314_vm11, %v13786_v40, %v13787_v15 }
 0x6ab   : > { %v5182_v20 = vsel %vm5179_vm4, %v13777_v25, %v13766_v60  ;;  %v5180_v39 = vsel %vm5179_vm4, %v13776_v63, %v13771_v56  ;;  %v13790_v16 = vpop.permute.xlu1 %13789  ;;  %v11088_v56 = vld [vmem:[%s21061_s4 + $0xc8] sm:$0xff] }
 0x6ac   : > { %v12913_v27 = vpack.c.bf16 %v5182_v20, %v5180_v39  ;;  %v13792_v37 = vunpack.i.h.bf16 %v13790_v16  ;;  %v13791_v42 = vunpack.i.l.bf16 %v13790_v16  ;;  %v13780_v28 = vpop.permute.xlu0 %13779  ;;  %v11090_v39 = vld [vmem:[%s21061_s4 + $0xd8] sm:$0xff] }
 0x6ad   : > { %v13782_v47 = vunpack.i.h.bf16 %v13780_v28  ;;  %v13781_v51 = vunpack.i.l.bf16 %v13780_v28 }
 0x6ae   : > { %v5315_v5 = vsel %vm5314_vm11, %v13791_v42, %v13786_v40  ;;  %7867 = vperm.xlu0 %13661, %v7861_v36   ;;  %12914 = vmatpush1.bf16.msra.mxu1 %v12913_v27  ;;  %v11095_v42 = vld [vmem:[%s21061_s4 + $0xe0] sm:$0xff] }
 0x6af   : > { %v5317_v0 = vsel %vm5314_vm11, %v13792_v37, %v13781_v51  ;;  %v13795_v9 = vpop.permute.xlu1 %13794  ;;  %v5318_v8 = vsel %vm5314_vm11, %v13781_v51, %v13782_v47  ;;  %vm6933_vm11 = vcmask 580608  }
 0x6b0   : > { %v12917_v43 = vpack.c.bf16 %v5317_v0, %v5315_v5  ;;  %v13797_v62 = vunpack.i.h.bf16 %v13795_v9  ;;  %v13796_v14 = vunpack.i.l.bf16 %v13795_v9  ;;  %v13800_v1 = vpop.permute.xlu0 %13799  ;;  %v12915_v24 = vpack.c.bf16 %v5318_v8, %v5316_v55  ;;  %v11096_v9 = vld [vmem:[%s21061_s4 + $0xe8] sm:$0xff] }
 0x6b1   : > { %v13802_v61 = vunpack.i.h.bf16 %v13800_v1  ;;  %v13801_v12 = vunpack.i.l.bf16 %v13800_v1  ;;  %11083 = vmatmul.mubr.msk.f32.vlgmr.msra.gmra.mrb[22].mxu1 %vm4563_vm7, %v11079_v35 }
 0x6b2   : > { %7978 = vrot.lane.b32.xlu0 %v19023_v44, %s21702_s25  ;;  %12916 = vmatprep.subr.bf16.mxu1 %v12915_v24  ;;  %v5453_v52 = vsel %vm5449_vm12, %v13796_v14, %v13797_v62 }
 0x6b3   : > { %v19032_v21 = vpop.permute.xlu1 %13814  ;;  %12918 = vmatpush1.bf16.msra.mxu1 %v12917_v43  ;;  %v5451_v49 = vsel %vm5449_vm12, %v13801_v12, %v13802_v61  ;;  %5270 = vmatprep.mubr.f32.mxu1 %v22195_v48  ;;  %v11097_v43 = vld [vmem:[%s21061_s4 + $0xf0] sm:$0xff] }
 0x6b4   : > { %v13805_v50 = vpop.permute.xlu0 %13804  ;;  %v12919_v2 = vpack.c.bf16 %v5453_v52, %v5451_v49  ;;  %v13817_v6 = vunpack.i.h.bf16 %v19032_v21  ;;  %v13816_v22 = vunpack.i.l.bf16 %v19032_v21  ;;  %v11098_v21 = vld [vmem:[%s21061_s4 + $0xf8] sm:$0xff] }
 0x6b5   : > { %11084 = vmatmul.mubr.msk.f32.gmra.mrb[24].mxu1 %vm4563_vm7, %v11080_v23  ;;  %v13807_v33 = vunpack.i.h.bf16 %v13805_v50  ;;  %v13806_v4 = vunpack.i.l.bf16 %v13805_v50 }
 0x6b6   : > { %7872 = vperm.xlu0 %13661, %v7862_v34   ;;  %12920 = vmatprep.subr.bf16.mxu1 %v12919_v2  ;;  %v5586_v38 = vsel %vm5584_vm13, %v13816_v22, %v13817_v6 }
 0x6b7   : > { %v13820_v54 = vpop.permute.xlu1 %13819  ;;  %5276 = vmatprep.mubr.f32.mxu1 %v22195_v48  ;;  %v5452_v53 = vsel %vm5449_vm12, %v13807_v33, %v13796_v14  ;;  %v5450_v57 = vsel %vm5449_vm12, %v13806_v4, %v13801_v12  ;;  %vm7068_vm12 = vcmask 572416  }
 0x6b8   : > { %v13810_v30 = vpop.permute.xlu0 %13809  ;;  %v12921_v59 = vpack.c.bf16 %v5452_v53, %v5450_v57  ;;  %v13822_v29 = vunpack.i.h.bf16 %v13820_v54  ;;  %v13821_v25 = vunpack.i.l.bf16 %v13820_v54 }
 0x6b9   : > { %11085 = vmatmul.mubr.msk.f32.gmra.mrb[26].mxu1 %vm4563_vm7, %v11081_v45  ;;  %v13812_v58 = vunpack.i.h.bf16 %v13810_v30  ;;  %v13811_v19 = vunpack.i.l.bf16 %v13810_v30 }
 0x6ba   : > { %5282 = vmatprep.mubr.f32.mxu1 %v22195_v48  ;;  %v5585_v27 = vsel %vm5584_vm13, %v13821_v25, %v13816_v22  ;;  %v11104_v25 = vld [vmem:[%s21061_s4 + $0x108] sm:$0xff] }
 0x6bb   : > { %v19049_v46 = vpop.permute.xlu1 %13824  ;;  %v5588_v18 = vsel %vm5584_vm13, %v13811_v19, %v13812_v58  ;;  %v5587_v37 = vsel %vm5584_vm13, %v13822_v29, %v13811_v19  ;;  %vm6123_vm13 = vcmask 736256  }
 0x6bc   : > { %v19053_v41 = vpop.permute.xlu0 %13829  ;;  %v12923_v7 = vpack.c.bf16 %v5588_v18, %v5586_v38  ;;  %v13827_v63 = vunpack.i.h.bf16 %v19049_v46  ;;  %v13826_v15 = vunpack.i.l.bf16 %v19049_v46  ;;  %v12925_v5 = vpack.c.bf16 %v5587_v37, %v5585_v27 }
 0x6bd   : > { %11086 = vmatmul.mubr.msk.f32.gmra.mrb[28].mxu1 %vm4563_vm7, %v11082_v3  ;;  %v13832_v40 = vunpack.i.h.bf16 %v19053_v41  ;;  %v13831_v20 = vunpack.i.l.bf16 %v19053_v41  ;;  %v11103_v3 = vld [vmem:[%s21061_s4 + $0x100] sm:$0xff] }
 0x6be   : > { %5399 = vmatprep.mubr.f32.mxu1 %v22195_v48  ;;  %v5723_v47 = vsel %vm5719_vm14, %v13826_v15, %v13827_v63 }
 0x6bf   : > { %v19063_v32 = vpop.permute.xlu1 %13844  ;;  %v5721_v28 = vsel %vm5719_vm14, %v13831_v20, %v13832_v40 }
 0x6c0   : > { %v19065_v60 = vpop.permute.xlu0 %13834  ;;  %v12927_v0 = vpack.c.bf16 %v5723_v47, %v5721_v28  ;;  %v13847_v61 = vunpack.i.h.bf16 %v19063_v32  ;;  %v13846_v12 = vunpack.i.l.bf16 %v19063_v32 }
 0x6c1   : > { %11091 = vmatmul.mubr.msk.f32.vlgmr.msra.gmra.mrb[22].mxu1 %vm4563_vm7, %v11087_v31  ;;  %v13837_v14 = vunpack.i.h.bf16 %v19065_v60  ;;  %v13836_v1 = vunpack.i.l.bf16 %v19065_v60 }
 0x6c2   : > { %12922 = vmatpush1.bf16.msra.mxu1 %v12921_v59  ;;  %5405 = vmatprep.mubr.f32.mxu1 %v22195_v48  ;;  %v5855_v46 = vsel %vm22203_vm10, %v13846_v12, %v13847_v61  ;;  %vm7473_vm10 = vcmask 441344  }
 0x6c3   : > { %v19073_v11 = vpop.permute.xlu1 %13849  ;;  %12924 = vmatprep.subr.bf16.mxu1 %v12923_v7  ;;  %v5722_v2 = vsel %vm5719_vm14, %v13837_v14, %v13826_v15  ;;  %v5720_v45 = vsel %vm5719_vm14, %v13836_v1, %v13831_v20  ;;  %vm7203_vm14 = vcmask 457728  }
 0x6c4   : > { %v19075_v10 = vpop.permute.xlu0 %13839  ;;  %v12929_v22 = vpack.c.bf16 %v5722_v2, %v5720_v45 }
 0x6c5   : > { %11092 = vmatmul.mubr.msk.f32.gmra.mrb[24].mxu1 %vm4563_vm7, %v11088_v56  ;;  %v13842_v52 = vunpack.i.h.bf16 %v19075_v10  ;;  %v13841_v23 = vunpack.i.l.bf16 %v19075_v10 }
 0x6c6   : > { %5411 = vmatprep.mubr.f32.mxu1 %v22195_v48 }
 0x6c7   : > { %v19082_v26 = vpop.permute.xlu1 %13854  ;;  %v5857_v6 = vsel %vm22204_vm5, %v13841_v23, %v13842_v52  ;;  %v13851_v52 = vunpack.i.l.bf16 %v19073_v11  ;;  %vm7608_vm5 = vcmask 433152  }
 0x6c8   : > { %v19084_v13 = vpop.permute.xlu0 %13859  ;;  %v12931_v29 = vpack.c.bf16 %v5857_v6, %v5855_v46 }
 0x6c9   : > { %11093 = vmatmul.mubr.msk.f32.gmra.mrb[26].mxu1 %vm4563_vm7, %v11089_v17  ;;  %v13862_v2 = vunpack.i.h.bf16 %v19084_v13  ;;  %v13861_v45 = vunpack.i.l.bf16 %v19084_v13 }
 0x6ca   : > { %5417 = vmatprep.mubr.f32.mxu1 %v22195_v48 }
 0x6cb   : > { %v19095_v16 = vpop.permute.xlu1 %13869  ;;  %v5990_v32 = vsel %vm5988_vm0, %v13861_v45, %v13862_v2 }
 0x6cc   : > { %v19097_v36 = vpop.permute.xlu0 %13864 }
 0x6cd   : > { %11094 = vmatmul.mubr.msk.f32.gmra.mrb[28].mxu1 %vm4563_vm7, %v11090_v39 }
 0x6ce   : > { %5534 = vmatprep.mubr.f32.mxu1 %v22195_v48 }
 0x6cf   : > { %v19108_v51 = vpop.permute.xlu1 %13879 }
 0x6d0   : > { %v19110_v35 = vpop.permute.xlu0 %13874 }
 0x6d1   : > { %11099 = vmatmul.mubr.msk.f32.vlgmr.msra.gmra.mrb[22].mxu1 %vm4563_vm7, %v11095_v42  ;;  %v11105_v42 = vld [vmem:[%s21061_s4 + $0x110] sm:$0xff] }
 0x6d2   : > { %12926 = vmatpush1.bf16.msra.mxu1 %v12925_v5  ;;  %5540 = vmatprep.mubr.f32.mxu1 %v22195_v48 }
 0x6d3   : > { %v19117_v55 = vpop.permute.xlu1 %13889  ;;  %12928 = vmatprep.subr.bf16.mxu1 %v12927_v0 }
 0x6d4   : > { %v19119_v8 = vpop.permute.xlu0 %13884 }
 0x6d5   : > { %11100 = vmatmul.mubr.msk.f32.gmra.mrb[24].mxu1 %vm4563_vm7, %v11096_v9 }
 0x6d6   : > { %5546 = vmatprep.mubr.f32.mxu1 %v22195_v48 }
 0x6d7   : > { %v13900_v62 = vpop.permute.xlu1 %13899 }
 0x6d8   : > { %v19128_v24 = vpop.permute.xlu0 %13894  ;;  %v13902_v34 = vunpack.i.h.bf16 %v13900_v62  ;;  %v13901_v49 = vunpack.i.l.bf16 %v13900_v62 }
 0x6d9   : > { %11101 = vmatmul.mubr.msk.f32.gmra.mrb[26].mxu1 %vm4563_vm7, %v11097_v43  ;;  %v13852_v43 = vunpack.i.h.bf16 %v19073_v11  ;;  %v11106_v11 = vld [vmem:[%s21061_s4 + $0x118] sm:$0xff] }
 0x6da   : > { %5552 = vmatprep.mubr.f32.mxu1 %v22195_v48  ;;  %v19159_v57 = vsel %vm6393_vm8, %v13901_v49, %v13902_v34 }
 0x6db   : > { %v13910_v50 = vpop.permute.xlu1 %13909 }
 0x6dc   : > { %v13912_v54 = vunpack.i.h.bf16 %v13910_v50  ;;  %v13911_v30 = vunpack.i.l.bf16 %v13910_v50  ;;  %v13905_v33 = vpop.permute.xlu0 %13904  ;;  %v13856_v50 = vunpack.i.l.bf16 %v19082_v26 }
 0x6dd   : > { %v13907_v4 = vunpack.i.h.bf16 %v13905_v33  ;;  %v13906_v58 = vunpack.i.l.bf16 %v13905_v33  ;;  %11102 = vmatmul.mubr.msk.f32.gmra.mrb[28].mxu1 %vm4563_vm7, %v11098_v21  ;;  %v13857_v21 = vunpack.i.h.bf16 %v19082_v26 }
 0x6de   : > { %v19143_v19 = vsel %vm6393_vm8, %v13911_v30, %v13901_v49  ;;  %5669 = vmatprep.mubr.f32.mxu1 %v22195_v48 }
 0x6df   : > { %v19156_v41 = vsel %vm6393_vm8, %v13912_v54, %v13906_v58  ;;  %v13920_v53 = vpop.permute.xlu1 %13919  ;;  %v19162_v31 = vsel %vm6393_vm8, %v13906_v58, %v13907_v4  ;;  %v5992_v10 = vsel %vm5988_vm0, %v13856_v50, %v13857_v21  ;;  %vm7338_vm8 = vcmask 449536  }
 0x6e0   : > { %v13922_v59 = vunpack.i.h.bf16 %v13920_v53  ;;  %v13921_v60 = vunpack.i.l.bf16 %v13920_v53  ;;  %v13915_v38 = vpop.permute.xlu0 %13914 }
 0x6e1   : > { %v13917_v56 = vunpack.i.h.bf16 %v13915_v38  ;;  %v13916_v17 = vunpack.i.l.bf16 %v13915_v38  ;;  %11107 = vmatmul.mubr.msk.f32.vlgmr.msra.gmra.mrb[22].mxu1 %vm4563_vm7, %v11103_v3 }
 0x6e2   : > { %12930 = vmatpush1.bf16.msra.mxu1 %v12929_v22  ;;  %5675 = vmatprep.mubr.f32.mxu1 %v22195_v48  ;;  %v19174_v63 = vsel %vm6528_vm15, %v13921_v60, %v13922_v59  ;;  %v5854_v59 = vsel %vm22205_vm6, %v13851_v52, %v13846_v12  ;;  %vm7901_vm6 = vcmask 1048544  }
 0x6e3   : > { %v13930_v15 = vpop.permute.xlu1 %13929  ;;  %12932 = vmatprep.subr.bf16.mxu1 %v12931_v29  ;;  %v19177_v40 = vsel %vm6528_vm15, %v13916_v17, %v13917_v56  ;;  %7902 = vst.msk [vmem:[#allocation4 + $0x8] sm:$0xff] %vm7901_vm6, %v22195_v48  ;;  %7904 = vst.msk [vmem:[#allocation4 + $0x20] sm:$0xff] %vm7901_vm6, %v22195_v48 }
 0x6e4   : > { %v13925_v20 = vpop.permute.xlu0 %13924  ;;  %v13932_v28 = vunpack.i.h.bf16 %v13930_v15  ;;  %v13931_v47 = vunpack.i.l.bf16 %v13930_v15  ;;  %7906 = vst.msk [vmem:[#allocation4 + $0x38] sm:$0xff] %vm7901_vm6, %v22195_v48  ;;  %7908 = vst.msk [vmem:[#allocation4 + $0x50] sm:$0xff] %vm7901_vm6, %v22195_v48  ;;  %vm8207_vm6 = vcmask 400384  }
 0x6e5   : > { %v13927_v27 = vunpack.i.h.bf16 %v13925_v20  ;;  %v13926_v37 = vunpack.i.l.bf16 %v13925_v20  ;;  %11108 = vmatmul.mubr.msk.f32.gmra.mrb[24].mxu1 %vm4563_vm7, %v11104_v25 }
 0x6e6   : > { %5681 = vmatprep.mubr.f32.mxu1 %v22195_v48  ;;  %v19212_v4 = vsel %vm6663_vm2, %v13931_v47, %v13932_v28  ;;  %v11112_v28 = vld [vmem:[%s21061_s4 + $0x128] sm:$0xff] }
 0x6e7   : > { %v19187_v5 = vsel %vm6528_vm15, %v13927_v27, %v13921_v60  ;;  %v19190_v0 = vsel %vm6528_vm15, %v13926_v37, %v13916_v17  ;;  %v13940_v9 = vpop.permute.xlu1 %13939  ;;  %v5856_v60 = vsel %vm22206_vm9, %v13852_v43, %v13841_v23  ;;  %v11111_v17 = vld [vmem:[%s21061_s4 + $0x120] sm:$0xff]  ;;  %vm6258_vm15 = vcmask 728064  }
 0x6e8   : > { %v13942_v14 = vunpack.i.h.bf16 %v13940_v9  ;;  %v13941_v1 = vunpack.i.l.bf16 %v13940_v9  ;;  %v13935_v61 = vpop.permute.xlu0 %13934  ;;  %v12933_v25 = vpack.c.bf16 %v5856_v60, %v5854_v59  ;;  %vm14188_vm9 = vmmov 1  }
 0x6e9   : > { %v13937_v34 = vunpack.i.h.bf16 %v13935_v61  ;;  %v13936_v49 = vunpack.i.l.bf16 %v13935_v61  ;;  %11109 = vmatmul.mubr.msk.f32.gmra.mrb[26].mxu1 %vm4563_vm7, %v11105_v42  ;;  %v12935_v42 = vpack.c.bf16 %v5992_v10, %v5990_v32 }
 0x6ea   : > { %v19202_v54 = vsel %vm6663_vm2, %v13941_v1, %v13931_v47  ;;  %5687 = vmatprep.mubr.f32.mxu1 %v22195_v48 }
 0x6eb   : > { %v19209_v30 = vsel %vm6663_vm2, %v13942_v14, %v13936_v49  ;;  %v13950_v33 = vpop.permute.xlu1 %13949  ;;  %v19215_v58 = vsel %vm6663_vm2, %v13936_v49, %v13937_v34  ;;  %vm22208_vm2 = vcmask 1039360  }
 0x6ec   : > { %v13952_v46 = vunpack.i.h.bf16 %v13950_v33  ;;  %v13951_v6 = vunpack.i.l.bf16 %v13950_v33  ;;  %v13945_v22 = vpop.permute.xlu0 %13944  ;;  %v11113_v33 = vld [vmem:[%s21061_s4 + $0x130] sm:$0xff] }
 0x6ed   : > { %v13947_v38 = vunpack.i.h.bf16 %v13945_v22  ;;  %v13946_v56 = vunpack.i.l.bf16 %v13945_v22  ;;  %11110 = vmatmul.mubr.msk.f32.gmra.mrb[28].mxu1 %vm4563_vm7, %v11106_v11 }
 0x6ee   : > { %5804 = vmatprep.mubr.f32.mxu1 %v22195_v48  ;;  %v19239_v12 = vsel %vm6798_vm1, %v13951_v6, %v13952_v46  ;;  %v13872_v46 = vunpack.i.h.bf16 %v19095_v16 }
 0x6ef   : > { %v13960_v23 = vpop.permute.xlu1 %13959  ;;  %v19242_v29 = vsel %vm6798_vm1, %v13946_v56, %v13947_v38 }
 0x6f0   : > { %v13955_v15 = vpop.permute.xlu0 %13954  ;;  %v13962_v47 = vunpack.i.h.bf16 %v13960_v23  ;;  %v13961_v9 = vunpack.i.l.bf16 %v13960_v23  ;;  %v13867_v23 = vunpack.i.h.bf16 %v19097_v36 }
 0x6f1   : > { %v13957_v27 = vunpack.i.h.bf16 %v13955_v15  ;;  %v13956_v37 = vunpack.i.l.bf16 %v13955_v15  ;;  %11115 = vmatmul.mubr.msk.f32.vlgmr.msra.gmra.mrb[22].mxu1 %vm4563_vm7, %v11111_v17 }
 0x6f2   : > { %12934 = vmatpush1.bf16.msra.mxu1 %v12933_v25  ;;  %5810 = vmatprep.mubr.f32.mxu1 %v22195_v48  ;;  %v19269_v59 = vsel %vm6933_vm11, %v13961_v9, %v13962_v47  ;;  %v13866_v25 = vunpack.i.l.bf16 %v19097_v36  ;;  %v11114_v47 = vld [vmem:[%s21061_s4 + $0x138] sm:$0xff] }
 0x6f3   : > { %v19252_v43 = vsel %vm6798_vm1, %v13957_v27, %v13951_v6  ;;  %v19255_v14 = vsel %vm6798_vm1, %v13956_v37, %v13946_v56  ;;  %v13970_v1 = vpop.permute.xlu1 %13969  ;;  %12936 = vmatprep.subr.bf16.mxu1 %v12935_v42  ;;  %v13871_v37 = vunpack.i.l.bf16 %v19095_v16  ;;  %v13877_v42 = vunpack.i.h.bf16 %v19110_v35  ;;  %v11122_v16 = vld [vmem:[%s21061_s4 + $0x158] sm:$0xff]  ;;  %vm22209_vm1 = vmmov %vm22208_vm2 }
 0x6f4   : > { %v13972_v52 = vunpack.i.h.bf16 %v13970_v1  ;;  %v13971_v21 = vunpack.i.l.bf16 %v13970_v1  ;;  %v13965_v34 = vpop.permute.xlu0 %13964 }
 0x6f5   : > { %v13967_v49 = vunpack.i.h.bf16 %v13965_v34  ;;  %v13966_v2 = vunpack.i.l.bf16 %v13965_v34  ;;  %11116 = vmatmul.mubr.msk.f32.gmra.mrb[24].mxu1 %vm4563_vm7, %v11112_v28  ;;  %v13876_v28 = vunpack.i.l.bf16 %v19110_v35  ;;  %v5991_v34 = vsel %vm5988_vm0, %v13867_v23, %v13856_v50  ;;  %v11127_v35 = vld [vmem:[%s21061_s4 + $0x160] sm:$0xff] }
 0x6f6   : > { %v19260_v11 = vsel %vm6933_vm11, %v13971_v21, %v13961_v9  ;;  %5816 = vmatprep.mubr.f32.mxu1 %v22195_v48  ;;  %v6125_v26 = vsel %vm6123_vm13, %v13871_v37, %v13872_v46 }
 0x6f7   : > { %v19267_v6 = vsel %vm6933_vm11, %v13972_v52, %v13966_v2  ;;  %v13980_v22 = vpop.permute.xlu1 %13979  ;;  %v19271_v60 = vsel %vm6933_vm11, %v13966_v2, %v13967_v49  ;;  %v5989_v49 = vsel %vm5988_vm0, %v13866_v25, %v13861_v45  ;;  %v6127_v13 = vsel %vm6123_vm13, %v13876_v28, %v13877_v42 }
 0x6f8   : > { %v13982_v56 = vunpack.i.h.bf16 %v13980_v22  ;;  %v13981_v17 = vunpack.i.l.bf16 %v13980_v22  ;;  %v13975_v32 = vpop.permute.xlu0 %13974  ;;  %v11119_v22 = vld [vmem:[%s21061_s4 + $0x140] sm:$0xff]  ;;  %v12937_v25 = vpack.c.bf16 %v5991_v34, %v5989_v49  ;;  %v12939_v42 = vpack.c.bf16 %v6127_v13, %v6125_v26 }
 0x6f9   : > { %v13977_v15 = vunpack.i.h.bf16 %v13975_v32  ;;  %v13976_v27 = vunpack.i.l.bf16 %v13975_v32  ;;  %11117 = vmatmul.mubr.msk.f32.gmra.mrb[26].mxu1 %vm4563_vm7, %v11113_v33  ;;  %vm7743_vm0 = vcmask 424960  }
 0x6fa   : > { %5822 = vmatprep.mubr.f32.mxu1 %v22195_v48  ;;  %v19288_v9 = vsel %vm7068_vm12, %v13981_v17, %v13982_v56 }
 0x6fb   : > { %v13990_v36 = vpop.permute.xlu1 %13989  ;;  %v19291_v1 = vsel %vm7068_vm12, %v13976_v27, %v13977_v15 }
 0x6fc   : > { %v13985_v52 = vpop.permute.xlu0 %13984  ;;  %v13992_v50 = vunpack.i.h.bf16 %v13990_v36  ;;  %v13991_v45 = vunpack.i.l.bf16 %v13990_v36 }
 0x6fd   : > { %v13987_v2 = vunpack.i.h.bf16 %v13985_v52  ;;  %v13986_v33 = vunpack.i.l.bf16 %v13985_v52  ;;  %11118 = vmatmul.mubr.msk.f32.gmra.mrb[28].mxu1 %vm4563_vm7, %v11114_v47 }
 0x6fe   : > { %5938 = vmatprep.mubr.f32.mxu1 %v22195_v48  ;;  %v19332_v49 = vsel %vm7203_vm14, %v13991_v45, %v13992_v50 }
 0x6ff   : > { %v19313_v56 = vsel %vm7068_vm12, %v13987_v2, %v13981_v17  ;;  %v19316_v32 = vsel %vm7068_vm12, %v13986_v33, %v13976_v27  ;;  %v14000_v23 = vpop.permute.xlu1 %13999  ;;  %v11120_v17 = vld [vmem:[%s21061_s4 + $0x148] sm:$0xff]  ;;  %vm22231_vm12 = vmmov %vm22209_vm1 }
 0x700   : > { %v14002_v47 = vunpack.i.h.bf16 %v14000_v23  ;;  %v14001_v52 = vunpack.i.l.bf16 %v14000_v23  ;;  %v13995_v46 = vpop.permute.xlu0 %13994  ;;  %v13886_v23 = vunpack.i.l.bf16 %v19119_v8 }
 0x701   : > { %v13997_v21 = vunpack.i.h.bf16 %v13995_v46  ;;  %v13996_v38 = vunpack.i.l.bf16 %v13995_v46  ;;  %11123 = vmatmul.mubr.msk.f32.vlgmr.msra.gmra.mrb[22].mxu1 %vm4563_vm7, %v11119_v22  ;;  %v13882_v46 = vunpack.i.h.bf16 %v19108_v51 }
 0x702   : > { %v19322_v36 = vsel %vm7203_vm14, %v14001_v52, %v13991_v45  ;;  %12938 = vmatpush1.bf16.msra.mxu1 %v12937_v25  ;;  %5944 = vmatprep.mubr.f32.mxu1 %v22195_v48  ;;  %v13881_v25 = vunpack.i.l.bf16 %v19108_v51  ;;  %v13887_v51 = vunpack.i.h.bf16 %v19119_v8 }
 0x703   : > { %v19329_v27 = vsel %vm7203_vm14, %v14002_v47, %v13996_v38  ;;  %v14010_v34 = vpop.permute.xlu1 %14009  ;;  %12940 = vmatprep.subr.bf16.mxu1 %v12939_v42  ;;  %v19335_v2 = vsel %vm7203_vm14, %v13996_v38, %v13997_v21  ;;  %v11121_v38 = vld [vmem:[%s21061_s4 + $0x150] sm:$0xff]  ;;  %v6126_v15 = vsel %vm6123_vm13, %v13882_v46, %v13876_v28  ;;  %vm22233_vm14 = vmmov %vm22209_vm1 }
 0x704   : > { %v14012_v22 = vunpack.i.h.bf16 %v14010_v34  ;;  %v14011_v26 = vunpack.i.l.bf16 %v14010_v34  ;;  %v14005_v13 = vpop.permute.xlu0 %14004  ;;  %v6124_v34 = vsel %vm6123_vm13, %v13881_v25, %v13871_v37  ;;  %v6260_v28 = vsel %vm6258_vm15, %v13886_v23, %v13887_v51  ;;  %vm22232_vm13 = vmmov %vm22209_vm1 }
 0x705   : > { %v14007_v47 = vunpack.i.h.bf16 %v14005_v13  ;;  %v14006_v52 = vunpack.i.l.bf16 %v14005_v13  ;;  %11124 = vmatmul.mubr.msk.f32.gmra.mrb[24].mxu1 %vm4563_vm7, %v11120_v17 }
 0x706   : > { %5950 = vmatprep.mubr.f32.mxu1 %v22195_v48  ;;  %v19348_v21 = vsel %vm7338_vm8, %v14011_v26, %v14012_v22  ;;  %v13892_v22 = vunpack.i.h.bf16 %v19117_v55 }
 0x707   : > { %v14020_v50 = vpop.permute.xlu1 %14019  ;;  %v19351_v45 = vsel %vm7338_vm8, %v14006_v52, %v14007_v47  ;;  %v13891_v47 = vunpack.i.l.bf16 %v19117_v55  ;;  %v11135_v55 = vld [vmem:[%s21061_s4 + $0x180] sm:$0xff] }
 0x708   : > { %v14015_v42 = vpop.permute.xlu0 %14014  ;;  %v14022_v37 = vunpack.i.h.bf16 %v14020_v50  ;;  %v14021_v25 = vunpack.i.l.bf16 %v14020_v50 }
 0x709   : > { %v14017_v13 = vunpack.i.h.bf16 %v14015_v42  ;;  %v14016_v33 = vunpack.i.l.bf16 %v14015_v42  ;;  %11125 = vmatmul.mubr.msk.f32.gmra.mrb[26].mxu1 %vm4563_vm7, %v11121_v38 }
 0x70a   : > { %5956 = vmatprep.mubr.f32.mxu1 %v22195_v48  ;;  %v19397_v50 = vsel %vm7473_vm10, %v14021_v25, %v14022_v37 }
 0x70b   : > { %v19369_v42 = vsel %vm7338_vm8, %v14017_v13, %v14011_v26  ;;  %v19372_v38 = vsel %vm7338_vm8, %v14016_v33, %v14006_v52  ;;  %v14030_v17 = vpop.permute.xlu1 %14029  ;;  %v12941_v33 = vpack.c.bf16 %v6126_v15, %v6124_v34  ;;  %vm22234_vm8 = vmmov %vm22209_vm1 }
 0x70c   : > { %v14032_v61 = vunpack.i.h.bf16 %v14030_v17  ;;  %v14031_v20 = vunpack.i.l.bf16 %v14030_v17  ;;  %v14025_v3 = vpop.permute.xlu0 %14024 }
 0x70d   : > { %v14027_v53 = vunpack.i.h.bf16 %v14025_v3  ;;  %v14026_v62 = vunpack.i.l.bf16 %v14025_v3  ;;  %11126 = vmatmul.mubr.msk.f32.gmra.mrb[28].mxu1 %vm4563_vm7, %v11122_v16  ;;  %v6262_v3 = vsel %vm6258_vm15, %v13891_v47, %v13892_v22  ;;  %v13896_v22 = vunpack.i.l.bf16 %v19128_v24 }
 0x70e   : > { %v19381_v26 = vsel %vm7473_vm10, %v14031_v20, %v14021_v25  ;;  %6073 = vmatprep.mubr.f32.mxu1 %v22195_v48 }
 0x70f   : > { %v19394_v52 = vsel %vm7473_vm10, %v14032_v61, %v14026_v62  ;;  %v14040_v20 = vpop.permute.xlu1 %14039  ;;  %v19400_v46 = vsel %vm7473_vm10, %v14026_v62, %v14027_v53  ;;  %v12943_v61 = vpack.c.bf16 %v6262_v3, %v6260_v28  ;;  %v11128_v62 = vld [vmem:[%s21061_s4 + $0x168] sm:$0xff]  ;;  %vm14190_vm10 = vmmov 0  }
 0x710   : > { %v14042_v13 = vunpack.i.h.bf16 %v14040_v20  ;;  %v14041_v51 = vunpack.i.l.bf16 %v14040_v20  ;;  %v14035_v16 = vpop.permute.xlu0 %14034 }
 0x711   : > { %v14037_v15 = vunpack.i.h.bf16 %v14035_v16  ;;  %v14036_v34 = vunpack.i.l.bf16 %v14035_v16  ;;  %11131 = vmatmul.mubr.msk.f32.vlgmr.msra.gmra.mrb[22].mxu1 %vm4563_vm7, %v11127_v35 }
 0x712   : > { %12942 = vmatpush1.bf16.msra.mxu1 %v12941_v33  ;;  %6079 = vmatprep.mubr.f32.mxu1 %v22195_v48  ;;  %v19412_v53 = vsel %vm7608_vm5, %v14041_v51, %v14042_v13  ;;  %v11129_v33 = vld [vmem:[%s21061_s4 + $0x170] sm:$0xff] }
 0x713   : > { %v14050_v37 = vpop.permute.xlu1 %14049  ;;  %12944 = vmatprep.subr.bf16.mxu1 %v12943_v61  ;;  %v19415_v25 = vsel %vm7608_vm5, %v14036_v34, %v14037_v15 }
 0x714   : > { %v14045_v20 = vpop.permute.xlu0 %14044  ;;  %v14052_v13 = vunpack.i.h.bf16 %v14050_v37  ;;  %v14051_v16 = vunpack.i.l.bf16 %v14050_v37 }
 0x715   : > { %v14047_v28 = vunpack.i.h.bf16 %v14045_v20  ;;  %v14046_v3 = vunpack.i.l.bf16 %v14045_v20  ;;  %11132 = vmatmul.mubr.msk.f32.gmra.mrb[24].mxu1 %vm4563_vm7, %v11128_v62  ;;  %v13897_v62 = vunpack.i.h.bf16 %v19128_v24 }
 0x716   : > { %6085 = vmatprep.mubr.f32.mxu1 %v22195_v48 }
 0x717   : > { %v19425_v61 = vsel %vm7608_vm5, %v14047_v28, %v14041_v51  ;;  %v19428_v15 = vsel %vm7608_vm5, %v14046_v3, %v14036_v34  ;;  %v14060_v17 = vpop.permute.xlu1 %14059  ;;  %v11130_v51 = vld [vmem:[%s21061_s4 + $0x178] sm:$0xff]  ;;  %v19440_v3 = vsel %vm7743_vm0, %v14051_v16, %v14052_v13  ;;  %v6261_v7 = vsel %vm6258_vm15, %v13897_v62, %v13891_v47  ;;  %vm22235_vm5 = vmmov %vm22209_vm1 }
 0x718   : > { %22207 = vst [vmem:[#allocation165_spill] sm:$0xff] %v19428_v15  ;;  %v14055_v35 = vpop.permute.xlu0 %14054  ;;  %v14062_v34 = vunpack.i.h.bf16 %v14060_v17  ;;  %v14061_v37 = vunpack.i.l.bf16 %v14060_v17  ;;  %v6259_v17 = vsel %vm6258_vm15, %v13896_v22, %v13886_v23  ;;  %vm8211_vm15 = vcmask 1040384  }
 0x719   : > { %v14057_v10 = vunpack.i.h.bf16 %v14055_v35  ;;  %v14056_v39 = vunpack.i.l.bf16 %v14055_v35  ;;  %11133 = vmatmul.mubr.msk.f32.gmra.mrb[26].mxu1 %vm4563_vm7, %v11129_v33  ;;  %v12945_v62 = vpack.c.bf16 %v6261_v7, %v6259_v17  ;;  %v11137_v7 = vld [vmem:[%s21061_s4 + $0x190] sm:$0xff]  ;;  %v22214_v17 = vpack.c.bf16 %v19215_v58, %v19212_v4  ;;  %v11160_v58 = vld [vmem:[%s21061_s4 + $0x1e8] sm:$0xff] }
 0x71a   : > { %6091 = vmatprep.mubr.f32.mxu1 %v22195_v48  ;;  %v4557_v8 = vsel %vm22208_vm2, %v14061_v37, %v14062_v34  ;;  %v22211_v37 = vpack.c.bf16 %v19156_v41, %v19143_v19  ;;  %v11146_v19 = vld [vmem:[%s21061_s4 + $0x1b8] sm:$0xff]  ;;  %v11151_v41 = vld [vmem:[%s21061_s4 + $0x1c0] sm:$0xff]  ;;  %v22215_v4 = vpack.c.bf16 %v19209_v30, %v19202_v54 }
 0x71b   : > { %v14070_v28 = vpop.permute.xlu1 %14069  ;;  %v19443_v20 = vsel %vm7743_vm0, %v14056_v39, %v14057_v10  ;;  %v11162_v54 = vld [vmem:[%s21061_s4 + $0x1f8] sm:$0xff]  ;;  %v11167_v30 = vld [vmem:[%s21061_s4 + $0x200] sm:$0xff] }
 0x71c   : > { %v14072_v24 = vunpack.i.h.bf16 %v14070_v28  ;;  %v14071_v18 = vunpack.i.l.bf16 %v14070_v28  ;;  %v14065_v35 = vpop.permute.xlu0 %14064  ;;  %v12987_v33 = vpack.c.bf16 %v19443_v20, %v19440_v3  ;;  %v11223_v20 = vld [vmem:[%s21061_s4 + $0x2e0] sm:$0xff]  ;;  %v11224_v3 = vld [vmem:[%s21061_s4 + $0x2e8] sm:$0xff] }
 0x71d   : > { %v14067_v15 = vunpack.i.h.bf16 %v14065_v35  ;;  %v14066_v13 = vunpack.i.l.bf16 %v14065_v35  ;;  %11134 = vmatmul.mubr.msk.f32.gmra.mrb[28].mxu1 %vm4563_vm7, %v11130_v51  ;;  %v22212_v35 = vpack.c.bf16 %v19174_v63, %v19177_v40  ;;  %v22213_v63 = vpack.c.bf16 %v19187_v5, %v19190_v0  ;;  %v11152_v40 = vld [vmem:[%s21061_s4 + $0x1c8] sm:$0xff]  ;;  %v11154_v5 = vld [vmem:[%s21061_s4 + $0x1d8] sm:$0xff]  ;;  %v11159_v0 = vld [vmem:[%s21061_s4 + $0x1e0] sm:$0xff] }
 0x71e   : > { %v19455_v10 = vsel %vm7743_vm0, %v14071_v18, %v14051_v16  ;;  %v19458_v28 = vsel %vm7743_vm0, %v14072_v24, %v14056_v39  ;;  %6208 = vmatprep.mubr.f32.mxu1 %v22195_v48  ;;  %v11136_v39 = vld [vmem:[%s21061_s4 + $0x188] sm:$0xff]  ;;  %v22210_v16 = vpack.c.bf16 %v19162_v31, %v19159_v57  ;;  %v11143_v31 = vld [vmem:[%s21061_s4 + $0x1a0] sm:$0xff]  ;;  %vm22236_vm0 = vmmov %vm22209_vm1 }
 0x71f   : > { %v12989_v23 = vpack.c.bf16 %v19458_v28, %v19455_v10  ;;  %v12891_v47 = vpack.c.bf16 %v14067_v15, %v14062_v34  ;;  %v4558_v22 = vsel %vm22209_vm1, %v14066_v13, %v14067_v15  ;;  %v11138_v15 = vld [vmem:[%s21061_s4 + $0x198] sm:$0xff]  ;;  %v11144_v24 = vld [vmem:[%s21061_s4 + $0x1a8] sm:$0xff]  ;;  %v11153_v13 = vld [vmem:[%s21061_s4 + $0x1d0] sm:$0xff] }
 0x720   : > { %v12893_v18 = vpack.c.bf16 %v4558_v22, %v4557_v8  ;;  %v11161_v8 = vld [vmem:[%s21061_s4 + $0x1f0] sm:$0xff]  ;;  %v11044_v22 = vld [vmem:[%s21061_s4 + $0x28] sm:$0xff]  ;;  %v11226_v10 = vld [vmem:[%s21061_s4 + $0x2f8] sm:$0xff] }
 0x721   : > { %12892 = vmatprep.subr.bf16.mxu0 %v12891_v47  ;;  %11139 = vmatmul.mubr.msk.f32.vlgmr.msra.gmra.mrb[22].mxu1 %vm4563_vm7, %v11135_v55  ;;  %v22216_v55 = vpack.c.bf16 %v19239_v12, %v19242_v29  ;;  %v11043_v12 = vld [vmem:[%s21061_s4 + $0x20] sm:$0xff]  ;;  %v22217_v29 = vpack.c.bf16 %v19252_v43, %v19255_v14  ;;  %v11168_v47 = vld [vmem:[%s21061_s4 + $0x208] sm:$0xff]  ;;  %v11169_v43 = vld [vmem:[%s21061_s4 + $0x210] sm:$0xff] }
 0x722   : > { %12894 = vmatpush1.bf16.msra.mxu0 %v12893_v18  ;;  %12946 = vmatpush1.bf16.msra.mxu1 %v12945_v62  ;;  %v22218_v62 = vpack.c.bf16 %v19271_v60, %v19269_v59  ;;  %v11045_v14 = vld [vmem:[%s21061_s4 + $0x30] sm:$0xff]  ;;  %v11170_v59 = vld [vmem:[%s21061_s4 + $0x218] sm:$0xff]  ;;  %v11175_v18 = vld [vmem:[%s21061_s4 + $0x220] sm:$0xff] }
 0x723   : > { %12948 = vmatprep.subr.bf16.mxu1 %v22210_v16  ;;  %6214 = vmatprep.mubr.f32.mxu1 %v22195_v48  ;;  %v11046_v60 = vld [vmem:[%s21061_s4 + $0x38] sm:$0xff]  ;;  %v11176_v16 = vld [vmem:[%s21061_s4 + $0x228] sm:$0xff]  ;;  %v11231_v28 = vld [vmem:[%s21061_s4 + $0x300] sm:$0xff] }
 0x724   : > { %vm22237_vm2 = vmmov %vm22236_vm0 }
 0x725   : > { %11140 = vmatmul.mubr.msk.f32.gmra.mrb[24].mxu1 %vm4563_vm7, %v11136_v39  ;;  %11047 = vmatmul.mubr.msk.f32.vlgmr.msra.gmra.mrb[4].mxu0 %vm4563_vm7, %v11043_v12  ;;  %v22219_v39 = vpack.c.bf16 %v19267_v6, %v19260_v11  ;;  %v11178_v11 = vld [vmem:[%s21061_s4 + $0x238] sm:$0xff]  ;;  %v11183_v6 = vld [vmem:[%s21061_s4 + $0x240] sm:$0xff]  ;;  %vm22238_vm1 = vmmov %vm22236_vm0 }
 0x726   : > { %6220 = vmatprep.mubr.f32.mxu1 %v22195_v48  ;;  %4646 = vmatprep.mubr.f32.mxu0 %v22195_v48 }
 0x729   : > { %11141 = vmatmul.mubr.msk.f32.gmra.mrb[26].mxu1 %vm4563_vm7, %v11137_v7  ;;  %11048 = vmatmul.mubr.msk.f32.gmra.mrb[6].mxu0 %vm4563_vm7, %v11044_v22  ;;  %v22220_v7 = vpack.c.bf16 %v19288_v9, %v19291_v1  ;;  %v22221_v9 = vpack.c.bf16 %v19313_v56, %v19316_v32  ;;  %v11184_v1 = vld [vmem:[%s21061_s4 + $0x248] sm:$0xff]  ;;  %v11186_v56 = vld [vmem:[%s21061_s4 + $0x258] sm:$0xff]  ;;  %v11191_v32 = vld [vmem:[%s21061_s4 + $0x260] sm:$0xff] }
 0x72a   : > { %6226 = vmatprep.mubr.f32.mxu1 %v22195_v48  ;;  %4652 = vmatprep.mubr.f32.mxu0 %v22195_v48 }
 0x72d   : > { %v19486_v57 = vpop.permute.xlu0 %7867  ;;  %11142 = vmatmul.mubr.msk.f32.gmra.mrb[28].mxu1 %vm4563_vm7, %v11138_v15  ;;  %11049 = vmatmul.mubr.msk.f32.gmra.mrb[8].mxu0 %vm4563_vm7, %v11045_v14  ;;  %v11177_v15 = vld [vmem:[%s21061_s4 + $0x230] sm:$0xff] }
 0x72e   : > { %6343 = vmatprep.mubr.f32.mxu1 %v22195_v48  ;;  %4658 = vmatprep.mubr.f32.mxu0 %v22195_v48 }
 0x731   : > { %v19493_v51 = vpop.permute.xlu0 %7978  ;;  %11147 = vmatmul.mubr.msk.f32.vlgmr.msra.gmra.mrb[22].mxu1 %vm4563_vm7, %v11143_v31  ;;  %11050 = vmatmul.mubr.msk.f32.gmra.mrb[10].mxu0 %vm4563_vm7, %v11046_v60  ;;  %v22222_v31 = vpack.c.bf16 %v19335_v2, %v19332_v49  ;;  %v22223_v49 = vpack.c.bf16 %v19329_v27, %v19322_v36  ;;  %v11192_v2 = vld [vmem:[%s21061_s4 + $0x268] sm:$0xff]  ;;  %v11194_v36 = vld [vmem:[%s21061_s4 + $0x278] sm:$0xff]  ;;  %v11199_v27 = vld [vmem:[%s21061_s4 + $0x280] sm:$0xff] }
 0x732   : > { %v7999_v34 = vmax.f32 %v19023_v44, %v19493_v51  ;;  %12950 = vmatpush1.bf16.msra.mxu1 %v22211_v37  ;;  %6349 = vmatprep.mubr.f32.mxu1 %v22195_v48  ;;  %v11145_v44 = vld [vmem:[%s21061_s4 + $0x1b0] sm:$0xff]  ;;  %v22224_v37 = vpack.c.bf16 %v19348_v21, %v19351_v45  ;;  %v22225_v21 = vpack.c.bf16 %v19369_v42, %v19372_v38  ;;  %v11200_v45 = vld [vmem:[%s21061_s4 + $0x288] sm:$0xff]  ;;  %v11202_v42 = vld [vmem:[%s21061_s4 + $0x298] sm:$0xff] }
 0x733   : > { %12952 = vmatprep.subr.bf16.mxu1 %v22212_v35  ;;  %v22226_v35 = vpack.c.bf16 %v19400_v46, %v19397_v50  ;;  %v11207_v38 = vld [vmem:[%s21061_s4 + $0x2a0] sm:$0xff]  ;;  %v22227_v50 = vpack.c.bf16 %v19394_v52, %v19381_v26  ;;  %v11208_v46 = vld [vmem:[%s21061_s4 + $0x2a8] sm:$0xff]  ;;  %v11210_v26 = vld [vmem:[%s21061_s4 + $0x2b8] sm:$0xff] }
 0x734   : > { %8022 = vrot.lane.b32.xlu0 %v7999_v34, %s14169_s20  ;;  %v11185_v34 = vld [vmem:[%s21061_s4 + $0x250] sm:$0xff]  ;;  %v11215_v52 = vld [vmem:[%s21061_s4 + $0x2c0] sm:$0xff] }
 0x735   : > { %11148 = vmatmul.mubr.msk.f32.gmra.mrb[24].mxu1 %vm4563_vm7, %v11144_v24  ;;  %v11193_v24 = vld [vmem:[%s21061_s4 + $0x270] sm:$0xff] }
 0x736   : > { %6355 = vmatprep.mubr.f32.mxu1 %v22195_v48 }
 0x739   : > { %11149 = vmatmul.mubr.msk.f32.gmra.mrb[26].mxu1 %vm4563_vm7, %v11145_v44  ;;  %v11201_v44 = vld [vmem:[%s21061_s4 + $0x290] sm:$0xff] }
 0x73a   : > { %6361 = vmatprep.mubr.f32.mxu1 %v22195_v48 }
 0x73d   : > { %11150 = vmatmul.mubr.msk.f32.gmra.mrb[28].mxu1 %vm4563_vm7, %v11146_v19  ;;  %v22228_v19 = vpack.c.bf16 %v19412_v53, %v19415_v25  ;;  %v22229_v53 = vld [vmem:[#allocation165_spill] sm:$0xff] }
 0x73e   : > { %6478 = vmatprep.mubr.f32.mxu1 %v22195_v48  ;;  %v22230_v25 = vpack.c.bf16 %v19425_v61, %v22229_v53  ;;  %v11218_v61 = vld [vmem:[%s21061_s4 + $0x2d8] sm:$0xff] }
 0x741   : > { %11155 = vmatmul.mubr.msk.f32.vlgmr.msra.gmra.mrb[22].mxu1 %vm4563_vm7, %v11151_v41  ;;  %v11209_v41 = vld [vmem:[%s21061_s4 + $0x2b0] sm:$0xff] }
 0x742   : > { %12954 = vmatpush1.bf16.msra.mxu1 %v22213_v63  ;;  %6484 = vmatprep.mubr.f32.mxu1 %v22195_v48  ;;  %v11216_v63 = vld [vmem:[%s21061_s4 + $0x2c8] sm:$0xff] }
 0x743   : > { %12956 = vmatprep.subr.bf16.mxu1 %v22214_v17  ;;  %v11233_v17 = vld [vmem:[%s21061_s4 + $0x310] sm:$0xff] }
 0x745   : > { %11156 = vmatmul.mubr.msk.f32.gmra.mrb[24].mxu1 %vm4563_vm7, %v11152_v40  ;;  %v11217_v40 = vld [vmem:[%s21061_s4 + $0x2d0] sm:$0xff] }
 0x746   : > { %6490 = vmatprep.mubr.f32.mxu1 %v22195_v48 }
 0x749   : > { %11157 = vmatmul.mubr.msk.f32.gmra.mrb[26].mxu1 %vm4563_vm7, %v11153_v13  ;;  %v11234_v13 = vld [vmem:[%s21061_s4 + $0x318] sm:$0xff] }
 0x74a   : > { %6496 = vmatprep.mubr.f32.mxu1 %v22195_v48 }
 0x74d   : > { %11158 = vmatmul.mubr.msk.f32.gmra.mrb[28].mxu1 %vm4563_vm7, %v11154_v5 }
 0x74e   : > { %6613 = vmatprep.mubr.f32.mxu1 %v22195_v48 }
 0x751   : > { %11163 = vmatmul.mubr.msk.f32.vlgmr.msra.gmra.mrb[22].mxu1 %vm4563_vm7, %v11159_v0 }
 0x752   : > { %12958 = vmatpush1.bf16.msra.mxu1 %v22215_v4  ;;  %6619 = vmatprep.mubr.f32.mxu1 %v22195_v48 }
 0x753   : > { %12960 = vmatprep.subr.bf16.mxu1 %v22216_v55 }
 0x755   : > { %11164 = vmatmul.mubr.msk.f32.gmra.mrb[24].mxu1 %vm4563_vm7, %v11160_v58 }
 0x756   : > { %6625 = vmatprep.mubr.f32.mxu1 %v22195_v48 }
 0x759   : > { %11165 = vmatmul.mubr.msk.f32.gmra.mrb[26].mxu1 %vm4563_vm7, %v11161_v8 }
 0x75a   : > { %6631 = vmatprep.mubr.f32.mxu1 %v22195_v48 }
 0x75d   : > { %11166 = vmatmul.mubr.msk.f32.gmra.mrb[28].mxu1 %vm4563_vm7, %v11162_v54 }
 0x75e   : > { %6748 = vmatprep.mubr.f32.mxu1 %v22195_v48 }
 0x761   : > { %11171 = vmatmul.mubr.msk.f32.vlgmr.msra.gmra.mrb[22].mxu1 %vm4563_vm7, %v11167_v30 }
 0x762   : > { %12962 = vmatpush1.bf16.msra.mxu1 %v22217_v29  ;;  %6754 = vmatprep.mubr.f32.mxu1 %v22195_v48 }
 0x763   : > { %12964 = vmatprep.subr.bf16.mxu1 %v22218_v62 }
 0x765   : > { %11172 = vmatmul.mubr.msk.f32.gmra.mrb[24].mxu1 %vm4563_vm7, %v11168_v47 }
 0x766   : > { %6760 = vmatprep.mubr.f32.mxu1 %v22195_v48 }
 0x769   : > { %11173 = vmatmul.mubr.msk.f32.gmra.mrb[26].mxu1 %vm4563_vm7, %v11169_v43 }
 0x76a   : > { %6766 = vmatprep.mubr.f32.mxu1 %v22195_v48 }
 0x76d   : > { %11174 = vmatmul.mubr.msk.f32.gmra.mrb[28].mxu1 %vm4563_vm7, %v11170_v59 }
 0x76e   : > { %6883 = vmatprep.mubr.f32.mxu1 %v22195_v48 }
 0x771   : > { %11179 = vmatmul.mubr.msk.f32.vlgmr.msra.gmra.mrb[22].mxu1 %vm4563_vm7, %v11175_v18 }
 0x772   : > { %12966 = vmatpush1.bf16.msra.mxu1 %v22219_v39  ;;  %6889 = vmatprep.mubr.f32.mxu1 %v22195_v48  ;;  %v7873_v39 = vpop.permute.xlu0 %7872 }
 0x773   : > { %12968 = vmatprep.subr.bf16.mxu1 %v22220_v7 }
 0x775   : > { %11180 = vmatmul.mubr.msk.f32.gmra.mrb[24].mxu1 %vm4563_vm7, %v11176_v16 }
 0x776   : > { %6895 = vmatprep.mubr.f32.mxu1 %v22195_v48 }
 0x779   : > { %11181 = vmatmul.mubr.msk.f32.gmra.mrb[26].mxu1 %vm4563_vm7, %v11177_v15 }
 0x77a   : > { %6901 = vmatprep.mubr.f32.mxu1 %v22195_v48 }
 0x77d   : > { %11182 = vmatmul.mubr.msk.f32.gmra.mrb[28].mxu1 %vm4563_vm7, %v11178_v11 }
 0x77e   : > { %7018 = vmatprep.mubr.f32.mxu1 %v22195_v48 }
 0x781   : > { %11187 = vmatmul.mubr.msk.f32.vlgmr.msra.gmra.mrb[22].mxu1 %vm4563_vm7, %v11183_v6 }
 0x782   : > { %12970 = vmatpush1.bf16.msra.mxu1 %v22221_v9  ;;  %7024 = vmatprep.mubr.f32.mxu1 %v22195_v48 }
 0x783   : > { %12972 = vmatprep.subr.bf16.mxu1 %v22222_v31 }
 0x785   : > { %11188 = vmatmul.mubr.msk.f32.gmra.mrb[24].mxu1 %vm4563_vm7, %v11184_v1 }
 0x786   : > { %7030 = vmatprep.mubr.f32.mxu1 %v22195_v48 }
 0x789   : > { %11189 = vmatmul.mubr.msk.f32.gmra.mrb[26].mxu1 %vm4563_vm7, %v11185_v34 }
 0x78a   : > { %7036 = vmatprep.mubr.f32.mxu1 %v22195_v48 }
 0x78d   : > { %11190 = vmatmul.mubr.msk.f32.gmra.mrb[28].mxu1 %vm4563_vm7, %v11186_v56 }
 0x78e   : > { %7153 = vmatprep.mubr.f32.mxu1 %v22195_v48 }
 0x791   : > { %11195 = vmatmul.mubr.msk.f32.vlgmr.msra.gmra.mrb[22].mxu1 %vm4563_vm7, %v11191_v32 }
 0x792   : > { %12974 = vmatpush1.bf16.msra.mxu1 %v22223_v49  ;;  %7159 = vmatprep.mubr.f32.mxu1 %v22195_v48 }
 0x793   : > { %12976 = vmatprep.subr.bf16.mxu1 %v22224_v37 }
 0x795   : > { %11196 = vmatmul.mubr.msk.f32.gmra.mrb[24].mxu1 %vm4563_vm7, %v11192_v2 }
 0x796   : > { %7165 = vmatprep.mubr.f32.mxu1 %v22195_v48 }
 0x799   : > { %11197 = vmatmul.mubr.msk.f32.gmra.mrb[26].mxu1 %vm4563_vm7, %v11193_v24 }
 0x79a   : > { %7171 = vmatprep.mubr.f32.mxu1 %v22195_v48 }
 0x79d   : > { %11198 = vmatmul.mubr.msk.f32.gmra.mrb[28].mxu1 %vm4563_vm7, %v11194_v36  ;;  %v7864_v36 = vld [vmem:[%s21062_s5 + $0x18] sm:$0xff] }
 0x79e   : > { %7288 = vmatprep.mubr.f32.mxu1 %v22195_v48 }
 0x7a1   : > { %11203 = vmatmul.mubr.msk.f32.vlgmr.msra.gmra.mrb[22].mxu1 %vm4563_vm7, %v11199_v27  ;;  %v8082_v27 = vld [vmem:[%s21063_s6 + $0x80] sm:$0xff] }
 0x7a2   : > { %12978 = vmatpush1.bf16.msra.mxu1 %v22225_v21  ;;  %7294 = vmatprep.mubr.f32.mxu1 %v22195_v48  ;;  %v8083_v21 = vld [vmem:[%s21063_s6 + $0x88] sm:$0xff] }
 0x7a3   : > { %12980 = vmatprep.subr.bf16.mxu1 %v22226_v35  ;;  %v12991_v35 = vpack.c.bf16 %v8083_v21, %v8082_v27 }
 0x7a5   : > { %11204 = vmatmul.mubr.msk.f32.gmra.mrb[24].mxu1 %vm4563_vm7, %v11200_v45  ;;  %v8066_v45 = vld [vmem:[%s21063_s6] sm:$0xff]  ;;  %12992 = vmatprep.subr.bf16.mxu0 %v12991_v35  ;;  %v7971_v35 = vld [vmem:[#allocation4 + $0x28] sm:$0xff] }
 0x7a6   : > { %7300 = vmatprep.mubr.f32.mxu1 %v22195_v48 }
 0x7a9   : > { %11205 = vmatmul.mubr.msk.f32.gmra.mrb[26].mxu1 %vm4563_vm7, %v11201_v44  ;;  %v8067_v44 = vld [vmem:[%s21063_s6 + $0x8] sm:$0xff] }
 0x7aa   : > { %7306 = vmatprep.mubr.f32.mxu1 %v22195_v48 }
 0x7ad   : > { %11206 = vmatmul.mubr.msk.f32.gmra.mrb[28].mxu1 %vm4563_vm7, %v11202_v42  ;;  %v8084_v42 = vld [vmem:[%s21063_s6 + $0x90] sm:$0xff] }
 0x7ae   : > { %7423 = vmatprep.mubr.f32.mxu1 %v22195_v48 }
 0x7b1   : > { %11211 = vmatmul.mubr.msk.f32.vlgmr.msra.gmra.mrb[22].mxu1 %vm4563_vm7, %v11207_v38  ;;  %v8085_v38 = vld [vmem:[%s21063_s6 + $0x98] sm:$0xff] }
 0x7b2   : > { %12982 = vmatpush1.bf16.msra.mxu1 %v22227_v50  ;;  %7429 = vmatprep.mubr.f32.mxu1 %v22195_v48  ;;  %v12993_v50 = vpack.c.bf16 %v8067_v44, %v8066_v45  ;;  %v8023_v45 = vpop.permute.xlu0 %8022 }
 0x7b3   : > { %12984 = vmatprep.subr.bf16.mxu1 %v22228_v19  ;;  %v8068_v19 = vld [vmem:[%s21063_s6 + $0x10] sm:$0xff] }
 0x7b4   : > { %12994 = vmatpush3.bf16.msra.mxu0 %v12993_v50 }
 0x7b5   : > { %11212 = vmatmul.mubr.msk.f32.gmra.mrb[24].mxu1 %vm4563_vm7, %v11208_v46  ;;  %v12995_v46 = vpack.c.bf16 %v8085_v38, %v8084_v42 }
 0x7b6   : > { %7435 = vmatprep.mubr.f32.mxu1 %v22195_v48 }
 0x7b7   : > { %12996 = vmatprep.subr.bf16.mxu0 %v12995_v46 }
 0x7b9   : > { %11213 = vmatmul.mubr.msk.f32.gmra.mrb[26].mxu1 %vm4563_vm7, %v11209_v41  ;;  %v8069_v41 = vld [vmem:[%s21063_s6 + $0x18] sm:$0xff] }
 0x7ba   : > { %7441 = vmatprep.mubr.f32.mxu1 %v22195_v48  ;;  %v12997_v53 = vpack.c.bf16 %v8069_v41, %v8068_v19 }
 0x7bc   : > { %12998 = vmatpush3.bf16.msra.mxu0 %v12997_v53 }
 0x7bd   : > { %11214 = vmatmul.mubr.msk.f32.gmra.mrb[28].mxu1 %vm4563_vm7, %v11210_v26  ;;  %v8086_v26 = vld [vmem:[%s21063_s6 + $0xa0] sm:$0xff] }
 0x7be   : > { %7558 = vmatprep.mubr.f32.mxu1 %v22195_v48 }
 0x7c1   : > { %11219 = vmatmul.mubr.msk.f32.vlgmr.msra.gmra.mrb[22].mxu1 %vm4563_vm7, %v11215_v52  ;;  %v8087_v52 = vld [vmem:[%s21063_s6 + $0xa8] sm:$0xff] }
 0x7c2   : > { %12986 = vmatpush1.bf16.msra.mxu1 %v22230_v25  ;;  %7564 = vmatprep.mubr.f32.mxu1 %v22195_v48  ;;  %v12999_v25 = vpack.c.bf16 %v8087_v52, %v8086_v26 }
 0x7c3   : > { %12988 = vmatprep.subr.bf16.mxu1 %v12987_v33  ;;  %v11225_v33 = vld [vmem:[%s21061_s4 + $0x2f0] sm:$0xff] }
 0x7c4   : > { %13000 = vmatprep.subr.bf16.mxu0 %v12999_v25 }
 0x7c5   : > { %11220 = vmatmul.mubr.msk.f32.gmra.mrb[24].mxu1 %vm4563_vm7, %v11216_v63  ;;  %v8070_v63 = vld [vmem:[%s21063_s6 + $0x20] sm:$0xff] }
 0x7c6   : > { %7570 = vmatprep.mubr.f32.mxu1 %v22195_v48 }
 0x7c9   : > { %11221 = vmatmul.mubr.msk.f32.gmra.mrb[26].mxu1 %vm4563_vm7, %v11217_v40  ;;  %v8071_v40 = vld [vmem:[%s21063_s6 + $0x28] sm:$0xff] }
 0x7ca   : > { %7576 = vmatprep.mubr.f32.mxu1 %v22195_v48 }
 0x7cd   : > { %11222 = vmatmul.mubr.msk.f32.gmra.mrb[28].mxu1 %vm4563_vm7, %v11218_v61  ;;  %v8088_v61 = vld [vmem:[%s21063_s6 + $0xb0] sm:$0xff] }
 0x7ce   : > { %7693 = vmatprep.mubr.f32.mxu1 %v22195_v48 }
 0x7d1   : > { %11227 = vmatmul.mubr.msk.f32.vlgmr.msra.gmra.mrb[22].mxu1 %vm4563_vm7, %v11223_v20  ;;  %v8089_v20 = vld [vmem:[%s21063_s6 + $0xb8] sm:$0xff] }
 0x7d2   : > { %12990 = vmatpush1.bf16.msra.mxu1 %v12989_v23  ;;  %7699 = vmatprep.mubr.f32.mxu1 %v22195_v48  ;;  %v11232_v23 = vld [vmem:[%s21061_s4 + $0x308] sm:$0xff] }
 0x7d5   : > { %11228 = vmatmul.mubr.msk.f32.gmra.mrb[24].mxu1 %vm4563_vm7, %v11224_v3  ;;  %v13001_v3 = vpack.c.bf16 %v8071_v40, %v8070_v63 }
 0x7d6   : > { %7705 = vmatprep.mubr.f32.mxu1 %v22195_v48 }
 0x7d7   : > { %13002 = vmatpush3.bf16.msra.mxu0 %v13001_v3  ;;  %v7972_v3 = vld [vmem:[#allocation4 + $0x40] sm:$0xff] }
 0x7d9   : > { %11229 = vmatmul.mubr.msk.f32.gmra.mrb[26].mxu1 %vm4563_vm7, %v11225_v33  ;;  %v13003_v33 = vpack.c.bf16 %v8089_v20, %v8088_v61 }
 0x7da   : > { %7711 = vmatprep.mubr.f32.mxu1 %v22195_v48 }
 0x7db   : > { %13004 = vmatprep.subr.bf16.mxu0 %v13003_v33 }
 0x7dd   : > { %11230 = vmatmul.mubr.msk.f32.gmra.mrb[28].mxu1 %vm4563_vm7, %v11226_v10  ;;  %v8072_v10 = vld [vmem:[%s21063_s6 + $0x30] sm:$0xff] }
 0x7de   : > { %7828 = vmatprep.mubr.f32.mxu1 %v22195_v48 }
 0x7e1   : > { %11235 = vmatmul.mubr.msk.f32.vlgmr.msra.gmra.mrb[22].mxu1 %vm4563_vm7, %v11231_v28  ;;  %v8073_v28 = vld [vmem:[%s21063_s6 + $0x38] sm:$0xff] }
 0x7e2   : > { %7834 = vmatprep.mubr.f32.mxu1 %v22195_v48 }
 0x7e5   : > { %11236 = vmatmul.mubr.msk.f32.gmra.mrb[24].mxu1 %vm4563_vm7, %v11232_v23  ;;  %v8090_v23 = vld [vmem:[%s21063_s6 + $0xc0] sm:$0xff] }
 0x7e6   : > { %7840 = vmatprep.mubr.f32.mxu1 %v22195_v48 }
 0x7e9   : > { %11237 = vmatmul.mubr.msk.f32.gmra.mrb[26].mxu1 %vm4563_vm7, %v11233_v17  ;;  %v8091_v17 = vld [vmem:[%s21063_s6 + $0xc8] sm:$0xff] }
 0x7ea   : > { %7846 = vmatprep.mubr.f32.mxu1 %v22195_v48 }
 0x7ed   : > { %11238 = vmatmul.mubr.msk.f32.gmra.mrb[28].mxu1 %vm4563_vm7, %v11234_v13  ;;  %v13005_v13 = vpack.c.bf16 %v8073_v28, %v8072_v10  ;;  %vm8110_vm7 = vcmask 1043456  }
 0x7ee   : > { %vm13020_vm11 = vmpackc.low %vm8110_vm7, %vm14188_vm9  ;;  %12009 = vmatprep.mubr.msk.f32.mxu1 %vm14190_vm10, %v22195_v48 }
 0x7ef   : > { %13006 = vmatpush3.bf16.msra.mxu0 %v13005_v13  ;;  %v8202_v13 = vld [vmem:[%s21064_s7 + $0x10] sm:$0xff] }
 0x7f8   : > { %v4642_v5 = vpop.f32.mrb[4].mxu0 }
 0x7f9   : > { %v4644_v0 = vpop.f32.mrb[5].mxu0 }
 0x7fc   : > { %v4648_v4 = vpop.f32.mrb[6].mxu0 }
 0x7fd   : > { %v4650_v58 = vpop.f32.mrb[7].mxu0 }
 0x800   : > { %v4654_v55 = vpop.f32.mrb[8].mxu0 }
 0x801   : > { %v4656_v8 = vpop.f32.mrb[9].mxu0 }
 0x804   : > { %v4660_v54 = vpop.f32.mrb[10].mxu0 }
 0x805   : > { %v4662_v30 = vpop.f32.mrb[11].mxu0 }
 0x8b4   : > { %v7830_v12 = vpop.f32.mrb[22].mxu1 }
 0x8b5   : > { %v13320_v29 = vadd.f32 %v7830_v12, %v4642_v5  ;;  %v7832_v47 = vpop.f32.mrb[23].mxu1  ;;  %v13007_v5 = vpack.c.bf16 %v8091_v17, %v8090_v23  ;;  %v8077_v12 = vld [vmem:[%s21063_s6 + $0x58] sm:$0xff] }
 0x8b6   : > { %v13321_v22 = vadd.f32 %v7832_v47, %v4644_v0  ;;  %v8074_v0 = vld [vmem:[%s21063_s6 + $0x40] sm:$0xff]  ;;  %v8095_v47 = vld [vmem:[%s21063_s6 + $0xe8] sm:$0xff] }
 0x8b7   : > { %v19821_v62 = vadd.f32 %v13320_v29, %v19486_v57  ;;  %13008 = vmatprep.subr.bf16.mxu0 %v13007_v5  ;;  %v8094_v29 = vld [vmem:[%s21063_s6 + $0xe0] sm:$0xff]  ;;  %v14189_v5 = vmov 0.0|0.0  }
 0x8b8   : > { %v7886_v43 = vadd.f32 %v13321_v22, %v19486_v57  ;;  %v7836_v14 = vpop.f32.mrb[24].mxu1  ;;  %13024 = vmatprep.subr.bf16.mxu1 %v14189_v5 }
 0x8b9   : > { %v7893_v59 = vmax.f32 %v19821_v62, 0.0  ;;  %v13322_v60 = vadd.f32 %v7836_v14, %v4648_v4  ;;  %v7838_v18 = vpop.f32.mrb[25].mxu1  ;;  %v8075_v4 = vld [vmem:[%s21063_s6 + $0x48] sm:$0xff]  ;;  %v8078_v14 = vld [vmem:[%s21063_s6 + $0x60] sm:$0xff] }
 0x8ba   : > { %v7894_v16 = vmax.f32 %v7886_v43, 0.0  ;;  %v13323_v7 = vadd.f32 %v7838_v18, %v4650_v58  ;;  %v8092_v58 = vld [vmem:[%s21063_s6 + $0xd0] sm:$0xff]  ;;  %v13015_v43 = vpack.c.bf16 %v8095_v47, %v8094_v29 }
 0x8bb   : > { %v19825_v15 = vadd.f32 %v13322_v60, %v7873_v39  ;;  %v8079_v60 = vld [vmem:[%s21063_s6 + $0x68] sm:$0xff]  ;;  %v8096_v18 = vld [vmem:[%s21063_s6 + $0xf0] sm:$0xff] }
 0x8bc   : > { %7911 = vst.msk [vmem:[#allocation4 + $0x8] sm:$0xff] %vm883_vm3, %v7894_v16  ;;  %v7888_v11 = vadd.f32 %v13323_v7, %v7873_v39  ;;  %v7842_v6 = vpop.f32.mrb[26].mxu1  ;;  %v13017_v39 = vpack.c.bf16 %v8079_v60, %v8078_v14  ;;  %v8097_v16 = vld [vmem:[%s21063_s6 + $0xf8] sm:$0xf] }
 0x8bd   : > { %v7895_v9 = vmax.f32 %v19825_v15, 0.0  ;;  %v19829_v1 = vadd.f32 %v7842_v6, %v4654_v55  ;;  %v7844_v31 = vpop.f32.mrb[27].mxu1  ;;  %v8093_v55 = vld [vmem:[%s21063_s6 + $0xd8] sm:$0xff]  ;;  %v13019_v7 = vpack.c.bf16 %v8097_v16, %v8096_v18 }
 0x8be   : > { %v7896_v57 = vmax.f32 %v7888_v11, 0.0  ;;  %v19831_v34 = vadd.f32 %v7844_v31, %v4656_v8  ;;  %v13009_v8 = vpack.c.bf16 %v8075_v4, %v8074_v0  ;;  %v8080_v11 = vld [vmem:[%s21063_s6 + $0x70] sm:$0xff]  ;;  %v8081_v6 = vld [vmem:[%s21063_s6 + $0x78] sm:$0xff] }
 0x8bf   : > { %v13022_v31 = vpack.c.bf16 %v8081_v6, %v8080_v11  ;;  %v8203_v4 = vld [vmem:[%s21064_s7 + $0x18] sm:$0xff] }
 0x8c0   : > { %7913 = vst.msk [vmem:[#allocation4 + $0x20] sm:$0xff] %vm883_vm3, %v7896_v57  ;;  %v7848_v56 = vpop.f32.mrb[28].mxu1  ;;  %13010 = vmatpush3.bf16.msra.mxu0 %v13009_v8  ;;  %v8204_v8 = vld [vmem:[%s21064_s7 + $0x20] sm:$0xff]  ;;  %v11246_v11 = vld [vmem:[%s21064_s7 + $0x38] sm:$0xff] }
 0x8c1   : > { %v19834_v32 = vadd.f32 %v7848_v56, %v4660_v54  ;;  %v7850_v49 = vpop.f32.mrb[29].mxu1  ;;  %v13011_v54 = vpack.c.bf16 %v8093_v55, %v8092_v58  ;;  %v7973_v58 = vld [vmem:[#allocation4 + $0x58] sm:$0xff]  ;;  %v13028_v55 = vpack.c.bf16 %v8203_v4, %v8202_v13 }
 0x8c2   : > { %v19836_v2 = vadd.f32 %v7850_v49, %v4662_v30  ;;  %v8076_v30 = vld [vmem:[%s21063_s6 + $0x50] sm:$0xff] }
 0x8c3   : > { %v19838_v37 = vld [vmem:[#allocation4 + $0x8] sm:$0xff]  ;;  %v13013_v22 = vpack.c.bf16 %v8077_v12, %v8076_v30  ;;  %13012 = vmatprep.subr.bf16.mxu0 %v13011_v54  ;;  %v8205_v54 = vld [vmem:[%s21064_s7 + $0x28] sm:$0xff]  ;;  %v8206_v12 = vld [vmem:[%s21064_s7 + $0x30] sm:$0x1] }
 0x8c4   : > { %7936 = vrot.lane.b32.xlu1 %v19838_v37, %s21702_s25  ;;  %v13031_v30 = vpack.c.bf16 %v8205_v54, %v8204_v8  ;;  %v11258_v8 = vld [vmem:[%s21064_s7 + $0x88] sm:$0xff] }
 0x8c5   : > { %13014 = vmatpush3.bf16.msra.mxu0 %v13013_v22 }
 0x8c6   : > { %13016 = vmatprep.subr.bf16.mxu0 %v13015_v43 }
 0x8c7   : > { %v19842_v24 = vld [vmem:[#allocation4 + $0x20] sm:$0xff] }
 0x8c8   : > { %7934 = vrot.lane.b32.xlu1 %v7893_v59, %s21702_s25  ;;  %7940 = vrot.lane.b32.xlu0 %v19842_v24, %s21702_s25 }
 0x8c9   : > { %13018 = vmatpush3.bf16.msra.mxu0 %v13017_v39 }
 0x8ca   : > { %13021 = vmatprep.subr.msk.bf16.mxu0 %vm13020_vm11, %v13019_v7 }
 0x8cc   : > { %7938 = vrot.lane.b32.xlu0 %v7895_v9, %s21702_s25 }
 0x8cd   : > { %13023 = vmatpush3.bf16.msra.mxu0 %v13022_v31 }
 0x8ce   : > { %13033 = vmatprep.subr.bf16.mxu0 %v14189_v5 }
 0x8d0   : > { %7882 = vperm.xlu0 %13661, %v7864_v36  }
 0x936   : > { %v7937_v57 = vpop.permute.xlu1 %7936 }
 0x937   : > { %v7986_v56 = vsel %vm22231_vm12, %v7937_v57, %v19493_v51  ;;  %v7863_v51 = vld [vmem:[%s21062_s5 + $0x10] sm:$0xff]  ;;  %v7963_v19 = vmax.f32 %v19838_v37, %v7937_v57 }
 0x938   : > { %v7998_v49 = vmax.f32 %v19838_v37, %v7986_v56  ;;  %v11249_v56 = vld [vmem:[%s21064_s7 + $0x50] sm:$0xff] }
 0x93a   : > { %8020 = vrot.lane.b32.xlu1 %v7998_v49, %s14169_s20  ;;  %v7935_v36 = vpop.permute.xlu1 %7934  ;;  %v19963_v44 = vpop.permute.xlu0 %7940 }
 0x93b   : > { %v7950_v27 = vsel %vm22232_vm13, %v7935_v36, %v7937_v57  ;;  %v7965_v47 = vmax.f32 %v19842_v24, %v19963_v44  ;;  %v11248_v57 = vld [vmem:[%s21064_s7 + $0x48] sm:$0xff] }
 0x93c   : > { %v7962_v21 = vmax.f32 %v7893_v59, %v7950_v27  ;;  %v13037_v36 = vpack.c.bf16 %v11249_v56, %v11248_v57  ;;  %v11270_v57 = vld [vmem:[%s21064_s7 + $0xd8] sm:$0x1] }
 0x93e   : > { %8018 = vrot.lane.b32.xlu1 %v7962_v21, %s14169_s20  ;;  %v7939_v42 = vpop.permute.xlu0 %7938 }
 0x93f   : > { %v7951_v37 = vsel %vm22234_vm8, %v7939_v42, %v19963_v44 }
 0x940   : > { %v7964_v20 = vmax.f32 %v7895_v9, %v7951_v37 }
 0x942   : > { %7980 = vrot.lane.b32.xlu1 %v7971_v35, %s21702_s25 }
 0x946   : > { %7877 = vperm.xlu1 %13662, %v7863_v51   ;;  %v11251_v51 = vld [vmem:[%s21064_s7 + $0x60] sm:$0xff] }
 0x94f   : > { %v7883_v38 = vpop.permute.xlu0 %7882 }
 0x950   : > { %v19966_v50 = vadd.f32 %v19834_v32, %v7883_v38  ;;  %v7892_v62 = vadd.f32 %v19836_v2, %v7883_v38 }
 0x952   : > { %v7899_v59 = vmax.f32 %v19966_v50, 0.0  ;;  %v7900_v46 = vmax.f32 %v7892_v62, 0.0 }
 0x954   : > { %7917 = vst.msk [vmem:[#allocation4 + $0x50] sm:$0xff] %vm883_vm3, %v7900_v46 }
 0x95b   : > { %v19986_v33 = vld [vmem:[#allocation4 + $0x50] sm:$0xff] }
 0x9ac   : > { %v8021_v41 = vpop.permute.xlu1 %8020 }
 0x9ad   : > { %v8043_v26 = vsel %vm5179_vm4, %v8021_v41, %v8023_v45 }
 0x9ae   : > { %v8059_v52 = vmax.f32 %v7963_v19, %v8043_v26  ;;  %v11252_v19 = vld [vmem:[%s21064_s7 + $0x68] sm:$0x1] }
 0x9b0   : > { %11240 = vmatprep.mubr.msk.f32.mxu0 %vm883_vm3, %v8059_v52  ;;  %v8019_v53 = vpop.permute.xlu1 %8018 }
 0x9b1   : > { %v8042_v25 = vsel %vm5179_vm4, %v8019_v53, %v8021_v41 }
 0x9b2   : > { %v8058_v32 = vmax.f32 %v7962_v21, %v8042_v25 }
 0x9b4   : > { %8179 = vmatmul.mubr.f32.vlgmr.msra.gmra.mrb[12].mxu0 %v8058_v32  ;;  %v7981_v63 = vpop.permute.xlu1 %7980 }
 0x9b5   : > { %v7987_v2 = vsel %vm22233_vm14, %v19963_v44, %v7981_v63  ;;  %v8001_v40 = vmax.f32 %v7971_v35, %v7981_v63  ;;  %v11250_v35 = vld [vmem:[%s21064_s7 + $0x58] sm:$0xff] }
 0x9b6   : > { %v8000_v61 = vmax.f32 %v19842_v24, %v7987_v2  ;;  %v11247_v24 = vld [vmem:[%s21064_s7 + $0x40] sm:$0xff]  ;;  %v13040_v42 = vpack.c.bf16 %v11251_v51, %v11250_v35  ;;  %v11278_v35 = vld [vmem:[%s21064_s7 + $0x108] sm:$0xff] }
 0x9b7   : > { %8028 = vrot.lane.b32.xlu0 %v8001_v40, %s14169_s20  ;;  %v13034_v6 = vpack.c.bf16 %v11247_v24, %v11246_v11  ;;  %v11269_v11 = vld [vmem:[%s21064_s7 + $0xd0] sm:$0xff] }
 0x9b8   : > { %8026 = vrot.lane.b32.xlu1 %v8000_v61, %s14169_s20 }
 0x9b9   : > { %13035 = vmatpush3.bf16.msra.mxu0 %v13034_v6  ;;  %v11273_v6 = vld [vmem:[%s21064_s7 + $0xe0] sm:$0xff] }
 0x9ba   : > { %13036 = vmatprep.subr.bf16.mxu0 %v14189_v5 }
 0x9bc   : > { %8024 = vrot.lane.b32.xlu1 %v7964_v20, %s14169_s20 }
 0x9bd   : > { %13038 = vmatpush3.bf16.msra.mxu0 %v13037_v36  ;;  %v11275_v36 = vld [vmem:[%s21064_s7 + $0xf0] sm:$0xff] }
 0x9be   : > { %13039 = vmatprep.subr.bf16.mxu0 %v14189_v5 }
 0x9c0   : > { %7982 = vrot.lane.b32.xlu1 %v7972_v3, %s21702_s25 }
 0x9c1   : > { %13041 = vmatpush3.bf16.msra.mxu0 %v13040_v42  ;;  %v11283_v42 = vld [vmem:[%s21064_s7 + $0x120] sm:$0xff] }
 0x9c2   : > { %12024 = vmatprep.subr.mxu0 %v22195_v48 }
 0x9c4   : > { %7948 = vrot.lane.b32.xlu1 %v19986_v33, %s21702_s25 }
 0x9c5   : > { %v7878_v10 = vpop.permute.xlu1 %7877  ;;  %12025 = vmatpush3.msk.msra.mxu0 %vm8211_vm15, %v11252_v19  ;;  %v11284_v19 = vld [vmem:[%s21064_s7 + $0x128] sm:$0xff] }
 0x9c6   : > { %v19991_v28 = vadd.f32 %v19829_v1, %v7878_v10  ;;  %v7890_v23 = vadd.f32 %v19831_v34, %v7878_v10  ;;  %v8200_v1 = vld [vmem:[%s21064_s7] sm:$0xff]  ;;  %v8201_v34 = vld [vmem:[%s21064_s7 + $0x8] sm:$0xff]  ;;  %13042 = vmatprep.subr.bf16.mxu0 %v14189_v5 }
 0x9c7   : > { %v13025_v0 = vpack.c.bf16 %v8201_v34, %v8200_v1 }
 0x9c8   : > { %v7897_v17 = vmax.f32 %v19991_v28, 0.0  ;;  %v7898_v15 = vmax.f32 %v7890_v23, 0.0  ;;  %7946 = vrot.lane.b32.xlu1 %v7899_v59, %s21702_s25 }
 0x9c9   : > { %13026 = vmatpush3.bf16.msra.mxu1 %v13025_v0  ;;  %v11255_v0 = vld [vmem:[%s21064_s7 + $0x70] sm:$0xff] }
 0x9ca   : > { %7915 = vst.msk [vmem:[#allocation4 + $0x38] sm:$0xff] %vm883_vm3, %v7898_v15  ;;  %13027 = vmatprep.subr.bf16.mxu1 %v14189_v5 }
 0x9cd   : > { %13029 = vmatpush3.bf16.msra.mxu1 %v13028_v55  ;;  %v11257_v55 = vld [vmem:[%s21064_s7 + $0x80] sm:$0xff] }
 0x9ce   : > { %13030 = vmatprep.subr.bf16.mxu1 %v14189_v5  ;;  %v13046_v54 = vpack.c.bf16 %v11258_v8, %v11257_v55  ;;  %v11304_v55 = vld [vmem:[%s21064_s7 + $0x1a8] sm:$0xff]  ;;  %v11305_v8 = vld [vmem:[%s21064_s7 + $0x1b0] sm:$0xff] }
 0x9d1   : > { %v19999_v9 = vld [vmem:[#allocation4 + $0x38] sm:$0xff]  ;;  %13032 = vmatpush3.bf16.msra.mxu1 %v13031_v30  ;;  %v11259_v30 = vld [vmem:[%s21064_s7 + $0x90] sm:$0xff] }
 0x9d2   : > { %7944 = vrot.lane.b32.xlu0 %v19999_v9, %s21702_s25  ;;  %12007 = vmatprep.subr.mxu1 %v22195_v48 }
 0x9d5   : > { %12008 = vmatpush3.msk.msra.mxu1 %vm8211_vm15, %v8206_v12  ;;  %v11260_v12 = vld [vmem:[%s21064_s7 + $0x98] sm:$0xff] }
 0x9d6   : > { %7942 = vrot.lane.b32.xlu0 %v7897_v17, %s21702_s25 }
 0x9da   : > { %7984 = vrot.lane.b32.xlu0 %v7973_v58, %s21702_s25 }
 0xa29   : > { %v8029_v29 = vpop.permute.xlu0 %8028 }
 0xa2a   : > { %v8027_v22 = vpop.permute.xlu1 %8026 }
 0xa2b   : > { %v8045_v43 = vsel %vm5179_vm4, %v8027_v22, %v8029_v29  ;;  %v13049_v29 = vpack.c.bf16 %v11260_v12, %v11259_v30  ;;  %v11309_v30 = vld [vmem:[%s21064_s7 + $0x1c0] sm:$0xff]  ;;  %v11310_v12 = vld [vmem:[%s21064_s7 + $0x1c8] sm:$0xff] }
 0xa2c   : > { %v8061_v14 = vmax.f32 %v7965_v47, %v8045_v43  ;;  %v11264_v47 = vld [vmem:[%s21064_s7 + $0xa8] sm:$0xff]  ;;  %v11261_v43 = vld [vmem:[%s21064_s7 + $0xa0] sm:$0x1] }
 0xa2e   : > { %v8025_v60 = vpop.permute.xlu1 %8024  ;;  %11241 = vmatprep.mubr.msk.f32.mxu0 %vm883_vm3, %v8061_v14 }
 0xa2f   : > { %v8044_v18 = vsel %vm5179_vm4, %v8025_v60, %v8027_v22  ;;  %v11265_v22 = vld [vmem:[%s21064_s7 + $0xb0] sm:$0xff] }
 0xa30   : > { %v8060_v39 = vmax.f32 %v7964_v20, %v8044_v18  ;;  %v13052_v14 = vpack.c.bf16 %v11265_v22, %v11264_v47  ;;  %v11266_v18 = vld [vmem:[%s21064_s7 + $0xb8] sm:$0xff]  ;;  %v13097_v47 = vpack.c.bf16 %v11310_v12, %v11309_v30  ;;  %v11356_v30 = vld [vmem:[%s21064_s7 + $0x2e8] sm:$0xff]  ;;  %v11357_v12 = vld [vmem:[%s21064_s7 + $0x2f0] sm:$0xff] }
 0xa32   : > { %v7983_v16 = vpop.permute.xlu1 %7982  ;;  %8184 = vmatmul.mubr.f32.gmra.mrb[14].mxu0 %v8060_v39  ;;  %v11267_v39 = vld [vmem:[%s21064_s7 + $0xc0] sm:$0xff] }
 0xa33   : > { %v8003_v7 = vmax.f32 %v7972_v3, %v7983_v16 }
 0xa35   : > { %8034 = vrot.lane.b32.xlu1 %v8003_v7, %s14169_s20  ;;  %v11268_v7 = vld [vmem:[%s21064_s7 + $0xc8] sm:$0xff] }
 0xa36   : > { %v7949_v27 = vpop.permute.xlu1 %7948  ;;  %v13058_v24 = vpack.c.bf16 %v11269_v11, %v11268_v7  ;;  %v11319_v7 = vld [vmem:[%s21064_s7 + $0x200] sm:$0xff]  ;;  %v11315_v11 = vld [vmem:[%s21064_s7 + $0x1f0] sm:$0x1] }
 0xa37   : > { %v7969_v28 = vmax.f32 %v19986_v33, %v7949_v27 }
 0xa3a   : > { %v7947_v62 = vpop.permute.xlu1 %7946 }
 0xa3b   : > { %v7953_v53 = vsel %vm22238_vm1, %v7947_v62, %v7949_v27 }
 0xa3c   : > { %v7968_v25 = vmax.f32 %v7899_v59, %v7953_v53  ;;  %v11287_v53 = vld [vmem:[%s21064_s7 + $0x140] sm:$0xff] }
 0xa44   : > { %v7945_v31 = vpop.permute.xlu0 %7944 }
 0xa45   : > { %v7988_v49 = vsel %vm22235_vm5, %v7945_v31, %v7983_v16  ;;  %v7967_v61 = vmax.f32 %v19999_v9, %v7945_v31  ;;  %v13055_v16 = vpack.c.bf16 %v11267_v39, %v11266_v18  ;;  %v11314_v18 = vld [vmem:[%s21064_s7 + $0x1e8] sm:$0xff] }
 0xa46   : > { %v8002_v21 = vmax.f32 %v19999_v9, %v7988_v49 }
 0xa48   : > { %8032 = vrot.lane.b32.xlu0 %v8002_v21, %s14169_s20  ;;  %v7943_v45 = vpop.permute.xlu0 %7942 }
 0xa49   : > { %v7952_v44 = vsel %vm22236_vm0, %v7943_v45, %v7945_v31  ;;  %v11274_v31 = vld [vmem:[%s21064_s7 + $0xe8] sm:$0xff]  ;;  %v11277_v45 = vld [vmem:[%s21064_s7 + $0x100] sm:$0xff] }
 0xa4a   : > { %v7966_v38 = vmax.f32 %v7897_v17, %v7952_v44  ;;  %v13061_v56 = vpack.c.bf16 %v11274_v31, %v11273_v6  ;;  %v13067_v51 = vpack.c.bf16 %v11278_v35, %v11277_v45  ;;  %v11282_v44 = vld [vmem:[%s21064_s7 + $0x118] sm:$0xff]  ;;  %v11320_v6 = vld [vmem:[%s21064_s7 + $0x208] sm:$0xff]  ;;  %v11321_v31 = vld [vmem:[%s21064_s7 + $0x210] sm:$0xff] }
 0xa4b   : > { %v13070_v62 = vpack.c.bf16 %v11283_v42, %v11282_v44  ;;  %v11324_v45 = vld [vmem:[%s21064_s7 + $0x228] sm:$0x1]  ;;  %v11329_v44 = vld [vmem:[%s21064_s7 + $0x240] sm:$0xff] }
 0xa4c   : > { %8030 = vrot.lane.b32.xlu0 %v7966_v38, %s14169_s20  ;;  %v7985_v46 = vpop.permute.xlu0 %7984  ;;  %v11330_v42 = vld [vmem:[%s21064_s7 + $0x248] sm:$0xff] }
 0xa4d   : > { %v7989_v41 = vsel %vm22237_vm2, %v7949_v27, %v7985_v46  ;;  %v8005_v26 = vmax.f32 %v7973_v58, %v7985_v46  ;;  %v11276_v27 = vld [vmem:[%s21064_s7 + $0xf8] sm:$0xff] }
 0xa4e   : > { %v8004_v52 = vmax.f32 %v19986_v33, %v7989_v41  ;;  %v11256_v33 = vld [vmem:[%s21064_s7 + $0x78] sm:$0xff]  ;;  %v13064_v21 = vpack.c.bf16 %v11276_v27, %v11275_v36  ;;  %v11285_v41 = vld [vmem:[%s21064_s7 + $0x130] sm:$0xff] }
 0xa4f   : > { %v13043_v4 = vpack.c.bf16 %v11256_v33, %v11255_v0  ;;  %v11302_v33 = vld [vmem:[%s21064_s7 + $0x198] sm:$0xff]  ;;  %v11327_v27 = vld [vmem:[%s21064_s7 + $0x230] sm:$0xff] }
 0xa50   : > { %8040 = vrot.lane.b32.xlu0 %v8005_v26, %s14169_s20  ;;  %8038 = vrot.lane.b32.xlu1 %v8004_v52, %s14169_s20  ;;  %v13073_v26 = vpack.c.bf16 %v11285_v41, %v11284_v19  ;;  %v11286_v52 = vld [vmem:[%s21064_s7 + $0x138] sm:$0xff]  ;;  %v11336_v41 = vld [vmem:[%s21064_s7 + $0x268] sm:$0xff] }
 0xa54   : > { %8036 = vrot.lane.b32.xlu1 %v7968_v25, %s14169_s20  ;;  %s321_s20 = sand.u32 1, %s14138_s10  }
 0xa55   : > { %s322_s27 = scalar_lea.vmem [#allocation5], %s321_s20  ;;  %s10924_s13 = scalar_lea.sflag [#allocation6], %s321_s20 }
 0xa56   : > { %s10936_s30 = sshll.u32 %s322_s27, 4  ;;  %s21017_s30 = int_to_ptr.vmem [resolvable:$true] %s10936_s30 }
 0xa57   : > { %s14084_s1 = scalar_lea.vmem %s21017_s30, 16  ;;  %p14091_p0 = scmp.lt.s32.totalorder %s21017_s30, %s14089_s11 }
 0xa58   : > { %p14085_p11 = scmp.ne.s32.totalorder %s21017_s30, %s14084_s1  ;;  %p14092_p1 = scmp.lt.s32.totalorder %s14090_s23, %s14084_s1 }
 0xa5a   : > { %p14086_p12 = pnand %p14085_p11, %p14280_p5  ;;  %p14093_p2 = por %p14092_p1, %p14091_p0 }
 0xa5c   : > { %p14087_p13 = pneg %p14086_p12 }
 0xa5e   : > { %p14094_p3 = pnand %p14093_p2, %p14087_p13 }
 0xa87   : > { %v11692_v32 = vpop.f32.mrb[12].mxu0 }
 0xa88   : > { %v11693_v63 = vpop.f32.mrb[13].mxu0 }
 0xa89   : > { %v20083_v2 = vadd.f32 %v11693_v63, %v11692_v32  ;;  %v11291_v32 = vld [vmem:[%s21064_s7 + $0x150] sm:$0xff]  ;;  %v11292_v63 = vld [vmem:[%s21064_s7 + $0x158] sm:$0xff] }
 0xa8b   : > { %12010 = vmatmul.mubr.msk.f32.vlgmr.msra.gmra.mrb[30].mxu1 %vm8207_vm6, %v20083_v2  ;;  %v8294_v58 = vrot.slane %v20083_v2, 1  ;;  %v8379_v60 = vrot.slane %v20083_v2, 2  ;;  %v8464_v49 = vrot.slane %v20083_v2, 3  ;;  %v8549_v46 = vrot.slane %v20083_v2, 4 }
 0xa8c   : > { %v8719_v0 = vrot.slane %v20083_v2, 6  ;;  %v8804_v22 = vrot.slane %v20083_v2, 7 }
 0xaa7   : > { %v8035_v40 = vpop.permute.xlu1 %8034 }
 0xaba   : > { %v8033_v37 = vpop.permute.xlu0 %8032 }
 0xabb   : > { %v8047_v20 = vsel %vm5179_vm4, %v8033_v37, %v8035_v40  ;;  %v11288_v40 = vld [vmem:[%s21064_s7 + $0x148] sm:$0x1] }
 0xabc   : > { %v8063_v3 = vmax.f32 %v7967_v61, %v8047_v20  ;;  %v13079_v61 = vpack.c.bf16 %v11292_v63, %v11291_v32  ;;  %v11293_v20 = vld [vmem:[%s21064_s7 + $0x160] sm:$0xff]  ;;  %v11338_v32 = vld [vmem:[%s21064_s7 + $0x278] sm:$0xff] }
 0xabd   : > { %v11339_v63 = vld [vmem:[%s21064_s7 + $0x280] sm:$0xff] }
 0xabe   : > { %v8031_v10 = vpop.permute.xlu0 %8030  ;;  %11242 = vmatprep.mubr.msk.f32.mxu0 %vm883_vm3, %v8063_v3  ;;  %v11294_v3 = vld [vmem:[%s21064_s7 + $0x168] sm:$0xff] }
 0xabf   : > { %v8046_v50 = vsel %vm5179_vm4, %v8031_v10, %v8033_v37  ;;  %v8634_v37 = vrot.slane %v20083_v2, 5  ;;  %v11313_v2 = vld [vmem:[%s21064_s7 + $0x1e0] sm:$0xff] }
 0xac0   : > { %v8062_v59 = vmax.f32 %v7966_v38, %v8046_v50  ;;  %v11279_v38 = vld [vmem:[%s21064_s7 + $0x110] sm:$0x1]  ;;  %v13103_v39 = vpack.c.bf16 %v11314_v18, %v11313_v2  ;;  %v11360_v2 = vld [vmem:[%s21064_s7 + $0x308] sm:$0x1] }
 0xac2   : > { %v8041_v23 = vpop.permute.xlu0 %8040  ;;  %8189 = vmatmul.mubr.f32.gmra.mrb[16].mxu0 %v8062_v59  ;;  %v8039_v17 = vpop.permute.xlu1 %8038 }
 0xac3   : > { %v8049_v15 = vsel %vm5179_vm4, %v8039_v17, %v8041_v23  ;;  %v11295_v23 = vld [vmem:[%s21064_s7 + $0x170] sm:$0xff] }
 0xac4   : > { %v8065_v1 = vmax.f32 %v7969_v28, %v8049_v15  ;;  %v13082_v28 = vpack.c.bf16 %v11294_v3, %v11293_v20  ;;  %v11345_v3 = vld [vmem:[%s21064_s7 + $0x2a0] sm:$0xff] }
 0xac6   : > { %11243 = vmatprep.mubr.msk.f32.mxu0 %vm883_vm3, %v8065_v1  ;;  %v8037_v9 = vpop.permute.xlu1 %8036  ;;  %v11300_v1 = vld [vmem:[%s21064_s7 + $0x188] sm:$0xff]  ;;  %vm10921_vm3 = vcmask 73728  }
 0xac7   : > { %v8048_v34 = vsel %vm5179_vm4, %v8037_v9, %v8039_v17  ;;  %v11296_v17 = vld [vmem:[%s21064_s7 + $0x178] sm:$0xff]  ;;  %v11301_v9 = vld [vmem:[%s21064_s7 + $0x190] sm:$0xff] }
 0xac8   : > { %v8064_v13 = vmax.f32 %v7968_v25, %v8048_v34  ;;  %v13076_v25 = vpack.c.bf16 %v11287_v53, %v11286_v52  ;;  %v13085_v15 = vpack.c.bf16 %v11296_v17, %v11295_v23  ;;  %v11297_v34 = vld [vmem:[%s21064_s7 + $0x180] sm:$0x1]  ;;  %v11347_v17 = vld [vmem:[%s21064_s7 + $0x2b0] sm:$0xff] }
 0xac9   : > { %v11333_v52 = vld [vmem:[%s21064_s7 + $0x260] sm:$0x1] }
 0xaca   : > { %8194 = vmatmul.mubr.f32.gmra.mrb[18].mxu0 %v8064_v13  ;;  %v13088_v13 = vpack.c.bf16 %v11301_v9, %v11300_v1  ;;  %v11349_v9 = vld [vmem:[%s21064_s7 + $0x2c0] sm:$0xff] }
 0xacb   : > { %12026 = vmatprep.mubr.msk.f32.mxu0 %vm14190_vm10, %v22195_v48 }
 0xace   : > { %12027 = vmatmul.mubr.msk.f32.vlgmr.msra.gmra.mrb[20].mxu0 %vm8207_vm6, %v8294_v58 }
 0xacf   : > { %13044 = vmatpush3.bf16.msra.mxu0 %v13043_v4  ;;  %12043 = vmatprep.mubr.msk.f32.mxu0 %vm14190_vm10, %v22195_v48  ;;  %v11303_v4 = vld [vmem:[%s21064_s7 + $0x1a0] sm:$0xff] }
 0xad0   : > { %13045 = vmatprep.subr.bf16.mxu0 %v14189_v5  ;;  %v13091_v58 = vpack.c.bf16 %v11303_v4, %v11302_v33  ;;  %v11354_v4 = vld [vmem:[%s21064_s7 + $0x2d8] sm:$0xff] }
 0xad3   : > { %13047 = vmatpush3.bf16.msra.mxu0 %v13046_v54  ;;  %v13094_v54 = vpack.c.bf16 %v11305_v8, %v11304_v55  ;;  %v11351_v55 = vld [vmem:[%s21064_s7 + $0x2d0] sm:$0x1] }
 0xad4   : > { %13048 = vmatprep.subr.bf16.mxu0 %v14189_v5 }
 0xad7   : > { %13050 = vmatpush3.bf16.msra.mxu0 %v13049_v29  ;;  %v11306_v29 = vld [vmem:[%s21064_s7 + $0x1b8] sm:$0x1] }
 0xad8   : > { %12041 = vmatprep.subr.mxu0 %v22195_v48 }
 0xadb   : > { %12042 = vmatpush3.msk.msra.mxu0 %vm8211_vm15, %v11261_v43  ;;  %v11311_v43 = vld [vmem:[%s21064_s7 + $0x1d0] sm:$0xff] }
 0xadc   : > { %12044 = vmatmul.mubr.msk.f32.vlgmr.msra.gmra.mrb[20].mxu0 %vm8207_vm6, %v8379_v60  ;;  %13051 = vmatprep.subr.bf16.mxu0 %v14189_v5 }
 0xadd   : > { %13053 = vmatpush3.bf16.msra.mxu0 %v13052_v14  ;;  %12060 = vmatprep.mubr.msk.f32.mxu0 %vm14190_vm10, %v22195_v48  ;;  %v11312_v14 = vld [vmem:[%s21064_s7 + $0x1d8] sm:$0xff] }
 0xade   : > { %13054 = vmatprep.subr.bf16.mxu0 %v14189_v5  ;;  %v13100_v60 = vpack.c.bf16 %v11312_v14, %v11311_v43  ;;  %v11363_v14 = vld [vmem:[%s21064_s7 + $0x310] sm:$0xff] }
 0xae1   : > { %13056 = vmatpush3.bf16.msra.mxu0 %v13055_v16  ;;  %v11318_v16 = vld [vmem:[%s21064_s7 + $0x1f8] sm:$0xff] }
 0xae2   : > { %13057 = vmatprep.subr.bf16.mxu0 %v14189_v5 }
 0xae5   : > { %13059 = vmatpush3.bf16.msra.mxu0 %v13058_v24  ;;  %v13106_v24 = vpack.c.bf16 %v11319_v7, %v11318_v16  ;;  %v11365_v16 = vld [vmem:[%s21064_s7 + $0x320] sm:$0xff]  ;;  %v11366_v7 = vld [vmem:[%s21064_s7 + $0x328] sm:$0xff] }
 0xae6   : > { %12058 = vmatprep.subr.mxu0 %v22195_v48 }
 0xae9   : > { %12059 = vmatpush3.msk.msra.mxu0 %vm8211_vm15, %v11270_v57  ;;  %v13109_v57 = vpack.c.bf16 %v11321_v31, %v11320_v6  ;;  %v11368_v6 = vld [vmem:[%s21064_s7 + $0x338] sm:$0xff] }
 0xaea   : > { %12061 = vmatmul.mubr.msk.f32.vlgmr.msra.gmra.mrb[20].mxu0 %vm8207_vm6, %v8464_v49  ;;  %13060 = vmatprep.subr.bf16.mxu0 %v14189_v5  ;;  %v11323_v49 = vld [vmem:[%s21064_s7 + $0x220] sm:$0xff] }
 0xaeb   : > { %13062 = vmatpush3.bf16.msra.mxu0 %v13061_v56  ;;  %12077 = vmatprep.mubr.msk.f32.mxu0 %vm14190_vm10, %v22195_v48  ;;  %v11322_v56 = vld [vmem:[%s21064_s7 + $0x218] sm:$0xff] }
 0xaec   : > { %13063 = vmatprep.subr.bf16.mxu0 %v14189_v5  ;;  %v13112_v36 = vpack.c.bf16 %v11323_v49, %v11322_v56  ;;  %v11373_v56 = vld [vmem:[%s21064_s7 + $0x350] sm:$0xff]  ;;  %v11369_v49 = vld [vmem:[%s21064_s7 + $0x340] sm:$0x1] }
 0xaef   : > { %13065 = vmatpush3.bf16.msra.mxu0 %v13064_v21  ;;  %v11328_v21 = vld [vmem:[%s21064_s7 + $0x238] sm:$0xff] }
 0xaf0   : > { %13066 = vmatprep.subr.bf16.mxu0 %v14189_v5  ;;  %v13115_v35 = vpack.c.bf16 %v11328_v21, %v11327_v27  ;;  %v11374_v21 = vld [vmem:[%s21064_s7 + $0x358] sm:$0xff] }
 0xaf3   : > { %13068 = vmatpush3.bf16.msra.mxu0 %v13067_v51 }
 0xaf4   : > { %12075 = vmatprep.subr.mxu0 %v22195_v48 }
 0xaf7   : > { %12076 = vmatpush3.msk.msra.mxu0 %vm8211_vm15, %v11279_v38  ;;  %v13118_v38 = vpack.c.bf16 %v11330_v42, %v11329_v44  ;;  %v11377_v44 = vld [vmem:[%s21064_s7 + $0x370] sm:$0xff] }
 0xaf8   : > { %12078 = vmatmul.mubr.msk.f32.vlgmr.msra.gmra.mrb[20].mxu0 %vm8207_vm6, %v8549_v46  ;;  %13069 = vmatprep.subr.bf16.mxu0 %v14189_v5  ;;  %v11332_v46 = vld [vmem:[%s21064_s7 + $0x258] sm:$0xff] }
 0xaf9   : > { %13071 = vmatpush3.bf16.msra.mxu0 %v13070_v62  ;;  %12094 = vmatprep.mubr.msk.f32.mxu0 %vm14190_vm10, %v22195_v48  ;;  %v11331_v62 = vld [vmem:[%s21064_s7 + $0x250] sm:$0xff] }
 0xafa   : > { %13072 = vmatprep.subr.bf16.mxu0 %v14189_v5  ;;  %v13121_v19 = vpack.c.bf16 %v11332_v46, %v11331_v62  ;;  %v11382_v62 = vld [vmem:[%s21064_s7 + $0x388] sm:$0xff]  ;;  %v11378_v46 = vld [vmem:[%s21064_s7 + $0x378] sm:$0x1] }
 0xafd   : > { %13074 = vmatpush3.bf16.msra.mxu0 %v13073_v26  ;;  %v11337_v26 = vld [vmem:[%s21064_s7 + $0x270] sm:$0xff] }
 0xafe   : > { %13075 = vmatprep.subr.bf16.mxu0 %v14189_v5  ;;  %v13124_v53 = vpack.c.bf16 %v11337_v26, %v11336_v41  ;;  %v11383_v26 = vld [vmem:[%s21064_s7 + $0x390] sm:$0xff] }
 0xb01   : > { %13077 = vmatpush3.bf16.msra.mxu0 %v13076_v25 }
 0xb02   : > { %12092 = vmatprep.subr.mxu0 %v22195_v48 }
 0xb05   : > { %12093 = vmatpush3.msk.msra.mxu0 %vm8211_vm15, %v11288_v40  ;;  %v11695_v10 = vpop.f32.mrb[14].mxu0  ;;  %v13127_v40 = vpack.c.bf16 %v11339_v63, %v11338_v32 }
 0xb06   : > { %12095 = vmatmul.mubr.msk.f32.vlgmr.msra.gmra.mrb[20].mxu0 %vm8207_vm6, %v8634_v37  ;;  %13078 = vmatprep.subr.bf16.mxu0 %v14189_v5  ;;  %v11696_v50 = vpop.f32.mrb[15].mxu0  ;;  %v11341_v37 = vld [vmem:[%s21064_s7 + $0x290] sm:$0xff] }
 0xb07   : > { %v20231_v59 = vadd.f32 %v11696_v50, %v11695_v10  ;;  %13080 = vmatpush3.bf16.msra.mxu0 %v13079_v61  ;;  %12111 = vmatprep.mubr.msk.f32.mxu0 %vm14190_vm10, %v22195_v48  ;;  %v11340_v61 = vld [vmem:[%s21064_s7 + $0x288] sm:$0xff]  ;;  %v11342_v50 = vld [vmem:[%s21064_s7 + $0x298] sm:$0x1] }
 0xb08   : > { %13081 = vmatprep.subr.bf16.mxu0 %v14189_v5  ;;  %v13130_v20 = vpack.c.bf16 %v11341_v37, %v11340_v61  ;;  %v11346_v10 = vld [vmem:[%s21064_s7 + $0x2a8] sm:$0xff]  ;;  %v11390_v37 = vld [vmem:[%s21064_s7 + $0x3b8] sm:$0xff] }
 0xb09   : > { %v8974_v51 = vrot.slane %v20231_v59, 1  ;;  %v9059_v25 = vrot.slane %v20231_v59, 2  ;;  %v9144_v23 = vrot.slane %v20231_v59, 3  ;;  %v9399_v27 = vrot.slane %v20231_v59, 6 }
 0xb0a   : > { %v9484_v41 = vrot.slane %v20231_v59, 7 }
 0xb0b   : > { %13083 = vmatpush3.bf16.msra.mxu0 %v13082_v28  ;;  %v13133_v28 = vpack.c.bf16 %v11346_v10, %v11345_v3  ;;  %v11387_v3 = vld [vmem:[%s21064_s7 + $0x3b0] sm:$0x1] }
 0xb0c   : > { %13084 = vmatprep.subr.bf16.mxu0 %v14189_v5 }
 0xb0f   : > { %13086 = vmatpush3.bf16.msra.mxu0 %v13085_v15  ;;  %v11348_v15 = vld [vmem:[%s21064_s7 + $0x2b8] sm:$0xff] }
 0xb10   : > { %12109 = vmatprep.subr.mxu0 %v22195_v48  ;;  %v13136_v1 = vpack.c.bf16 %v11348_v15, %v11347_v17  ;;  %v11393_v17 = vld [vmem:[%s21064_s7 + $0x3d0] sm:$0xff] }
 0xb13   : > { %12110 = vmatpush3.msk.msra.mxu0 %vm8211_vm15, %v11297_v34  ;;  %v11350_v34 = vld [vmem:[%s21064_s7 + $0x2c8] sm:$0xff] }
 0xb14   : > { %12112 = vmatmul.mubr.msk.f32.vlgmr.msra.gmra.mrb[20].mxu0 %vm8207_vm6, %v8719_v0  ;;  %13087 = vmatprep.subr.bf16.mxu0 %v14189_v5  ;;  %v13139_v33 = vpack.c.bf16 %v11350_v34, %v11349_v9  ;;  %v11394_v9 = vld [vmem:[%s21064_s7 + $0x3d8] sm:$0xff]  ;;  %v11395_v34 = vld [vmem:[%s21064_s7 + $0x3e0] sm:$0xff] }
 0xb15   : > { %13089 = vmatpush3.bf16.msra.mxu0 %v13088_v13  ;;  %12128 = vmatprep.mubr.msk.f32.mxu0 %vm14190_vm10, %v22195_v48 }
 0xb16   : > { %13090 = vmatprep.subr.bf16.mxu0 %v14189_v5 }
 0xb19   : > { %13092 = vmatpush3.bf16.msra.mxu0 %v13091_v58  ;;  %v11355_v58 = vld [vmem:[%s21064_s7 + $0x2e0] sm:$0xff] }
 0xb1a   : > { %13093 = vmatprep.subr.bf16.mxu0 %v14189_v5  ;;  %v13142_v8 = vpack.c.bf16 %v11355_v58, %v11354_v4  ;;  %v11400_v4 = vld [vmem:[%s21064_s7 + $0x3f8] sm:$0xff]  ;;  %v11396_v58 = vld [vmem:[%s21064_s7 + $0x3e8] sm:$0x1] }
 0xb1d   : > { %13095 = vmatpush3.bf16.msra.mxu0 %v13094_v54  ;;  %v9229_v54 = vrot.slane %v20231_v59, 4 }
 0xb1e   : > { %12126 = vmatprep.subr.mxu0 %v22195_v48 }
 0xb21   : > { %12127 = vmatpush3.msk.msra.mxu0 %vm8211_vm15, %v11306_v29  ;;  %v13145_v29 = vpack.c.bf16 %v11357_v12, %v11356_v30  ;;  %v11402_v30 = vld [vmem:[%s21064_s7 + $0x408] sm:$0xff] }
 0xb22   : > { %12129 = vmatmul.mubr.msk.f32.vlgmr.msra.gmra.mrb[20].mxu0 %vm8207_vm6, %v8804_v22  ;;  %13096 = vmatprep.subr.bf16.mxu0 %v14189_v5  ;;  %v11359_v22 = vld [vmem:[%s21064_s7 + $0x300] sm:$0xff] }
 0xb23   : > { %13098 = vmatpush3.bf16.msra.mxu0 %v13097_v47  ;;  %12145 = vmatprep.mubr.msk.f32.mxu0 %vm14190_vm10, %v22195_v48  ;;  %v11358_v47 = vld [vmem:[%s21064_s7 + $0x2f8] sm:$0xff] }
 0xb24   : > { %13099 = vmatprep.subr.bf16.mxu0 %v14189_v5  ;;  %v13148_v43 = vpack.c.bf16 %v11359_v22, %v11358_v47  ;;  %v11404_v47 = vld [vmem:[%s21064_s7 + $0x418] sm:$0xff] }
 0xb27   : > { %13101 = vmatpush3.bf16.msra.mxu0 %v13100_v60  ;;  %v11364_v60 = vld [vmem:[%s21064_s7 + $0x318] sm:$0xff] }
 0xb28   : > { %13102 = vmatprep.subr.bf16.mxu0 %v14189_v5  ;;  %v13151_v18 = vpack.c.bf16 %v11364_v60, %v11363_v14  ;;  %v11409_v14 = vld [vmem:[%s21064_s7 + $0x430] sm:$0xff]  ;;  %v11405_v60 = vld [vmem:[%s21064_s7 + $0x420] sm:$0x1] }
 0xb2b   : > { %13104 = vmatpush3.bf16.msra.mxu0 %v13103_v39  ;;  %v9314_v39 = vrot.slane %v20231_v59, 5 }
 0xb2c   : > { %12143 = vmatprep.subr.mxu0 %v22195_v48 }
 0xb2f   : > { %12144 = vmatpush3.msk.msra.mxu0 %vm8211_vm15, %v11315_v11  ;;  %v13154_v11 = vpack.c.bf16 %v11366_v7, %v11365_v16  ;;  %v11411_v16 = vld [vmem:[%s21064_s7 + $0x440] sm:$0xff] }
 0xb30   : > { %12146 = vmatmul.mubr.msk.f32.vlgmr.msra.gmra.mrb[20].mxu0 %vm8207_vm6, %v20231_v59  ;;  %13105 = vmatprep.subr.bf16.mxu0 %v14189_v5  ;;  %v11385_v59 = vld [vmem:[%s21064_s7 + $0x3a0] sm:$0xff] }
 0xb31   : > { %13107 = vmatpush3.bf16.msra.mxu0 %v13106_v24  ;;  %12162 = vmatprep.mubr.msk.f32.mxu0 %vm14190_vm10, %v22195_v48  ;;  %v11367_v24 = vld [vmem:[%s21064_s7 + $0x330] sm:$0xff] }
 0xb32   : > { %13108 = vmatprep.subr.bf16.mxu0 %v14189_v5  ;;  %v13157_v31 = vpack.c.bf16 %v11368_v6, %v11367_v24  ;;  %v11413_v24 = vld [vmem:[%s21064_s7 + $0x450] sm:$0xff] }
 0xb35   : > { %13110 = vmatpush3.bf16.msra.mxu0 %v13109_v57  ;;  %v11372_v57 = vld [vmem:[%s21064_s7 + $0x348] sm:$0xff] }
 0xb36   : > { %13111 = vmatprep.subr.bf16.mxu0 %v14189_v5 }
 0xb39   : > { %13113 = vmatpush3.bf16.msra.mxu0 %v13112_v36  ;;  %v13160_v36 = vpack.c.bf16 %v11373_v56, %v11372_v57  ;;  %v11418_v57 = vld [vmem:[%s21064_s7 + $0x468] sm:$0xff]  ;;  %v11414_v56 = vld [vmem:[%s21064_s7 + $0x458] sm:$0x1] }
 0xb3a   : > { %12160 = vmatprep.subr.mxu0 %v22195_v48 }
 0xb3d   : > { %12161 = vmatpush3.msk.msra.mxu0 %vm8211_vm15, %v11324_v45  ;;  %v11375_v45 = vld [vmem:[%s21064_s7 + $0x360] sm:$0xff] }
 0xb3e   : > { %12163 = vmatmul.mubr.msk.f32.vlgmr.msra.gmra.mrb[20].mxu0 %vm8207_vm6, %v8974_v51  ;;  %13114 = vmatprep.subr.bf16.mxu0 %v14189_v5  ;;  %v11376_v51 = vld [vmem:[%s21064_s7 + $0x368] sm:$0xff] }
 0xb3f   : > { %13116 = vmatpush3.bf16.msra.mxu0 %v13115_v35  ;;  %12179 = vmatprep.mubr.msk.f32.mxu0 %vm14190_vm10, %v22195_v48  ;;  %v13163_v35 = vpack.c.bf16 %v11375_v45, %v11374_v21  ;;  %v13166_v42 = vpack.c.bf16 %v11377_v44, %v11376_v51  ;;  %v11420_v21 = vld [vmem:[%s21064_s7 + $0x478] sm:$0xff]  ;;  %v11422_v51 = vld [vmem:[%s21064_s7 + $0x488] sm:$0xff] }
 0xb40   : > { %13117 = vmatprep.subr.bf16.mxu0 %v14189_v5 }
 0xb43   : > { %13119 = vmatpush3.bf16.msra.mxu0 %v13118_v38  ;;  %v11381_v38 = vld [vmem:[%s21064_s7 + $0x380] sm:$0xff] }
 0xb44   : > { %13120 = vmatprep.subr.bf16.mxu0 %v14189_v5 }
 0xb47   : > { %13122 = vmatpush3.bf16.msra.mxu0 %v13121_v19  ;;  %v13169_v19 = vpack.c.bf16 %v11382_v62, %v11381_v38  ;;  %v11427_v38 = vld [vmem:[%s21064_s7 + $0x4a0] sm:$0xff]  ;;  %v11423_v62 = vld [vmem:[%s21064_s7 + $0x490] sm:$0x1] }
 0xb48   : > { %12177 = vmatprep.subr.mxu0 %v22195_v48 }
 0xb4b   : > { %12178 = vmatpush3.msk.msra.mxu0 %vm8211_vm15, %v11333_v52  ;;  %v11384_v52 = vld [vmem:[%s21064_s7 + $0x398] sm:$0xff] }
 0xb4c   : > { %12180 = vmatmul.mubr.msk.f32.vlgmr.msra.gmra.mrb[20].mxu0 %vm8207_vm6, %v9059_v25  ;;  %13123 = vmatprep.subr.bf16.mxu0 %v14189_v5  ;;  %v11386_v25 = vld [vmem:[%s21064_s7 + $0x3a8] sm:$0xff] }
 0xb4d   : > { %13125 = vmatpush3.bf16.msra.mxu0 %v13124_v53  ;;  %12196 = vmatprep.mubr.msk.f32.mxu0 %vm14190_vm10, %v22195_v48  ;;  %v13172_v53 = vpack.c.bf16 %v11384_v52, %v11383_v26  ;;  %v13175_v61 = vpack.c.bf16 %v11386_v25, %v11385_v59  ;;  %v11429_v26 = vld [vmem:[%s21064_s7 + $0x4b0] sm:$0xff]  ;;  %v11431_v59 = vld [vmem:[%s21064_s7 + $0x4c0] sm:$0xff] }
 0xb4e   : > { %13126 = vmatprep.subr.bf16.mxu0 %v14189_v5 }
 0xb51   : > { %13128 = vmatpush3.bf16.msra.mxu0 %v13127_v40 }
 0xb52   : > { %13129 = vmatprep.subr.bf16.mxu0 %v14189_v5 }
 0xb55   : > { %13131 = vmatpush3.bf16.msra.mxu0 %v13130_v20  ;;  %v11391_v20 = vld [vmem:[%s21064_s7 + $0x3c0] sm:$0xff] }
 0xb56   : > { %12194 = vmatprep.subr.mxu0 %v22195_v48 }
 0xb59   : > { %12195 = vmatpush3.msk.msra.mxu0 %vm8211_vm15, %v11342_v50  ;;  %v13178_v50 = vpack.c.bf16 %v11391_v20, %v11390_v37 }
 0xb5a   : > { %12197 = vmatmul.mubr.msk.f32.vlgmr.msra.gmra.mrb[20].mxu0 %vm8207_vm6, %v9144_v23  ;;  %13132 = vmatprep.subr.bf16.mxu0 %v14189_v5  ;;  %v11392_v23 = vld [vmem:[%s21064_s7 + $0x3c8] sm:$0xff] }
 0xb5b   : > { %13134 = vmatpush3.bf16.msra.mxu0 %v13133_v28  ;;  %12213 = vmatprep.mubr.msk.f32.mxu0 %vm14190_vm10, %v22195_v48 }
 0xb5c   : > { %13135 = vmatprep.subr.bf16.mxu0 %v14189_v5 }
 0xb5e   : > { %v20422_v13 = vpop.f32.mrb[30].mxu1 }
 0xb5f   : > { %13137 = vmatpush3.bf16.msra.mxu0 %v13136_v1  ;;  %v12011_v0 = vpop.f32.mrb[31].mxu1  ;;  %v13181_v1 = vpack.c.bf16 %v11393_v17, %v11392_v23  ;;  %v11440_v23 = vld [vmem:[%s21064_s7 + $0x4f8] sm:$0xff] }
 0xb60   : > { %13138 = vmatprep.subr.bf16.mxu0 %v14189_v5  ;;  %v13184_v0 = vpack.c.bf16 %v11395_v34, %v11394_v9  ;;  %v11445_v9 = vld [vmem:[%s21064_s7 + $0x510] sm:$0xff]  ;;  %v11441_v34 = vld [vmem:[%s21064_s7 + $0x500] sm:$0x1] }
 0xb63   : > { %13140 = vmatpush3.bf16.msra.mxu0 %v13139_v33  ;;  %v11399_v33 = vld [vmem:[%s21064_s7 + $0x3f0] sm:$0xff] }
 0xb64   : > { %12211 = vmatprep.subr.mxu0 %v22195_v48 }
 0xb67   : > { %12212 = vmatpush3.msk.msra.mxu0 %vm8211_vm15, %v11351_v55  ;;  %v13187_v55 = vpack.c.bf16 %v11400_v4, %v11399_v33  ;;  %v11446_v4 = vld [vmem:[%s21064_s7 + $0x518] sm:$0xff] }
 0xb68   : > { %12214 = vmatmul.mubr.msk.f32.vlgmr.msra.gmra.mrb[20].mxu0 %vm8207_vm6, %v9229_v54  ;;  %13141 = vmatprep.subr.bf16.mxu0 %v14189_v5  ;;  %v11401_v54 = vld [vmem:[%s21064_s7 + $0x400] sm:$0xff] }
 0xb69   : > { %13143 = vmatpush3.bf16.msra.mxu0 %v13142_v8  ;;  %12230 = vmatprep.mubr.msk.f32.mxu0 %vm14190_vm10, %v22195_v48  ;;  %v13190_v12 = vpack.c.bf16 %v11402_v30, %v11401_v54  ;;  %v11449_v54 = vld [vmem:[%s21064_s7 + $0x530] sm:$0xff] }
 0xb6a   : > { %13144 = vmatprep.subr.bf16.mxu0 %v14189_v5 }
 0xb6d   : > { %13146 = vmatpush3.bf16.msra.mxu0 %v13145_v29  ;;  %v11403_v29 = vld [vmem:[%s21064_s7 + $0x410] sm:$0xff] }
 0xb6e   : > { %13147 = vmatprep.subr.bf16.mxu0 %v14189_v5  ;;  %v13193_v22 = vpack.c.bf16 %v11404_v47, %v11403_v29  ;;  %v11454_v29 = vld [vmem:[%s21064_s7 + $0x548] sm:$0xff]  ;;  %v11450_v47 = vld [vmem:[%s21064_s7 + $0x538] sm:$0x1] }
 0xb71   : > { %13149 = vmatpush3.bf16.msra.mxu0 %v13148_v43  ;;  %v11408_v43 = vld [vmem:[%s21064_s7 + $0x428] sm:$0xff] }
 0xb72   : > { %12228 = vmatprep.subr.mxu0 %v22195_v48 }
 0xb75   : > { %12229 = vmatpush3.msk.msra.mxu0 %vm8211_vm15, %v11360_v2  ;;  %v13196_v2 = vpack.c.bf16 %v11409_v14, %v11408_v43  ;;  %v11455_v14 = vld [vmem:[%s21064_s7 + $0x550] sm:$0xff] }
 0xb76   : > { %12231 = vmatmul.mubr.msk.f32.vlgmr.msra.gmra.mrb[20].mxu0 %vm8207_vm6, %v9314_v39  ;;  %13150 = vmatprep.subr.bf16.mxu0 %v14189_v5  ;;  %v11410_v39 = vld [vmem:[%s21064_s7 + $0x438] sm:$0xff] }
 0xb77   : > { %13152 = vmatpush3.bf16.msra.mxu0 %v13151_v18  ;;  %12247 = vmatprep.mubr.msk.f32.mxu0 %vm14190_vm10, %v22195_v48  ;;  %v13199_v7 = vpack.c.bf16 %v11411_v16, %v11410_v39  ;;  %v11462_v16 = vld [vmem:[%s21064_s7 + $0x578] sm:$0xff] }
 0xb78   : > { %13153 = vmatprep.subr.bf16.mxu0 %v14189_v5 }
 0xb7b   : > { %13155 = vmatpush3.bf16.msra.mxu0 %v13154_v11  ;;  %v11412_v11 = vld [vmem:[%s21064_s7 + $0x448] sm:$0xff] }
 0xb7c   : > { %13156 = vmatprep.subr.bf16.mxu0 %v14189_v5  ;;  %v13202_v6 = vpack.c.bf16 %v11413_v24, %v11412_v11  ;;  %v11459_v11 = vld [vmem:[%s21064_s7 + $0x570] sm:$0x1] }
 0xb7f   : > { %13158 = vmatpush3.bf16.msra.mxu0 %v13157_v31  ;;  %v11417_v31 = vld [vmem:[%s21064_s7 + $0x460] sm:$0xff] }
 0xb80   : > { %12245 = vmatprep.subr.mxu0 %v22195_v48 }
 0xb83   : > { %12246 = vmatpush3.msk.msra.mxu0 %vm8211_vm15, %v11369_v49  ;;  %v13205_v49 = vpack.c.bf16 %v11418_v57, %v11417_v31  ;;  %v11465_v31 = vld [vmem:[%s21064_s7 + $0x590] sm:$0xff] }
 0xb84   : > { %12248 = vmatmul.mubr.msk.f32.vlgmr.msra.gmra.mrb[20].mxu0 %vm8207_vm6, %v9399_v27  ;;  %13159 = vmatprep.subr.bf16.mxu0 %v14189_v5  ;;  %v11419_v27 = vld [vmem:[%s21064_s7 + $0x470] sm:$0xff] }
 0xb85   : > { %13161 = vmatpush3.bf16.msra.mxu0 %v13160_v36  ;;  %12264 = vmatprep.mubr.msk.f32.mxu0 %vm14190_vm10, %v22195_v48  ;;  %v13208_v45 = vpack.c.bf16 %v11420_v21, %v11419_v27  ;;  %v11471_v27 = vld [vmem:[%s21064_s7 + $0x5b0] sm:$0xff]  ;;  %v11472_v21 = vld [vmem:[%s21064_s7 + $0x5b8] sm:$0xff] }
 0xb86   : > { %13162 = vmatprep.subr.bf16.mxu0 %v14189_v5 }
 0xb89   : > { %13164 = vmatpush3.bf16.msra.mxu0 %v13163_v35  ;;  %v11421_v35 = vld [vmem:[%s21064_s7 + $0x480] sm:$0xff] }
 0xb8a   : > { %13165 = vmatprep.subr.bf16.mxu0 %v14189_v5  ;;  %v13211_v44 = vpack.c.bf16 %v11422_v51, %v11421_v35  ;;  %v13259_v35 = vpack.c.bf16 %v11472_v21, %v11471_v27  ;;  %v11518_v27 = vld [vmem:[%s21064_s7 + $0x6d8] sm:$0xff]  ;;  %v11519_v21 = vld [vmem:[%s21064_s7 + $0x6e0] sm:$0xff] }
 0xb8d   : > { %13167 = vmatpush3.bf16.msra.mxu0 %v13166_v42  ;;  %v11426_v42 = vld [vmem:[%s21064_s7 + $0x498] sm:$0xff] }
 0xb8e   : > { %12262 = vmatprep.subr.mxu0 %v22195_v48 }
 0xb91   : > { %12263 = vmatpush3.msk.msra.mxu0 %vm8211_vm15, %v11378_v46  ;;  %v13214_v46 = vpack.c.bf16 %v11427_v38, %v11426_v42  ;;  %v11474_v42 = vld [vmem:[%s21064_s7 + $0x5c8] sm:$0xff] }
 0xb92   : > { %12265 = vmatmul.mubr.msk.f32.vlgmr.msra.gmra.mrb[20].mxu0 %vm8207_vm6, %v9484_v41  ;;  %13168 = vmatprep.subr.bf16.mxu0 %v14189_v5  ;;  %v11428_v41 = vld [vmem:[%s21064_s7 + $0x4a8] sm:$0xff] }
 0xb93   : > { %13170 = vmatpush3.bf16.msra.mxu0 %v13169_v19  ;;  %12281 = vmatprep.mubr.msk.f32.mxu0 %vm14190_vm10, %v22195_v48  ;;  %v13217_v52 = vpack.c.bf16 %v11429_v26, %v11428_v41  ;;  %v11480_v41 = vld [vmem:[%s21064_s7 + $0x5e8] sm:$0xff]  ;;  %v11481_v26 = vld [vmem:[%s21064_s7 + $0x5f0] sm:$0xff] }
 0xb94   : > { %13171 = vmatprep.subr.bf16.mxu0 %v14189_v5 }
 0xb95   : > { %v11698_v32 = vpop.f32.mrb[16].mxu0 }
 0xb96   : > { %v11699_v63 = vpop.f32.mrb[17].mxu0 }
 0xb97   : > { %v20544_v40 = vadd.f32 %v11699_v63, %v11698_v32  ;;  %13173 = vmatpush3.bf16.msra.mxu0 %v13172_v53  ;;  %v11430_v53 = vld [vmem:[%s21064_s7 + $0x4b8] sm:$0xff]  ;;  %v11435_v32 = vld [vmem:[%s21064_s7 + $0x4d0] sm:$0xff] }
 0xb98   : > { %13174 = vmatprep.subr.bf16.mxu0 %v14189_v5  ;;  %v13220_v25 = vpack.c.bf16 %v11431_v59, %v11430_v53  ;;  %v11436_v63 = vld [vmem:[%s21064_s7 + $0x4d8] sm:$0xff]  ;;  %v13268_v53 = vpack.c.bf16 %v11481_v26, %v11480_v41 }
 0xb99   : > { %v9654_v8 = vrot.slane %v20544_v40, 1  ;;  %v9739_v18 = vrot.slane %v20544_v40, 2  ;;  %v9824_v36 = vrot.slane %v20544_v40, 3  ;;  %v9909_v19 = vrot.slane %v20544_v40, 4 }
 0xb9a   : > { %v13223_v37 = vpack.c.bf16 %v11436_v63, %v11435_v32  ;;  %v9994_v20 = vrot.slane %v20544_v40, 5  ;;  %v10079_v33 = vrot.slane %v20544_v40, 6  ;;  %v10164_v43 = vrot.slane %v20544_v40, 7  ;;  %v11483_v32 = vld [vmem:[%s21064_s7 + $0x600] sm:$0xff] }
 0xb9b   : > { %13176 = vmatpush3.bf16.msra.mxu0 %v13175_v61  ;;  %v11432_v61 = vld [vmem:[%s21064_s7 + $0x4c8] sm:$0x1] }
 0xb9c   : > { %12279 = vmatprep.subr.mxu0 %v22195_v48 }
 0xb9d   : > { %v11701_v10 = vpop.f32.mrb[18].mxu0 }
 0xb9e   : > { %v11702_v28 = vpop.f32.mrb[19].mxu0 }
 0xb9f   : > { %v20563_v15 = vadd.f32 %v11702_v28, %v11701_v10  ;;  %12280 = vmatpush3.msk.msra.mxu0 %vm8211_vm15, %v11387_v3  ;;  %v11437_v3 = vld [vmem:[%s21064_s7 + $0x4e0] sm:$0xff]  ;;  %v11438_v10 = vld [vmem:[%s21064_s7 + $0x4e8] sm:$0xff]  ;;  %v11439_v28 = vld [vmem:[%s21064_s7 + $0x4f0] sm:$0xff] }
 0xba0   : > { %12282 = vmatmul.mubr.msk.f32.vlgmr.msra.gmra.mrb[20].mxu0 %vm8207_vm6, %v20544_v40  ;;  %13177 = vmatprep.subr.bf16.mxu0 %v14189_v5  ;;  %v13229_v17 = vpack.c.bf16 %v11440_v23, %v11439_v28  ;;  %v11457_v40 = vld [vmem:[%s21064_s7 + $0x560] sm:$0xff] }
 0xba1   : > { %13179 = vmatpush3.bf16.msra.mxu0 %v13178_v50  ;;  %12298 = vmatprep.mubr.msk.f32.mxu0 %vm14190_vm10, %v22195_v48  ;;  %v13226_v50 = vpack.c.bf16 %v11438_v10, %v11437_v3  ;;  %v10334_v51 = vrot.slane %v20563_v15, 1  ;;  %v10419_v59 = vrot.slane %v20563_v15, 2  ;;  %v11489_v3 = vld [vmem:[%s21064_s7 + $0x620] sm:$0xff]  ;;  %v11490_v10 = vld [vmem:[%s21064_s7 + $0x628] sm:$0xff]  ;;  %v10504_v23 = vrot.slane %v20563_v15, 3 }
 0xba2   : > { %13180 = vmatprep.subr.bf16.mxu0 %v14189_v5  ;;  %v13277_v28 = vpack.c.bf16 %v11490_v10, %v11489_v3 }
 0xba5   : > { %13182 = vmatpush3.bf16.msra.mxu0 %v13181_v1  ;;  %v11444_v1 = vld [vmem:[%s21064_s7 + $0x508] sm:$0xff] }
 0xba6   : > { %13183 = vmatprep.subr.bf16.mxu0 %v14189_v5 }
 0xba9   : > { %13185 = vmatpush3.bf16.msra.mxu0 %v13184_v0  ;;  %v13232_v0 = vpack.c.bf16 %v11445_v9, %v11444_v1  ;;  %v11492_v1 = vld [vmem:[%s21064_s7 + $0x638] sm:$0xff] }
 0xbaa   : > { %12296 = vmatprep.subr.mxu0 %v22195_v48 }
 0xbad   : > { %12297 = vmatpush3.msk.msra.mxu0 %vm8211_vm15, %v11396_v58  ;;  %v11447_v58 = vld [vmem:[%s21064_s7 + $0x520] sm:$0xff] }
 0xbae   : > { %12299 = vmatmul.mubr.msk.f32.vlgmr.msra.gmra.mrb[20].mxu0 %vm8207_vm6, %v9654_v8  ;;  %13186 = vmatprep.subr.bf16.mxu0 %v14189_v5  ;;  %v11448_v8 = vld [vmem:[%s21064_s7 + $0x528] sm:$0xff] }
 0xbaf   : > { %13188 = vmatpush3.bf16.msra.mxu0 %v13187_v55  ;;  %12315 = vmatprep.mubr.msk.f32.mxu0 %vm14190_vm10, %v22195_v48  ;;  %v13235_v55 = vpack.c.bf16 %v11447_v58, %v11446_v4  ;;  %v13238_v30 = vpack.c.bf16 %v11449_v54, %v11448_v8  ;;  %v11498_v4 = vld [vmem:[%s21064_s7 + $0x658] sm:$0xff]  ;;  %v11499_v58 = vld [vmem:[%s21064_s7 + $0x660] sm:$0xff]  ;;  %v10589_v54 = vrot.slane %v20563_v15, 4 }
 0xbb0   : > { %13189 = vmatprep.subr.bf16.mxu0 %v14189_v5  ;;  %v13286_v8 = vpack.c.bf16 %v11499_v58, %v11498_v4 }
 0xbb3   : > { %13191 = vmatpush3.bf16.msra.mxu0 %v13190_v12  ;;  %v11453_v12 = vld [vmem:[%s21064_s7 + $0x540] sm:$0xff] }
 0xbb4   : > { %13192 = vmatprep.subr.bf16.mxu0 %v14189_v5 }
 0xbb7   : > { %13194 = vmatpush3.bf16.msra.mxu0 %v13193_v22  ;;  %v13241_v22 = vpack.c.bf16 %v11454_v29, %v11453_v12  ;;  %v11501_v12 = vld [vmem:[%s21064_s7 + $0x670] sm:$0xff] }
 0xbb8   : > { %12313 = vmatprep.subr.mxu0 %v22195_v48 }
 0xbbb   : > { %12314 = vmatpush3.msk.msra.mxu0 %vm8211_vm15, %v11405_v60  ;;  %v11456_v60 = vld [vmem:[%s21064_s7 + $0x558] sm:$0xff] }
 0xbbc   : > { %12316 = vmatmul.mubr.msk.f32.vlgmr.msra.gmra.mrb[20].mxu0 %vm8207_vm6, %v9739_v18  ;;  %13195 = vmatprep.subr.bf16.mxu0 %v14189_v5  ;;  %v11458_v18 = vld [vmem:[%s21064_s7 + $0x568] sm:$0xff] }
 0xbbd   : > { %13197 = vmatpush3.bf16.msra.mxu0 %v13196_v2  ;;  %12332 = vmatprep.mubr.msk.f32.mxu0 %vm14190_vm10, %v22195_v48  ;;  %v13244_v2 = vpack.c.bf16 %v11456_v60, %v11455_v14  ;;  %v13247_v39 = vpack.c.bf16 %v11458_v18, %v11457_v40  ;;  %v11507_v14 = vld [vmem:[%s21064_s7 + $0x690] sm:$0xff]  ;;  %v11508_v60 = vld [vmem:[%s21064_s7 + $0x698] sm:$0xff]  ;;  %v10674_v18 = vrot.slane %v20563_v15, 5 }
 0xbbe   : > { %13198 = vmatprep.subr.bf16.mxu0 %v14189_v5  ;;  %v13295_v40 = vpack.c.bf16 %v11508_v60, %v11507_v14 }
 0xbc1   : > { %13200 = vmatpush3.bf16.msra.mxu0 %v13199_v7  ;;  %v11463_v7 = vld [vmem:[%s21064_s7 + $0x580] sm:$0xff] }
 0xbc2   : > { %13201 = vmatprep.subr.bf16.mxu0 %v14189_v5  ;;  %v13250_v24 = vpack.c.bf16 %v11463_v7, %v11462_v16  ;;  %v11510_v16 = vld [vmem:[%s21064_s7 + $0x6a8] sm:$0xff] }
 0xbc5   : > { %13203 = vmatpush3.bf16.msra.mxu0 %v13202_v6  ;;  %v11464_v6 = vld [vmem:[%s21064_s7 + $0x588] sm:$0xff] }
 0xbc6   : > { %12330 = vmatprep.subr.mxu0 %v22195_v48  ;;  %v13253_v57 = vpack.c.bf16 %v11465_v31, %v11464_v6  ;;  %v11516_v31 = vld [vmem:[%s21064_s7 + $0x6c8] sm:$0xff] }
 0xbc9   : > { %12331 = vmatpush3.msk.msra.mxu0 %vm8211_vm15, %v11414_v56  ;;  %v11466_v56 = vld [vmem:[%s21064_s7 + $0x598] sm:$0xff] }
 0xbca   : > { %12333 = vmatmul.mubr.msk.f32.vlgmr.msra.gmra.mrb[20].mxu0 %vm8207_vm6, %v9824_v36  ;;  %13204 = vmatprep.subr.bf16.mxu0 %v14189_v5 }
 0xbcb   : > { %13206 = vmatpush3.bf16.msra.mxu0 %v13205_v49  ;;  %12349 = vmatprep.mubr.msk.f32.mxu0 %vm14190_vm10, %v22195_v48  ;;  %v11467_v49 = vld [vmem:[%s21064_s7 + $0x5a0] sm:$0xff] }
 0xbcc   : > { %13207 = vmatprep.subr.bf16.mxu0 %v14189_v5  ;;  %v13256_v36 = vpack.c.bf16 %v11467_v49, %v11466_v56  ;;  %v11513_v56 = vld [vmem:[%s21064_s7 + $0x6c0] sm:$0x1] }
 0xbcf   : > { %13209 = vmatpush3.bf16.msra.mxu0 %v13208_v45  ;;  %v11468_v45 = vld [vmem:[%s21064_s7 + $0x5a8] sm:$0x1] }
 0xbd0   : > { %13210 = vmatprep.subr.bf16.mxu0 %v14189_v5 }
 0xbd3   : > { %13212 = vmatpush3.bf16.msra.mxu0 %v13211_v44  ;;  %v11473_v44 = vld [vmem:[%s21064_s7 + $0x5c0] sm:$0xff] }
 0xbd4   : > { %12347 = vmatprep.subr.mxu0 %v22195_v48  ;;  %v13262_v38 = vpack.c.bf16 %v11474_v42, %v11473_v44  ;;  %v11522_v42 = vld [vmem:[%s21064_s7 + $0x6f8] sm:$0x1] }
 0xbd7   : > { %12348 = vmatpush3.msk.msra.mxu0 %vm8211_vm15, %v11423_v62  ;;  %v11475_v62 = vld [vmem:[%s21064_s7 + $0x5d0] sm:$0xff] }
 0xbd8   : > { %12350 = vmatmul.mubr.msk.f32.vlgmr.msra.gmra.mrb[20].mxu0 %vm8207_vm6, %v9909_v19  ;;  %13213 = vmatprep.subr.bf16.mxu0 %v14189_v5 }
 0xbd9   : > { %13215 = vmatpush3.bf16.msra.mxu0 %v13214_v46  ;;  %12366 = vmatprep.mubr.msk.f32.mxu0 %vm14190_vm10, %v22195_v48  ;;  %v11476_v46 = vld [vmem:[%s21064_s7 + $0x5d8] sm:$0xff] }
 0xbda   : > { %13216 = vmatprep.subr.bf16.mxu0 %v14189_v5  ;;  %v13265_v19 = vpack.c.bf16 %v11476_v46, %v11475_v62  ;;  %v8199_v62 = vld [vmem:[%s21065_s8] sm:$0x1] }
 0xbdd   : > { %13218 = vmatpush3.bf16.msra.mxu0 %v13217_v52  ;;  %v11477_v52 = vld [vmem:[%s21064_s7 + $0x5e0] sm:$0x1] }
 0xbde   : > { %13219 = vmatprep.subr.bf16.mxu0 %v14189_v5 }
 0xbe1   : > { %13221 = vmatpush3.bf16.msra.mxu0 %v13220_v25  ;;  %v11482_v25 = vld [vmem:[%s21064_s7 + $0x5f8] sm:$0xff] }
 0xbe2   : > { %12364 = vmatprep.subr.mxu0 %v22195_v48  ;;  %v13271_v63 = vpack.c.bf16 %v11483_v32, %v11482_v25 }
 0xbe5   : > { %12365 = vmatpush3.msk.msra.mxu0 %vm8211_vm15, %v11432_v61  ;;  %v11484_v61 = vld [vmem:[%s21064_s7 + $0x608] sm:$0xff] }
 0xbe6   : > { %12367 = vmatmul.mubr.msk.f32.vlgmr.msra.gmra.mrb[20].mxu0 %vm8207_vm6, %v9994_v20  ;;  %13222 = vmatprep.subr.bf16.mxu0 %v14189_v5 }
 0xbe7   : > { %13224 = vmatpush3.bf16.msra.mxu0 %v13223_v37  ;;  %12383 = vmatprep.mubr.msk.f32.mxu0 %vm14190_vm10, %v22195_v48  ;;  %v11485_v37 = vld [vmem:[%s21064_s7 + $0x610] sm:$0xff] }
 0xbe8   : > { %13225 = vmatprep.subr.bf16.mxu0 %v14189_v5  ;;  %v13274_v20 = vpack.c.bf16 %v11485_v37, %v11484_v61 }
 0xbeb   : > { %13227 = vmatpush3.bf16.msra.mxu0 %v13226_v50  ;;  %v11486_v50 = vld [vmem:[%s21064_s7 + $0x618] sm:$0x1] }
 0xbec   : > { %13228 = vmatprep.subr.bf16.mxu0 %v14189_v5 }
 0xbef   : > { %13230 = vmatpush3.bf16.msra.mxu0 %v13229_v17  ;;  %v11491_v17 = vld [vmem:[%s21064_s7 + $0x630] sm:$0xff] }
 0xbf0   : > { %12381 = vmatprep.subr.mxu0 %v22195_v48  ;;  %v13280_v9 = vpack.c.bf16 %v11492_v1, %v11491_v17 }
 0xbf3   : > { %12382 = vmatpush3.msk.msra.mxu0 %vm8211_vm15, %v11441_v34  ;;  %v11493_v34 = vld [vmem:[%s21064_s7 + $0x640] sm:$0xff] }
 0xbf4   : > { %12384 = vmatmul.mubr.msk.f32.vlgmr.msra.gmra.mrb[20].mxu0 %vm8207_vm6, %v10079_v33  ;;  %13231 = vmatprep.subr.bf16.mxu0 %v14189_v5 }
 0xbf5   : > { %13233 = vmatpush3.bf16.msra.mxu0 %v13232_v0  ;;  %12400 = vmatprep.mubr.msk.f32.mxu0 %vm14190_vm10, %v22195_v48  ;;  %v11494_v0 = vld [vmem:[%s21064_s7 + $0x648] sm:$0xff] }
 0xbf6   : > { %13234 = vmatprep.subr.bf16.mxu0 %v14189_v5  ;;  %v13283_v33 = vpack.c.bf16 %v11494_v0, %v11493_v34 }
 0xbf9   : > { %13236 = vmatpush3.bf16.msra.mxu0 %v13235_v55  ;;  %v11495_v55 = vld [vmem:[%s21064_s7 + $0x650] sm:$0x1] }
 0xbfa   : > { %13237 = vmatprep.subr.bf16.mxu0 %v14189_v5 }
 0xbfd   : > { %13239 = vmatpush3.bf16.msra.mxu0 %v13238_v30  ;;  %v11500_v30 = vld [vmem:[%s21064_s7 + $0x668] sm:$0xff] }
 0xbfe   : > { %12398 = vmatprep.subr.mxu0 %v22195_v48  ;;  %v13289_v29 = vpack.c.bf16 %v11501_v12, %v11500_v30 }
 0xc01   : > { %12399 = vmatpush3.msk.msra.mxu0 %vm8211_vm15, %v11450_v47  ;;  %v11502_v47 = vld [vmem:[%s21064_s7 + $0x678] sm:$0xff] }
 0xc02   : > { %12401 = vmatmul.mubr.msk.f32.vlgmr.msra.gmra.mrb[20].mxu0 %vm8207_vm6, %v10164_v43  ;;  %13240 = vmatprep.subr.bf16.mxu0 %v14189_v5 }
 0xc03   : > { %13242 = vmatpush3.bf16.msra.mxu0 %v13241_v22  ;;  %12417 = vmatprep.mubr.msk.f32.mxu0 %vm14190_vm10, %v22195_v48  ;;  %v11503_v22 = vld [vmem:[%s21064_s7 + $0x680] sm:$0xff] }
 0xc04   : > { %13243 = vmatprep.subr.bf16.mxu0 %v14189_v5  ;;  %v13292_v43 = vpack.c.bf16 %v11503_v22, %v11502_v47 }
 0xc07   : > { %13245 = vmatpush3.bf16.msra.mxu0 %v13244_v2  ;;  %v11504_v2 = vld [vmem:[%s21064_s7 + $0x688] sm:$0x1] }
 0xc08   : > { %13246 = vmatprep.subr.bf16.mxu0 %v14189_v5 }
 0xc0b   : > { %13248 = vmatpush3.bf16.msra.mxu0 %v13247_v39  ;;  %v11509_v39 = vld [vmem:[%s21064_s7 + $0x6a0] sm:$0xff] }
 0xc0c   : > { %12415 = vmatprep.subr.mxu0 %v22195_v48  ;;  %v13298_v7 = vpack.c.bf16 %v11510_v16, %v11509_v39 }
 0xc0f   : > { %12416 = vmatpush3.msk.msra.mxu0 %vm8211_vm15, %v11459_v11  ;;  %v11511_v11 = vld [vmem:[%s21064_s7 + $0x6b0] sm:$0xff] }
 0xc10   : > { %12418 = vmatmul.mubr.msk.f32.vlgmr.msra.gmra.mrb[20].mxu0 %vm8207_vm6, %v20563_v15  ;;  %13249 = vmatprep.subr.bf16.mxu0 %v14189_v5 }
 0xc11   : > { %13251 = vmatpush3.bf16.msra.mxu0 %v13250_v24  ;;  %12434 = vmatprep.mubr.msk.f32.mxu0 %vm14190_vm10, %v22195_v48  ;;  %v11512_v24 = vld [vmem:[%s21064_s7 + $0x6b8] sm:$0xff] }
 0xc12   : > { %13252 = vmatprep.subr.bf16.mxu0 %v14189_v5  ;;  %v13301_v6 = vpack.c.bf16 %v11512_v24, %v11511_v11 }
 0xc15   : > { %13254 = vmatpush3.bf16.msra.mxu0 %v13253_v57  ;;  %v11517_v57 = vld [vmem:[%s21064_s7 + $0x6d0] sm:$0xff] }
 0xc16   : > { %13255 = vmatprep.subr.bf16.mxu0 %v14189_v5  ;;  %v13304_v49 = vpack.c.bf16 %v11517_v57, %v11516_v31 }
 0xc19   : > { %13257 = vmatpush3.bf16.msra.mxu0 %v13256_v36  ;;  %v10759_v36 = vrot.slane %v20563_v15, 6 }
 0xc1a   : > { %12432 = vmatprep.subr.mxu0 %v22195_v48 }
 0xc1d   : > { %12433 = vmatpush3.msk.msra.mxu0 %vm8211_vm15, %v11468_v45  ;;  %v13307_v45 = vpack.c.bf16 %v11519_v21, %v11518_v27 }
 0xc1e   : > { %12435 = vmatmul.mubr.msk.f32.vlgmr.msra.gmra.mrb[20].mxu0 %vm8207_vm6, %v10334_v51  ;;  %13258 = vmatprep.subr.bf16.mxu0 %v14189_v5  ;;  %v11521_v51 = vld [vmem:[%s21064_s7 + $0x6f0] sm:$0xff] }
 0xc1f   : > { %13260 = vmatpush3.bf16.msra.mxu0 %v13259_v35  ;;  %12451 = vmatprep.mubr.msk.f32.mxu0 %vm14190_vm10, %v22195_v48  ;;  %v11520_v35 = vld [vmem:[%s21064_s7 + $0x6e8] sm:$0xff] }
 0xc20   : > { %13261 = vmatprep.subr.bf16.mxu0 %v14189_v5  ;;  %v13310_v44 = vpack.c.bf16 %v11521_v51, %v11520_v35 }
 0xc23   : > { %13263 = vmatpush3.bf16.msra.mxu0 %v13262_v38  ;;  %v10844_v38 = vrot.slane %v20563_v15, 7 }
 0xc24   : > { %13264 = vmatprep.subr.bf16.mxu0 %v14189_v5 }
 0xc27   : > { %13266 = vmatpush3.bf16.msra.mxu0 %v13265_v19 }
 0xc28   : > { %12449 = vmatprep.subr.mxu0 %v22195_v48 }
 0xc2b   : > { %12450 = vmatpush3.msk.msra.mxu0 %vm8211_vm15, %v11477_v52 }
 0xc2c   : > { %12452 = vmatmul.mubr.msk.f32.vlgmr.msra.gmra.mrb[20].mxu0 %vm8207_vm6, %v10419_v59  ;;  %13267 = vmatprep.subr.bf16.mxu0 %v14189_v5 }
 0xc2d   : > { %13269 = vmatpush3.bf16.msra.mxu0 %v13268_v53  ;;  %12468 = vmatprep.mubr.msk.f32.mxu0 %vm14190_vm10, %v22195_v48 }
 0xc2e   : > { %13270 = vmatprep.subr.bf16.mxu0 %v14189_v5 }
 0xc31   : > { %13272 = vmatpush3.bf16.msra.mxu0 %v13271_v63 }
 0xc32   : > { %13273 = vmatprep.subr.bf16.mxu0 %v14189_v5 }
 0xc35   : > { %13275 = vmatpush3.bf16.msra.mxu0 %v13274_v20 }
 0xc36   : > { %12466 = vmatprep.subr.mxu0 %v22195_v48 }
 0xc39   : > { %12467 = vmatpush3.msk.msra.mxu0 %vm8211_vm15, %v11486_v50 }
 0xc3a   : > { %12469 = vmatmul.mubr.msk.f32.vlgmr.msra.gmra.mrb[20].mxu0 %vm8207_vm6, %v10504_v23  ;;  %13276 = vmatprep.subr.bf16.mxu0 %v14189_v5 }
 0xc3b   : > { %13278 = vmatpush3.bf16.msra.mxu0 %v13277_v28  ;;  %12485 = vmatprep.mubr.msk.f32.mxu0 %vm14190_vm10, %v22195_v48 }
 0xc3c   : > { %13279 = vmatprep.subr.bf16.mxu0 %v14189_v5 }
 0xc3f   : > { %13281 = vmatpush3.bf16.msra.mxu0 %v13280_v9 }
 0xc40   : > { %13282 = vmatprep.subr.bf16.mxu0 %v14189_v5 }
 0xc43   : > { %13284 = vmatpush3.bf16.msra.mxu0 %v13283_v33 }
 0xc44   : > { %12483 = vmatprep.subr.mxu0 %v22195_v48 }
 0xc47   : > { %12484 = vmatpush3.msk.msra.mxu0 %vm8211_vm15, %v11495_v55 }
 0xc48   : > { %12486 = vmatmul.mubr.msk.f32.vlgmr.msra.gmra.mrb[20].mxu0 %vm8207_vm6, %v10589_v54  ;;  %13285 = vmatprep.subr.bf16.mxu0 %v14189_v5 }
 0xc49   : > { %13287 = vmatpush3.bf16.msra.mxu0 %v13286_v8  ;;  %12502 = vmatprep.mubr.msk.f32.mxu0 %vm14190_vm10, %v22195_v48 }
 0xc4a   : > { %13288 = vmatprep.subr.bf16.mxu0 %v14189_v5 }
 0xc4d   : > { %13290 = vmatpush3.bf16.msra.mxu0 %v13289_v29 }
 0xc4e   : > { %13291 = vmatprep.subr.bf16.mxu0 %v14189_v5 }
 0xc51   : > { %13293 = vmatpush3.bf16.msra.mxu0 %v13292_v43 }
 0xc52   : > { %12500 = vmatprep.subr.mxu0 %v22195_v48 }
 0xc55   : > { %12501 = vmatpush3.msk.msra.mxu0 %vm8211_vm15, %v11504_v2 }
 0xc56   : > { %12503 = vmatmul.mubr.msk.f32.vlgmr.msra.gmra.mrb[20].mxu0 %vm8207_vm6, %v10674_v18  ;;  %13294 = vmatprep.subr.bf16.mxu0 %v14189_v5 }
 0xc57   : > { %13296 = vmatpush3.bf16.msra.mxu0 %v13295_v40  ;;  %12519 = vmatprep.mubr.msk.f32.mxu0 %vm14190_vm10, %v22195_v48 }
 0xc58   : > { %13297 = vmatprep.subr.bf16.mxu0 %v14189_v5 }
 0xc5b   : > { %13299 = vmatpush3.bf16.msra.mxu0 %v13298_v7 }
 0xc5c   : > { %13300 = vmatprep.subr.bf16.mxu0 %v14189_v5 }
 0xc5f   : > { %13302 = vmatpush3.bf16.msra.mxu0 %v13301_v6 }
 0xc60   : > { %12517 = vmatprep.subr.mxu0 %v22195_v48 }
 0xc63   : > { %12518 = vmatpush3.msk.msra.mxu0 %vm8211_vm15, %v11513_v56 }
 0xc64   : > { %12520 = vmatmul.mubr.msk.f32.vlgmr.msra.gmra.mrb[20].mxu0 %vm8207_vm6, %v10759_v36  ;;  %13303 = vmatprep.subr.bf16.mxu0 %v14189_v5 }
 0xc65   : > { %13305 = vmatpush3.bf16.msra.mxu0 %v13304_v49  ;;  %12536 = vmatprep.mubr.msk.f32.mxu0 %vm14190_vm10, %v22195_v48 }
 0xc66   : > { %13306 = vmatprep.subr.bf16.mxu0 %v14189_v5 }
 0xc69   : > { %13308 = vmatpush3.bf16.msra.mxu0 %v13307_v45 }
 0xc6a   : > { %13309 = vmatprep.subr.bf16.mxu0 %v14189_v5 }
 0xc6d   : > { %13311 = vmatpush3.bf16.msra.mxu0 %v13310_v44 }
 0xc6e   : > { %12534 = vmatprep.subr.mxu0 %v22195_v48  ;;  %v8285_v48 = vadd.f32 %v20422_v13, %v8199_v62 }
 0xc71   : > { %12535 = vmatpush3.msk.msra.mxu0 %vm8211_vm15, %v11522_v42 }
 0xc72   : > { %12537 = vmatmul.mubr.msk.f32.vlgmr.msra.gmra.mrb[20].mxu0 %vm8207_vm6, %v10844_v38 }
 0xd45   : > { %v10916_v5 = vpop.f32.mrb[20].mxu0 }
 0xd46   : > { %v13329_v46 = vadd.f32 %v10916_v5, %v8285_v48  ;;  %v12538_v19 = vpop.f32.mrb[21].mxu0 }
 0xd48   : > { %10922 = vst.msk [vmem:[%s322_s27] sm:$0x1] %vm10921_vm3, %v13329_v46 }
 0xd49   : > { %14097 = shalt.err (!%p14094_p3)
}
 0xd4a   : > { %s14098_s21 = scalar_lea.hbm %s21015_s22, 16  ;;  %s14102_s9 = scalar_lea.hbm %s22239_s29, 32 }
 0xd4b   : > { %p14099_p4 = scmp.ne.s32.totalorder %s21015_s22, %s14098_s21  ;;  %p14103_p9 = scmp.lt.u32.totalorder %s21015_s22, %s22239_s29 }
 0xd4c   : > { %p14104_p10 = scmp.lt.u32.totalorder %s14102_s9, %s14098_s21  ;;  %p14106_p12 = scmp.lt.u32.totalorder %s14098_s21, %s21015_s22 }
 0xd4d   : > { %p14100_p7 = pnand %p14099_p4, %p14280_p5 }
 0xd4e   : > { %p14105_p11 = por %p14104_p10, %p14103_p9 }
 0xd4f   : > { %p14101_p8 = pneg %p14100_p7 }
 0xd50   : > { %p14107_p13 = por %p14106_p12, %p14105_p11 }
 0xd52   : > { %p14108_p0 = pnand %p14107_p13, %p14101_p8 }
 0xd54   : > { %14111 = shalt.err (!%p14108_p0)
}
 0xd55   : > { %13579 = dma.vmem_to_hbm [thread:$0]  (%p14280_p5), %s21017_s30, 16, %s21015_s22, %s10924_s13  }
 0xd56 PF: > { %s22240_s15 = sld [smem:[#allocation10_spill]]  ;;  %s22241_s20 = sld [smem:[#allocation8_spill]] }
 0xd5c   : > { %p13585_p1 = scmp.ge.s32.totalorder %s22240_s15, 2  ;;  %s10948_s26 = sand.u32 1, %s22241_s20  }
 0xd5d   : > { %s10949_s14 = scalar_lea.sflag [#allocation6], %s10948_s26 }
 0xd5e   : > { %p13582_p2 = pnand %p13585_p1, %p14284_p6 }
 0xd60   : > { %14129 = dma.done.wait (!%p13582_p2), %s10949_s14, 16  }
 0xd61   : > { %14131 = vsyncadd (!%p13582_p2), %s10949_s14, 4294967280  ;;  %s22243_s12 = sld [smem:[#allocation11_spill]]  ;;  %s22244_s27 = sld [smem:[#allocation9_spill]] }
 0xd62   : > { %s22245_s11 = sld [smem:[#allocation12_spill]]  ;;  %s22246_s30 = smov %s14138_s10 }
 0xd67   : > { %p19_p3 = scmp.ge.s32.totalorder %s22243_s12, 4   ;;  %s22247_s10 = smov %s22244_s27 }
 0xd69   :  { %21 = sbr.rel (!%p19_p3) target bundleno = 7 (0x7), region = 170 }
 0xd70   :  { %10953 = vsyncpa [#allocation6], 1 }
 0xd71   :  { %10955 = vsyncpa [#allocation6 + $0x1], 1 }

</bundles_post_ra>
